<compile_context>
chip_gen: v6e
topology: v6e:2x2x1
jax: 0.10.0
libtpu: 0.0.40
codegen_flags: <defaults>
</compile_context>

<pallas_src>
import functools

import jax
import jax.numpy as jnp
from jax.experimental import pallas as pl
from jax.experimental.pallas import tpu as pltpu

# ---- model constants (Mnist_CNN_large, MNIST 1x28x28) ----
KH = KW = 4
STRIDE = 2
PAD = 1
C_OUT = 8
OH = OW = 14
NTAP = KH * KW          # 16 taps (single input channel)
HID = 64
NCLS = 10
OUT_PAD = 128           # lane-dense padded output width

# ---- phase-plane / frame layout constants ----
PH = PW = 15            # each stride-2 phase plane of the padded 30x30 image is 15x15
PHASE_W = 256           # lane-padded flattened phase width (>= PH*PW = 225)
FRAME = OH * PW         # 210: conv position q = 15*oh + ow (rows where ow==14 are dead)


# ---------------- fused Pallas kernel ----------------

def fused_kernel(ph_ref, cw_ref, cb_ref, w1_ref, b1_ref, w2_ref, b2_ref,
                 o_ref, taps_ref, acc_ref):
    # ph_ref:   (4, tile_n, 256) VMEM   stride-2 phase planes (lane-padded)
    # cw_ref:   (8, 16)  SMEM           conv weight (scalar broadcast MACs)
    # cb_ref:   (8,)     SMEM           conv bias
    # w1_ref:   (8, 210, 64) VMEM       fc1 weight in the 15-wide frame order
    # b1_ref:   (1, 64)  VMEM
    # w2_ref:   (64, 128) VMEM          fc2 weight, padded to 128 lanes
    # b2_ref:   (1, 128) VMEM
    # o_ref:    (tile_n, 128) VMEM
    # taps_ref: (16, tile_n, 210) VMEM  scratch: rebuilt lane-dense tap slabs
    # acc_ref:  (tile_n, 64) VMEM       scratch: fc1 partial-sum accumulator

    # Stage 1: rebuild the 16 tap slabs from the 4 phase planes.  Tap (kh, kw)
    # is phase plane 2*(kh%2)+(kw%2) shifted by 15*(kh//2)+(kw//2) lanes — a
    # static lane-offset slice.  Done once per grid step, reused by all 8
    # output channels; lanes where ow == 14 carry junk but hit zero fc1 rows.
    for k in range(NTAP):
        kh, kw = k // KW, k % KW
        p = 2 * (kh % 2) + (kw % 2)           # phase plane index
        s = PW * (kh // 2) + (kw // 2)        # lane shift in {0, 1, 15, 16}
        taps_ref[k] = ph_ref[p, :, s:s + FRAME]

    # Stage 2: per output channel, conv on the VPU (16 scalar-broadcast MACs)
    # immediately followed by its fc1 partial matmul on the MXU, accumulated
    # into the VMEM scratch (keeps the (tile_n, 64) partial out of vregs).
    acc_ref[...] = jnp.zeros_like(acc_ref)
    for c in range(C_OUT):
        conv_c = cw_ref[c, 0] * taps_ref[0]
        for k in range(1, NTAP):
            conv_c = conv_c + cw_ref[c, k] * taps_ref[k]
        conv_c = jnp.maximum(conv_c + cb_ref[c], 0.0)           # (tile_n, 210)
        acc_ref[...] += jnp.dot(conv_c.astype(w1_ref.dtype), w1_ref[c],
                                preferred_element_type=jnp.float32)

    # Stage 3: fc1 bias + ReLU, then fc2 into a lane-dense 128-wide output.
    h = jnp.maximum(acc_ref[...] + b1_ref[...], 0.0)            # (tile_n, 64)
    o_ref[...] = (
        jnp.dot(h, w2_ref[...], preferred_element_type=jnp.float32) + b2_ref[...]
    )


# ---------------- wrapper / glue ----------------

def prepare_params(params, fc1_dtype=jnp.float32):
    """One-time parameter preprocessing (hoisted out of forward).

    fc1_dtype=jnp.bfloat16 enables the opt-in bf16 fc1 matmul (v6e/v7x MXU
    win, slightly different numerics); default f32 matches PyTorch exactly.
    """
    conv_w, conv_b, fc1_w, fc1_b, fc2_w, fc2_b = params
    cw = conv_w.reshape(C_OUT, NTAP).astype(jnp.float32)               # (8, 16)
    cb = conv_b.astype(jnp.float32)                                    # (8,)
    # fc1_w is (64, 1568) with inputs in CHW order: f = c*196 + oh*14 + ow.
    w1 = fc1_w.T.reshape(C_OUT, OH, OW, HID).astype(jnp.float32)       # (8,14,14,64)
    # Embed into the 15-wide frame (row q = 15*oh + ow); ow==14 rows are zero,
    # so the junk lanes of the in-kernel frame contribute nothing.
    w1f = jnp.zeros((C_OUT, OH, PW, HID), jnp.float32).at[:, :, :OW, :].set(w1)
    w1f = w1f.reshape(C_OUT, FRAME, HID).astype(fc1_dtype)             # (8, 210, 64)
    b1 = fc1_b.reshape(1, HID).astype(jnp.float32)
    w2 = jnp.zeros((HID, OUT_PAD), jnp.float32).at[:, :NCLS].set(
        fc2_w.T.astype(jnp.float32))
    b2 = jnp.zeros((1, OUT_PAD), jnp.float32).at[:, :NCLS].set(
        fc2_b.astype(jnp.float32))
    return cw, cb, w1f, b1, w2, b2


def make_phases(x):
    """(N, 1, 28, 28) -> (4, N, 256) flattened stride-2 phase planes.

    Phase p = 2*r + c holds xpad[:, r::2, c::2] (15x15, ~4 KiB/sample total),
    flattened so lane u = 15*i + j and lane-padded to 256.  Conv tap (kh, kw)
    is then phase[2*(kh%2)+(kw%2)] lane-shifted by 15*(kh//2) + (kw//2).
    """
    n = x.shape[0]
    xp = jnp.pad(x[:, 0].astype(jnp.float32), ((0, 0), (PAD, PAD), (PAD, PAD)))
    planes = [xp[:, r::2, c::2] for r in range(2) for c in range(2)]   # (N,15,15) x4
    ph = jnp.stack(planes, axis=0).reshape(4, n, PH * PW)              # (4, N, 225)
    return jnp.pad(ph, ((0, 0), (0, 0), (0, PHASE_W - PH * PW)))       # (4, N, 256)


def pick_tile_n(n, max_tile=256):
    """Largest batch tile (multiple of 8, capped at 256) giving >= 2 grid steps.

    >= 2 steps keeps both v7x TensorCores busy under the parallel grid axis;
    the 256 cap keeps double-buffered blocks well under the scoped-VMEM
    default on v5e (16 MiB) / v6e / v7x (32 MiB).
    """
    half = -(-n // 2)
    half = -(-half // 8) * 8
    return int(min(max_tile, max(8, half)))


@functools.partial(jax.jit, static_argnames=("tile_n",))
def forward(x, prepped, tile_n=256):
    cw, cb, w1, b1, w2, b2 = prepped
    n = x.shape[0]
    phases = make_phases(x)                                            # (4, N, 256)

    n_pad = -(-n // tile_n) * tile_n
    if n_pad != n:
        phases = jnp.pad(phases, ((0, 0), (0, n_pad - n), (0, 0)))
    grid = (n_pad // tile_n,)

    out = pl.pallas_call(
        fused_kernel,
        out_shape=jax.ShapeDtypeStruct((n_pad, OUT_PAD), jnp.float32),
        grid=grid,
        in_specs=[
            pl.BlockSpec((4, tile_n, PHASE_W), lambda i: (0, i, 0)),       # phases
            pl.BlockSpec(memory_space=pltpu.MemorySpace.SMEM),             # conv w
            pl.BlockSpec(memory_space=pltpu.MemorySpace.SMEM),             # conv b
            pl.BlockSpec((C_OUT, FRAME, HID), lambda i: (0, 0, 0)),        # fc1 w
            pl.BlockSpec((1, HID), lambda i: (0, 0)),                      # fc1 b
            pl.BlockSpec((HID, OUT_PAD), lambda i: (0, 0)),                # fc2 w
            pl.BlockSpec((1, OUT_PAD), lambda i: (0, 0)),                  # fc2 b
        ],
        out_specs=pl.BlockSpec((tile_n, OUT_PAD), lambda i: (i, 0)),
        scratch_shapes=[
            pltpu.VMEM((NTAP, tile_n, FRAME), jnp.float32),   # rebuilt tap slabs
            pltpu.VMEM((tile_n, HID), jnp.float32),           # fc1 accumulator
        ],
        compiler_params=pltpu.CompilerParams(
            dimension_semantics=("parallel",),
            vmem_limit_bytes=32 * 1024 * 1024),                # headroom, ~7 MiB used
    )(phases, cw, cb, w1, b1, w2, b2)

    return out[:n, :NCLS]


# ---------------- pure-JAX reference (real conv semantics) ----------------

def reference(x, params):
    conv_w, conv_b, fc1_w, fc1_b, fc2_w, fc2_b = params
    hp = jax.lax.Precision.HIGHEST
    out = jax.lax.conv_general_dilated(
        x, conv_w, window_strides=(STRIDE, STRIDE),
        padding=((PAD, PAD), (PAD, PAD)),
        dimension_numbers=("NCHW", "OIHW", "NCHW"), precision=hp)
    out = jnp.maximum(out + conv_b[None, :, None, None], 0.0)          # (N, 8, 14, 14)
    flat = out.reshape(x.shape[0], -1)                                 # CHW flatten
    h = jnp.maximum(jnp.dot(flat, fc1_w.T, precision=hp) + fc1_b, 0.0)
    return jnp.dot(h, fc2_w.T, precision=hp) + fc2_b


if __name__ == "__main__":
    key = jax.random.PRNGKey(0)
    ks = jax.random.split(key, 7)
    # Mnist_CNN_large parameter shapes
    conv_w = jax.random.normal(ks[0], (8, 1, 4, 4), jnp.float32) * 0.1
    conv_b = jax.random.normal(ks[1], (8,), jnp.float32) * 0.1
    fc1_w = jax.random.normal(ks[2], (64, 8 * 14 * 14), jnp.float32) * 0.02
    fc1_b = jax.random.normal(ks[3], (64,), jnp.float32) * 0.02
    fc2_w = jax.random.normal(ks[4], (10, 64), jnp.float32) * 0.05
    fc2_b = jax.random.normal(ks[5], (10,), jnp.float32) * 0.05
    params = (conv_w, conv_b, fc1_w, fc1_b, fc2_w, fc2_b)

    # MNIST-shaped input (1x28x28 is required by the hardcoded 8*14*14 fc).
    N = 64
    x = jax.random.normal(ks[6], (N, 1, 28, 28), jnp.float32)
    tile_n = pick_tile_n(N)     # -> 32 here: keeps 2 parallel grid steps at this demo batch

    ref = reference(x, params)

    # Default f32 path: matches the PyTorch module's numerics.
    prepped = prepare_params(params)
    out = jax.block_until_ready(forward(x, prepped, tile_n=tile_n))
    assert out.shape == (N, NCLS)
    max_err = float(jnp.max(jnp.abs(out - ref)))
    assert jnp.allclose(out, ref, atol=1e-3, rtol=1e-3), (
        f"f32 mismatch vs reference, max abs err={max_err}")

    # Opt-in bf16 fc1 path (v6e/v7x MXU win); intentionally looser tolerance.
    prepped_bf16 = prepare_params(params, fc1_dtype=jnp.bfloat16)
    out_bf16 = jax.block_until_ready(forward(x, prepped_bf16, tile_n=tile_n))
    max_err_bf16 = float(jnp.max(jnp.abs(out_bf16 - ref)))
    assert max_err_bf16 < 2e-2, (
        f"bf16-fc1 mismatch vs reference, max abs err={max_err_bf16}")

    print("KERNEL_OK")
</pallas_src>

<mosaic_0001>
module attributes {stable_mosaic.version = 11 : i64} {
  func.func @fused_kernel(%arg0: i32, %arg1: memref<4x32x256xf32, #tpu.memory_space<vmem>>, %arg2: memref<8x16xf32, #tpu.memory_space<smem>>, %arg3: memref<8xf32, #tpu.memory_space<smem>>, %arg4: memref<8x210x64xf32, #tpu.memory_space<vmem>>, %arg5: memref<1x64xf32, #tpu.memory_space<vmem>>, %arg6: memref<64x128xf32, #tpu.memory_space<vmem>>, %arg7: memref<1x128xf32, #tpu.memory_space<vmem>>, %arg8: memref<32x128xf32, #tpu.memory_space<vmem>>, %arg9: memref<16x32x210xf32, #tpu.memory_space<vmem>>, %arg10: memref<32x64xf32, #tpu.memory_space<vmem>>) attributes {dimension_semantics = [#tpu.dimension_semantics<parallel>], iteration_bounds = array<i64: 2>, scalar_prefetch = 0 : i64, scratch_operands = 2 : i64, tpu.core_type = #tpu.core_type<tc>, window_params = [{transform_indices = @transform_0, window_bounds = array<i64: 4, 32, 256>}, {transform_indices = @transform_1, window_bounds = array<i64: 8, 16>}, {transform_indices = @transform_2, window_bounds = array<i64: 8>}, {pipeline_mode = #tpu.pipeline_mode<synchronous>, transform_indices = @transform_3, window_bounds = array<i64: 8, 210, 64>}, {pipeline_mode = #tpu.pipeline_mode<synchronous>, transform_indices = @transform_4, window_bounds = array<i64: 1, 64>}, {pipeline_mode = #tpu.pipeline_mode<synchronous>, transform_indices = @transform_5, window_bounds = array<i64: 64, 128>}, {pipeline_mode = #tpu.pipeline_mode<synchronous>, transform_indices = @transform_6, window_bounds = array<i64: 1, 128>}, {transform_indices = @transform_7, window_bounds = array<i64: 32, 128>}]} {
    %c0 = arith.constant 0 : index
    %c0_0 = arith.constant 0 : index
    %c0_1 = arith.constant 0 : index
    %0 = vector.load %arg1[%c0, %c0_0, %c0_1] : memref<4x32x256xf32, #tpu.memory_space<vmem>>, vector<1x32x210xf32>
    %1 = vector.shape_cast %0 : vector<1x32x210xf32> to vector<32x210xf32>
    %c0_2 = arith.constant 0 : index
    %c0_3 = arith.constant 0 : index
    %c0_4 = arith.constant 0 : index
    %2 = vector.load %arg9[%c0_2, %c0_3, %c0_4] : memref<16x32x210xf32, #tpu.memory_space<vmem>>, vector<1x32x210xf32>
    %3 = vector.shape_cast %2 : vector<1x32x210xf32> to vector<32x210xf32>
    %4 = vector.shape_cast %1 : vector<32x210xf32> to vector<1x32x210xf32>
    tpu.vector_store %arg9[%c0_2, %c0_3, %c0_4], %4 {strides = array<i32>} : memref<16x32x210xf32, #tpu.memory_space<vmem>>, vector<1x32x210xf32>,
    %c1 = arith.constant 1 : index
    %c0_5 = arith.constant 0 : index
    %c0_6 = arith.constant 0 : index
    %5 = vector.load %arg1[%c1, %c0_5, %c0_6] : memref<4x32x256xf32, #tpu.memory_space<vmem>>, vector<1x32x210xf32>
    %6 = vector.shape_cast %5 : vector<1x32x210xf32> to vector<32x210xf32>
    %c1_7 = arith.constant 1 : index
    %c0_8 = arith.constant 0 : index
    %c0_9 = arith.constant 0 : index
    %7 = vector.load %arg9[%c1_7, %c0_8, %c0_9] : memref<16x32x210xf32, #tpu.memory_space<vmem>>, vector<1x32x210xf32>
    %8 = vector.shape_cast %7 : vector<1x32x210xf32> to vector<32x210xf32>
    %9 = vector.shape_cast %6 : vector<32x210xf32> to vector<1x32x210xf32>
    tpu.vector_store %arg9[%c1_7, %c0_8, %c0_9], %9 {strides = array<i32>} : memref<16x32x210xf32, #tpu.memory_space<vmem>>, vector<1x32x210xf32>,
    %c0_10 = arith.constant 0 : index
    %c0_11 = arith.constant 0 : index
    %c1_12 = arith.constant 1 : index
    %10 = vector.load %arg1[%c0_10, %c0_11, %c1_12] : memref<4x32x256xf32, #tpu.memory_space<vmem>>, vector<1x32x210xf32>
    %11 = vector.shape_cast %10 : vector<1x32x210xf32> to vector<32x210xf32>
    %c2 = arith.constant 2 : index
    %c0_13 = arith.constant 0 : index
    %c0_14 = arith.constant 0 : index
    %12 = vector.load %arg9[%c2, %c0_13, %c0_14] : memref<16x32x210xf32, #tpu.memory_space<vmem>>, vector<1x32x210xf32>
    %13 = vector.shape_cast %12 : vector<1x32x210xf32> to vector<32x210xf32>
    %14 = vector.shape_cast %11 : vector<32x210xf32> to vector<1x32x210xf32>
    tpu.vector_store %arg9[%c2, %c0_13, %c0_14], %14 {strides = array<i32>} : memref<16x32x210xf32, #tpu.memory_space<vmem>>, vector<1x32x210xf32>,
    %c1_15 = arith.constant 1 : index
    %c0_16 = arith.constant 0 : index
    %c1_17 = arith.constant 1 : index
    %15 = vector.load %arg1[%c1_15, %c0_16, %c1_17] : memref<4x32x256xf32, #tpu.memory_space<vmem>>, vector<1x32x210xf32>
    %16 = vector.shape_cast %15 : vector<1x32x210xf32> to vector<32x210xf32>
    %c3 = arith.constant 3 : index
    %c0_18 = arith.constant 0 : index
    %c0_19 = arith.constant 0 : index
    %17 = vector.load %arg9[%c3, %c0_18, %c0_19] : memref<16x32x210xf32, #tpu.memory_space<vmem>>, vector<1x32x210xf32>
    %18 = vector.shape_cast %17 : vector<1x32x210xf32> to vector<32x210xf32>
    %19 = vector.shape_cast %16 : vector<32x210xf32> to vector<1x32x210xf32>
    tpu.vector_store %arg9[%c3, %c0_18, %c0_19], %19 {strides = array<i32>} : memref<16x32x210xf32, #tpu.memory_space<vmem>>, vector<1x32x210xf32>,
    %c2_20 = arith.constant 2 : index
    %c0_21 = arith.constant 0 : index
    %c0_22 = arith.constant 0 : index
    %20 = vector.load %arg1[%c2_20, %c0_21, %c0_22] : memref<4x32x256xf32, #tpu.memory_space<vmem>>, vector<1x32x210xf32>
    %21 = vector.shape_cast %20 : vector<1x32x210xf32> to vector<32x210xf32>
    %c4 = arith.constant 4 : index
    %c0_23 = arith.constant 0 : index
    %c0_24 = arith.constant 0 : index
    %22 = vector.load %arg9[%c4, %c0_23, %c0_24] : memref<16x32x210xf32, #tpu.memory_space<vmem>>, vector<1x32x210xf32>
    %23 = vector.shape_cast %22 : vector<1x32x210xf32> to vector<32x210xf32>
    %24 = vector.shape_cast %21 : vector<32x210xf32> to vector<1x32x210xf32>
    tpu.vector_store %arg9[%c4, %c0_23, %c0_24], %24 {strides = array<i32>} : memref<16x32x210xf32, #tpu.memory_space<vmem>>, vector<1x32x210xf32>,
    %c3_25 = arith.constant 3 : index
    %c0_26 = arith.constant 0 : index
    %c0_27 = arith.constant 0 : index
    %25 = vector.load %arg1[%c3_25, %c0_26, %c0_27] : memref<4x32x256xf32, #tpu.memory_space<vmem>>, vector<1x32x210xf32>
    %26 = vector.shape_cast %25 : vector<1x32x210xf32> to vector<32x210xf32>
    %c5 = arith.constant 5 : index
    %c0_28 = arith.constant 0 : index
    %c0_29 = arith.constant 0 : index
    %27 = vector.load %arg9[%c5, %c0_28, %c0_29] : memref<16x32x210xf32, #tpu.memory_space<vmem>>, vector<1x32x210xf32>
    %28 = vector.shape_cast %27 : vector<1x32x210xf32> to vector<32x210xf32>
    %29 = vector.shape_cast %26 : vector<32x210xf32> to vector<1x32x210xf32>
    tpu.vector_store %arg9[%c5, %c0_28, %c0_29], %29 {strides = array<i32>} : memref<16x32x210xf32, #tpu.memory_space<vmem>>, vector<1x32x210xf32>,
    %c2_30 = arith.constant 2 : index
    %c0_31 = arith.constant 0 : index
    %c1_32 = arith.constant 1 : index
    %30 = vector.load %arg1[%c2_30, %c0_31, %c1_32] : memref<4x32x256xf32, #tpu.memory_space<vmem>>, vector<1x32x210xf32>
    %31 = vector.shape_cast %30 : vector<1x32x210xf32> to vector<32x210xf32>
    %c6 = arith.constant 6 : index
    %c0_33 = arith.constant 0 : index
    %c0_34 = arith.constant 0 : index
    %32 = vector.load %arg9[%c6, %c0_33, %c0_34] : memref<16x32x210xf32, #tpu.memory_space<vmem>>, vector<1x32x210xf32>
    %33 = vector.shape_cast %32 : vector<1x32x210xf32> to vector<32x210xf32>
    %34 = vector.shape_cast %31 : vector<32x210xf32> to vector<1x32x210xf32>
    tpu.vector_store %arg9[%c6, %c0_33, %c0_34], %34 {strides = array<i32>} : memref<16x32x210xf32, #tpu.memory_space<vmem>>, vector<1x32x210xf32>,
    %c3_35 = arith.constant 3 : index
    %c0_36 = arith.constant 0 : index
    %c1_37 = arith.constant 1 : index
    %35 = vector.load %arg1[%c3_35, %c0_36, %c1_37] : memref<4x32x256xf32, #tpu.memory_space<vmem>>, vector<1x32x210xf32>
    %36 = vector.shape_cast %35 : vector<1x32x210xf32> to vector<32x210xf32>
    %c7 = arith.constant 7 : index
    %c0_38 = arith.constant 0 : index
    %c0_39 = arith.constant 0 : index
    %37 = vector.load %arg9[%c7, %c0_38, %c0_39] : memref<16x32x210xf32, #tpu.memory_space<vmem>>, vector<1x32x210xf32>
    %38 = vector.shape_cast %37 : vector<1x32x210xf32> to vector<32x210xf32>
    %39 = vector.shape_cast %36 : vector<32x210xf32> to vector<1x32x210xf32>
    tpu.vector_store %arg9[%c7, %c0_38, %c0_39], %39 {strides = array<i32>} : memref<16x32x210xf32, #tpu.memory_space<vmem>>, vector<1x32x210xf32>,
    %c0_40 = arith.constant 0 : index
    %c0_41 = arith.constant 0 : index
    %c15 = arith.constant 15 : index
    %40 = vector.load %arg1[%c0_40, %c0_41, %c15] : memref<4x32x256xf32, #tpu.memory_space<vmem>>, vector<1x32x210xf32>
    %41 = vector.shape_cast %40 : vector<1x32x210xf32> to vector<32x210xf32>
    %c8 = arith.constant 8 : index
    %c0_42 = arith.constant 0 : index
    %c0_43 = arith.constant 0 : index
    %42 = vector.load %arg9[%c8, %c0_42, %c0_43] : memref<16x32x210xf32, #tpu.memory_space<vmem>>, vector<1x32x210xf32>
    %43 = vector.shape_cast %42 : vector<1x32x210xf32> to vector<32x210xf32>
    %44 = vector.shape_cast %41 : vector<32x210xf32> to vector<1x32x210xf32>
    tpu.vector_store %arg9[%c8, %c0_42, %c0_43], %44 {strides = array<i32>} : memref<16x32x210xf32, #tpu.memory_space<vmem>>, vector<1x32x210xf32>,
    %c1_44 = arith.constant 1 : index
    %c0_45 = arith.constant 0 : index
    %c15_46 = arith.constant 15 : index
    %45 = vector.load %arg1[%c1_44, %c0_45, %c15_46] : memref<4x32x256xf32, #tpu.memory_space<vmem>>, vector<1x32x210xf32>
    %46 = vector.shape_cast %45 : vector<1x32x210xf32> to vector<32x210xf32>
    %c9 = arith.constant 9 : index
    %c0_47 = arith.constant 0 : index
    %c0_48 = arith.constant 0 : index
    %47 = vector.load %arg9[%c9, %c0_47, %c0_48] : memref<16x32x210xf32, #tpu.memory_space<vmem>>, vector<1x32x210xf32>
    %48 = vector.shape_cast %47 : vector<1x32x210xf32> to vector<32x210xf32>
    %49 = vector.shape_cast %46 : vector<32x210xf32> to vector<1x32x210xf32>
    tpu.vector_store %arg9[%c9, %c0_47, %c0_48], %49 {strides = array<i32>} : memref<16x32x210xf32, #tpu.memory_space<vmem>>, vector<1x32x210xf32>,
    %c0_49 = arith.constant 0 : index
    %c0_50 = arith.constant 0 : index
    %c16 = arith.constant 16 : index
    %50 = vector.load %arg1[%c0_49, %c0_50, %c16] : memref<4x32x256xf32, #tpu.memory_space<vmem>>, vector<1x32x210xf32>
    %51 = vector.shape_cast %50 : vector<1x32x210xf32> to vector<32x210xf32>
    %c10 = arith.constant 10 : index
    %c0_51 = arith.constant 0 : index
    %c0_52 = arith.constant 0 : index
    %52 = vector.load %arg9[%c10, %c0_51, %c0_52] : memref<16x32x210xf32, #tpu.memory_space<vmem>>, vector<1x32x210xf32>
    %53 = vector.shape_cast %52 : vector<1x32x210xf32> to vector<32x210xf32>
    %54 = vector.shape_cast %51 : vector<32x210xf32> to vector<1x32x210xf32>
    tpu.vector_store %arg9[%c10, %c0_51, %c0_52], %54 {strides = array<i32>} : memref<16x32x210xf32, #tpu.memory_space<vmem>>, vector<1x32x210xf32>,
    %c1_53 = arith.constant 1 : index
    %c0_54 = arith.constant 0 : index
    %c16_55 = arith.constant 16 : index
    %55 = vector.load %arg1[%c1_53, %c0_54, %c16_55] : memref<4x32x256xf32, #tpu.memory_space<vmem>>, vector<1x32x210xf32>
    %56 = vector.shape_cast %55 : vector<1x32x210xf32> to vector<32x210xf32>
    %c11 = arith.constant 11 : index
    %c0_56 = arith.constant 0 : index
    %c0_57 = arith.constant 0 : index
    %57 = vector.load %arg9[%c11, %c0_56, %c0_57] : memref<16x32x210xf32, #tpu.memory_space<vmem>>, vector<1x32x210xf32>
    %58 = vector.shape_cast %57 : vector<1x32x210xf32> to vector<32x210xf32>
    %59 = vector.shape_cast %56 : vector<32x210xf32> to vector<1x32x210xf32>
    tpu.vector_store %arg9[%c11, %c0_56, %c0_57], %59 {strides = array<i32>} : memref<16x32x210xf32, #tpu.memory_space<vmem>>, vector<1x32x210xf32>,
    %c2_58 = arith.constant 2 : index
    %c0_59 = arith.constant 0 : index
    %c15_60 = arith.constant 15 : index
    %60 = vector.load %arg1[%c2_58, %c0_59, %c15_60] : memref<4x32x256xf32, #tpu.memory_space<vmem>>, vector<1x32x210xf32>
    %61 = vector.shape_cast %60 : vector<1x32x210xf32> to vector<32x210xf32>
    %c12 = arith.constant 12 : index
    %c0_61 = arith.constant 0 : index
    %c0_62 = arith.constant 0 : index
    %62 = vector.load %arg9[%c12, %c0_61, %c0_62] : memref<16x32x210xf32, #tpu.memory_space<vmem>>, vector<1x32x210xf32>
    %63 = vector.shape_cast %62 : vector<1x32x210xf32> to vector<32x210xf32>
    %64 = vector.shape_cast %61 : vector<32x210xf32> to vector<1x32x210xf32>
    tpu.vector_store %arg9[%c12, %c0_61, %c0_62], %64 {strides = array<i32>} : memref<16x32x210xf32, #tpu.memory_space<vmem>>, vector<1x32x210xf32>,
    %c3_63 = arith.constant 3 : index
    %c0_64 = arith.constant 0 : index
    %c15_65 = arith.constant 15 : index
    %65 = vector.load %arg1[%c3_63, %c0_64, %c15_65] : memref<4x32x256xf32, #tpu.memory_space<vmem>>, vector<1x32x210xf32>
    %66 = vector.shape_cast %65 : vector<1x32x210xf32> to vector<32x210xf32>
    %c13 = arith.constant 13 : index
    %c0_66 = arith.constant 0 : index
    %c0_67 = arith.constant 0 : index
    %67 = vector.load %arg9[%c13, %c0_66, %c0_67] : memref<16x32x210xf32, #tpu.memory_space<vmem>>, vector<1x32x210xf32>
    %68 = vector.shape_cast %67 : vector<1x32x210xf32> to vector<32x210xf32>
    %69 = vector.shape_cast %66 : vector<32x210xf32> to vector<1x32x210xf32>
    tpu.vector_store %arg9[%c13, %c0_66, %c0_67], %69 {strides = array<i32>} : memref<16x32x210xf32, #tpu.memory_space<vmem>>, vector<1x32x210xf32>,
    %c2_68 = arith.constant 2 : index
    %c0_69 = arith.constant 0 : index
    %c16_70 = arith.constant 16 : index
    %70 = vector.load %arg1[%c2_68, %c0_69, %c16_70] : memref<4x32x256xf32, #tpu.memory_space<vmem>>, vector<1x32x210xf32>
    %71 = vector.shape_cast %70 : vector<1x32x210xf32> to vector<32x210xf32>
    %c14 = arith.constant 14 : index
    %c0_71 = arith.constant 0 : index
    %c0_72 = arith.constant 0 : index
    %72 = vector.load %arg9[%c14, %c0_71, %c0_72] : memref<16x32x210xf32, #tpu.memory_space<vmem>>, vector<1x32x210xf32>
    %73 = vector.shape_cast %72 : vector<1x32x210xf32> to vector<32x210xf32>
    %74 = vector.shape_cast %71 : vector<32x210xf32> to vector<1x32x210xf32>
    tpu.vector_store %arg9[%c14, %c0_71, %c0_72], %74 {strides = array<i32>} : memref<16x32x210xf32, #tpu.memory_space<vmem>>, vector<1x32x210xf32>,
    %c3_73 = arith.constant 3 : index
    %c0_74 = arith.constant 0 : index
    %c16_75 = arith.constant 16 : index
    %75 = vector.load %arg1[%c3_73, %c0_74, %c16_75] : memref<4x32x256xf32, #tpu.memory_space<vmem>>, vector<1x32x210xf32>
    %76 = vector.shape_cast %75 : vector<1x32x210xf32> to vector<32x210xf32>
    %c15_76 = arith.constant 15 : index
    %c0_77 = arith.constant 0 : index
    %c0_78 = arith.constant 0 : index
    %77 = vector.load %arg9[%c15_76, %c0_77, %c0_78] : memref<16x32x210xf32, #tpu.memory_space<vmem>>, vector<1x32x210xf32>
    %78 = vector.shape_cast %77 : vector<1x32x210xf32> to vector<32x210xf32>
    %79 = vector.shape_cast %76 : vector<32x210xf32> to vector<1x32x210xf32>
    tpu.vector_store %arg9[%c15_76, %c0_77, %c0_78], %79 {strides = array<i32>} : memref<16x32x210xf32, #tpu.memory_space<vmem>>, vector<1x32x210xf32>,
    %cst = arith.constant 0.000000e+00 : f32
    %80 = vector.broadcast %cst : f32 to vector<32x64xf32>
    %c0_79 = arith.constant 0 : index
    %c0_80 = arith.constant 0 : index
    %81 = vector.load %arg10[%c0_79, %c0_80] : memref<32x64xf32, #tpu.memory_space<vmem>>, vector<32x64xf32>
    tpu.vector_store %arg10[%c0_79, %c0_80], %80 {strides = array<i32>} : memref<32x64xf32, #tpu.memory_space<vmem>>, vector<32x64xf32>,
    %c0_81 = arith.constant 0 : index
    %c0_82 = arith.constant 0 : index
    %82 = memref.load %arg2[%c0_81, %c0_82] : memref<8x16xf32, #tpu.memory_space<smem>>
    %c0_83 = arith.constant 0 : index
    %c0_84 = arith.constant 0 : index
    %c0_85 = arith.constant 0 : index
    %83 = vector.load %arg9[%c0_83, %c0_84, %c0_85] : memref<16x32x210xf32, #tpu.memory_space<vmem>>, vector<1x32x210xf32>
    %84 = vector.shape_cast %83 : vector<1x32x210xf32> to vector<32x210xf32>
    %85 = vector.broadcast %82 : f32 to vector<32x210xf32>
    %86 = arith.mulf %85, %84 : vector<32x210xf32>
    %c0_86 = arith.constant 0 : index
    %c1_87 = arith.constant 1 : index
    %87 = memref.load %arg2[%c0_86, %c1_87] : memref<8x16xf32, #tpu.memory_space<smem>>
    %c1_88 = arith.constant 1 : index
    %c0_89 = arith.constant 0 : index
    %c0_90 = arith.constant 0 : index
    %88 = vector.load %arg9[%c1_88, %c0_89, %c0_90] : memref<16x32x210xf32, #tpu.memory_space<vmem>>, vector<1x32x210xf32>
    %89 = vector.shape_cast %88 : vector<1x32x210xf32> to vector<32x210xf32>
    %90 = vector.broadcast %87 : f32 to vector<32x210xf32>
    %91 = arith.mulf %90, %89 : vector<32x210xf32>
    %92 = arith.addf %86, %91 : vector<32x210xf32>
    %c0_91 = arith.constant 0 : index
    %c2_92 = arith.constant 2 : index
    %93 = memref.load %arg2[%c0_91, %c2_92] : memref<8x16xf32, #tpu.memory_space<smem>>
    %c2_93 = arith.constant 2 : index
    %c0_94 = arith.constant 0 : index
    %c0_95 = arith.constant 0 : index
    %94 = vector.load %arg9[%c2_93, %c0_94, %c0_95] : memref<16x32x210xf32, #tpu.memory_space<vmem>>, vector<1x32x210xf32>
    %95 = vector.shape_cast %94 : vector<1x32x210xf32> to vector<32x210xf32>
    %96 = vector.broadcast %93 : f32 to vector<32x210xf32>
    %97 = arith.mulf %96, %95 : vector<32x210xf32>
    %98 = arith.addf %92, %97 : vector<32x210xf32>
    %c0_96 = arith.constant 0 : index
    %c3_97 = arith.constant 3 : index
    %99 = memref.load %arg2[%c0_96, %c3_97] : memref<8x16xf32, #tpu.memory_space<smem>>
    %c3_98 = arith.constant 3 : index
    %c0_99 = arith.constant 0 : index
    %c0_100 = arith.constant 0 : index
    %100 = vector.load %arg9[%c3_98, %c0_99, %c0_100] : memref<16x32x210xf32, #tpu.memory_space<vmem>>, vector<1x32x210xf32>
    %101 = vector.shape_cast %100 : vector<1x32x210xf32> to vector<32x210xf32>
    %102 = vector.broadcast %99 : f32 to vector<32x210xf32>
    %103 = arith.mulf %102, %101 : vector<32x210xf32>
    %104 = arith.addf %98, %103 : vector<32x210xf32>
    %c0_101 = arith.constant 0 : index
    %c4_102 = arith.constant 4 : index
    %105 = memref.load %arg2[%c0_101, %c4_102] : memref<8x16xf32, #tpu.memory_space<smem>>
    %c4_103 = arith.constant 4 : index
    %c0_104 = arith.constant 0 : index
    %c0_105 = arith.constant 0 : index
    %106 = vector.load %arg9[%c4_103, %c0_104, %c0_105] : memref<16x32x210xf32, #tpu.memory_space<vmem>>, vector<1x32x210xf32>
    %107 = vector.shape_cast %106 : vector<1x32x210xf32> to vector<32x210xf32>
    %108 = vector.broadcast %105 : f32 to vector<32x210xf32>
    %109 = arith.mulf %108, %107 : vector<32x210xf32>
    %110 = arith.addf %104, %109 : vector<32x210xf32>
    %c0_106 = arith.constant 0 : index
    %c5_107 = arith.constant 5 : index
    %111 = memref.load %arg2[%c0_106, %c5_107] : memref<8x16xf32, #tpu.memory_space<smem>>
    %c5_108 = arith.constant 5 : index
    %c0_109 = arith.constant 0 : index
    %c0_110 = arith.constant 0 : index
    %112 = vector.load %arg9[%c5_108, %c0_109, %c0_110] : memref<16x32x210xf32, #tpu.memory_space<vmem>>, vector<1x32x210xf32>
    %113 = vector.shape_cast %112 : vector<1x32x210xf32> to vector<32x210xf32>
    %114 = vector.broadcast %111 : f32 to vector<32x210xf32>
    %115 = arith.mulf %114, %113 : vector<32x210xf32>
    %116 = arith.addf %110, %115 : vector<32x210xf32>
    %c0_111 = arith.constant 0 : index
    %c6_112 = arith.constant 6 : index
    %117 = memref.load %arg2[%c0_111, %c6_112] : memref<8x16xf32, #tpu.memory_space<smem>>
    %c6_113 = arith.constant 6 : index
    %c0_114 = arith.constant 0 : index
    %c0_115 = arith.constant 0 : index
    %118 = vector.load %arg9[%c6_113, %c0_114, %c0_115] : memref<16x32x210xf32, #tpu.memory_space<vmem>>, vector<1x32x210xf32>
    %119 = vector.shape_cast %118 : vector<1x32x210xf32> to vector<32x210xf32>
    %120 = vector.broadcast %117 : f32 to vector<32x210xf32>
    %121 = arith.mulf %120, %119 : vector<32x210xf32>
    %122 = arith.addf %116, %121 : vector<32x210xf32>
    %c0_116 = arith.constant 0 : index
    %c7_117 = arith.constant 7 : index
    %123 = memref.load %arg2[%c0_116, %c7_117] : memref<8x16xf32, #tpu.memory_space<smem>>
    %c7_118 = arith.constant 7 : index
    %c0_119 = arith.constant 0 : index
    %c0_120 = arith.constant 0 : index
    %124 = vector.load %arg9[%c7_118, %c0_119, %c0_120] : memref<16x32x210xf32, #tpu.memory_space<vmem>>, vector<1x32x210xf32>
    %125 = vector.shape_cast %124 : vector<1x32x210xf32> to vector<32x210xf32>
    %126 = vector.broadcast %123 : f32 to vector<32x210xf32>
    %127 = arith.mulf %126, %125 : vector<32x210xf32>
    %128 = arith.addf %122, %127 : vector<32x210xf32>
    %c0_121 = arith.constant 0 : index
    %c8_122 = arith.constant 8 : index
    %129 = memref.load %arg2[%c0_121, %c8_122] : memref<8x16xf32, #tpu.memory_space<smem>>
    %c8_123 = arith.constant 8 : index
    %c0_124 = arith.constant 0 : index
    %c0_125 = arith.constant 0 : index
    %130 = vector.load %arg9[%c8_123, %c0_124, %c0_125] : memref<16x32x210xf32, #tpu.memory_space<vmem>>, vector<1x32x210xf32>
    %131 = vector.shape_cast %130 : vector<1x32x210xf32> to vector<32x210xf32>
    %132 = vector.broadcast %129 : f32 to vector<32x210xf32>
    %133 = arith.mulf %132, %131 : vector<32x210xf32>
    %134 = arith.addf %128, %133 : vector<32x210xf32>
    %c0_126 = arith.constant 0 : index
    %c9_127 = arith.constant 9 : index
    %135 = memref.load %arg2[%c0_126, %c9_127] : memref<8x16xf32, #tpu.memory_space<smem>>
    %c9_128 = arith.constant 9 : index
    %c0_129 = arith.constant 0 : index
    %c0_130 = arith.constant 0 : index
    %136 = vector.load %arg9[%c9_128, %c0_129, %c0_130] : memref<16x32x210xf32, #tpu.memory_space<vmem>>, vector<1x32x210xf32>
    %137 = vector.shape_cast %136 : vector<1x32x210xf32> to vector<32x210xf32>
    %138 = vector.broadcast %135 : f32 to vector<32x210xf32>
    %139 = arith.mulf %138, %137 : vector<32x210xf32>
    %140 = arith.addf %134, %139 : vector<32x210xf32>
    %c0_131 = arith.constant 0 : index
    %c10_132 = arith.constant 10 : index
    %141 = memref.load %arg2[%c0_131, %c10_132] : memref<8x16xf32, #tpu.memory_space<smem>>
    %c10_133 = arith.constant 10 : index
    %c0_134 = arith.constant 0 : index
    %c0_135 = arith.constant 0 : index
    %142 = vector.load %arg9[%c10_133, %c0_134, %c0_135] : memref<16x32x210xf32, #tpu.memory_space<vmem>>, vector<1x32x210xf32>
    %143 = vector.shape_cast %142 : vector<1x32x210xf32> to vector<32x210xf32>
    %144 = vector.broadcast %141 : f32 to vector<32x210xf32>
    %145 = arith.mulf %144, %143 : vector<32x210xf32>
    %146 = arith.addf %140, %145 : vector<32x210xf32>
    %c0_136 = arith.constant 0 : index
    %c11_137 = arith.constant 11 : index
    %147 = memref.load %arg2[%c0_136, %c11_137] : memref<8x16xf32, #tpu.memory_space<smem>>
    %c11_138 = arith.constant 11 : index
    %c0_139 = arith.constant 0 : index
    %c0_140 = arith.constant 0 : index
    %148 = vector.load %arg9[%c11_138, %c0_139, %c0_140] : memref<16x32x210xf32, #tpu.memory_space<vmem>>, vector<1x32x210xf32>
    %149 = vector.shape_cast %148 : vector<1x32x210xf32> to vector<32x210xf32>
    %150 = vector.broadcast %147 : f32 to vector<32x210xf32>
    %151 = arith.mulf %150, %149 : vector<32x210xf32>
    %152 = arith.addf %146, %151 : vector<32x210xf32>
    %c0_141 = arith.constant 0 : index
    %c12_142 = arith.constant 12 : index
    %153 = memref.load %arg2[%c0_141, %c12_142] : memref<8x16xf32, #tpu.memory_space<smem>>
    %c12_143 = arith.constant 12 : index
    %c0_144 = arith.constant 0 : index
    %c0_145 = arith.constant 0 : index
    %154 = vector.load %arg9[%c12_143, %c0_144, %c0_145] : memref<16x32x210xf32, #tpu.memory_space<vmem>>, vector<1x32x210xf32>
    %155 = vector.shape_cast %154 : vector<1x32x210xf32> to vector<32x210xf32>
    %156 = vector.broadcast %153 : f32 to vector<32x210xf32>
    %157 = arith.mulf %156, %155 : vector<32x210xf32>
    %158 = arith.addf %152, %157 : vector<32x210xf32>
    %c0_146 = arith.constant 0 : index
    %c13_147 = arith.constant 13 : index
    %159 = memref.load %arg2[%c0_146, %c13_147] : memref<8x16xf32, #tpu.memory_space<smem>>
    %c13_148 = arith.constant 13 : index
    %c0_149 = arith.constant 0 : index
    %c0_150 = arith.constant 0 : index
    %160 = vector.load %arg9[%c13_148, %c0_149, %c0_150] : memref<16x32x210xf32, #tpu.memory_space<vmem>>, vector<1x32x210xf32>
    %161 = vector.shape_cast %160 : vector<1x32x210xf32> to vector<32x210xf32>
    %162 = vector.broadcast %159 : f32 to vector<32x210xf32>
    %163 = arith.mulf %162, %161 : vector<32x210xf32>
    %164 = arith.addf %158, %163 : vector<32x210xf32>
    %c0_151 = arith.constant 0 : index
    %c14_152 = arith.constant 14 : index
    %165 = memref.load %arg2[%c0_151, %c14_152] : memref<8x16xf32, #tpu.memory_space<smem>>
    %c14_153 = arith.constant 14 : index
    %c0_154 = arith.constant 0 : index
    %c0_155 = arith.constant 0 : index
    %166 = vector.load %arg9[%c14_153, %c0_154, %c0_155] : memref<16x32x210xf32, #tpu.memory_space<vmem>>, vector<1x32x210xf32>
    %167 = vector.shape_cast %166 : vector<1x32x210xf32> to vector<32x210xf32>
    %168 = vector.broadcast %165 : f32 to vector<32x210xf32>
    %169 = arith.mulf %168, %167 : vector<32x210xf32>
    %170 = arith.addf %164, %169 : vector<32x210xf32>
    %c0_156 = arith.constant 0 : index
    %c15_157 = arith.constant 15 : index
    %171 = memref.load %arg2[%c0_156, %c15_157] : memref<8x16xf32, #tpu.memory_space<smem>>
    %c15_158 = arith.constant 15 : index
    %c0_159 = arith.constant 0 : index
    %c0_160 = arith.constant 0 : index
    %172 = vector.load %arg9[%c15_158, %c0_159, %c0_160] : memref<16x32x210xf32, #tpu.memory_space<vmem>>, vector<1x32x210xf32>
    %173 = vector.shape_cast %172 : vector<1x32x210xf32> to vector<32x210xf32>
    %174 = vector.broadcast %171 : f32 to vector<32x210xf32>
    %175 = arith.mulf %174, %173 : vector<32x210xf32>
    %176 = arith.addf %170, %175 : vector<32x210xf32>
    %c0_161 = arith.constant 0 : index
    %177 = memref.load %arg3[%c0_161] : memref<8xf32, #tpu.memory_space<smem>>
    %178 = vector.broadcast %177 : f32 to vector<32x210xf32>
    %179 = arith.addf %176, %178 : vector<32x210xf32>
    %cst_162 = arith.constant 0.000000e+00 : f32
    %180 = vector.broadcast %cst_162 : f32 to vector<32x210xf32>
    %181 = arith.maximumf %179, %180 : vector<32x210xf32>
    %c0_163 = arith.constant 0 : index
    %c0_164 = arith.constant 0 : index
    %182 = vector.load %arg10[%c0_163, %c0_164] : memref<32x64xf32, #tpu.memory_space<vmem>>, vector<32x64xf32>
    %c0_165 = arith.constant 0 : index
    %c0_166 = arith.constant 0 : index
    %c0_167 = arith.constant 0 : index
    %183 = vector.load %arg4[%c0_165, %c0_166, %c0_167] : memref<8x210x64xf32, #tpu.memory_space<vmem>>, vector<1x210x64xf32>
    %184 = vector.shape_cast %183 : vector<1x210x64xf32> to vector<210x64xf32>
    %cst_168 = arith.constant dense<0.000000e+00> : vector<32x64xf32>
    %185 = tpu.matmul %181, %184, %cst_168 {dimension_numbers = #tpu.dot_dimension_numbers<[1], [0], [0], [1], [0, 0, 1, 1], [], []>} : vector<32x210xf32>, vector<210x64xf32>, vector<32x64xf32> -> vector<32x64xf32>
    %186 = arith.addf %182, %185 : vector<32x64xf32>
    %c0_169 = arith.constant 0 : index
    %c0_170 = arith.constant 0 : index
    %187 = vector.load %arg10[%c0_169, %c0_170] : memref<32x64xf32, #tpu.memory_space<vmem>>, vector<32x64xf32>
    tpu.vector_store %arg10[%c0_169, %c0_170], %186 {strides = array<i32>} : memref<32x64xf32, #tpu.memory_space<vmem>>, vector<32x64xf32>,
    %c1_171 = arith.constant 1 : index
    %c0_172 = arith.constant 0 : index
    %188 = memref.load %arg2[%c1_171, %c0_172] : memref<8x16xf32, #tpu.memory_space<smem>>
    %c0_173 = arith.constant 0 : index
    %c0_174 = arith.constant 0 : index
    %c0_175 = arith.constant 0 : index
    %189 = vector.load %arg9[%c0_173, %c0_174, %c0_175] : memref<16x32x210xf32, #tpu.memory_space<vmem>>, vector<1x32x210xf32>
    %190 = vector.shape_cast %189 : vector<1x32x210xf32> to vector<32x210xf32>
    %191 = vector.broadcast %188 : f32 to vector<32x210xf32>
    %192 = arith.mulf %191, %190 : vector<32x210xf32>
    %c1_176 = arith.constant 1 : index
    %c1_177 = arith.constant 1 : index
    %193 = memref.load %arg2[%c1_176, %c1_177] : memref<8x16xf32, #tpu.memory_space<smem>>
    %c1_178 = arith.constant 1 : index
    %c0_179 = arith.constant 0 : index
    %c0_180 = arith.constant 0 : index
    %194 = vector.load %arg9[%c1_178, %c0_179, %c0_180] : memref<16x32x210xf32, #tpu.memory_space<vmem>>, vector<1x32x210xf32>
    %195 = vector.shape_cast %194 : vector<1x32x210xf32> to vector<32x210xf32>
    %196 = vector.broadcast %193 : f32 to vector<32x210xf32>
    %197 = arith.mulf %196, %195 : vector<32x210xf32>
    %198 = arith.addf %192, %197 : vector<32x210xf32>
    %c1_181 = arith.constant 1 : index
    %c2_182 = arith.constant 2 : index
    %199 = memref.load %arg2[%c1_181, %c2_182] : memref<8x16xf32, #tpu.memory_space<smem>>
    %c2_183 = arith.constant 2 : index
    %c0_184 = arith.constant 0 : index
    %c0_185 = arith.constant 0 : index
    %200 = vector.load %arg9[%c2_183, %c0_184, %c0_185] : memref<16x32x210xf32, #tpu.memory_space<vmem>>, vector<1x32x210xf32>
    %201 = vector.shape_cast %200 : vector<1x32x210xf32> to vector<32x210xf32>
    %202 = vector.broadcast %199 : f32 to vector<32x210xf32>
    %203 = arith.mulf %202, %201 : vector<32x210xf32>
    %204 = arith.addf %198, %203 : vector<32x210xf32>
    %c1_186 = arith.constant 1 : index
    %c3_187 = arith.constant 3 : index
    %205 = memref.load %arg2[%c1_186, %c3_187] : memref<8x16xf32, #tpu.memory_space<smem>>
    %c3_188 = arith.constant 3 : index
    %c0_189 = arith.constant 0 : index
    %c0_190 = arith.constant 0 : index
    %206 = vector.load %arg9[%c3_188, %c0_189, %c0_190] : memref<16x32x210xf32, #tpu.memory_space<vmem>>, vector<1x32x210xf32>
    %207 = vector.shape_cast %206 : vector<1x32x210xf32> to vector<32x210xf32>
    %208 = vector.broadcast %205 : f32 to vector<32x210xf32>
    %209 = arith.mulf %208, %207 : vector<32x210xf32>
    %210 = arith.addf %204, %209 : vector<32x210xf32>
    %c1_191 = arith.constant 1 : index
    %c4_192 = arith.constant 4 : index
    %211 = memref.load %arg2[%c1_191, %c4_192] : memref<8x16xf32, #tpu.memory_space<smem>>
    %c4_193 = arith.constant 4 : index
    %c0_194 = arith.constant 0 : index
    %c0_195 = arith.constant 0 : index
    %212 = vector.load %arg9[%c4_193, %c0_194, %c0_195] : memref<16x32x210xf32, #tpu.memory_space<vmem>>, vector<1x32x210xf32>
    %213 = vector.shape_cast %212 : vector<1x32x210xf32> to vector<32x210xf32>
    %214 = vector.broadcast %211 : f32 to vector<32x210xf32>
    %215 = arith.mulf %214, %213 : vector<32x210xf32>
    %216 = arith.addf %210, %215 : vector<32x210xf32>
    %c1_196 = arith.constant 1 : index
    %c5_197 = arith.constant 5 : index
    %217 = memref.load %arg2[%c1_196, %c5_197] : memref<8x16xf32, #tpu.memory_space<smem>>
    %c5_198 = arith.constant 5 : index
    %c0_199 = arith.constant 0 : index
    %c0_200 = arith.constant 0 : index
    %218 = vector.load %arg9[%c5_198, %c0_199, %c0_200] : memref<16x32x210xf32, #tpu.memory_space<vmem>>, vector<1x32x210xf32>
    %219 = vector.shape_cast %218 : vector<1x32x210xf32> to vector<32x210xf32>
    %220 = vector.broadcast %217 : f32 to vector<32x210xf32>
    %221 = arith.mulf %220, %219 : vector<32x210xf32>
    %222 = arith.addf %216, %221 : vector<32x210xf32>
    %c1_201 = arith.constant 1 : index
    %c6_202 = arith.constant 6 : index
    %223 = memref.load %arg2[%c1_201, %c6_202] : memref<8x16xf32, #tpu.memory_space<smem>>
    %c6_203 = arith.constant 6 : index
    %c0_204 = arith.constant 0 : index
    %c0_205 = arith.constant 0 : index
    %224 = vector.load %arg9[%c6_203, %c0_204, %c0_205] : memref<16x32x210xf32, #tpu.memory_space<vmem>>, vector<1x32x210xf32>
    %225 = vector.shape_cast %224 : vector<1x32x210xf32> to vector<32x210xf32>
    %226 = vector.broadcast %223 : f32 to vector<32x210xf32>
    %227 = arith.mulf %226, %225 : vector<32x210xf32>
    %228 = arith.addf %222, %227 : vector<32x210xf32>
    %c1_206 = arith.constant 1 : index
    %c7_207 = arith.constant 7 : index
    %229 = memref.load %arg2[%c1_206, %c7_207] : memref<8x16xf32, #tpu.memory_space<smem>>
    %c7_208 = arith.constant 7 : index
    %c0_209 = arith.constant 0 : index
    %c0_210 = arith.constant 0 : index
    %230 = vector.load %arg9[%c7_208, %c0_209, %c0_210] : memref<16x32x210xf32, #tpu.memory_space<vmem>>, vector<1x32x210xf32>
    %231 = vector.shape_cast %230 : vector<1x32x210xf32> to vector<32x210xf32>
    %232 = vector.broadcast %229 : f32 to vector<32x210xf32>
    %233 = arith.mulf %232, %231 : vector<32x210xf32>
    %234 = arith.addf %228, %233 : vector<32x210xf32>
    %c1_211 = arith.constant 1 : index
    %c8_212 = arith.constant 8 : index
    %235 = memref.load %arg2[%c1_211, %c8_212] : memref<8x16xf32, #tpu.memory_space<smem>>
    %c8_213 = arith.constant 8 : index
    %c0_214 = arith.constant 0 : index
    %c0_215 = arith.constant 0 : index
    %236 = vector.load %arg9[%c8_213, %c0_214, %c0_215] : memref<16x32x210xf32, #tpu.memory_space<vmem>>, vector<1x32x210xf32>
    %237 = vector.shape_cast %236 : vector<1x32x210xf32> to vector<32x210xf32>
    %238 = vector.broadcast %235 : f32 to vector<32x210xf32>
    %239 = arith.mulf %238, %237 : vector<32x210xf32>
    %240 = arith.addf %234, %239 : vector<32x210xf32>
    %c1_216 = arith.constant 1 : index
    %c9_217 = arith.constant 9 : index
    %241 = memref.load %arg2[%c1_216, %c9_217] : memref<8x16xf32, #tpu.memory_space<smem>>
    %c9_218 = arith.constant 9 : index
    %c0_219 = arith.constant 0 : index
    %c0_220 = arith.constant 0 : index
    %242 = vector.load %arg9[%c9_218, %c0_219, %c0_220] : memref<16x32x210xf32, #tpu.memory_space<vmem>>, vector<1x32x210xf32>
    %243 = vector.shape_cast %242 : vector<1x32x210xf32> to vector<32x210xf32>
    %244 = vector.broadcast %241 : f32 to vector<32x210xf32>
    %245 = arith.mulf %244, %243 : vector<32x210xf32>
    %246 = arith.addf %240, %245 : vector<32x210xf32>
    %c1_221 = arith.constant 1 : index
    %c10_222 = arith.constant 10 : index
    %247 = memref.load %arg2[%c1_221, %c10_222] : memref<8x16xf32, #tpu.memory_space<smem>>
    %c10_223 = arith.constant 10 : index
    %c0_224 = arith.constant 0 : index
    %c0_225 = arith.constant 0 : index
    %248 = vector.load %arg9[%c10_223, %c0_224, %c0_225] : memref<16x32x210xf32, #tpu.memory_space<vmem>>, vector<1x32x210xf32>
    %249 = vector.shape_cast %248 : vector<1x32x210xf32> to vector<32x210xf32>
    %250 = vector.broadcast %247 : f32 to vector<32x210xf32>
    %251 = arith.mulf %250, %249 : vector<32x210xf32>
    %252 = arith.addf %246, %251 : vector<32x210xf32>
    %c1_226 = arith.constant 1 : index
    %c11_227 = arith.constant 11 : index
    %253 = memref.load %arg2[%c1_226, %c11_227] : memref<8x16xf32, #tpu.memory_space<smem>>
    %c11_228 = arith.constant 11 : index
    %c0_229 = arith.constant 0 : index
    %c0_230 = arith.constant 0 : index
    %254 = vector.load %arg9[%c11_228, %c0_229, %c0_230] : memref<16x32x210xf32, #tpu.memory_space<vmem>>, vector<1x32x210xf32>
    %255 = vector.shape_cast %254 : vector<1x32x210xf32> to vector<32x210xf32>
    %256 = vector.broadcast %253 : f32 to vector<32x210xf32>
    %257 = arith.mulf %256, %255 : vector<32x210xf32>
    %258 = arith.addf %252, %257 : vector<32x210xf32>
    %c1_231 = arith.constant 1 : index
    %c12_232 = arith.constant 12 : index
    %259 = memref.load %arg2[%c1_231, %c12_232] : memref<8x16xf32, #tpu.memory_space<smem>>
    %c12_233 = arith.constant 12 : index
    %c0_234 = arith.constant 0 : index
    %c0_235 = arith.constant 0 : index
    %260 = vector.load %arg9[%c12_233, %c0_234, %c0_235] : memref<16x32x210xf32, #tpu.memory_space<vmem>>, vector<1x32x210xf32>
    %261 = vector.shape_cast %260 : vector<1x32x210xf32> to vector<32x210xf32>
    %262 = vector.broadcast %259 : f32 to vector<32x210xf32>
    %263 = arith.mulf %262, %261 : vector<32x210xf32>
    %264 = arith.addf %258, %263 : vector<32x210xf32>
    %c1_236 = arith.constant 1 : index
    %c13_237 = arith.constant 13 : index
    %265 = memref.load %arg2[%c1_236, %c13_237] : memref<8x16xf32, #tpu.memory_space<smem>>
    %c13_238 = arith.constant 13 : index
    %c0_239 = arith.constant 0 : index
    %c0_240 = arith.constant 0 : index
    %266 = vector.load %arg9[%c13_238, %c0_239, %c0_240] : memref<16x32x210xf32, #tpu.memory_space<vmem>>, vector<1x32x210xf32>
    %267 = vector.shape_cast %266 : vector<1x32x210xf32> to vector<32x210xf32>
    %268 = vector.broadcast %265 : f32 to vector<32x210xf32>
    %269 = arith.mulf %268, %267 : vector<32x210xf32>
    %270 = arith.addf %264, %269 : vector<32x210xf32>
    %c1_241 = arith.constant 1 : index
    %c14_242 = arith.constant 14 : index
    %271 = memref.load %arg2[%c1_241, %c14_242] : memref<8x16xf32, #tpu.memory_space<smem>>
    %c14_243 = arith.constant 14 : index
    %c0_244 = arith.constant 0 : index
    %c0_245 = arith.constant 0 : index
    %272 = vector.load %arg9[%c14_243, %c0_244, %c0_245] : memref<16x32x210xf32, #tpu.memory_space<vmem>>, vector<1x32x210xf32>
    %273 = vector.shape_cast %272 : vector<1x32x210xf32> to vector<32x210xf32>
    %274 = vector.broadcast %271 : f32 to vector<32x210xf32>
    %275 = arith.mulf %274, %273 : vector<32x210xf32>
    %276 = arith.addf %270, %275 : vector<32x210xf32>
    %c1_246 = arith.constant 1 : index
    %c15_247 = arith.constant 15 : index
    %277 = memref.load %arg2[%c1_246, %c15_247] : memref<8x16xf32, #tpu.memory_space<smem>>
    %c15_248 = arith.constant 15 : index
    %c0_249 = arith.constant 0 : index
    %c0_250 = arith.constant 0 : index
    %278 = vector.load %arg9[%c15_248, %c0_249, %c0_250] : memref<16x32x210xf32, #tpu.memory_space<vmem>>, vector<1x32x210xf32>
    %279 = vector.shape_cast %278 : vector<1x32x210xf32> to vector<32x210xf32>
    %280 = vector.broadcast %277 : f32 to vector<32x210xf32>
    %281 = arith.mulf %280, %279 : vector<32x210xf32>
    %282 = arith.addf %276, %281 : vector<32x210xf32>
    %c1_251 = arith.constant 1 : index
    %283 = memref.load %arg3[%c1_251] : memref<8xf32, #tpu.memory_space<smem>>
    %284 = vector.broadcast %283 : f32 to vector<32x210xf32>
    %285 = arith.addf %282, %284 : vector<32x210xf32>
    %cst_252 = arith.constant 0.000000e+00 : f32
    %286 = vector.broadcast %cst_252 : f32 to vector<32x210xf32>
    %287 = arith.maximumf %285, %286 : vector<32x210xf32>
    %c0_253 = arith.constant 0 : index
    %c0_254 = arith.constant 0 : index
    %288 = vector.load %arg10[%c0_253, %c0_254] : memref<32x64xf32, #tpu.memory_space<vmem>>, vector<32x64xf32>
    %c1_255 = arith.constant 1 : index
    %c0_256 = arith.constant 0 : index
    %c0_257 = arith.constant 0 : index
    %289 = vector.load %arg4[%c1_255, %c0_256, %c0_257] : memref<8x210x64xf32, #tpu.memory_space<vmem>>, vector<1x210x64xf32>
    %290 = vector.shape_cast %289 : vector<1x210x64xf32> to vector<210x64xf32>
    %cst_258 = arith.constant dense<0.000000e+00> : vector<32x64xf32>
    %291 = tpu.matmul %287, %290, %cst_258 {dimension_numbers = #tpu.dot_dimension_numbers<[1], [0], [0], [1], [0, 0, 1, 1], [], []>} : vector<32x210xf32>, vector<210x64xf32>, vector<32x64xf32> -> vector<32x64xf32>
    %292 = arith.addf %288, %291 : vector<32x64xf32>
    %c0_259 = arith.constant 0 : index
    %c0_260 = arith.constant 0 : index
    %293 = vector.load %arg10[%c0_259, %c0_260] : memref<32x64xf32, #tpu.memory_space<vmem>>, vector<32x64xf32>
    tpu.vector_store %arg10[%c0_259, %c0_260], %292 {strides = array<i32>} : memref<32x64xf32, #tpu.memory_space<vmem>>, vector<32x64xf32>,
    %c2_261 = arith.constant 2 : index
    %c0_262 = arith.constant 0 : index
    %294 = memref.load %arg2[%c2_261, %c0_262] : memref<8x16xf32, #tpu.memory_space<smem>>
    %c0_263 = arith.constant 0 : index
    %c0_264 = arith.constant 0 : index
    %c0_265 = arith.constant 0 : index
    %295 = vector.load %arg9[%c0_263, %c0_264, %c0_265] : memref<16x32x210xf32, #tpu.memory_space<vmem>>, vector<1x32x210xf32>
    %296 = vector.shape_cast %295 : vector<1x32x210xf32> to vector<32x210xf32>
    %297 = vector.broadcast %294 : f32 to vector<32x210xf32>
    %298 = arith.mulf %297, %296 : vector<32x210xf32>
    %c2_266 = arith.constant 2 : index
    %c1_267 = arith.constant 1 : index
    %299 = memref.load %arg2[%c2_266, %c1_267] : memref<8x16xf32, #tpu.memory_space<smem>>
    %c1_268 = arith.constant 1 : index
    %c0_269 = arith.constant 0 : index
    %c0_270 = arith.constant 0 : index
    %300 = vector.load %arg9[%c1_268, %c0_269, %c0_270] : memref<16x32x210xf32, #tpu.memory_space<vmem>>, vector<1x32x210xf32>
    %301 = vector.shape_cast %300 : vector<1x32x210xf32> to vector<32x210xf32>
    %302 = vector.broadcast %299 : f32 to vector<32x210xf32>
    %303 = arith.mulf %302, %301 : vector<32x210xf32>
    %304 = arith.addf %298, %303 : vector<32x210xf32>
    %c2_271 = arith.constant 2 : index
    %c2_272 = arith.constant 2 : index
    %305 = memref.load %arg2[%c2_271, %c2_272] : memref<8x16xf32, #tpu.memory_space<smem>>
    %c2_273 = arith.constant 2 : index
    %c0_274 = arith.constant 0 : index
    %c0_275 = arith.constant 0 : index
    %306 = vector.load %arg9[%c2_273, %c0_274, %c0_275] : memref<16x32x210xf32, #tpu.memory_space<vmem>>, vector<1x32x210xf32>
    %307 = vector.shape_cast %306 : vector<1x32x210xf32> to vector<32x210xf32>
    %308 = vector.broadcast %305 : f32 to vector<32x210xf32>
    %309 = arith.mulf %308, %307 : vector<32x210xf32>
    %310 = arith.addf %304, %309 : vector<32x210xf32>
    %c2_276 = arith.constant 2 : index
    %c3_277 = arith.constant 3 : index
    %311 = memref.load %arg2[%c2_276, %c3_277] : memref<8x16xf32, #tpu.memory_space<smem>>
    %c3_278 = arith.constant 3 : index
    %c0_279 = arith.constant 0 : index
    %c0_280 = arith.constant 0 : index
    %312 = vector.load %arg9[%c3_278, %c0_279, %c0_280] : memref<16x32x210xf32, #tpu.memory_space<vmem>>, vector<1x32x210xf32>
    %313 = vector.shape_cast %312 : vector<1x32x210xf32> to vector<32x210xf32>
    %314 = vector.broadcast %311 : f32 to vector<32x210xf32>
    %315 = arith.mulf %314, %313 : vector<32x210xf32>
    %316 = arith.addf %310, %315 : vector<32x210xf32>
    %c2_281 = arith.constant 2 : index
    %c4_282 = arith.constant 4 : index
    %317 = memref.load %arg2[%c2_281, %c4_282] : memref<8x16xf32, #tpu.memory_space<smem>>
    %c4_283 = arith.constant 4 : index
    %c0_284 = arith.constant 0 : index
    %c0_285 = arith.constant 0 : index
    %318 = vector.load %arg9[%c4_283, %c0_284, %c0_285] : memref<16x32x210xf32, #tpu.memory_space<vmem>>, vector<1x32x210xf32>
    %319 = vector.shape_cast %318 : vector<1x32x210xf32> to vector<32x210xf32>
    %320 = vector.broadcast %317 : f32 to vector<32x210xf32>
    %321 = arith.mulf %320, %319 : vector<32x210xf32>
    %322 = arith.addf %316, %321 : vector<32x210xf32>
    %c2_286 = arith.constant 2 : index
    %c5_287 = arith.constant 5 : index
    %323 = memref.load %arg2[%c2_286, %c5_287] : memref<8x16xf32, #tpu.memory_space<smem>>
    %c5_288 = arith.constant 5 : index
    %c0_289 = arith.constant 0 : index
    %c0_290 = arith.constant 0 : index
    %324 = vector.load %arg9[%c5_288, %c0_289, %c0_290] : memref<16x32x210xf32, #tpu.memory_space<vmem>>, vector<1x32x210xf32>
    %325 = vector.shape_cast %324 : vector<1x32x210xf32> to vector<32x210xf32>
    %326 = vector.broadcast %323 : f32 to vector<32x210xf32>
    %327 = arith.mulf %326, %325 : vector<32x210xf32>
    %328 = arith.addf %322, %327 : vector<32x210xf32>
    %c2_291 = arith.constant 2 : index
    %c6_292 = arith.constant 6 : index
    %329 = memref.load %arg2[%c2_291, %c6_292] : memref<8x16xf32, #tpu.memory_space<smem>>
    %c6_293 = arith.constant 6 : index
    %c0_294 = arith.constant 0 : index
    %c0_295 = arith.constant 0 : index
    %330 = vector.load %arg9[%c6_293, %c0_294, %c0_295] : memref<16x32x210xf32, #tpu.memory_space<vmem>>, vector<1x32x210xf32>
    %331 = vector.shape_cast %330 : vector<1x32x210xf32> to vector<32x210xf32>
    %332 = vector.broadcast %329 : f32 to vector<32x210xf32>
    %333 = arith.mulf %332, %331 : vector<32x210xf32>
    %334 = arith.addf %328, %333 : vector<32x210xf32>
    %c2_296 = arith.constant 2 : index
    %c7_297 = arith.constant 7 : index
    %335 = memref.load %arg2[%c2_296, %c7_297] : memref<8x16xf32, #tpu.memory_space<smem>>
    %c7_298 = arith.constant 7 : index
    %c0_299 = arith.constant 0 : index
    %c0_300 = arith.constant 0 : index
    %336 = vector.load %arg9[%c7_298, %c0_299, %c0_300] : memref<16x32x210xf32, #tpu.memory_space<vmem>>, vector<1x32x210xf32>
    %337 = vector.shape_cast %336 : vector<1x32x210xf32> to vector<32x210xf32>
    %338 = vector.broadcast %335 : f32 to vector<32x210xf32>
    %339 = arith.mulf %338, %337 : vector<32x210xf32>
    %340 = arith.addf %334, %339 : vector<32x210xf32>
    %c2_301 = arith.constant 2 : index
    %c8_302 = arith.constant 8 : index
    %341 = memref.load %arg2[%c2_301, %c8_302] : memref<8x16xf32, #tpu.memory_space<smem>>
    %c8_303 = arith.constant 8 : index
    %c0_304 = arith.constant 0 : index
    %c0_305 = arith.constant 0 : index
    %342 = vector.load %arg9[%c8_303, %c0_304, %c0_305] : memref<16x32x210xf32, #tpu.memory_space<vmem>>, vector<1x32x210xf32>
    %343 = vector.shape_cast %342 : vector<1x32x210xf32> to vector<32x210xf32>
    %344 = vector.broadcast %341 : f32 to vector<32x210xf32>
    %345 = arith.mulf %344, %343 : vector<32x210xf32>
    %346 = arith.addf %340, %345 : vector<32x210xf32>
    %c2_306 = arith.constant 2 : index
    %c9_307 = arith.constant 9 : index
    %347 = memref.load %arg2[%c2_306, %c9_307] : memref<8x16xf32, #tpu.memory_space<smem>>
    %c9_308 = arith.constant 9 : index
    %c0_309 = arith.constant 0 : index
    %c0_310 = arith.constant 0 : index
    %348 = vector.load %arg9[%c9_308, %c0_309, %c0_310] : memref<16x32x210xf32, #tpu.memory_space<vmem>>, vector<1x32x210xf32>
    %349 = vector.shape_cast %348 : vector<1x32x210xf32> to vector<32x210xf32>
    %350 = vector.broadcast %347 : f32 to vector<32x210xf32>
    %351 = arith.mulf %350, %349 : vector<32x210xf32>
    %352 = arith.addf %346, %351 : vector<32x210xf32>
    %c2_311 = arith.constant 2 : index
    %c10_312 = arith.constant 10 : index
    %353 = memref.load %arg2[%c2_311, %c10_312] : memref<8x16xf32, #tpu.memory_space<smem>>
    %c10_313 = arith.constant 10 : index
    %c0_314 = arith.constant 0 : index
    %c0_315 = arith.constant 0 : index
    %354 = vector.load %arg9[%c10_313, %c0_314, %c0_315] : memref<16x32x210xf32, #tpu.memory_space<vmem>>, vector<1x32x210xf32>
    %355 = vector.shape_cast %354 : vector<1x32x210xf32> to vector<32x210xf32>
    %356 = vector.broadcast %353 : f32 to vector<32x210xf32>
    %357 = arith.mulf %356, %355 : vector<32x210xf32>
    %358 = arith.addf %352, %357 : vector<32x210xf32>
    %c2_316 = arith.constant 2 : index
    %c11_317 = arith.constant 11 : index
    %359 = memref.load %arg2[%c2_316, %c11_317] : memref<8x16xf32, #tpu.memory_space<smem>>
    %c11_318 = arith.constant 11 : index
    %c0_319 = arith.constant 0 : index
    %c0_320 = arith.constant 0 : index
    %360 = vector.load %arg9[%c11_318, %c0_319, %c0_320] : memref<16x32x210xf32, #tpu.memory_space<vmem>>, vector<1x32x210xf32>
    %361 = vector.shape_cast %360 : vector<1x32x210xf32> to vector<32x210xf32>
    %362 = vector.broadcast %359 : f32 to vector<32x210xf32>
    %363 = arith.mulf %362, %361 : vector<32x210xf32>
    %364 = arith.addf %358, %363 : vector<32x210xf32>
    %c2_321 = arith.constant 2 : index
    %c12_322 = arith.constant 12 : index
    %365 = memref.load %arg2[%c2_321, %c12_322] : memref<8x16xf32, #tpu.memory_space<smem>>
    %c12_323 = arith.constant 12 : index
    %c0_324 = arith.constant 0 : index
    %c0_325 = arith.constant 0 : index
    %366 = vector.load %arg9[%c12_323, %c0_324, %c0_325] : memref<16x32x210xf32, #tpu.memory_space<vmem>>, vector<1x32x210xf32>
    %367 = vector.shape_cast %366 : vector<1x32x210xf32> to vector<32x210xf32>
    %368 = vector.broadcast %365 : f32 to vector<32x210xf32>
    %369 = arith.mulf %368, %367 : vector<32x210xf32>
    %370 = arith.addf %364, %369 : vector<32x210xf32>
    %c2_326 = arith.constant 2 : index
    %c13_327 = arith.constant 13 : index
    %371 = memref.load %arg2[%c2_326, %c13_327] : memref<8x16xf32, #tpu.memory_space<smem>>
    %c13_328 = arith.constant 13 : index
    %c0_329 = arith.constant 0 : index
    %c0_330 = arith.constant 0 : index
    %372 = vector.load %arg9[%c13_328, %c0_329, %c0_330] : memref<16x32x210xf32, #tpu.memory_space<vmem>>, vector<1x32x210xf32>
    %373 = vector.shape_cast %372 : vector<1x32x210xf32> to vector<32x210xf32>
    %374 = vector.broadcast %371 : f32 to vector<32x210xf32>
    %375 = arith.mulf %374, %373 : vector<32x210xf32>
    %376 = arith.addf %370, %375 : vector<32x210xf32>
    %c2_331 = arith.constant 2 : index
    %c14_332 = arith.constant 14 : index
    %377 = memref.load %arg2[%c2_331, %c14_332] : memref<8x16xf32, #tpu.memory_space<smem>>
    %c14_333 = arith.constant 14 : index
    %c0_334 = arith.constant 0 : index
    %c0_335 = arith.constant 0 : index
    %378 = vector.load %arg9[%c14_333, %c0_334, %c0_335] : memref<16x32x210xf32, #tpu.memory_space<vmem>>, vector<1x32x210xf32>
    %379 = vector.shape_cast %378 : vector<1x32x210xf32> to vector<32x210xf32>
    %380 = vector.broadcast %377 : f32 to vector<32x210xf32>
    %381 = arith.mulf %380, %379 : vector<32x210xf32>
    %382 = arith.addf %376, %381 : vector<32x210xf32>
    %c2_336 = arith.constant 2 : index
    %c15_337 = arith.constant 15 : index
    %383 = memref.load %arg2[%c2_336, %c15_337] : memref<8x16xf32, #tpu.memory_space<smem>>
    %c15_338 = arith.constant 15 : index
    %c0_339 = arith.constant 0 : index
    %c0_340 = arith.constant 0 : index
    %384 = vector.load %arg9[%c15_338, %c0_339, %c0_340] : memref<16x32x210xf32, #tpu.memory_space<vmem>>, vector<1x32x210xf32>
    %385 = vector.shape_cast %384 : vector<1x32x210xf32> to vector<32x210xf32>
    %386 = vector.broadcast %383 : f32 to vector<32x210xf32>
    %387 = arith.mulf %386, %385 : vector<32x210xf32>
    %388 = arith.addf %382, %387 : vector<32x210xf32>
    %c2_341 = arith.constant 2 : index
    %389 = memref.load %arg3[%c2_341] : memref<8xf32, #tpu.memory_space<smem>>
    %390 = vector.broadcast %389 : f32 to vector<32x210xf32>
    %391 = arith.addf %388, %390 : vector<32x210xf32>
    %cst_342 = arith.constant 0.000000e+00 : f32
    %392 = vector.broadcast %cst_342 : f32 to vector<32x210xf32>
    %393 = arith.maximumf %391, %392 : vector<32x210xf32>
    %c0_343 = arith.constant 0 : index
    %c0_344 = arith.constant 0 : index
    %394 = vector.load %arg10[%c0_343, %c0_344] : memref<32x64xf32, #tpu.memory_space<vmem>>, vector<32x64xf32>
    %c2_345 = arith.constant 2 : index
    %c0_346 = arith.constant 0 : index
    %c0_347 = arith.constant 0 : index
    %395 = vector.load %arg4[%c2_345, %c0_346, %c0_347] : memref<8x210x64xf32, #tpu.memory_space<vmem>>, vector<1x210x64xf32>
    %396 = vector.shape_cast %395 : vector<1x210x64xf32> to vector<210x64xf32>
    %cst_348 = arith.constant dense<0.000000e+00> : vector<32x64xf32>
    %397 = tpu.matmul %393, %396, %cst_348 {dimension_numbers = #tpu.dot_dimension_numbers<[1], [0], [0], [1], [0, 0, 1, 1], [], []>} : vector<32x210xf32>, vector<210x64xf32>, vector<32x64xf32> -> vector<32x64xf32>
    %398 = arith.addf %394, %397 : vector<32x64xf32>
    %c0_349 = arith.constant 0 : index
    %c0_350 = arith.constant 0 : index
    %399 = vector.load %arg10[%c0_349, %c0_350] : memref<32x64xf32, #tpu.memory_space<vmem>>, vector<32x64xf32>
    tpu.vector_store %arg10[%c0_349, %c0_350], %398 {strides = array<i32>} : memref<32x64xf32, #tpu.memory_space<vmem>>, vector<32x64xf32>,
    %c3_351 = arith.constant 3 : index
    %c0_352 = arith.constant 0 : index
    %400 = memref.load %arg2[%c3_351, %c0_352] : memref<8x16xf32, #tpu.memory_space<smem>>
    %c0_353 = arith.constant 0 : index
    %c0_354 = arith.constant 0 : index
    %c0_355 = arith.constant 0 : index
    %401 = vector.load %arg9[%c0_353, %c0_354, %c0_355] : memref<16x32x210xf32, #tpu.memory_space<vmem>>, vector<1x32x210xf32>
    %402 = vector.shape_cast %401 : vector<1x32x210xf32> to vector<32x210xf32>
    %403 = vector.broadcast %400 : f32 to vector<32x210xf32>
    %404 = arith.mulf %403, %402 : vector<32x210xf32>
    %c3_356 = arith.constant 3 : index
    %c1_357 = arith.constant 1 : index
    %405 = memref.load %arg2[%c3_356, %c1_357] : memref<8x16xf32, #tpu.memory_space<smem>>
    %c1_358 = arith.constant 1 : index
    %c0_359 = arith.constant 0 : index
    %c0_360 = arith.constant 0 : index
    %406 = vector.load %arg9[%c1_358, %c0_359, %c0_360] : memref<16x32x210xf32, #tpu.memory_space<vmem>>, vector<1x32x210xf32>
    %407 = vector.shape_cast %406 : vector<1x32x210xf32> to vector<32x210xf32>
    %408 = vector.broadcast %405 : f32 to vector<32x210xf32>
    %409 = arith.mulf %408, %407 : vector<32x210xf32>
    %410 = arith.addf %404, %409 : vector<32x210xf32>
    %c3_361 = arith.constant 3 : index
    %c2_362 = arith.constant 2 : index
    %411 = memref.load %arg2[%c3_361, %c2_362] : memref<8x16xf32, #tpu.memory_space<smem>>
    %c2_363 = arith.constant 2 : index
    %c0_364 = arith.constant 0 : index
    %c0_365 = arith.constant 0 : index
    %412 = vector.load %arg9[%c2_363, %c0_364, %c0_365] : memref<16x32x210xf32, #tpu.memory_space<vmem>>, vector<1x32x210xf32>
    %413 = vector.shape_cast %412 : vector<1x32x210xf32> to vector<32x210xf32>
    %414 = vector.broadcast %411 : f32 to vector<32x210xf32>
    %415 = arith.mulf %414, %413 : vector<32x210xf32>
    %416 = arith.addf %410, %415 : vector<32x210xf32>
    %c3_366 = arith.constant 3 : index
    %c3_367 = arith.constant 3 : index
    %417 = memref.load %arg2[%c3_366, %c3_367] : memref<8x16xf32, #tpu.memory_space<smem>>
    %c3_368 = arith.constant 3 : index
    %c0_369 = arith.constant 0 : index
    %c0_370 = arith.constant 0 : index
    %418 = vector.load %arg9[%c3_368, %c0_369, %c0_370] : memref<16x32x210xf32, #tpu.memory_space<vmem>>, vector<1x32x210xf32>
    %419 = vector.shape_cast %418 : vector<1x32x210xf32> to vector<32x210xf32>
    %420 = vector.broadcast %417 : f32 to vector<32x210xf32>
    %421 = arith.mulf %420, %419 : vector<32x210xf32>
    %422 = arith.addf %416, %421 : vector<32x210xf32>
    %c3_371 = arith.constant 3 : index
    %c4_372 = arith.constant 4 : index
    %423 = memref.load %arg2[%c3_371, %c4_372] : memref<8x16xf32, #tpu.memory_space<smem>>
    %c4_373 = arith.constant 4 : index
    %c0_374 = arith.constant 0 : index
    %c0_375 = arith.constant 0 : index
    %424 = vector.load %arg9[%c4_373, %c0_374, %c0_375] : memref<16x32x210xf32, #tpu.memory_space<vmem>>, vector<1x32x210xf32>
    %425 = vector.shape_cast %424 : vector<1x32x210xf32> to vector<32x210xf32>
    %426 = vector.broadcast %423 : f32 to vector<32x210xf32>
    %427 = arith.mulf %426, %425 : vector<32x210xf32>
    %428 = arith.addf %422, %427 : vector<32x210xf32>
    %c3_376 = arith.constant 3 : index
    %c5_377 = arith.constant 5 : index
    %429 = memref.load %arg2[%c3_376, %c5_377] : memref<8x16xf32, #tpu.memory_space<smem>>
    %c5_378 = arith.constant 5 : index
    %c0_379 = arith.constant 0 : index
    %c0_380 = arith.constant 0 : index
    %430 = vector.load %arg9[%c5_378, %c0_379, %c0_380] : memref<16x32x210xf32, #tpu.memory_space<vmem>>, vector<1x32x210xf32>
    %431 = vector.shape_cast %430 : vector<1x32x210xf32> to vector<32x210xf32>
    %432 = vector.broadcast %429 : f32 to vector<32x210xf32>
    %433 = arith.mulf %432, %431 : vector<32x210xf32>
    %434 = arith.addf %428, %433 : vector<32x210xf32>
    %c3_381 = arith.constant 3 : index
    %c6_382 = arith.constant 6 : index
    %435 = memref.load %arg2[%c3_381, %c6_382] : memref<8x16xf32, #tpu.memory_space<smem>>
    %c6_383 = arith.constant 6 : index
    %c0_384 = arith.constant 0 : index
    %c0_385 = arith.constant 0 : index
    %436 = vector.load %arg9[%c6_383, %c0_384, %c0_385] : memref<16x32x210xf32, #tpu.memory_space<vmem>>, vector<1x32x210xf32>
    %437 = vector.shape_cast %436 : vector<1x32x210xf32> to vector<32x210xf32>
    %438 = vector.broadcast %435 : f32 to vector<32x210xf32>
    %439 = arith.mulf %438, %437 : vector<32x210xf32>
    %440 = arith.addf %434, %439 : vector<32x210xf32>
    %c3_386 = arith.constant 3 : index
    %c7_387 = arith.constant 7 : index
    %441 = memref.load %arg2[%c3_386, %c7_387] : memref<8x16xf32, #tpu.memory_space<smem>>
    %c7_388 = arith.constant 7 : index
    %c0_389 = arith.constant 0 : index
    %c0_390 = arith.constant 0 : index
    %442 = vector.load %arg9[%c7_388, %c0_389, %c0_390] : memref<16x32x210xf32, #tpu.memory_space<vmem>>, vector<1x32x210xf32>
    %443 = vector.shape_cast %442 : vector<1x32x210xf32> to vector<32x210xf32>
    %444 = vector.broadcast %441 : f32 to vector<32x210xf32>
    %445 = arith.mulf %444, %443 : vector<32x210xf32>
    %446 = arith.addf %440, %445 : vector<32x210xf32>
    %c3_391 = arith.constant 3 : index
    %c8_392 = arith.constant 8 : index
    %447 = memref.load %arg2[%c3_391, %c8_392] : memref<8x16xf32, #tpu.memory_space<smem>>
    %c8_393 = arith.constant 8 : index
    %c0_394 = arith.constant 0 : index
    %c0_395 = arith.constant 0 : index
    %448 = vector.load %arg9[%c8_393, %c0_394, %c0_395] : memref<16x32x210xf32, #tpu.memory_space<vmem>>, vector<1x32x210xf32>
    %449 = vector.shape_cast %448 : vector<1x32x210xf32> to vector<32x210xf32>
    %450 = vector.broadcast %447 : f32 to vector<32x210xf32>
    %451 = arith.mulf %450, %449 : vector<32x210xf32>
    %452 = arith.addf %446, %451 : vector<32x210xf32>
    %c3_396 = arith.constant 3 : index
    %c9_397 = arith.constant 9 : index
    %453 = memref.load %arg2[%c3_396, %c9_397] : memref<8x16xf32, #tpu.memory_space<smem>>
    %c9_398 = arith.constant 9 : index
    %c0_399 = arith.constant 0 : index
    %c0_400 = arith.constant 0 : index
    %454 = vector.load %arg9[%c9_398, %c0_399, %c0_400] : memref<16x32x210xf32, #tpu.memory_space<vmem>>, vector<1x32x210xf32>
    %455 = vector.shape_cast %454 : vector<1x32x210xf32> to vector<32x210xf32>
    %456 = vector.broadcast %453 : f32 to vector<32x210xf32>
    %457 = arith.mulf %456, %455 : vector<32x210xf32>
    %458 = arith.addf %452, %457 : vector<32x210xf32>
    %c3_401 = arith.constant 3 : index
    %c10_402 = arith.constant 10 : index
    %459 = memref.load %arg2[%c3_401, %c10_402] : memref<8x16xf32, #tpu.memory_space<smem>>
    %c10_403 = arith.constant 10 : index
    %c0_404 = arith.constant 0 : index
    %c0_405 = arith.constant 0 : index
    %460 = vector.load %arg9[%c10_403, %c0_404, %c0_405] : memref<16x32x210xf32, #tpu.memory_space<vmem>>, vector<1x32x210xf32>
    %461 = vector.shape_cast %460 : vector<1x32x210xf32> to vector<32x210xf32>
    %462 = vector.broadcast %459 : f32 to vector<32x210xf32>
    %463 = arith.mulf %462, %461 : vector<32x210xf32>
    %464 = arith.addf %458, %463 : vector<32x210xf32>
    %c3_406 = arith.constant 3 : index
    %c11_407 = arith.constant 11 : index
    %465 = memref.load %arg2[%c3_406, %c11_407] : memref<8x16xf32, #tpu.memory_space<smem>>
    %c11_408 = arith.constant 11 : index
    %c0_409 = arith.constant 0 : index
    %c0_410 = arith.constant 0 : index
    %466 = vector.load %arg9[%c11_408, %c0_409, %c0_410] : memref<16x32x210xf32, #tpu.memory_space<vmem>>, vector<1x32x210xf32>
    %467 = vector.shape_cast %466 : vector<1x32x210xf32> to vector<32x210xf32>
    %468 = vector.broadcast %465 : f32 to vector<32x210xf32>
    %469 = arith.mulf %468, %467 : vector<32x210xf32>
    %470 = arith.addf %464, %469 : vector<32x210xf32>
    %c3_411 = arith.constant 3 : index
    %c12_412 = arith.constant 12 : index
    %471 = memref.load %arg2[%c3_411, %c12_412] : memref<8x16xf32, #tpu.memory_space<smem>>
    %c12_413 = arith.constant 12 : index
    %c0_414 = arith.constant 0 : index
    %c0_415 = arith.constant 0 : index
    %472 = vector.load %arg9[%c12_413, %c0_414, %c0_415] : memref<16x32x210xf32, #tpu.memory_space<vmem>>, vector<1x32x210xf32>
    %473 = vector.shape_cast %472 : vector<1x32x210xf32> to vector<32x210xf32>
    %474 = vector.broadcast %471 : f32 to vector<32x210xf32>
    %475 = arith.mulf %474, %473 : vector<32x210xf32>
    %476 = arith.addf %470, %475 : vector<32x210xf32>
    %c3_416 = arith.constant 3 : index
    %c13_417 = arith.constant 13 : index
    %477 = memref.load %arg2[%c3_416, %c13_417] : memref<8x16xf32, #tpu.memory_space<smem>>
    %c13_418 = arith.constant 13 : index
    %c0_419 = arith.constant 0 : index
    %c0_420 = arith.constant 0 : index
    %478 = vector.load %arg9[%c13_418, %c0_419, %c0_420] : memref<16x32x210xf32, #tpu.memory_space<vmem>>, vector<1x32x210xf32>
    %479 = vector.shape_cast %478 : vector<1x32x210xf32> to vector<32x210xf32>
    %480 = vector.broadcast %477 : f32 to vector<32x210xf32>
    %481 = arith.mulf %480, %479 : vector<32x210xf32>
    %482 = arith.addf %476, %481 : vector<32x210xf32>
    %c3_421 = arith.constant 3 : index
    %c14_422 = arith.constant 14 : index
    %483 = memref.load %arg2[%c3_421, %c14_422] : memref<8x16xf32, #tpu.memory_space<smem>>
    %c14_423 = arith.constant 14 : index
    %c0_424 = arith.constant 0 : index
    %c0_425 = arith.constant 0 : index
    %484 = vector.load %arg9[%c14_423, %c0_424, %c0_425] : memref<16x32x210xf32, #tpu.memory_space<vmem>>, vector<1x32x210xf32>
    %485 = vector.shape_cast %484 : vector<1x32x210xf32> to vector<32x210xf32>
    %486 = vector.broadcast %483 : f32 to vector<32x210xf32>
    %487 = arith.mulf %486, %485 : vector<32x210xf32>
    %488 = arith.addf %482, %487 : vector<32x210xf32>
    %c3_426 = arith.constant 3 : index
    %c15_427 = arith.constant 15 : index
    %489 = memref.load %arg2[%c3_426, %c15_427] : memref<8x16xf32, #tpu.memory_space<smem>>
    %c15_428 = arith.constant 15 : index
    %c0_429 = arith.constant 0 : index
    %c0_430 = arith.constant 0 : index
    %490 = vector.load %arg9[%c15_428, %c0_429, %c0_430] : memref<16x32x210xf32, #tpu.memory_space<vmem>>, vector<1x32x210xf32>
    %491 = vector.shape_cast %490 : vector<1x32x210xf32> to vector<32x210xf32>
    %492 = vector.broadcast %489 : f32 to vector<32x210xf32>
    %493 = arith.mulf %492, %491 : vector<32x210xf32>
    %494 = arith.addf %488, %493 : vector<32x210xf32>
    %c3_431 = arith.constant 3 : index
    %495 = memref.load %arg3[%c3_431] : memref<8xf32, #tpu.memory_space<smem>>
    %496 = vector.broadcast %495 : f32 to vector<32x210xf32>
    %497 = arith.addf %494, %496 : vector<32x210xf32>
    %cst_432 = arith.constant 0.000000e+00 : f32
    %498 = vector.broadcast %cst_432 : f32 to vector<32x210xf32>
    %499 = arith.maximumf %497, %498 : vector<32x210xf32>
    %c0_433 = arith.constant 0 : index
    %c0_434 = arith.constant 0 : index
    %500 = vector.load %arg10[%c0_433, %c0_434] : memref<32x64xf32, #tpu.memory_space<vmem>>, vector<32x64xf32>
    %c3_435 = arith.constant 3 : index
    %c0_436 = arith.constant 0 : index
    %c0_437 = arith.constant 0 : index
    %501 = vector.load %arg4[%c3_435, %c0_436, %c0_437] : memref<8x210x64xf32, #tpu.memory_space<vmem>>, vector<1x210x64xf32>
    %502 = vector.shape_cast %501 : vector<1x210x64xf32> to vector<210x64xf32>
    %cst_438 = arith.constant dense<0.000000e+00> : vector<32x64xf32>
    %503 = tpu.matmul %499, %502, %cst_438 {dimension_numbers = #tpu.dot_dimension_numbers<[1], [0], [0], [1], [0, 0, 1, 1], [], []>} : vector<32x210xf32>, vector<210x64xf32>, vector<32x64xf32> -> vector<32x64xf32>
    %504 = arith.addf %500, %503 : vector<32x64xf32>
    %c0_439 = arith.constant 0 : index
    %c0_440 = arith.constant 0 : index
    %505 = vector.load %arg10[%c0_439, %c0_440] : memref<32x64xf32, #tpu.memory_space<vmem>>, vector<32x64xf32>
    tpu.vector_store %arg10[%c0_439, %c0_440], %504 {strides = array<i32>} : memref<32x64xf32, #tpu.memory_space<vmem>>, vector<32x64xf32>,
    %c4_441 = arith.constant 4 : index
    %c0_442 = arith.constant 0 : index
    %506 = memref.load %arg2[%c4_441, %c0_442] : memref<8x16xf32, #tpu.memory_space<smem>>
    %c0_443 = arith.constant 0 : index
    %c0_444 = arith.constant 0 : index
    %c0_445 = arith.constant 0 : index
    %507 = vector.load %arg9[%c0_443, %c0_444, %c0_445] : memref<16x32x210xf32, #tpu.memory_space<vmem>>, vector<1x32x210xf32>
    %508 = vector.shape_cast %507 : vector<1x32x210xf32> to vector<32x210xf32>
    %509 = vector.broadcast %506 : f32 to vector<32x210xf32>
    %510 = arith.mulf %509, %508 : vector<32x210xf32>
    %c4_446 = arith.constant 4 : index
    %c1_447 = arith.constant 1 : index
    %511 = memref.load %arg2[%c4_446, %c1_447] : memref<8x16xf32, #tpu.memory_space<smem>>
    %c1_448 = arith.constant 1 : index
    %c0_449 = arith.constant 0 : index
    %c0_450 = arith.constant 0 : index
    %512 = vector.load %arg9[%c1_448, %c0_449, %c0_450] : memref<16x32x210xf32, #tpu.memory_space<vmem>>, vector<1x32x210xf32>
    %513 = vector.shape_cast %512 : vector<1x32x210xf32> to vector<32x210xf32>
    %514 = vector.broadcast %511 : f32 to vector<32x210xf32>
    %515 = arith.mulf %514, %513 : vector<32x210xf32>
    %516 = arith.addf %510, %515 : vector<32x210xf32>
    %c4_451 = arith.constant 4 : index
    %c2_452 = arith.constant 2 : index
    %517 = memref.load %arg2[%c4_451, %c2_452] : memref<8x16xf32, #tpu.memory_space<smem>>
    %c2_453 = arith.constant 2 : index
    %c0_454 = arith.constant 0 : index
    %c0_455 = arith.constant 0 : index
    %518 = vector.load %arg9[%c2_453, %c0_454, %c0_455] : memref<16x32x210xf32, #tpu.memory_space<vmem>>, vector<1x32x210xf32>
    %519 = vector.shape_cast %518 : vector<1x32x210xf32> to vector<32x210xf32>
    %520 = vector.broadcast %517 : f32 to vector<32x210xf32>
    %521 = arith.mulf %520, %519 : vector<32x210xf32>
    %522 = arith.addf %516, %521 : vector<32x210xf32>
    %c4_456 = arith.constant 4 : index
    %c3_457 = arith.constant 3 : index
    %523 = memref.load %arg2[%c4_456, %c3_457] : memref<8x16xf32, #tpu.memory_space<smem>>
    %c3_458 = arith.constant 3 : index
    %c0_459 = arith.constant 0 : index
    %c0_460 = arith.constant 0 : index
    %524 = vector.load %arg9[%c3_458, %c0_459, %c0_460] : memref<16x32x210xf32, #tpu.memory_space<vmem>>, vector<1x32x210xf32>
    %525 = vector.shape_cast %524 : vector<1x32x210xf32> to vector<32x210xf32>
    %526 = vector.broadcast %523 : f32 to vector<32x210xf32>
    %527 = arith.mulf %526, %525 : vector<32x210xf32>
    %528 = arith.addf %522, %527 : vector<32x210xf32>
    %c4_461 = arith.constant 4 : index
    %c4_462 = arith.constant 4 : index
    %529 = memref.load %arg2[%c4_461, %c4_462] : memref<8x16xf32, #tpu.memory_space<smem>>
    %c4_463 = arith.constant 4 : index
    %c0_464 = arith.constant 0 : index
    %c0_465 = arith.constant 0 : index
    %530 = vector.load %arg9[%c4_463, %c0_464, %c0_465] : memref<16x32x210xf32, #tpu.memory_space<vmem>>, vector<1x32x210xf32>
    %531 = vector.shape_cast %530 : vector<1x32x210xf32> to vector<32x210xf32>
    %532 = vector.broadcast %529 : f32 to vector<32x210xf32>
    %533 = arith.mulf %532, %531 : vector<32x210xf32>
    %534 = arith.addf %528, %533 : vector<32x210xf32>
    %c4_466 = arith.constant 4 : index
    %c5_467 = arith.constant 5 : index
    %535 = memref.load %arg2[%c4_466, %c5_467] : memref<8x16xf32, #tpu.memory_space<smem>>
    %c5_468 = arith.constant 5 : index
    %c0_469 = arith.constant 0 : index
    %c0_470 = arith.constant 0 : index
    %536 = vector.load %arg9[%c5_468, %c0_469, %c0_470] : memref<16x32x210xf32, #tpu.memory_space<vmem>>, vector<1x32x210xf32>
    %537 = vector.shape_cast %536 : vector<1x32x210xf32> to vector<32x210xf32>
    %538 = vector.broadcast %535 : f32 to vector<32x210xf32>
    %539 = arith.mulf %538, %537 : vector<32x210xf32>
    %540 = arith.addf %534, %539 : vector<32x210xf32>
    %c4_471 = arith.constant 4 : index
    %c6_472 = arith.constant 6 : index
    %541 = memref.load %arg2[%c4_471, %c6_472] : memref<8x16xf32, #tpu.memory_space<smem>>
    %c6_473 = arith.constant 6 : index
    %c0_474 = arith.constant 0 : index
    %c0_475 = arith.constant 0 : index
    %542 = vector.load %arg9[%c6_473, %c0_474, %c0_475] : memref<16x32x210xf32, #tpu.memory_space<vmem>>, vector<1x32x210xf32>
    %543 = vector.shape_cast %542 : vector<1x32x210xf32> to vector<32x210xf32>
    %544 = vector.broadcast %541 : f32 to vector<32x210xf32>
    %545 = arith.mulf %544, %543 : vector<32x210xf32>
    %546 = arith.addf %540, %545 : vector<32x210xf32>
    %c4_476 = arith.constant 4 : index
    %c7_477 = arith.constant 7 : index
    %547 = memref.load %arg2[%c4_476, %c7_477] : memref<8x16xf32, #tpu.memory_space<smem>>
    %c7_478 = arith.constant 7 : index
    %c0_479 = arith.constant 0 : index
    %c0_480 = arith.constant 0 : index
    %548 = vector.load %arg9[%c7_478, %c0_479, %c0_480] : memref<16x32x210xf32, #tpu.memory_space<vmem>>, vector<1x32x210xf32>
    %549 = vector.shape_cast %548 : vector<1x32x210xf32> to vector<32x210xf32>
    %550 = vector.broadcast %547 : f32 to vector<32x210xf32>
    %551 = arith.mulf %550, %549 : vector<32x210xf32>
    %552 = arith.addf %546, %551 : vector<32x210xf32>
    %c4_481 = arith.constant 4 : index
    %c8_482 = arith.constant 8 : index
    %553 = memref.load %arg2[%c4_481, %c8_482] : memref<8x16xf32, #tpu.memory_space<smem>>
    %c8_483 = arith.constant 8 : index
    %c0_484 = arith.constant 0 : index
    %c0_485 = arith.constant 0 : index
    %554 = vector.load %arg9[%c8_483, %c0_484, %c0_485] : memref<16x32x210xf32, #tpu.memory_space<vmem>>, vector<1x32x210xf32>
    %555 = vector.shape_cast %554 : vector<1x32x210xf32> to vector<32x210xf32>
    %556 = vector.broadcast %553 : f32 to vector<32x210xf32>
    %557 = arith.mulf %556, %555 : vector<32x210xf32>
    %558 = arith.addf %552, %557 : vector<32x210xf32>
    %c4_486 = arith.constant 4 : index
    %c9_487 = arith.constant 9 : index
    %559 = memref.load %arg2[%c4_486, %c9_487] : memref<8x16xf32, #tpu.memory_space<smem>>
    %c9_488 = arith.constant 9 : index
    %c0_489 = arith.constant 0 : index
    %c0_490 = arith.constant 0 : index
    %560 = vector.load %arg9[%c9_488, %c0_489, %c0_490] : memref<16x32x210xf32, #tpu.memory_space<vmem>>, vector<1x32x210xf32>
    %561 = vector.shape_cast %560 : vector<1x32x210xf32> to vector<32x210xf32>
    %562 = vector.broadcast %559 : f32 to vector<32x210xf32>
    %563 = arith.mulf %562, %561 : vector<32x210xf32>
    %564 = arith.addf %558, %563 : vector<32x210xf32>
    %c4_491 = arith.constant 4 : index
    %c10_492 = arith.constant 10 : index
    %565 = memref.load %arg2[%c4_491, %c10_492] : memref<8x16xf32, #tpu.memory_space<smem>>
    %c10_493 = arith.constant 10 : index
    %c0_494 = arith.constant 0 : index
    %c0_495 = arith.constant 0 : index
    %566 = vector.load %arg9[%c10_493, %c0_494, %c0_495] : memref<16x32x210xf32, #tpu.memory_space<vmem>>, vector<1x32x210xf32>
    %567 = vector.shape_cast %566 : vector<1x32x210xf32> to vector<32x210xf32>
    %568 = vector.broadcast %565 : f32 to vector<32x210xf32>
    %569 = arith.mulf %568, %567 : vector<32x210xf32>
    %570 = arith.addf %564, %569 : vector<32x210xf32>
    %c4_496 = arith.constant 4 : index
    %c11_497 = arith.constant 11 : index
    %571 = memref.load %arg2[%c4_496, %c11_497] : memref<8x16xf32, #tpu.memory_space<smem>>
    %c11_498 = arith.constant 11 : index
    %c0_499 = arith.constant 0 : index
    %c0_500 = arith.constant 0 : index
    %572 = vector.load %arg9[%c11_498, %c0_499, %c0_500] : memref<16x32x210xf32, #tpu.memory_space<vmem>>, vector<1x32x210xf32>
    %573 = vector.shape_cast %572 : vector<1x32x210xf32> to vector<32x210xf32>
    %574 = vector.broadcast %571 : f32 to vector<32x210xf32>
    %575 = arith.mulf %574, %573 : vector<32x210xf32>
    %576 = arith.addf %570, %575 : vector<32x210xf32>
    %c4_501 = arith.constant 4 : index
    %c12_502 = arith.constant 12 : index
    %577 = memref.load %arg2[%c4_501, %c12_502] : memref<8x16xf32, #tpu.memory_space<smem>>
    %c12_503 = arith.constant 12 : index
    %c0_504 = arith.constant 0 : index
    %c0_505 = arith.constant 0 : index
    %578 = vector.load %arg9[%c12_503, %c0_504, %c0_505] : memref<16x32x210xf32, #tpu.memory_space<vmem>>, vector<1x32x210xf32>
    %579 = vector.shape_cast %578 : vector<1x32x210xf32> to vector<32x210xf32>
    %580 = vector.broadcast %577 : f32 to vector<32x210xf32>
    %581 = arith.mulf %580, %579 : vector<32x210xf32>
    %582 = arith.addf %576, %581 : vector<32x210xf32>
    %c4_506 = arith.constant 4 : index
    %c13_507 = arith.constant 13 : index
    %583 = memref.load %arg2[%c4_506, %c13_507] : memref<8x16xf32, #tpu.memory_space<smem>>
    %c13_508 = arith.constant 13 : index
    %c0_509 = arith.constant 0 : index
    %c0_510 = arith.constant 0 : index
    %584 = vector.load %arg9[%c13_508, %c0_509, %c0_510] : memref<16x32x210xf32, #tpu.memory_space<vmem>>, vector<1x32x210xf32>
    %585 = vector.shape_cast %584 : vector<1x32x210xf32> to vector<32x210xf32>
    %586 = vector.broadcast %583 : f32 to vector<32x210xf32>
    %587 = arith.mulf %586, %585 : vector<32x210xf32>
    %588 = arith.addf %582, %587 : vector<32x210xf32>
    %c4_511 = arith.constant 4 : index
    %c14_512 = arith.constant 14 : index
    %589 = memref.load %arg2[%c4_511, %c14_512] : memref<8x16xf32, #tpu.memory_space<smem>>
    %c14_513 = arith.constant 14 : index
    %c0_514 = arith.constant 0 : index
    %c0_515 = arith.constant 0 : index
    %590 = vector.load %arg9[%c14_513, %c0_514, %c0_515] : memref<16x32x210xf32, #tpu.memory_space<vmem>>, vector<1x32x210xf32>
    %591 = vector.shape_cast %590 : vector<1x32x210xf32> to vector<32x210xf32>
    %592 = vector.broadcast %589 : f32 to vector<32x210xf32>
    %593 = arith.mulf %592, %591 : vector<32x210xf32>
    %594 = arith.addf %588, %593 : vector<32x210xf32>
    %c4_516 = arith.constant 4 : index
    %c15_517 = arith.constant 15 : index
    %595 = memref.load %arg2[%c4_516, %c15_517] : memref<8x16xf32, #tpu.memory_space<smem>>
    %c15_518 = arith.constant 15 : index
    %c0_519 = arith.constant 0 : index
    %c0_520 = arith.constant 0 : index
    %596 = vector.load %arg9[%c15_518, %c0_519, %c0_520] : memref<16x32x210xf32, #tpu.memory_space<vmem>>, vector<1x32x210xf32>
    %597 = vector.shape_cast %596 : vector<1x32x210xf32> to vector<32x210xf32>
    %598 = vector.broadcast %595 : f32 to vector<32x210xf32>
    %599 = arith.mulf %598, %597 : vector<32x210xf32>
    %600 = arith.addf %594, %599 : vector<32x210xf32>
    %c4_521 = arith.constant 4 : index
    %601 = memref.load %arg3[%c4_521] : memref<8xf32, #tpu.memory_space<smem>>
    %602 = vector.broadcast %601 : f32 to vector<32x210xf32>
    %603 = arith.addf %600, %602 : vector<32x210xf32>
    %cst_522 = arith.constant 0.000000e+00 : f32
    %604 = vector.broadcast %cst_522 : f32 to vector<32x210xf32>
    %605 = arith.maximumf %603, %604 : vector<32x210xf32>
    %c0_523 = arith.constant 0 : index
    %c0_524 = arith.constant 0 : index
    %606 = vector.load %arg10[%c0_523, %c0_524] : memref<32x64xf32, #tpu.memory_space<vmem>>, vector<32x64xf32>
    %c4_525 = arith.constant 4 : index
    %c0_526 = arith.constant 0 : index
    %c0_527 = arith.constant 0 : index
    %607 = vector.load %arg4[%c4_525, %c0_526, %c0_527] : memref<8x210x64xf32, #tpu.memory_space<vmem>>, vector<1x210x64xf32>
    %608 = vector.shape_cast %607 : vector<1x210x64xf32> to vector<210x64xf32>
    %cst_528 = arith.constant dense<0.000000e+00> : vector<32x64xf32>
    %609 = tpu.matmul %605, %608, %cst_528 {dimension_numbers = #tpu.dot_dimension_numbers<[1], [0], [0], [1], [0, 0, 1, 1], [], []>} : vector<32x210xf32>, vector<210x64xf32>, vector<32x64xf32> -> vector<32x64xf32>
    %610 = arith.addf %606, %609 : vector<32x64xf32>
    %c0_529 = arith.constant 0 : index
    %c0_530 = arith.constant 0 : index
    %611 = vector.load %arg10[%c0_529, %c0_530] : memref<32x64xf32, #tpu.memory_space<vmem>>, vector<32x64xf32>
    tpu.vector_store %arg10[%c0_529, %c0_530], %610 {strides = array<i32>} : memref<32x64xf32, #tpu.memory_space<vmem>>, vector<32x64xf32>,
    %c5_531 = arith.constant 5 : index
    %c0_532 = arith.constant 0 : index
    %612 = memref.load %arg2[%c5_531, %c0_532] : memref<8x16xf32, #tpu.memory_space<smem>>
    %c0_533 = arith.constant 0 : index
    %c0_534 = arith.constant 0 : index
    %c0_535 = arith.constant 0 : index
    %613 = vector.load %arg9[%c0_533, %c0_534, %c0_535] : memref<16x32x210xf32, #tpu.memory_space<vmem>>, vector<1x32x210xf32>
    %614 = vector.shape_cast %613 : vector<1x32x210xf32> to vector<32x210xf32>
    %615 = vector.broadcast %612 : f32 to vector<32x210xf32>
    %616 = arith.mulf %615, %614 : vector<32x210xf32>
    %c5_536 = arith.constant 5 : index
    %c1_537 = arith.constant 1 : index
    %617 = memref.load %arg2[%c5_536, %c1_537] : memref<8x16xf32, #tpu.memory_space<smem>>
    %c1_538 = arith.constant 1 : index
    %c0_539 = arith.constant 0 : index
    %c0_540 = arith.constant 0 : index
    %618 = vector.load %arg9[%c1_538, %c0_539, %c0_540] : memref<16x32x210xf32, #tpu.memory_space<vmem>>, vector<1x32x210xf32>
    %619 = vector.shape_cast %618 : vector<1x32x210xf32> to vector<32x210xf32>
    %620 = vector.broadcast %617 : f32 to vector<32x210xf32>
    %621 = arith.mulf %620, %619 : vector<32x210xf32>
    %622 = arith.addf %616, %621 : vector<32x210xf32>
    %c5_541 = arith.constant 5 : index
    %c2_542 = arith.constant 2 : index
    %623 = memref.load %arg2[%c5_541, %c2_542] : memref<8x16xf32, #tpu.memory_space<smem>>
    %c2_543 = arith.constant 2 : index
    %c0_544 = arith.constant 0 : index
    %c0_545 = arith.constant 0 : index
    %624 = vector.load %arg9[%c2_543, %c0_544, %c0_545] : memref<16x32x210xf32, #tpu.memory_space<vmem>>, vector<1x32x210xf32>
    %625 = vector.shape_cast %624 : vector<1x32x210xf32> to vector<32x210xf32>
    %626 = vector.broadcast %623 : f32 to vector<32x210xf32>
    %627 = arith.mulf %626, %625 : vector<32x210xf32>
    %628 = arith.addf %622, %627 : vector<32x210xf32>
    %c5_546 = arith.constant 5 : index
    %c3_547 = arith.constant 3 : index
    %629 = memref.load %arg2[%c5_546, %c3_547] : memref<8x16xf32, #tpu.memory_space<smem>>
    %c3_548 = arith.constant 3 : index
    %c0_549 = arith.constant 0 : index
    %c0_550 = arith.constant 0 : index
    %630 = vector.load %arg9[%c3_548, %c0_549, %c0_550] : memref<16x32x210xf32, #tpu.memory_space<vmem>>, vector<1x32x210xf32>
    %631 = vector.shape_cast %630 : vector<1x32x210xf32> to vector<32x210xf32>
    %632 = vector.broadcast %629 : f32 to vector<32x210xf32>
    %633 = arith.mulf %632, %631 : vector<32x210xf32>
    %634 = arith.addf %628, %633 : vector<32x210xf32>
    %c5_551 = arith.constant 5 : index
    %c4_552 = arith.constant 4 : index
    %635 = memref.load %arg2[%c5_551, %c4_552] : memref<8x16xf32, #tpu.memory_space<smem>>
    %c4_553 = arith.constant 4 : index
    %c0_554 = arith.constant 0 : index
    %c0_555 = arith.constant 0 : index
    %636 = vector.load %arg9[%c4_553, %c0_554, %c0_555] : memref<16x32x210xf32, #tpu.memory_space<vmem>>, vector<1x32x210xf32>
    %637 = vector.shape_cast %636 : vector<1x32x210xf32> to vector<32x210xf32>
    %638 = vector.broadcast %635 : f32 to vector<32x210xf32>
    %639 = arith.mulf %638, %637 : vector<32x210xf32>
    %640 = arith.addf %634, %639 : vector<32x210xf32>
    %c5_556 = arith.constant 5 : index
    %c5_557 = arith.constant 5 : index
    %641 = memref.load %arg2[%c5_556, %c5_557] : memref<8x16xf32, #tpu.memory_space<smem>>
    %c5_558 = arith.constant 5 : index
    %c0_559 = arith.constant 0 : index
    %c0_560 = arith.constant 0 : index
    %642 = vector.load %arg9[%c5_558, %c0_559, %c0_560] : memref<16x32x210xf32, #tpu.memory_space<vmem>>, vector<1x32x210xf32>
    %643 = vector.shape_cast %642 : vector<1x32x210xf32> to vector<32x210xf32>
    %644 = vector.broadcast %641 : f32 to vector<32x210xf32>
    %645 = arith.mulf %644, %643 : vector<32x210xf32>
    %646 = arith.addf %640, %645 : vector<32x210xf32>
    %c5_561 = arith.constant 5 : index
    %c6_562 = arith.constant 6 : index
    %647 = memref.load %arg2[%c5_561, %c6_562] : memref<8x16xf32, #tpu.memory_space<smem>>
    %c6_563 = arith.constant 6 : index
    %c0_564 = arith.constant 0 : index
    %c0_565 = arith.constant 0 : index
    %648 = vector.load %arg9[%c6_563, %c0_564, %c0_565] : memref<16x32x210xf32, #tpu.memory_space<vmem>>, vector<1x32x210xf32>
    %649 = vector.shape_cast %648 : vector<1x32x210xf32> to vector<32x210xf32>
    %650 = vector.broadcast %647 : f32 to vector<32x210xf32>
    %651 = arith.mulf %650, %649 : vector<32x210xf32>
    %652 = arith.addf %646, %651 : vector<32x210xf32>
    %c5_566 = arith.constant 5 : index
    %c7_567 = arith.constant 7 : index
    %653 = memref.load %arg2[%c5_566, %c7_567] : memref<8x16xf32, #tpu.memory_space<smem>>
    %c7_568 = arith.constant 7 : index
    %c0_569 = arith.constant 0 : index
    %c0_570 = arith.constant 0 : index
    %654 = vector.load %arg9[%c7_568, %c0_569, %c0_570] : memref<16x32x210xf32, #tpu.memory_space<vmem>>, vector<1x32x210xf32>
    %655 = vector.shape_cast %654 : vector<1x32x210xf32> to vector<32x210xf32>
    %656 = vector.broadcast %653 : f32 to vector<32x210xf32>
    %657 = arith.mulf %656, %655 : vector<32x210xf32>
    %658 = arith.addf %652, %657 : vector<32x210xf32>
    %c5_571 = arith.constant 5 : index
    %c8_572 = arith.constant 8 : index
    %659 = memref.load %arg2[%c5_571, %c8_572] : memref<8x16xf32, #tpu.memory_space<smem>>
    %c8_573 = arith.constant 8 : index
    %c0_574 = arith.constant 0 : index
    %c0_575 = arith.constant 0 : index
    %660 = vector.load %arg9[%c8_573, %c0_574, %c0_575] : memref<16x32x210xf32, #tpu.memory_space<vmem>>, vector<1x32x210xf32>
    %661 = vector.shape_cast %660 : vector<1x32x210xf32> to vector<32x210xf32>
    %662 = vector.broadcast %659 : f32 to vector<32x210xf32>
    %663 = arith.mulf %662, %661 : vector<32x210xf32>
    %664 = arith.addf %658, %663 : vector<32x210xf32>
    %c5_576 = arith.constant 5 : index
    %c9_577 = arith.constant 9 : index
    %665 = memref.load %arg2[%c5_576, %c9_577] : memref<8x16xf32, #tpu.memory_space<smem>>
    %c9_578 = arith.constant 9 : index
    %c0_579 = arith.constant 0 : index
    %c0_580 = arith.constant 0 : index
    %666 = vector.load %arg9[%c9_578, %c0_579, %c0_580] : memref<16x32x210xf32, #tpu.memory_space<vmem>>, vector<1x32x210xf32>
    %667 = vector.shape_cast %666 : vector<1x32x210xf32> to vector<32x210xf32>
    %668 = vector.broadcast %665 : f32 to vector<32x210xf32>
    %669 = arith.mulf %668, %667 : vector<32x210xf32>
    %670 = arith.addf %664, %669 : vector<32x210xf32>
    %c5_581 = arith.constant 5 : index
    %c10_582 = arith.constant 10 : index
    %671 = memref.load %arg2[%c5_581, %c10_582] : memref<8x16xf32, #tpu.memory_space<smem>>
    %c10_583 = arith.constant 10 : index
    %c0_584 = arith.constant 0 : index
    %c0_585 = arith.constant 0 : index
    %672 = vector.load %arg9[%c10_583, %c0_584, %c0_585] : memref<16x32x210xf32, #tpu.memory_space<vmem>>, vector<1x32x210xf32>
    %673 = vector.shape_cast %672 : vector<1x32x210xf32> to vector<32x210xf32>
    %674 = vector.broadcast %671 : f32 to vector<32x210xf32>
    %675 = arith.mulf %674, %673 : vector<32x210xf32>
    %676 = arith.addf %670, %675 : vector<32x210xf32>
    %c5_586 = arith.constant 5 : index
    %c11_587 = arith.constant 11 : index
    %677 = memref.load %arg2[%c5_586, %c11_587] : memref<8x16xf32, #tpu.memory_space<smem>>
    %c11_588 = arith.constant 11 : index
    %c0_589 = arith.constant 0 : index
    %c0_590 = arith.constant 0 : index
    %678 = vector.load %arg9[%c11_588, %c0_589, %c0_590] : memref<16x32x210xf32, #tpu.memory_space<vmem>>, vector<1x32x210xf32>
    %679 = vector.shape_cast %678 : vector<1x32x210xf32> to vector<32x210xf32>
    %680 = vector.broadcast %677 : f32 to vector<32x210xf32>
    %681 = arith.mulf %680, %679 : vector<32x210xf32>
    %682 = arith.addf %676, %681 : vector<32x210xf32>
    %c5_591 = arith.constant 5 : index
    %c12_592 = arith.constant 12 : index
    %683 = memref.load %arg2[%c5_591, %c12_592] : memref<8x16xf32, #tpu.memory_space<smem>>
    %c12_593 = arith.constant 12 : index
    %c0_594 = arith.constant 0 : index
    %c0_595 = arith.constant 0 : index
    %684 = vector.load %arg9[%c12_593, %c0_594, %c0_595] : memref<16x32x210xf32, #tpu.memory_space<vmem>>, vector<1x32x210xf32>
    %685 = vector.shape_cast %684 : vector<1x32x210xf32> to vector<32x210xf32>
    %686 = vector.broadcast %683 : f32 to vector<32x210xf32>
    %687 = arith.mulf %686, %685 : vector<32x210xf32>
    %688 = arith.addf %682, %687 : vector<32x210xf32>
    %c5_596 = arith.constant 5 : index
    %c13_597 = arith.constant 13 : index
    %689 = memref.load %arg2[%c5_596, %c13_597] : memref<8x16xf32, #tpu.memory_space<smem>>
    %c13_598 = arith.constant 13 : index
    %c0_599 = arith.constant 0 : index
    %c0_600 = arith.constant 0 : index
    %690 = vector.load %arg9[%c13_598, %c0_599, %c0_600] : memref<16x32x210xf32, #tpu.memory_space<vmem>>, vector<1x32x210xf32>
    %691 = vector.shape_cast %690 : vector<1x32x210xf32> to vector<32x210xf32>
    %692 = vector.broadcast %689 : f32 to vector<32x210xf32>
    %693 = arith.mulf %692, %691 : vector<32x210xf32>
    %694 = arith.addf %688, %693 : vector<32x210xf32>
    %c5_601 = arith.constant 5 : index
    %c14_602 = arith.constant 14 : index
    %695 = memref.load %arg2[%c5_601, %c14_602] : memref<8x16xf32, #tpu.memory_space<smem>>
    %c14_603 = arith.constant 14 : index
    %c0_604 = arith.constant 0 : index
    %c0_605 = arith.constant 0 : index
    %696 = vector.load %arg9[%c14_603, %c0_604, %c0_605] : memref<16x32x210xf32, #tpu.memory_space<vmem>>, vector<1x32x210xf32>
    %697 = vector.shape_cast %696 : vector<1x32x210xf32> to vector<32x210xf32>
    %698 = vector.broadcast %695 : f32 to vector<32x210xf32>
    %699 = arith.mulf %698, %697 : vector<32x210xf32>
    %700 = arith.addf %694, %699 : vector<32x210xf32>
    %c5_606 = arith.constant 5 : index
    %c15_607 = arith.constant 15 : index
    %701 = memref.load %arg2[%c5_606, %c15_607] : memref<8x16xf32, #tpu.memory_space<smem>>
    %c15_608 = arith.constant 15 : index
    %c0_609 = arith.constant 0 : index
    %c0_610 = arith.constant 0 : index
    %702 = vector.load %arg9[%c15_608, %c0_609, %c0_610] : memref<16x32x210xf32, #tpu.memory_space<vmem>>, vector<1x32x210xf32>
    %703 = vector.shape_cast %702 : vector<1x32x210xf32> to vector<32x210xf32>
    %704 = vector.broadcast %701 : f32 to vector<32x210xf32>
    %705 = arith.mulf %704, %703 : vector<32x210xf32>
    %706 = arith.addf %700, %705 : vector<32x210xf32>
    %c5_611 = arith.constant 5 : index
    %707 = memref.load %arg3[%c5_611] : memref<8xf32, #tpu.memory_space<smem>>
    %708 = vector.broadcast %707 : f32 to vector<32x210xf32>
    %709 = arith.addf %706, %708 : vector<32x210xf32>
    %cst_612 = arith.constant 0.000000e+00 : f32
    %710 = vector.broadcast %cst_612 : f32 to vector<32x210xf32>
    %711 = arith.maximumf %709, %710 : vector<32x210xf32>
    %c0_613 = arith.constant 0 : index
    %c0_614 = arith.constant 0 : index
    %712 = vector.load %arg10[%c0_613, %c0_614] : memref<32x64xf32, #tpu.memory_space<vmem>>, vector<32x64xf32>
    %c5_615 = arith.constant 5 : index
    %c0_616 = arith.constant 0 : index
    %c0_617 = arith.constant 0 : index
    %713 = vector.load %arg4[%c5_615, %c0_616, %c0_617] : memref<8x210x64xf32, #tpu.memory_space<vmem>>, vector<1x210x64xf32>
    %714 = vector.shape_cast %713 : vector<1x210x64xf32> to vector<210x64xf32>
    %cst_618 = arith.constant dense<0.000000e+00> : vector<32x64xf32>
    %715 = tpu.matmul %711, %714, %cst_618 {dimension_numbers = #tpu.dot_dimension_numbers<[1], [0], [0], [1], [0, 0, 1, 1], [], []>} : vector<32x210xf32>, vector<210x64xf32>, vector<32x64xf32> -> vector<32x64xf32>
    %716 = arith.addf %712, %715 : vector<32x64xf32>
    %c0_619 = arith.constant 0 : index
    %c0_620 = arith.constant 0 : index
    %717 = vector.load %arg10[%c0_619, %c0_620] : memref<32x64xf32, #tpu.memory_space<vmem>>, vector<32x64xf32>
    tpu.vector_store %arg10[%c0_619, %c0_620], %716 {strides = array<i32>} : memref<32x64xf32, #tpu.memory_space<vmem>>, vector<32x64xf32>,
    %c6_621 = arith.constant 6 : index
    %c0_622 = arith.constant 0 : index
    %718 = memref.load %arg2[%c6_621, %c0_622] : memref<8x16xf32, #tpu.memory_space<smem>>
    %c0_623 = arith.constant 0 : index
    %c0_624 = arith.constant 0 : index
    %c0_625 = arith.constant 0 : index
    %719 = vector.load %arg9[%c0_623, %c0_624, %c0_625] : memref<16x32x210xf32, #tpu.memory_space<vmem>>, vector<1x32x210xf32>
    %720 = vector.shape_cast %719 : vector<1x32x210xf32> to vector<32x210xf32>
    %721 = vector.broadcast %718 : f32 to vector<32x210xf32>
    %722 = arith.mulf %721, %720 : vector<32x210xf32>
    %c6_626 = arith.constant 6 : index
    %c1_627 = arith.constant 1 : index
    %723 = memref.load %arg2[%c6_626, %c1_627] : memref<8x16xf32, #tpu.memory_space<smem>>
    %c1_628 = arith.constant 1 : index
    %c0_629 = arith.constant 0 : index
    %c0_630 = arith.constant 0 : index
    %724 = vector.load %arg9[%c1_628, %c0_629, %c0_630] : memref<16x32x210xf32, #tpu.memory_space<vmem>>, vector<1x32x210xf32>
    %725 = vector.shape_cast %724 : vector<1x32x210xf32> to vector<32x210xf32>
    %726 = vector.broadcast %723 : f32 to vector<32x210xf32>
    %727 = arith.mulf %726, %725 : vector<32x210xf32>
    %728 = arith.addf %722, %727 : vector<32x210xf32>
    %c6_631 = arith.constant 6 : index
    %c2_632 = arith.constant 2 : index
    %729 = memref.load %arg2[%c6_631, %c2_632] : memref<8x16xf32, #tpu.memory_space<smem>>
    %c2_633 = arith.constant 2 : index
    %c0_634 = arith.constant 0 : index
    %c0_635 = arith.constant 0 : index
    %730 = vector.load %arg9[%c2_633, %c0_634, %c0_635] : memref<16x32x210xf32, #tpu.memory_space<vmem>>, vector<1x32x210xf32>
    %731 = vector.shape_cast %730 : vector<1x32x210xf32> to vector<32x210xf32>
    %732 = vector.broadcast %729 : f32 to vector<32x210xf32>
    %733 = arith.mulf %732, %731 : vector<32x210xf32>
    %734 = arith.addf %728, %733 : vector<32x210xf32>
    %c6_636 = arith.constant 6 : index
    %c3_637 = arith.constant 3 : index
    %735 = memref.load %arg2[%c6_636, %c3_637] : memref<8x16xf32, #tpu.memory_space<smem>>
    %c3_638 = arith.constant 3 : index
    %c0_639 = arith.constant 0 : index
    %c0_640 = arith.constant 0 : index
    %736 = vector.load %arg9[%c3_638, %c0_639, %c0_640] : memref<16x32x210xf32, #tpu.memory_space<vmem>>, vector<1x32x210xf32>
    %737 = vector.shape_cast %736 : vector<1x32x210xf32> to vector<32x210xf32>
    %738 = vector.broadcast %735 : f32 to vector<32x210xf32>
    %739 = arith.mulf %738, %737 : vector<32x210xf32>
    %740 = arith.addf %734, %739 : vector<32x210xf32>
    %c6_641 = arith.constant 6 : index
    %c4_642 = arith.constant 4 : index
    %741 = memref.load %arg2[%c6_641, %c4_642] : memref<8x16xf32, #tpu.memory_space<smem>>
    %c4_643 = arith.constant 4 : index
    %c0_644 = arith.constant 0 : index
    %c0_645 = arith.constant 0 : index
    %742 = vector.load %arg9[%c4_643, %c0_644, %c0_645] : memref<16x32x210xf32, #tpu.memory_space<vmem>>, vector<1x32x210xf32>
    %743 = vector.shape_cast %742 : vector<1x32x210xf32> to vector<32x210xf32>
    %744 = vector.broadcast %741 : f32 to vector<32x210xf32>
    %745 = arith.mulf %744, %743 : vector<32x210xf32>
    %746 = arith.addf %740, %745 : vector<32x210xf32>
    %c6_646 = arith.constant 6 : index
    %c5_647 = arith.constant 5 : index
    %747 = memref.load %arg2[%c6_646, %c5_647] : memref<8x16xf32, #tpu.memory_space<smem>>
    %c5_648 = arith.constant 5 : index
    %c0_649 = arith.constant 0 : index
    %c0_650 = arith.constant 0 : index
    %748 = vector.load %arg9[%c5_648, %c0_649, %c0_650] : memref<16x32x210xf32, #tpu.memory_space<vmem>>, vector<1x32x210xf32>
    %749 = vector.shape_cast %748 : vector<1x32x210xf32> to vector<32x210xf32>
    %750 = vector.broadcast %747 : f32 to vector<32x210xf32>
    %751 = arith.mulf %750, %749 : vector<32x210xf32>
    %752 = arith.addf %746, %751 : vector<32x210xf32>
    %c6_651 = arith.constant 6 : index
    %c6_652 = arith.constant 6 : index
    %753 = memref.load %arg2[%c6_651, %c6_652] : memref<8x16xf32, #tpu.memory_space<smem>>
    %c6_653 = arith.constant 6 : index
    %c0_654 = arith.constant 0 : index
    %c0_655 = arith.constant 0 : index
    %754 = vector.load %arg9[%c6_653, %c0_654, %c0_655] : memref<16x32x210xf32, #tpu.memory_space<vmem>>, vector<1x32x210xf32>
    %755 = vector.shape_cast %754 : vector<1x32x210xf32> to vector<32x210xf32>
    %756 = vector.broadcast %753 : f32 to vector<32x210xf32>
    %757 = arith.mulf %756, %755 : vector<32x210xf32>
    %758 = arith.addf %752, %757 : vector<32x210xf32>
    %c6_656 = arith.constant 6 : index
    %c7_657 = arith.constant 7 : index
    %759 = memref.load %arg2[%c6_656, %c7_657] : memref<8x16xf32, #tpu.memory_space<smem>>
    %c7_658 = arith.constant 7 : index
    %c0_659 = arith.constant 0 : index
    %c0_660 = arith.constant 0 : index
    %760 = vector.load %arg9[%c7_658, %c0_659, %c0_660] : memref<16x32x210xf32, #tpu.memory_space<vmem>>, vector<1x32x210xf32>
    %761 = vector.shape_cast %760 : vector<1x32x210xf32> to vector<32x210xf32>
    %762 = vector.broadcast %759 : f32 to vector<32x210xf32>
    %763 = arith.mulf %762, %761 : vector<32x210xf32>
    %764 = arith.addf %758, %763 : vector<32x210xf32>
    %c6_661 = arith.constant 6 : index
    %c8_662 = arith.constant 8 : index
    %765 = memref.load %arg2[%c6_661, %c8_662] : memref<8x16xf32, #tpu.memory_space<smem>>
    %c8_663 = arith.constant 8 : index
    %c0_664 = arith.constant 0 : index
    %c0_665 = arith.constant 0 : index
    %766 = vector.load %arg9[%c8_663, %c0_664, %c0_665] : memref<16x32x210xf32, #tpu.memory_space<vmem>>, vector<1x32x210xf32>
    %767 = vector.shape_cast %766 : vector<1x32x210xf32> to vector<32x210xf32>
    %768 = vector.broadcast %765 : f32 to vector<32x210xf32>
    %769 = arith.mulf %768, %767 : vector<32x210xf32>
    %770 = arith.addf %764, %769 : vector<32x210xf32>
    %c6_666 = arith.constant 6 : index
    %c9_667 = arith.constant 9 : index
    %771 = memref.load %arg2[%c6_666, %c9_667] : memref<8x16xf32, #tpu.memory_space<smem>>
    %c9_668 = arith.constant 9 : index
    %c0_669 = arith.constant 0 : index
    %c0_670 = arith.constant 0 : index
    %772 = vector.load %arg9[%c9_668, %c0_669, %c0_670] : memref<16x32x210xf32, #tpu.memory_space<vmem>>, vector<1x32x210xf32>
    %773 = vector.shape_cast %772 : vector<1x32x210xf32> to vector<32x210xf32>
    %774 = vector.broadcast %771 : f32 to vector<32x210xf32>
    %775 = arith.mulf %774, %773 : vector<32x210xf32>
    %776 = arith.addf %770, %775 : vector<32x210xf32>
    %c6_671 = arith.constant 6 : index
    %c10_672 = arith.constant 10 : index
    %777 = memref.load %arg2[%c6_671, %c10_672] : memref<8x16xf32, #tpu.memory_space<smem>>
    %c10_673 = arith.constant 10 : index
    %c0_674 = arith.constant 0 : index
    %c0_675 = arith.constant 0 : index
    %778 = vector.load %arg9[%c10_673, %c0_674, %c0_675] : memref<16x32x210xf32, #tpu.memory_space<vmem>>, vector<1x32x210xf32>
    %779 = vector.shape_cast %778 : vector<1x32x210xf32> to vector<32x210xf32>
    %780 = vector.broadcast %777 : f32 to vector<32x210xf32>
    %781 = arith.mulf %780, %779 : vector<32x210xf32>
    %782 = arith.addf %776, %781 : vector<32x210xf32>
    %c6_676 = arith.constant 6 : index
    %c11_677 = arith.constant 11 : index
    %783 = memref.load %arg2[%c6_676, %c11_677] : memref<8x16xf32, #tpu.memory_space<smem>>
    %c11_678 = arith.constant 11 : index
    %c0_679 = arith.constant 0 : index
    %c0_680 = arith.constant 0 : index
    %784 = vector.load %arg9[%c11_678, %c0_679, %c0_680] : memref<16x32x210xf32, #tpu.memory_space<vmem>>, vector<1x32x210xf32>
    %785 = vector.shape_cast %784 : vector<1x32x210xf32> to vector<32x210xf32>
    %786 = vector.broadcast %783 : f32 to vector<32x210xf32>
    %787 = arith.mulf %786, %785 : vector<32x210xf32>
    %788 = arith.addf %782, %787 : vector<32x210xf32>
    %c6_681 = arith.constant 6 : index
    %c12_682 = arith.constant 12 : index
    %789 = memref.load %arg2[%c6_681, %c12_682] : memref<8x16xf32, #tpu.memory_space<smem>>
    %c12_683 = arith.constant 12 : index
    %c0_684 = arith.constant 0 : index
    %c0_685 = arith.constant 0 : index
    %790 = vector.load %arg9[%c12_683, %c0_684, %c0_685] : memref<16x32x210xf32, #tpu.memory_space<vmem>>, vector<1x32x210xf32>
    %791 = vector.shape_cast %790 : vector<1x32x210xf32> to vector<32x210xf32>
    %792 = vector.broadcast %789 : f32 to vector<32x210xf32>
    %793 = arith.mulf %792, %791 : vector<32x210xf32>
    %794 = arith.addf %788, %793 : vector<32x210xf32>
    %c6_686 = arith.constant 6 : index
    %c13_687 = arith.constant 13 : index
    %795 = memref.load %arg2[%c6_686, %c13_687] : memref<8x16xf32, #tpu.memory_space<smem>>
    %c13_688 = arith.constant 13 : index
    %c0_689 = arith.constant 0 : index
    %c0_690 = arith.constant 0 : index
    %796 = vector.load %arg9[%c13_688, %c0_689, %c0_690] : memref<16x32x210xf32, #tpu.memory_space<vmem>>, vector<1x32x210xf32>
    %797 = vector.shape_cast %796 : vector<1x32x210xf32> to vector<32x210xf32>
    %798 = vector.broadcast %795 : f32 to vector<32x210xf32>
    %799 = arith.mulf %798, %797 : vector<32x210xf32>
    %800 = arith.addf %794, %799 : vector<32x210xf32>
    %c6_691 = arith.constant 6 : index
    %c14_692 = arith.constant 14 : index
    %801 = memref.load %arg2[%c6_691, %c14_692] : memref<8x16xf32, #tpu.memory_space<smem>>
    %c14_693 = arith.constant 14 : index
    %c0_694 = arith.constant 0 : index
    %c0_695 = arith.constant 0 : index
    %802 = vector.load %arg9[%c14_693, %c0_694, %c0_695] : memref<16x32x210xf32, #tpu.memory_space<vmem>>, vector<1x32x210xf32>
    %803 = vector.shape_cast %802 : vector<1x32x210xf32> to vector<32x210xf32>
    %804 = vector.broadcast %801 : f32 to vector<32x210xf32>
    %805 = arith.mulf %804, %803 : vector<32x210xf32>
    %806 = arith.addf %800, %805 : vector<32x210xf32>
    %c6_696 = arith.constant 6 : index
    %c15_697 = arith.constant 15 : index
    %807 = memref.load %arg2[%c6_696, %c15_697] : memref<8x16xf32, #tpu.memory_space<smem>>
    %c15_698 = arith.constant 15 : index
    %c0_699 = arith.constant 0 : index
    %c0_700 = arith.constant 0 : index
    %808 = vector.load %arg9[%c15_698, %c0_699, %c0_700] : memref<16x32x210xf32, #tpu.memory_space<vmem>>, vector<1x32x210xf32>
    %809 = vector.shape_cast %808 : vector<1x32x210xf32> to vector<32x210xf32>
    %810 = vector.broadcast %807 : f32 to vector<32x210xf32>
    %811 = arith.mulf %810, %809 : vector<32x210xf32>
    %812 = arith.addf %806, %811 : vector<32x210xf32>
    %c6_701 = arith.constant 6 : index
    %813 = memref.load %arg3[%c6_701] : memref<8xf32, #tpu.memory_space<smem>>
    %814 = vector.broadcast %813 : f32 to vector<32x210xf32>
    %815 = arith.addf %812, %814 : vector<32x210xf32>
    %cst_702 = arith.constant 0.000000e+00 : f32
    %816 = vector.broadcast %cst_702 : f32 to vector<32x210xf32>
    %817 = arith.maximumf %815, %816 : vector<32x210xf32>
    %c0_703 = arith.constant 0 : index
    %c0_704 = arith.constant 0 : index
    %818 = vector.load %arg10[%c0_703, %c0_704] : memref<32x64xf32, #tpu.memory_space<vmem>>, vector<32x64xf32>
    %c6_705 = arith.constant 6 : index
    %c0_706 = arith.constant 0 : index
    %c0_707 = arith.constant 0 : index
    %819 = vector.load %arg4[%c6_705, %c0_706, %c0_707] : memref<8x210x64xf32, #tpu.memory_space<vmem>>, vector<1x210x64xf32>
    %820 = vector.shape_cast %819 : vector<1x210x64xf32> to vector<210x64xf32>
    %cst_708 = arith.constant dense<0.000000e+00> : vector<32x64xf32>
    %821 = tpu.matmul %817, %820, %cst_708 {dimension_numbers = #tpu.dot_dimension_numbers<[1], [0], [0], [1], [0, 0, 1, 1], [], []>} : vector<32x210xf32>, vector<210x64xf32>, vector<32x64xf32> -> vector<32x64xf32>
    %822 = arith.addf %818, %821 : vector<32x64xf32>
    %c0_709 = arith.constant 0 : index
    %c0_710 = arith.constant 0 : index
    %823 = vector.load %arg10[%c0_709, %c0_710] : memref<32x64xf32, #tpu.memory_space<vmem>>, vector<32x64xf32>
    tpu.vector_store %arg10[%c0_709, %c0_710], %822 {strides = array<i32>} : memref<32x64xf32, #tpu.memory_space<vmem>>, vector<32x64xf32>,
    %c7_711 = arith.constant 7 : index
    %c0_712 = arith.constant 0 : index
    %824 = memref.load %arg2[%c7_711, %c0_712] : memref<8x16xf32, #tpu.memory_space<smem>>
    %c0_713 = arith.constant 0 : index
    %c0_714 = arith.constant 0 : index
    %c0_715 = arith.constant 0 : index
    %825 = vector.load %arg9[%c0_713, %c0_714, %c0_715] : memref<16x32x210xf32, #tpu.memory_space<vmem>>, vector<1x32x210xf32>
    %826 = vector.shape_cast %825 : vector<1x32x210xf32> to vector<32x210xf32>
    %827 = vector.broadcast %824 : f32 to vector<32x210xf32>
    %828 = arith.mulf %827, %826 : vector<32x210xf32>
    %c7_716 = arith.constant 7 : index
    %c1_717 = arith.constant 1 : index
    %829 = memref.load %arg2[%c7_716, %c1_717] : memref<8x16xf32, #tpu.memory_space<smem>>
    %c1_718 = arith.constant 1 : index
    %c0_719 = arith.constant 0 : index
    %c0_720 = arith.constant 0 : index
    %830 = vector.load %arg9[%c1_718, %c0_719, %c0_720] : memref<16x32x210xf32, #tpu.memory_space<vmem>>, vector<1x32x210xf32>
    %831 = vector.shape_cast %830 : vector<1x32x210xf32> to vector<32x210xf32>
    %832 = vector.broadcast %829 : f32 to vector<32x210xf32>
    %833 = arith.mulf %832, %831 : vector<32x210xf32>
    %834 = arith.addf %828, %833 : vector<32x210xf32>
    %c7_721 = arith.constant 7 : index
    %c2_722 = arith.constant 2 : index
    %835 = memref.load %arg2[%c7_721, %c2_722] : memref<8x16xf32, #tpu.memory_space<smem>>
    %c2_723 = arith.constant 2 : index
    %c0_724 = arith.constant 0 : index
    %c0_725 = arith.constant 0 : index
    %836 = vector.load %arg9[%c2_723, %c0_724, %c0_725] : memref<16x32x210xf32, #tpu.memory_space<vmem>>, vector<1x32x210xf32>
    %837 = vector.shape_cast %836 : vector<1x32x210xf32> to vector<32x210xf32>
    %838 = vector.broadcast %835 : f32 to vector<32x210xf32>
    %839 = arith.mulf %838, %837 : vector<32x210xf32>
    %840 = arith.addf %834, %839 : vector<32x210xf32>
    %c7_726 = arith.constant 7 : index
    %c3_727 = arith.constant 3 : index
    %841 = memref.load %arg2[%c7_726, %c3_727] : memref<8x16xf32, #tpu.memory_space<smem>>
    %c3_728 = arith.constant 3 : index
    %c0_729 = arith.constant 0 : index
    %c0_730 = arith.constant 0 : index
    %842 = vector.load %arg9[%c3_728, %c0_729, %c0_730] : memref<16x32x210xf32, #tpu.memory_space<vmem>>, vector<1x32x210xf32>
    %843 = vector.shape_cast %842 : vector<1x32x210xf32> to vector<32x210xf32>
    %844 = vector.broadcast %841 : f32 to vector<32x210xf32>
    %845 = arith.mulf %844, %843 : vector<32x210xf32>
    %846 = arith.addf %840, %845 : vector<32x210xf32>
    %c7_731 = arith.constant 7 : index
    %c4_732 = arith.constant 4 : index
    %847 = memref.load %arg2[%c7_731, %c4_732] : memref<8x16xf32, #tpu.memory_space<smem>>
    %c4_733 = arith.constant 4 : index
    %c0_734 = arith.constant 0 : index
    %c0_735 = arith.constant 0 : index
    %848 = vector.load %arg9[%c4_733, %c0_734, %c0_735] : memref<16x32x210xf32, #tpu.memory_space<vmem>>, vector<1x32x210xf32>
    %849 = vector.shape_cast %848 : vector<1x32x210xf32> to vector<32x210xf32>
    %850 = vector.broadcast %847 : f32 to vector<32x210xf32>
    %851 = arith.mulf %850, %849 : vector<32x210xf32>
    %852 = arith.addf %846, %851 : vector<32x210xf32>
    %c7_736 = arith.constant 7 : index
    %c5_737 = arith.constant 5 : index
    %853 = memref.load %arg2[%c7_736, %c5_737] : memref<8x16xf32, #tpu.memory_space<smem>>
    %c5_738 = arith.constant 5 : index
    %c0_739 = arith.constant 0 : index
    %c0_740 = arith.constant 0 : index
    %854 = vector.load %arg9[%c5_738, %c0_739, %c0_740] : memref<16x32x210xf32, #tpu.memory_space<vmem>>, vector<1x32x210xf32>
    %855 = vector.shape_cast %854 : vector<1x32x210xf32> to vector<32x210xf32>
    %856 = vector.broadcast %853 : f32 to vector<32x210xf32>
    %857 = arith.mulf %856, %855 : vector<32x210xf32>
    %858 = arith.addf %852, %857 : vector<32x210xf32>
    %c7_741 = arith.constant 7 : index
    %c6_742 = arith.constant 6 : index
    %859 = memref.load %arg2[%c7_741, %c6_742] : memref<8x16xf32, #tpu.memory_space<smem>>
    %c6_743 = arith.constant 6 : index
    %c0_744 = arith.constant 0 : index
    %c0_745 = arith.constant 0 : index
    %860 = vector.load %arg9[%c6_743, %c0_744, %c0_745] : memref<16x32x210xf32, #tpu.memory_space<vmem>>, vector<1x32x210xf32>
    %861 = vector.shape_cast %860 : vector<1x32x210xf32> to vector<32x210xf32>
    %862 = vector.broadcast %859 : f32 to vector<32x210xf32>
    %863 = arith.mulf %862, %861 : vector<32x210xf32>
    %864 = arith.addf %858, %863 : vector<32x210xf32>
    %c7_746 = arith.constant 7 : index
    %c7_747 = arith.constant 7 : index
    %865 = memref.load %arg2[%c7_746, %c7_747] : memref<8x16xf32, #tpu.memory_space<smem>>
    %c7_748 = arith.constant 7 : index
    %c0_749 = arith.constant 0 : index
    %c0_750 = arith.constant 0 : index
    %866 = vector.load %arg9[%c7_748, %c0_749, %c0_750] : memref<16x32x210xf32, #tpu.memory_space<vmem>>, vector<1x32x210xf32>
    %867 = vector.shape_cast %866 : vector<1x32x210xf32> to vector<32x210xf32>
    %868 = vector.broadcast %865 : f32 to vector<32x210xf32>
    %869 = arith.mulf %868, %867 : vector<32x210xf32>
    %870 = arith.addf %864, %869 : vector<32x210xf32>
    %c7_751 = arith.constant 7 : index
    %c8_752 = arith.constant 8 : index
    %871 = memref.load %arg2[%c7_751, %c8_752] : memref<8x16xf32, #tpu.memory_space<smem>>
    %c8_753 = arith.constant 8 : index
    %c0_754 = arith.constant 0 : index
    %c0_755 = arith.constant 0 : index
    %872 = vector.load %arg9[%c8_753, %c0_754, %c0_755] : memref<16x32x210xf32, #tpu.memory_space<vmem>>, vector<1x32x210xf32>
    %873 = vector.shape_cast %872 : vector<1x32x210xf32> to vector<32x210xf32>
    %874 = vector.broadcast %871 : f32 to vector<32x210xf32>
    %875 = arith.mulf %874, %873 : vector<32x210xf32>
    %876 = arith.addf %870, %875 : vector<32x210xf32>
    %c7_756 = arith.constant 7 : index
    %c9_757 = arith.constant 9 : index
    %877 = memref.load %arg2[%c7_756, %c9_757] : memref<8x16xf32, #tpu.memory_space<smem>>
    %c9_758 = arith.constant 9 : index
    %c0_759 = arith.constant 0 : index
    %c0_760 = arith.constant 0 : index
    %878 = vector.load %arg9[%c9_758, %c0_759, %c0_760] : memref<16x32x210xf32, #tpu.memory_space<vmem>>, vector<1x32x210xf32>
    %879 = vector.shape_cast %878 : vector<1x32x210xf32> to vector<32x210xf32>
    %880 = vector.broadcast %877 : f32 to vector<32x210xf32>
    %881 = arith.mulf %880, %879 : vector<32x210xf32>
    %882 = arith.addf %876, %881 : vector<32x210xf32>
    %c7_761 = arith.constant 7 : index
    %c10_762 = arith.constant 10 : index
    %883 = memref.load %arg2[%c7_761, %c10_762] : memref<8x16xf32, #tpu.memory_space<smem>>
    %c10_763 = arith.constant 10 : index
    %c0_764 = arith.constant 0 : index
    %c0_765 = arith.constant 0 : index
    %884 = vector.load %arg9[%c10_763, %c0_764, %c0_765] : memref<16x32x210xf32, #tpu.memory_space<vmem>>, vector<1x32x210xf32>
    %885 = vector.shape_cast %884 : vector<1x32x210xf32> to vector<32x210xf32>
    %886 = vector.broadcast %883 : f32 to vector<32x210xf32>
    %887 = arith.mulf %886, %885 : vector<32x210xf32>
    %888 = arith.addf %882, %887 : vector<32x210xf32>
    %c7_766 = arith.constant 7 : index
    %c11_767 = arith.constant 11 : index
    %889 = memref.load %arg2[%c7_766, %c11_767] : memref<8x16xf32, #tpu.memory_space<smem>>
    %c11_768 = arith.constant 11 : index
    %c0_769 = arith.constant 0 : index
    %c0_770 = arith.constant 0 : index
    %890 = vector.load %arg9[%c11_768, %c0_769, %c0_770] : memref<16x32x210xf32, #tpu.memory_space<vmem>>, vector<1x32x210xf32>
    %891 = vector.shape_cast %890 : vector<1x32x210xf32> to vector<32x210xf32>
    %892 = vector.broadcast %889 : f32 to vector<32x210xf32>
    %893 = arith.mulf %892, %891 : vector<32x210xf32>
    %894 = arith.addf %888, %893 : vector<32x210xf32>
    %c7_771 = arith.constant 7 : index
    %c12_772 = arith.constant 12 : index
    %895 = memref.load %arg2[%c7_771, %c12_772] : memref<8x16xf32, #tpu.memory_space<smem>>
    %c12_773 = arith.constant 12 : index
    %c0_774 = arith.constant 0 : index
    %c0_775 = arith.constant 0 : index
    %896 = vector.load %arg9[%c12_773, %c0_774, %c0_775] : memref<16x32x210xf32, #tpu.memory_space<vmem>>, vector<1x32x210xf32>
    %897 = vector.shape_cast %896 : vector<1x32x210xf32> to vector<32x210xf32>
    %898 = vector.broadcast %895 : f32 to vector<32x210xf32>
    %899 = arith.mulf %898, %897 : vector<32x210xf32>
    %900 = arith.addf %894, %899 : vector<32x210xf32>
    %c7_776 = arith.constant 7 : index
    %c13_777 = arith.constant 13 : index
    %901 = memref.load %arg2[%c7_776, %c13_777] : memref<8x16xf32, #tpu.memory_space<smem>>
    %c13_778 = arith.constant 13 : index
    %c0_779 = arith.constant 0 : index
    %c0_780 = arith.constant 0 : index
    %902 = vector.load %arg9[%c13_778, %c0_779, %c0_780] : memref<16x32x210xf32, #tpu.memory_space<vmem>>, vector<1x32x210xf32>
    %903 = vector.shape_cast %902 : vector<1x32x210xf32> to vector<32x210xf32>
    %904 = vector.broadcast %901 : f32 to vector<32x210xf32>
    %905 = arith.mulf %904, %903 : vector<32x210xf32>
    %906 = arith.addf %900, %905 : vector<32x210xf32>
    %c7_781 = arith.constant 7 : index
    %c14_782 = arith.constant 14 : index
    %907 = memref.load %arg2[%c7_781, %c14_782] : memref<8x16xf32, #tpu.memory_space<smem>>
    %c14_783 = arith.constant 14 : index
    %c0_784 = arith.constant 0 : index
    %c0_785 = arith.constant 0 : index
    %908 = vector.load %arg9[%c14_783, %c0_784, %c0_785] : memref<16x32x210xf32, #tpu.memory_space<vmem>>, vector<1x32x210xf32>
    %909 = vector.shape_cast %908 : vector<1x32x210xf32> to vector<32x210xf32>
    %910 = vector.broadcast %907 : f32 to vector<32x210xf32>
    %911 = arith.mulf %910, %909 : vector<32x210xf32>
    %912 = arith.addf %906, %911 : vector<32x210xf32>
    %c7_786 = arith.constant 7 : index
    %c15_787 = arith.constant 15 : index
    %913 = memref.load %arg2[%c7_786, %c15_787] : memref<8x16xf32, #tpu.memory_space<smem>>
    %c15_788 = arith.constant 15 : index
    %c0_789 = arith.constant 0 : index
    %c0_790 = arith.constant 0 : index
    %914 = vector.load %arg9[%c15_788, %c0_789, %c0_790] : memref<16x32x210xf32, #tpu.memory_space<vmem>>, vector<1x32x210xf32>
    %915 = vector.shape_cast %914 : vector<1x32x210xf32> to vector<32x210xf32>
    %916 = vector.broadcast %913 : f32 to vector<32x210xf32>
    %917 = arith.mulf %916, %915 : vector<32x210xf32>
    %918 = arith.addf %912, %917 : vector<32x210xf32>
    %c7_791 = arith.constant 7 : index
    %919 = memref.load %arg3[%c7_791] : memref<8xf32, #tpu.memory_space<smem>>
    %920 = vector.broadcast %919 : f32 to vector<32x210xf32>
    %921 = arith.addf %918, %920 : vector<32x210xf32>
    %cst_792 = arith.constant 0.000000e+00 : f32
    %922 = vector.broadcast %cst_792 : f32 to vector<32x210xf32>
    %923 = arith.maximumf %921, %922 : vector<32x210xf32>
    %c0_793 = arith.constant 0 : index
    %c0_794 = arith.constant 0 : index
    %924 = vector.load %arg10[%c0_793, %c0_794] : memref<32x64xf32, #tpu.memory_space<vmem>>, vector<32x64xf32>
    %c7_795 = arith.constant 7 : index
    %c0_796 = arith.constant 0 : index
    %c0_797 = arith.constant 0 : index
    %925 = vector.load %arg4[%c7_795, %c0_796, %c0_797] : memref<8x210x64xf32, #tpu.memory_space<vmem>>, vector<1x210x64xf32>
    %926 = vector.shape_cast %925 : vector<1x210x64xf32> to vector<210x64xf32>
    %cst_798 = arith.constant dense<0.000000e+00> : vector<32x64xf32>
    %927 = tpu.matmul %923, %926, %cst_798 {dimension_numbers = #tpu.dot_dimension_numbers<[1], [0], [0], [1], [0, 0, 1, 1], [], []>} : vector<32x210xf32>, vector<210x64xf32>, vector<32x64xf32> -> vector<32x64xf32>
    %928 = arith.addf %924, %927 : vector<32x64xf32>
    %c0_799 = arith.constant 0 : index
    %c0_800 = arith.constant 0 : index
    %929 = vector.load %arg10[%c0_799, %c0_800] : memref<32x64xf32, #tpu.memory_space<vmem>>, vector<32x64xf32>
    tpu.vector_store %arg10[%c0_799, %c0_800], %928 {strides = array<i32>} : memref<32x64xf32, #tpu.memory_space<vmem>>, vector<32x64xf32>,
    %c0_801 = arith.constant 0 : index
    %c0_802 = arith.constant 0 : index
    %930 = vector.load %arg10[%c0_801, %c0_802] : memref<32x64xf32, #tpu.memory_space<vmem>>, vector<32x64xf32>
    %c0_803 = arith.constant 0 : index
    %c0_804 = arith.constant 0 : index
    %931 = vector.load %arg5[%c0_803, %c0_804] : memref<1x64xf32, #tpu.memory_space<vmem>>, vector<1x64xf32>
    %932 = vector.broadcast %931 : vector<1x64xf32> to vector<32x64xf32>
    %933 = arith.addf %930, %932 : vector<32x64xf32>
    %cst_805 = arith.constant 0.000000e+00 : f32
    %934 = vector.broadcast %cst_805 : f32 to vector<32x64xf32>
    %935 = arith.maximumf %933, %934 : vector<32x64xf32>
    %c0_806 = arith.constant 0 : index
    %c0_807 = arith.constant 0 : index
    %936 = vector.load %arg6[%c0_806, %c0_807] : memref<64x128xf32, #tpu.memory_space<vmem>>, vector<64x128xf32>
    %cst_808 = arith.constant dense<0.000000e+00> : vector<32x128xf32>
    %937 = tpu.matmul %935, %936, %cst_808 {dimension_numbers = #tpu.dot_dimension_numbers<[1], [0], [0], [1], [0, 0, 1, 1], [], []>} : vector<32x64xf32>, vector<64x128xf32>, vector<32x128xf32> -> vector<32x128xf32>
    %c0_809 = arith.constant 0 : index
    %c0_810 = arith.constant 0 : index
    %938 = vector.load %arg7[%c0_809, %c0_810] : memref<1x128xf32, #tpu.memory_space<vmem>>, vector<1x128xf32>
    %939 = vector.broadcast %938 : vector<1x128xf32> to vector<32x128xf32>
    %940 = arith.addf %937, %939 : vector<32x128xf32>
    %c0_811 = arith.constant 0 : index
    %c0_812 = arith.constant 0 : index
    %941 = vector.load %arg8[%c0_811, %c0_812] : memref<32x128xf32, #tpu.memory_space<vmem>>, vector<32x128xf32>
    tpu.vector_store %arg8[%c0_811, %c0_812], %940 {strides = array<i32>} : memref<32x128xf32, #tpu.memory_space<vmem>>, vector<32x128xf32>,
    return
  }
  func.func @transform_0(%arg0: i32) -> (i32, i32, i32) {
    %c0_i32 = arith.constant 0 : i32
    %c0_i32_0 = arith.constant 0 : i32
    %c0_i32_1 = arith.constant 0 : i32
    return %c0_i32, %arg0, %c0_i32_0 : i32, i32, i32
  }
  func.func @transform_1(%arg0: i32) -> (i32, i32) {
    %c0_i32 = arith.constant 0 : i32
    %c0_i32_0 = arith.constant 0 : i32
    %c0_i32_1 = arith.constant 0 : i32
    return %c0_i32, %c0_i32_0 : i32, i32
  }
  func.func @transform_2(%arg0: i32) -> i32 {
    %c0_i32 = arith.constant 0 : i32
    %c0_i32_0 = arith.constant 0 : i32
    return %c0_i32 : i32
  }
  func.func @transform_3(%arg0: i32) -> (i32, i32, i32) {
    %c0_i32 = arith.constant 0 : i32
    %c0_i32_0 = arith.constant 0 : i32
    %c0_i32_1 = arith.constant 0 : i32
    %c0_i32_2 = arith.constant 0 : i32
    return %c0_i32, %c0_i32_0, %c0_i32_1 : i32, i32, i32
  }
  func.func @transform_4(%arg0: i32) -> (i32, i32) {
    %c0_i32 = arith.constant 0 : i32
    %c0_i32_0 = arith.constant 0 : i32
    %c0_i32_1 = arith.constant 0 : i32
    return %c0_i32, %c0_i32_0 : i32, i32
  }
  func.func @transform_5(%arg0: i32) -> (i32, i32) {
    %c0_i32 = arith.constant 0 : i32
    %c0_i32_0 = arith.constant 0 : i32
    %c0_i32_1 = arith.constant 0 : i32
    return %c0_i32, %c0_i32_0 : i32, i32
  }
  func.func @transform_6(%arg0: i32) -> (i32, i32) {
    %c0_i32 = arith.constant 0 : i32
    %c0_i32_0 = arith.constant 0 : i32
    %c0_i32_1 = arith.constant 0 : i32
    return %c0_i32, %c0_i32_0 : i32, i32
  }
  func.func @transform_7(%arg0: i32) -> (i32, i32) {
    %c0_i32 = arith.constant 0 : i32
    %c0_i32_0 = arith.constant 0 : i32
    return %arg0, %c0_i32 : i32, i32
  }
}

</mosaic_0001>

<bundles_post_ra>
// kernel: forward.1
= control target key start
LH: loop header
LB: loop body
LE: loop exit
PB: predicated region body
PF: predicated region fallthrough
CT: control target
= control target key end

     0   :  { %s11980_s0 = inlined_call_operand.vmem [shape: f32[4,64,256], index: 0, kind: input, shape index: {}]   ;;  %s11981_s1 = inlined_call_operand.vmem [shape: f32[8,16], index: 1, kind: input, shape index: {}]   ;;  %s11982_s2 = inlined_call_operand.vmem [shape: f32[8], index: 2, kind: input, shape index: {}]   ;;  %s11983_s3 = inlined_call_operand.vmem [shape: f32[8,210,64], index: 3, kind: input, shape index: {}]   ;;  %s11984_s4 = inlined_call_operand.vmem [shape: f32[1,64], index: 4, kind: input, shape index: {}]   ;;  %s11985_s5 = inlined_call_operand.vmem [shape: f32[64,128], index: 5, kind: input, shape index: {}]   ;;  %s11986_s6 = inlined_call_operand.vmem [shape: f32[1,128], index: 6, kind: input, shape index: {}]   ;;  %s11987_s7 = inlined_call_operand.vmem [shape: f32[64,128], index: 7, kind: output, shape index: {}]  }
   0x1   :  { %12272 = sst [smem:[#allocation171_spill]] %s11980_s0 }
   0x2   :  { %12273 = sst [smem:[#allocation172_spill]] %s11981_s1 }
   0x3   :  { %12274 = sst [smem:[#allocation173_spill]] %s11982_s2 }
   0x4   :  { %12275 = sst [smem:[#allocation174_spill]] %s11983_s3 }
   0x5   :  { %12276 = sst [smem:[#allocation175_spill]] %s11984_s4 }
   0x6   :  { %12277 = sst [smem:[#allocation176_spill]] %s11985_s5 }
   0x7   :  { %12278 = sst [smem:[#allocation177_spill]] %s11986_s6 }
   0x8   :  { %12279 = sst [smem:[#allocation178_spill]] %s11987_s7 }
   0x9   :  { %12 = vsyncpa [#allocation6], 0 }
   0xa   :  { %13 = vsyncpa [#allocation8], 0  ;;  %s6559_s24 = smov 0   ;;  %s6561_s25 = smov 0  }
   0xb   :  { %s6563_s26 = smov 0  }
   0xc LB: > { %12280 = sst [smem:[#allocation11_spill]] %s6507_s25  ;;  %s11991_s27 = sadd.s32 4294967295, %s6511_s26   ;;  %s6511_s26 = sphi %s6563_s26, %s13022_s26   ;;  %s6507_s25 = sphi %s6561_s25, %s13024_s25   ;;  %s6503_s24 = sphi %s6559_s24, %s13023_s24  }
   0xd   : > { %12281 = sst [smem:[#allocation12_spill]] %s6511_s26  ;;  %s6576_s28 = sadd.s32 1, %s6511_s26  }
   0xe   : > { %12282 = sst [smem:[#allocation13_spill]] %s6576_s28  ;;  %s23_s29 = ssub.s32 %s6511_s26, %s6576_s28 }
   0xf   : > { %s26_s30 = sadd.s32 1, %s6507_s25  ;;  %p24_p0 = scmp.eq.s32.totalorder %s23_s29, 0 }
  0x10   : > { %p33_p1 = scmp.ne.s32.totalorder %s6507_s25, %s6503_s24  ;;  %p34_p2 = scmp.eq.s32.totalorder %s6511_s26, 0 }
  0x11   : > { %p5855_p3 = scmp.ge.s32.totalorder %s6511_s26, 1  ;;  %p202_p5 = scmp.lt.s32.totalorder %s6511_s26, 3 }
  0x12   : > { %s6586_s8 = scalar_select %p24_p0, %s6507_s25, %s26_s30  }
  0x13   : > { %p6588_p4 = por %p34_p2, %p33_p1  ;;  %p6595_p6 = scmp.eq.s32.totalorder %s11991_s27, 0 }
  0x14   : > { %12283 = sst [smem:[#allocation14_spill]] %s6586_s8  ;;  %p6599_p7 = pnand %p5855_p3, %p202_p5 }
  0x15   : > { %s12284_s9 = scalar_select %p6588_p4, 1, 0 }
  0x16   : > { %s12285_s10 = scalar_select %p6595_p6, 1, 0 }
  0x17   : > { %s12286_s11 = scalar_select %p6599_p7, 1, 0 }
  0x18   : > { %s12287_s1 = sld [smem:[#allocation172_spill]]  ;;  %p6396_p8 = pneg %p6599_p7 }
  0x19   : > { %s12288_s2 = sld [smem:[#allocation173_spill]] }
  0x1a   : > { %p6613_p9 = pnand %p6595_p6, %p6396_p8 }
  0x1c   : > { %p6453_p11 = pneg %p6613_p9 }
  0x1e   : > { %s215_s14 = sshll.u32 %s12287_s1, 4  ;;  %s216_s14 = int_to_ptr.vmem [resolvable:$true] %s215_s14 }
  0x1f   : > { %s226_s17 = sshll.u32 %s12288_s2, 4  ;;  %s6451_s19 = scalar_lea.vmem %s216_s14, 128  ;;  %s227_s17 = int_to_ptr.vmem [resolvable:$true] %s226_s17 }
  0x20   : > { %p6452_p10 = scmp.ne.s32.totalorder %s216_s14, %s6451_s19  ;;  %p6459_p0 = scmp.lt.s32.totalorder %s216_s14, %s216_s14 }
  0x21   : > { %p6460_p1 = scmp.lt.s32.totalorder %s6451_s19, %s6451_s19 }
  0x22   : > { %p6454_p12 = pnand %p6453_p11, %p6452_p10 }
  0x23   : > { %p6461_p2 = por %p6460_p1, %p6459_p0 }
  0x24   : > { %p6455_p13 = pneg %p6454_p12 }
  0x26   : > { %p6462_p3 = pnand %p6461_p2, %p6455_p13 }
  0x28   : > { %6465 = shalt.err (!%p6462_p3)
}
  0x29   : > { %s6513_s20 = smov [#allocation5]   ;;  %s6466_s21 = scalar_lea.vmem %s227_s17, 16 }
  0x2a   : > { %6399 = dma.vmem_to_smem (!%p6613_p9), %s216_s14, 128, %s6513_s20, [#allocation6]  }
  0x2b   : > { %p6467_p5 = scmp.ne.s32.totalorder %s227_s17, %s6466_s21  ;;  %p6474_p7 = scmp.lt.s32.totalorder %s227_s17, %s227_s17 }
  0x2c   : > { %p6475_p4 = scmp.lt.s32.totalorder %s6466_s21, %s6466_s21 }
  0x2d   : > { %p6469_p8 = pnand %p6467_p5, %p6453_p11 }
  0x2e   : > { %p6476_p10 = por %p6475_p4, %p6474_p7 }
  0x2f   : > { %p6470_p6 = pneg %p6469_p8 }
  0x31   : > { %p6477_p12 = pnand %p6476_p10, %p6470_p6 }
  0x33   : > { %6480 = shalt.err (!%p6477_p12)
}
  0x34   : > { %s6514_s22 = smov [#allocation7]   ;;  %p5858_p13 = scmp.ge.s32.totalorder %s6511_s26, 2 }
  0x35   : > { %6402 = dma.vmem_to_smem (!%p6613_p9), %s227_s17, 16, %s6514_s22, [#allocation8]  }
  0x36   : > { %245 = sbr.rel (%p5858_p13) target bundleno = 85 (0x55), region = 40  ;;  %p12290_p0 = scmp.ne.s32.totalorder (!%p5858_p13), %s12284_s9, 0 }
  0x3b   : > { %248 = sbr.rel (!%p12290_p0) target bundleno = 85 (0x55), region = 44  ;;  %s250_s23 = sand.u32 (%p12290_p0), 1, %s6507_s25  }
  0x3c   : > { %s6337_s29 = sshll.u32 (%p12290_p0), %s6511_s26, 6  ;;  %s5859_s30 = sshll.u32 (%p12290_p0), %s250_s23, 8 }
  0x3d   : > { %s12291_s0 = sld [smem:[#allocation171_spill]] (%p12290_p0)  ;;  %s6636_s9 = scalar_lea.vmem (%p12290_p0), [#allocation4], %s5859_s30 }
  0x43   : > { %s6631_s14 = scalar_lea.vmem %s12291_s0, %s6337_s29 }
  0x44   : > { %v269_v0 = vld [vmem:[%s6631_s14] sm:$0xff]  ;;  %v271_v1 = vld [vmem:[%s6631_s14 + $0x8] sm:$0xff]  ;;  %v273_v2 = vld [vmem:[%s6631_s14 + $0x10] sm:$0xff] }
  0x45   : > { %270 = vst [vmem:[%s6636_s9] sm:$0xff] %v269_v0  ;;  %272 = vst [vmem:[%s6636_s9 + $0x8] sm:$0xff] %v271_v1  ;;  %v275_v3 = vld [vmem:[%s6631_s14 + $0x18] sm:$0xff]  ;;  %v277_v4 = vld [vmem:[%s6631_s14 + $0x20] sm:$0xff] }
  0x46   : > { %274 = vst [vmem:[%s6636_s9 + $0x10] sm:$0xff] %v273_v2  ;;  %v279_v5 = vld [vmem:[%s6631_s14 + $0x28] sm:$0xff]  ;;  %276 = vst [vmem:[%s6636_s9 + $0x18] sm:$0xff] %v275_v3  ;;  %v281_v6 = vld [vmem:[%s6631_s14 + $0x30] sm:$0xff] }
  0x47   : > { %278 = vst [vmem:[%s6636_s9 + $0x20] sm:$0xff] %v277_v4  ;;  %280 = vst [vmem:[%s6636_s9 + $0x28] sm:$0xff] %v279_v5  ;;  %v283_v7 = vld [vmem:[%s6631_s14 + $0x38] sm:$0xff]  ;;  %v285_v8 = vld [vmem:[%s6631_s14 + $0x80] sm:$0xff] }
  0x48   : > { %282 = vst [vmem:[%s6636_s9 + $0x30] sm:$0xff] %v281_v6  ;;  %284 = vst [vmem:[%s6636_s9 + $0x38] sm:$0xff] %v283_v7  ;;  %v287_v9 = vld [vmem:[%s6631_s14 + $0x88] sm:$0xff]  ;;  %v289_v10 = vld [vmem:[%s6631_s14 + $0x90] sm:$0xff] }
  0x49   : > { %286 = vst [vmem:[%s6636_s9 + $0x40] sm:$0xff] %v285_v8  ;;  %v291_v11 = vld [vmem:[%s6631_s14 + $0x98] sm:$0xff]  ;;  %288 = vst [vmem:[%s6636_s9 + $0x48] sm:$0xff] %v287_v9  ;;  %v293_v12 = vld [vmem:[%s6631_s14 + $0xa0] sm:$0xff] }
  0x4a   : > { %290 = vst [vmem:[%s6636_s9 + $0x50] sm:$0xff] %v289_v10  ;;  %292 = vst [vmem:[%s6636_s9 + $0x58] sm:$0xff] %v291_v11  ;;  %v295_v13 = vld [vmem:[%s6631_s14 + $0xa8] sm:$0xff]  ;;  %v297_v14 = vld [vmem:[%s6631_s14 + $0xb0] sm:$0xff] }
  0x4b   : > { %294 = vst [vmem:[%s6636_s9 + $0x60] sm:$0xff] %v293_v12  ;;  %296 = vst [vmem:[%s6636_s9 + $0x68] sm:$0xff] %v295_v13  ;;  %v299_v15 = vld [vmem:[%s6631_s14 + $0xb8] sm:$0xff]  ;;  %v301_v16 = vld [vmem:[%s6631_s14 + $0x100] sm:$0xff] }
  0x4c   : > { %298 = vst [vmem:[%s6636_s9 + $0x70] sm:$0xff] %v297_v14  ;;  %v303_v17 = vld [vmem:[%s6631_s14 + $0x108] sm:$0xff]  ;;  %300 = vst [vmem:[%s6636_s9 + $0x78] sm:$0xff] %v299_v15  ;;  %v305_v18 = vld [vmem:[%s6631_s14 + $0x110] sm:$0xff] }
  0x4d   : > { %302 = vst [vmem:[%s6636_s9 + $0x80] sm:$0xff] %v301_v16  ;;  %304 = vst [vmem:[%s6636_s9 + $0x88] sm:$0xff] %v303_v17  ;;  %v307_v19 = vld [vmem:[%s6631_s14 + $0x118] sm:$0xff]  ;;  %v309_v20 = vld [vmem:[%s6631_s14 + $0x120] sm:$0xff] }
  0x4e   : > { %306 = vst [vmem:[%s6636_s9 + $0x90] sm:$0xff] %v305_v18  ;;  %308 = vst [vmem:[%s6636_s9 + $0x98] sm:$0xff] %v307_v19  ;;  %v311_v21 = vld [vmem:[%s6631_s14 + $0x128] sm:$0xff]  ;;  %v313_v22 = vld [vmem:[%s6631_s14 + $0x130] sm:$0xff] }
  0x4f   : > { %310 = vst [vmem:[%s6636_s9 + $0xa0] sm:$0xff] %v309_v20  ;;  %v315_v23 = vld [vmem:[%s6631_s14 + $0x138] sm:$0xff]  ;;  %312 = vst [vmem:[%s6636_s9 + $0xa8] sm:$0xff] %v311_v21  ;;  %v317_v24 = vld [vmem:[%s6631_s14 + $0x180] sm:$0xff] }
  0x50   : > { %314 = vst [vmem:[%s6636_s9 + $0xb0] sm:$0xff] %v313_v22  ;;  %316 = vst [vmem:[%s6636_s9 + $0xb8] sm:$0xff] %v315_v23  ;;  %v319_v25 = vld [vmem:[%s6631_s14 + $0x188] sm:$0xff]  ;;  %v321_v26 = vld [vmem:[%s6631_s14 + $0x190] sm:$0xff] }
  0x51   : > { %318 = vst [vmem:[%s6636_s9 + $0xc0] sm:$0xff] %v317_v24  ;;  %320 = vst [vmem:[%s6636_s9 + $0xc8] sm:$0xff] %v319_v25  ;;  %v323_v27 = vld [vmem:[%s6631_s14 + $0x198] sm:$0xff]  ;;  %v325_v28 = vld [vmem:[%s6631_s14 + $0x1a0] sm:$0xff] }
  0x52   : > { %322 = vst [vmem:[%s6636_s9 + $0xd0] sm:$0xff] %v321_v26  ;;  %v327_v29 = vld [vmem:[%s6631_s14 + $0x1a8] sm:$0xff]  ;;  %324 = vst [vmem:[%s6636_s9 + $0xd8] sm:$0xff] %v323_v27  ;;  %v329_v30 = vld [vmem:[%s6631_s14 + $0x1b0] sm:$0xff] }
  0x53   : > { %326 = vst [vmem:[%s6636_s9 + $0xe0] sm:$0xff] %v325_v28  ;;  %328 = vst [vmem:[%s6636_s9 + $0xe8] sm:$0xff] %v327_v29  ;;  %v331_v31 = vld [vmem:[%s6631_s14 + $0x1b8] sm:$0xff] }
  0x54   : > { %330 = vst [vmem:[%s6636_s9 + $0xf0] sm:$0xff] %v329_v30  ;;  %332 = vst [vmem:[%s6636_s9 + $0xf8] sm:$0xff] %v331_v31 }
  0x55 PF: > { %p12292_p4 = scmp.ne.s32.totalorder %s12286_s11, 0 }
  0x57   : > { %341 = sbr.rel (%p12292_p4) target bundleno = 1236 (0x4d4), region = 67 }
  0x5c   : > { %s344_s15 = sand.u32 1, %s6503_s24   ;;  %p12293_p6 = scmp.ne.s32.totalorder %s12285_s10, 0 }
  0x5d   : > { %s5864_s16 = sshll.u32 %s344_s15, 8 }
  0x5e   : > { %s6702_s17 = scalar_lea.vmem [#allocation4], %s5864_s16 }
  0x5f   : > { %6494 = dma.done.wait (%p12293_p6), [#allocation6], 128  }
  0x60   : > { %6496 = vsyncadd (%p12293_p6), [#allocation6], 4294967168 }
  0x61   : > { %6498 = dma.done.wait (%p12293_p6), [#allocation8], 16  }
  0x62   : > { %6500 = vsyncadd (%p12293_p6), [#allocation8], 4294967280 }
  0x63   : > { %358 = sfence }
  0x64   : > { %v6713_v32 = vld [vmem:[%s6702_s17 + $0x40] sm:$0xff]  ;;  %s11996_s24 = smov 127   ;;  %v6725_v34 = vld [vmem:[%s6702_s17 + $0x48] sm:$0xff]  ;;  %v12003_v36 = vmov 0.0   ;;  %s6034_s10 = sld [smem:[#allocation5 + $0x100]]  ;;  %vm400_vm0 = vcmask 670720  }
  0x65   : > { %v6716_v33 = vld [vmem:[%s6702_s17] sm:$0xff]  ;;  %496 = vrot.lane.b32.xlu1 %v6713_v32, %s11996_s24  ;;  %418 = vst [vmem:[#allocation2 + $0x40] sm:$0xff] %v6713_v32  ;;  %v6728_v35 = vld [vmem:[%s6702_s17 + $0x8] sm:$0xff]  ;;  %1579 = vmatprep.subr.mxu0 %v12003_v36  ;;  %s6035_s11 = sld [smem:[#allocation5 + $0x101]]  ;;  %s11994_s21 = smov 113   ;;  %vm1575_vm1 = vcmask 1041408  }
  0x66   : > { %442 = vrot.lane.b32.xlu0 %v6716_v33, %s11996_s24  ;;  %399 = vst [vmem:[#allocation2] sm:$0xff] %v6716_v33  ;;  %2145 = vmatprep.subr.mxu1 %v12003_v36  ;;  %v6737_v37 = vld [vmem:[%s6702_s17 + $0x88] sm:$0xff]  ;;  %v6740_v38 = vld [vmem:[%s6702_s17 + $0x80] sm:$0xff]  ;;  %s6083_s18 = sld [smem:[#allocation5 + $0x180]]  ;;  %s12318_s8 = smov 127   ;;  %vm458_vm2 = vcmask 1039360  }
  0x67   : > { %v6747_v39 = vld [vmem:[%s6702_s17 + $0xc8] sm:$0xff]  ;;  %v6750_v40 = vld [vmem:[%s6702_s17 + $0xc0] sm:$0xff]  ;;  %s6084_s19 = sld [smem:[#allocation5 + $0x181]]  ;;  %vm707_vm3 = vcmask 924672   ;;  %vm814_vm4 = vcmask 916480   ;;  %vm1101_vm5 = vcmask 523264  }
  0x68   : > { %s12294_s3 = sld [smem:[#allocation174_spill]]  ;;  %v392_v7 = vld [vmem:[%s6702_s17 + $0x8] sm:$0xff]  ;;  %v6864_v12 = vld [vmem:[%s6702_s17 + $0x80] sm:$0xff] }
  0x69   : > { %498 = vrot.lane.b32.xlu1 %v6725_v34, %s11996_s24  ;;  %s6132_s12 = sld [smem:[#allocation5 + $0x200]]  ;;  %v5870_v8 = vld [vmem:[%s6702_s17 + $0x48] sm:$0xff]  ;;  %401 = vst.msk [vmem:[#allocation2 + $0x8] sm:$0xff] %vm400_vm0, %v392_v7  ;;  %543 = vst [vmem:[#allocation2 + $0x100] sm:$0xff] %v6864_v12  ;;  %v6894_v20 = vld [vmem:[%s6702_s17 + $0xc0] sm:$0xff] }
  0x6a   : > { %444 = vrot.lane.b32.xlu0 %v6728_v35, %s11996_s24  ;;  %v6765_v44 = vstv %s6034_s10  ;;  %s6133_s9 = sld [smem:[#allocation5 + $0x201]]  ;;  %419 = vst.msk [vmem:[#allocation2 + $0x48] sm:$0xff] %vm400_vm0, %v5870_v8  ;;  %v5886_v10 = vld [vmem:[%s6702_s17 + $0x88] sm:$0xff]  ;;  %561 = vst [vmem:[#allocation2 + $0x140] sm:$0xff] %v6894_v20 }
  0x6b   : > { %12295 = vst [vmem:[#allocation15_spill] sm:$0xff] %v6765_v44  ;;  %v6770_v46 = vstv %s6035_s11  ;;  %v2248_v47 = vmul.f32 %v6765_v44, %v6716_v33  ;;  %s6780_s15 = sld [smem:[#allocation5 + $0x280]]  ;;  %v5894_v11 = vld [vmem:[%s6702_s17 + $0xc8] sm:$0xff]  ;;  %544 = vst.msk [vmem:[#allocation2 + $0x108] sm:$0xff] %vm400_vm0, %v5886_v10 }
  0x6c   : > { %12296 = vst [vmem:[#allocation16_spill] sm:$0xff] %v6770_v46  ;;  %v2266_v48 = vmul.f32 %v6713_v32, %v6770_v46  ;;  %v6778_v49 = vstv %s6083_s18  ;;  %s6182_s18 = sld [smem:[#allocation5 + $0x281]]  ;;  %562 = vst.msk [vmem:[#allocation2 + $0x148] sm:$0xff] %vm400_vm0, %v5894_v11 }
  0x6d   : > { %587 = vrot.lane.b32.xlu1 %v6737_v37, %s11996_s24  ;;  %12297 = vst [vmem:[#allocation17_spill] sm:$0xff] %v6778_v49  ;;  %v6792_v52 = vstv %s6084_s19  ;;  %v2814_v54 = vmul.f32 %v6778_v49, %v6716_v33  ;;  %s6804_s22 = sld [smem:[#allocation5 + $0x300]] }
  0x6e   : > { %585 = vrot.lane.b32.xlu0 %v6740_v38, %s11996_s24  ;;  %v1551_v41 = vld [vmem:[%s12294_s3 + $0x78] sm:$0xff]  ;;  %v6017_v42 = vld [vmem:[%s12294_s3 + $0x150] sm:$0xff]  ;;  %v6016_v45 = vld [vmem:[%s12294_s3 + $0x148] sm:$0xff]  ;;  %12298 = vst [vmem:[#allocation18_spill] sm:$0xff] %v6792_v52  ;;  %v6794_v53 = vadd.f32 %v2266_v48, %v2248_v47  ;;  %v2832_v55 = vmul.f32 %v6713_v32, %v6792_v52  ;;  %s6814_s13 = sld [smem:[#allocation5 + $0x301]] }
  0x6f   : > { %v1550_v43 = vld [vmem:[%s12294_s3 + $0x70] sm:$0xff]  ;;  %1580 = vmatpush1.msra.mxu0 %v1551_v41  ;;  %2146 = vmatpush1.msra.mxu1 %v6017_v42  ;;  %v1549_v50 = vld [vmem:[%s12294_s3 + $0x68] sm:$0xff]  ;;  %v6015_v51 = vld [vmem:[%s12294_s3 + $0x140] sm:$0xff]  ;;  %v6802_v56 = vstv %s6132_s12  ;;  %s6837_s10 = sld [smem:[#allocation5 + $0x380]] }
  0x70   : > { %1581 = vmatprep.subr.mxu0 %v12003_v36  ;;  %2147 = vmatprep.subr.mxu1 %v12003_v36  ;;  %12299 = vst [vmem:[#allocation19_spill] sm:$0xff] %v6802_v56  ;;  %v1548_v57 = vld [vmem:[%s12294_s3 + $0x60] sm:$0xff]  ;;  %v6014_v58 = vld [vmem:[%s12294_s3 + $0x138] sm:$0xff]  ;;  %v6812_v59 = vstv %s6133_s9  ;;  %v6816_v60 = vadd.f32 %v2832_v55, %v2814_v54  ;;  %v3380_v61 = vmul.f32 %v6802_v56, %v6716_v33  ;;  %v6013_v0 = vld [vmem:[%s12294_s3 + $0x130] sm:$0xff]  ;;  %s6844_s19 = sld [smem:[#allocation5 + $0x381]] }
  0x71   : > { %640 = vrot.lane.b32.xlu1 %v6747_v39, %s11996_s24  ;;  %1582 = vmatpush1.msra.mxu0 %v1550_v43  ;;  %12300 = vst [vmem:[#allocation20_spill] sm:$0xff] %v6812_v59  ;;  %v3398_v62 = vmul.f32 %v6713_v32, %v6812_v59  ;;  %v1547_v63 = vld [vmem:[%s12294_s3 + $0x58] sm:$0xff]  ;;  %v6835_v1 = vstv %s6780_s15  ;;  %v1546_v2 = vld [vmem:[%s12294_s3 + $0x50] sm:$0xff]  ;;  %s1106_s15 = sld [smem:[#allocation5]] }
  0x72   : > { %638 = vrot.lane.b32.xlu0 %v6750_v40, %s11996_s24  ;;  %2148 = vmatpush1.msra.mxu1 %v6016_v45  ;;  %12301 = vst [vmem:[#allocation21_spill] sm:$0xff] %v6835_v1  ;;  %v6842_v3 = vstv %s6182_s18  ;;  %v3946_v5 = vmul.f32 %v6835_v1, %v6716_v33  ;;  %v6012_v6 = vld [vmem:[%s12294_s3 + $0x128] sm:$0xff]  ;;  %s11992_s18 = smov 112   ;;  %v6011_v19 = vld [vmem:[%s12294_s3 + $0x120] sm:$0xff]  ;;  %s5965_s23 = sld [smem:[#allocation5 + $0x1]] }
  0x73   : > { %1583 = vmatprep.subr.mxu0 %v12003_v36  ;;  %2149 = vmatprep.subr.mxu1 %v12003_v36  ;;  %12302 = vst [vmem:[#allocation22_spill] sm:$0xff] %v6842_v3  ;;  %v6846_v4 = vadd.f32 %v3398_v62, %v3380_v61  ;;  %v3964_v9 = vmul.f32 %v6713_v32, %v6842_v3  ;;  %v6871_v13 = vstv %s6804_s22  ;;  %v1545_v18 = vld [vmem:[%s12294_s3 + $0x48] sm:$0xff]  ;;  %v1544_v22 = vld [vmem:[%s12294_s3 + $0x40] sm:$0xff]  ;;  %v6010_v26 = vld [vmem:[%s12294_s3 + $0x118] sm:$0xff]  ;;  %s7000_s12 = sld [smem:[#allocation5 + $0x80]] }
  0x74   : > { %1584 = vmatpush1.msra.mxu0 %v1549_v50  ;;  %2150 = vmatpush1.msra.mxu1 %v6015_v51  ;;  %12303 = vst [vmem:[#allocation23_spill] sm:$0xff] %v6871_v13  ;;  %v6877_v14 = vstv %s6814_s13  ;;  %v4512_v16 = vmul.f32 %v6871_v13, %v6716_v33  ;;  %v1543_v29 = vld [vmem:[%s12294_s3 + $0x38] sm:$0xff]  ;;  %v6009_v30 = vld [vmem:[%s12294_s3 + $0x110] sm:$0xff]  ;;  %v6007_v41 = vld [vmem:[%s12294_s3 + $0x100] sm:$0xff]  ;;  %s7011_s16 = sld [smem:[#allocation5 + $0x81]] }
  0x75   : > { %693 = vrot.lane.b32.xlu1 %v6728_v35, %s11994_s21  ;;  %1585 = vmatprep.subr.mxu0 %v12003_v36  ;;  %12304 = vst [vmem:[#allocation24_spill] sm:$0xff] %v6877_v14  ;;  %v6879_v15 = vadd.f32 %v3964_v9, %v3946_v5  ;;  %v4530_v17 = vmul.f32 %v6713_v32, %v6877_v14  ;;  %v6897_v21 = vstv %s6837_s10  ;;  %v1542_v31 = vld [vmem:[%s12294_s3 + $0x30] sm:$0xff]  ;;  %v1540_v42 = vld [vmem:[%s12294_s3 + $0x20] sm:$0xff]  ;;  %s7065_s29 = sld [smem:[#allocation5 + $0x103]] }
  0x76   : > { %691 = vrot.lane.b32.xlu0 %v6716_v33, %s11994_s21  ;;  %2151 = vmatprep.subr.mxu1 %v12003_v36  ;;  %12305 = vst [vmem:[#allocation25_spill] sm:$0xff] %v6897_v21  ;;  %v6910_v23 = vstv %s6844_s19  ;;  %v5078_v25 = vmul.f32 %v6897_v21, %v6716_v33  ;;  %v6006_v43 = vld [vmem:[%s12294_s3 + $0xf8] sm:$0xff]  ;;  %v6005_v54 = vld [vmem:[%s12294_s3 + $0xf0] sm:$0xff]  ;;  %s7105_s11 = sld [smem:[#allocation5 + $0x203]]  ;;  %v12332_v21 = vmov 0.0  }
  0x77   : > { %1586 = vmatpush1.msra.mxu0 %v1548_v57  ;;  %2152 = vmatpush1.msra.mxu1 %v6014_v58  ;;  %12306 = vst [vmem:[#allocation26_spill] sm:$0xff] %v6910_v23  ;;  %v6912_v24 = vadd.f32 %v4530_v17, %v4512_v16  ;;  %v5096_v27 = vmul.f32 %v6713_v32, %v6910_v23  ;;  %v6971_v45 = vstv %s1106_s15  ;;  %v394_v47 = vld [vmem:[%s6702_s17 + $0x18] sm:$0xff]  ;;  %v1538_v55 = vld [vmem:[%s12294_s3 + $0x10] sm:$0xff]  ;;  %v6004_v58 = vld [vmem:[%s12294_s3 + $0xe8] sm:$0xff]  ;;  %s7046_s15 = sld [smem:[#allocation5 + $0x84]] }
  0x78   : > { %1587 = vmatprep.subr.mxu0 %v12003_v36  ;;  %2153 = vmatprep.subr.mxu1 %v12003_v36  ;;  %v6978_v48 = vstv %s5965_s23  ;;  %403 = vst.msk [vmem:[#allocation2 + $0x18] sm:$0xff] %vm400_vm0, %v394_v47  ;;  %v5872_v50 = vld [vmem:[%s6702_s17 + $0x58] sm:$0xff]  ;;  %v7014_v61 = vld [vmem:[%s6702_s17 + $0x20] sm:$0xff]  ;;  %v7050_v9 = vld [vmem:[%s6702_s17 + $0x90] sm:$0xff]  ;;  %s7107_s20 = sld [smem:[#allocation5 + $0x283]]  ;;  %s12337_s23 = smov 113  }
  0x79   : > { %747 = vrot.lane.b32.xlu1 %v6725_v34, %s11994_s21  ;;  %1588 = vmatpush1.msra.mxu0 %v1547_v63  ;;  %v6923_v28 = vadd.f32 %v5096_v27, %v5078_v25  ;;  %421 = vst.msk [vmem:[#allocation2 + $0x58] sm:$0xff] %vm400_vm0, %v5872_v50  ;;  %v7017_v62 = vld [vmem:[%s6702_s17 + $0x18] sm:$0xff]  ;;  %v7020_v63 = vld [vmem:[%s6702_s17 + $0x10] sm:$0xff]  ;;  %404 = vst [vmem:[#allocation2 + $0x20] sm:$0xff] %v7014_v61  ;;  %v7058_v11 = vstv %s7000_s12  ;;  %s7077_s12 = sld [smem:[#allocation5 + $0x183]] }
  0x7a   : > { %745 = vrot.lane.b32.xlu0 %v6713_v32, %s11994_s21  ;;  %2154 = vmatpush1.msra.mxu1 %v6013_v0  ;;  %v7033_v0 = vld [vmem:[%s6702_s17 + $0x50] sm:$0xff]  ;;  %v6003_v5 = vld [vmem:[%s12294_s3 + $0xe0] sm:$0xff]  ;;  %v5896_v16 = vld [vmem:[%s6702_s17 + $0xd8] sm:$0xff]  ;;  %545 = vst [vmem:[#allocation2 + $0x110] sm:$0xff] %v7050_v9  ;;  %s7115_s19 = sld [smem:[#allocation5 + $0x303]] }
  0x7b   : > { %1589 = vmatprep.subr.mxu0 %v12003_v36  ;;  %2155 = vmatprep.subr.mxu1 %v12003_v36  ;;  %v1536_v10 = vld [vmem:[%s12294_s3] sm:$0xff]  ;;  %564 = vst.msk [vmem:[#allocation2 + $0x158] sm:$0xff] %vm400_vm0, %v5896_v16  ;;  %v5874_v27 = vld [vmem:[%s6702_s17 + $0x68] sm:$0xff]  ;;  %s7139_s14 = sld [smem:[#allocation5 + $0x383]]  ;;  %v7447_v59 = vstv %s7065_s29 }
  0x7c   : > { %1590 = vmatpush1.msra.mxu0 %v1546_v2  ;;  %2156 = vmatpush1.msra.mxu1 %v6012_v6  ;;  %v1537_v2 = vld [vmem:[%s12294_s3 + $0x8] sm:$0xff]  ;;  %v5888_v6 = vld [vmem:[%s6702_s17 + $0x98] sm:$0xff]  ;;  %423 = vst.msk [vmem:[#allocation2 + $0x68] sm:$0xff] %vm400_vm0, %v5874_v27  ;;  %s7148_s9 = sld [smem:[#allocation5 + $0x102]]  ;;  %v7350_v23 = vld [vmem:[%s6702_s17 + $0xa0] sm:$0xff] }
  0x7d   : > { %800 = vrot.lane.b32.xlu1 %v6728_v35, %s11992_s18  ;;  %1591 = vmatprep.subr.mxu0 %v12003_v36  ;;  %v1541_v35 = vld [vmem:[%s12294_s3 + $0x28] sm:$0xff]  ;;  %546 = vst.msk [vmem:[#allocation2 + $0x118] sm:$0xff] %vm400_vm0, %v5888_v6  ;;  %s7169_s30 = sld [smem:[#allocation5 + $0x202]]  ;;  %12330 = vst [vmem:[#allocation49_spill] sm:$0xff] %v7350_v23  ;;  %v7405_v1 = vld [vmem:[%s6702_s17 + $0xe0] sm:$0xff] }
  0x7e   : > { %798 = vrot.lane.b32.xlu0 %v6716_v33, %s11992_s18  ;;  %2157 = vmatprep.subr.mxu1 %v12003_v36  ;;  %v6944_v33 = vld [vmem:[%s6702_s17 + $0x10] sm:$0xff]  ;;  %v1561_v50 = vld [vmem:[%s12294_s3 + $0xc8] sm:$0xff]  ;;  %s7178_s13 = sld [smem:[#allocation5 + $0x282]]  ;;  %12341 = vst [vmem:[#allocation58_spill] sm:$0xff] %v7405_v1  ;;  %12349 = vst [vmem:[#allocation66_spill] sm:$0xff] %v7447_v59 }
  0x7f   : > { %1592 = vmatpush1.msra.mxu0 %v1545_v18  ;;  %2158 = vmatpush1.msra.mxu1 %v6011_v19  ;;  %402 = vst [vmem:[#allocation2 + $0x10] sm:$0xff] %v6944_v33  ;;  %v1118_v51 = vmul.f32 %v6971_v45, %v6944_v33  ;;  %v1110_v7 = vld [vmem:[#allocation2 + $0x18] sm:$0xff]  ;;  %v396_v19 = vld [vmem:[%s6702_s17 + $0x28] sm:$0xff]  ;;  %v1684_v47 = vmul.f32 %v7058_v11, %v6944_v33  ;;  %s7196_s27 = sld [smem:[#allocation5 + $0x302]]  ;;  %v7450_v56 = vstv %s7077_s12 }
  0x80   : > { %1593 = vmatprep.subr.mxu0 %v12003_v36  ;;  %2159 = vmatprep.subr.mxu1 %v12003_v36  ;;  %v1128_v8 = vld [vmem:[#allocation2 + $0x58] sm:$0xff]  ;;  %v1119_v17 = vmul.f32 %v6971_v45, %v1110_v7  ;;  %v1685_v25 = vmul.f32 %v7058_v11, %v1110_v7  ;;  %405 = vst.msk [vmem:[#allocation2 + $0x28] sm:$0xff] %vm400_vm0, %v396_v19  ;;  %v5890_v33 = vld [vmem:[%s6702_s17 + $0xa8] sm:$0xff]  ;;  %s7207_s10 = sld [smem:[#allocation5 + $0x382]]  ;;  %12350 = vst [vmem:[#allocation67_spill] sm:$0xff] %v7450_v56 }
  0x81   : > { %854 = vrot.lane.b32.xlu1 %v6725_v34, %s11992_s18  ;;  %1594 = vmatpush1.msra.mxu0 %v1544_v22  ;;  %v6947_v34 = vld [vmem:[%s6702_s17 + $0x50] sm:$0xff]  ;;  %v1137_v18 = vmul.f32 %v6978_v48, %v1128_v8  ;;  %v6002_v22 = vld [vmem:[%s12294_s3 + $0xd8] sm:$0xff]  ;;  %548 = vst.msk [vmem:[#allocation2 + $0x128] sm:$0xff] %vm400_vm0, %v5890_v33  ;;  %v5898_v6 = vld [vmem:[%s6702_s17 + $0xe8] sm:$0xff]  ;;  %s7235_s0 = sld [smem:[#allocation5 + $0x82]] }
  0x82   : > { %852 = vrot.lane.b32.xlu0 %v6713_v32, %s11992_s18  ;;  %2160 = vmatpush1.msra.mxu1 %v6010_v26  ;;  %v6008_v32 = vld [vmem:[%s12294_s3 + $0x108] sm:$0xff]  ;;  %420 = vst [vmem:[#allocation2 + $0x50] sm:$0xff] %v6947_v34  ;;  %v7073_v26 = vld [vmem:[%s6702_s17 + $0xd0] sm:$0xff]  ;;  %566 = vst.msk [vmem:[#allocation2 + $0x168] sm:$0xff] %vm400_vm0, %v5898_v6  ;;  %s7256_s1 = sld [smem:[#allocation5 + $0x83]] }
  0x83   : > { %1595 = vmatprep.subr.mxu0 %v12003_v36  ;;  %2161 = vmatprep.subr.mxu1 %v12003_v36  ;;  %563 = vst [vmem:[#allocation2 + $0x150] sm:$0xff] %v7073_v26  ;;  %v1559_v19 = vld [vmem:[%s12294_s3 + $0xb8] sm:$0xff]  ;;  %s7262_s2 = sld [smem:[#allocation5 + $0x4]] }
  0x84   : > { %1596 = vmatpush1.msra.mxu0 %v1543_v29  ;;  %2162 = vmatpush1.msra.mxu1 %v6009_v30  ;;  %v7082_v29 = vstv %s7011_s16  ;;  %v7084_v30 = vadd.f32 %v1137_v18, %v1119_v17  ;;  %v1130_v17 = vld [vmem:[#allocation2 + $0x68] sm:$0xff]  ;;  %s7217_s16 = sld [smem:[#allocation5 + $0x2]]  ;;  %v7233_v6 = vld [vmem:[%s6702_s17 + $0x98] sm:$0xff] }
  0x85   : > { %907 = vrot.lane.b32.xlu1 %v6737_v37, %s11994_s21  ;;  %1597 = vmatprep.subr.mxu0 %v12003_v36  ;;  %v1139_v18 = vmul.f32 %v6978_v48, %v1130_v17  ;;  %v1705_v27 = vmul.f32 %v7082_v29, %v1130_v17  ;;  %12316 = vst [vmem:[#allocation36_spill] sm:$0xff] %v7233_v6  ;;  %v6023_v17 = vld [vmem:[%s12294_s3 + $0x180] sm:$0xff]  ;;  %s7274_s25 = sld [smem:[#allocation5 + $0x5]] }
  0x86   : > { %905 = vrot.lane.b32.xlu0 %v6740_v38, %s11994_s21  ;;  %2163 = vmatprep.subr.mxu1 %v12003_v36  ;;  %12308 = vst [vmem:[#allocation28_spill] sm:$0xff] %v7084_v30  ;;  %s7282_s28 = sld [smem:[#allocation5 + $0x6]] }
  0x87   : > { %1598 = vmatpush1.msra.mxu0 %v1542_v31  ;;  %2164 = vmatpush1.msra.mxu1 %v6008_v32  ;;  %v1562_v31 = vld [vmem:[%s12294_s3 + $0xd0] sm:$0x3]  ;;  %v6028_v32 = vld [vmem:[%s12294_s3 + $0x1a8] sm:$0x3]  ;;  %s7294_s6 = sld [smem:[#allocation5 + $0x8]] }
  0x88   : > { %1599 = vmatprep.subr.mxu0 %v12003_v36  ;;  %2165 = vmatprep.subr.mxu1 %v12003_v36  ;;  %v1112_v7 = vld [vmem:[#allocation2 + $0x28] sm:$0xff]  ;;  %s7300_s26 = sld [smem:[#allocation5 + $0x9]] }
  0x89   : > { %960 = vrot.lane.b32.xlu1 %v6747_v39, %s11994_s21  ;;  %1600 = vmatpush1.msra.mxu0 %v1541_v35  ;;  %v1703_v35 = vmul.f32 %v7082_v29, %v1128_v8  ;;  %v1560_v8 = vld [vmem:[%s12294_s3 + $0xc0] sm:$0xff]  ;;  %v1121_v16 = vmul.f32 %v6971_v45, %v1112_v7  ;;  %s7312_s7 = sld [smem:[#allocation5 + $0xa]]  ;;  %v7486_v30 = vstv %s7262_s2 }
  0x8a   : > { %958 = vrot.lane.b32.xlu0 %v6750_v40, %s11994_s21  ;;  %2166 = vmatpush1.msra.mxu1 %v6007_v41  ;;  %v7100_v41 = vld [vmem:[%s6702_s17 + $0x28] sm:$0xff]  ;;  %s7242_s21 = sld [smem:[#allocation5 + $0x3]] }
  0x8b   : > { %1601 = vmatprep.subr.mxu0 %v12003_v36  ;;  %2167 = vmatprep.subr.mxu1 %v12003_v36  ;;  %s7322_s5 = sld [smem:[#allocation5 + $0xb]] }
  0x8c   : > { %1602 = vmatpush1.msra.mxu0 %v1540_v42  ;;  %2168 = vmatpush1.msra.mxu1 %v6006_v43  ;;  %v7103_v42 = vld [vmem:[%s6702_s17 + $0x20] sm:$0xff]  ;;  %v7111_v43 = vadd.f32 %v1703_v35, %v1685_v25  ;;  %v1687_v25 = vmul.f32 %v7058_v11, %v1112_v7  ;;  %v7194_v35 = vld [vmem:[%s6702_s17 + $0x30] sm:$0xff]  ;;  %s7356_s4 = sld [smem:[#allocation5 + $0xf]] }
  0x8d   : > { %1013 = vrot.lane.b32.xlu1 %v6737_v37, %s11992_s18  ;;  %v1136_v37 = vmul.f32 %v6947_v34, %v6978_v48  ;;  %1603 = vmatprep.subr.mxu0 %v12003_v36  ;;  %v7238_v7 = vld [vmem:[%s6702_s17 + $0x90] sm:$0xff]  ;;  %s7361_s22 = sld [smem:[#allocation7]] }
  0x8e   : > { %1011 = vrot.lane.b32.xlu0 %v6740_v38, %s11992_s18  ;;  %v1539_v38 = vld [vmem:[%s12294_s3 + $0x18] sm:$0xff]  ;;  %2169 = vmatprep.subr.mxu1 %v12003_v36  ;;  %12309 = vst [vmem:[#allocation29_spill] sm:$0xff] %v7111_v43  ;;  %v7211_v33 = vadd.f32 %v1705_v27, %v1687_v25  ;;  %12317 = vst [vmem:[#allocation37_spill] sm:$0xff] %v7238_v7  ;;  %v7280_v25 = vld [vmem:[%s6702_s17 + $0x70] sm:$0xff]  ;;  %12321 = sst [smem:[#allocation40_spill]] %s7300_s26 }
  0x8f   : > { %v7002_v57 = vadd.f32 %v1136_v37, %v1118_v51  ;;  %1604 = vmatpush1.msra.mxu0 %v1539_v38  ;;  %2170 = vmatpush1.msra.mxu1 %v6005_v54  ;;  %v6027_v51 = vld [vmem:[%s12294_s3 + $0x1a0] sm:$0xff]  ;;  %v1702_v37 = vmul.f32 %v6947_v34, %v7082_v29  ;;  %v1120_v38 = vmul.f32 %v6971_v45, %v7014_v61  ;;  %v1555_v27 = vld [vmem:[%s12294_s3 + $0x98] sm:$0xff]  ;;  %12324 = sst [smem:[#allocation43_spill]] %s7312_s7  ;;  %v1204_v43 = vld [vmem:[#allocation2 + $0x108] sm:$0xff] }
  0x90   : > { %1605 = vmatprep.subr.mxu0 %v12003_v36  ;;  %2171 = vmatprep.subr.mxu1 %v12003_v36  ;;  %v7146_v34 = vld [vmem:[%s6702_s17 + $0x60] sm:$0xff]  ;;  %12314 = vst [vmem:[#allocation34_spill] sm:$0xff] %v7211_v33  ;;  %12320 = vst [vmem:[#allocation39_spill] sm:$0xff] %v7280_v25  ;;  %s7330_s7 = sld [smem:[#allocation5 + $0xc]] }
  0x91   : > { %12307 = vst [vmem:[#allocation27_spill] sm:$0xff] %v7002_v57  ;;  %1066 = vrot.lane.b32.xlu1 %v6747_v39, %s11992_s18  ;;  %v7024_v39 = vld [vmem:[%s6702_s17 + $0x60] sm:$0xff]  ;;  %1606 = vmatpush1.msra.mxu0 %v1538_v55  ;;  %v7137_v55 = vld [vmem:[%s6702_s17 + $0x68] sm:$0xff]  ;;  %12325 = sst [smem:[#allocation44_spill]] %s7322_s5  ;;  %v7494_v57 = vstv %s7196_s27 }
  0x92   : > { %1064 = vrot.lane.b32.xlu0 %v6750_v40, %s11992_s18  ;;  %422 = vst [vmem:[#allocation2 + $0x60] sm:$0xff] %v7024_v39  ;;  %v7030_v40 = vld [vmem:[%s6702_s17 + $0x58] sm:$0xff]  ;;  %2172 = vmatpush1.msra.mxu1 %v6004_v58  ;;  %v1138_v54 = vmul.f32 %v7024_v39, %v6978_v48  ;;  %v7142_v58 = vstv %s7046_s15  ;;  %s7159_s15 = sld [smem:[#allocation5 + $0x182]]  ;;  %v1107_v33 = vld [vmem:[#allocation2] sm:$0xff]  ;;  %12359 = vst [vmem:[#allocation76_spill] sm:$0xff] %v7494_v57 }
  0x93   : > { %1607 = vmatprep.subr.mxu0 %v12003_v36  ;;  %2173 = vmatprep.subr.mxu1 %v12003_v36  ;;  %s7342_s5 = sld [smem:[#allocation5 + $0xd]] }
  0x94   : > { %1608 = vmatpush1.msra.mxu0 %v1537_v2  ;;  %2174 = vmatpush1.msra.mxu1 %v6003_v5  ;;  %v7152_v2 = vadd.f32 %v1702_v37, %v1684_v47  ;;  %v7156_v5 = vmul.f32 %v7050_v9, %v7142_v58  ;;  %v7198_v47 = vadd.f32 %v1139_v18, %v1121_v16  ;;  %v1557_v16 = vld [vmem:[%s12294_s3 + $0xa8] sm:$0xff]  ;;  %v1556_v18 = vld [vmem:[%s12294_s3 + $0xa0] sm:$0xff]  ;;  %s7374_s18 = sld [smem:[#allocation5 + $0x86]] }
  0x95   : > { %448 = vrot.lane.b32.xlu1 %v7017_v62, %s11996_s24  ;;  %1609 = vmatprep.subr.mxu0 %v12003_v36  ;;  %v1704_v37 = vmul.f32 %v7024_v39, %v7082_v29  ;;  %v6024_v39 = vld [vmem:[%s12294_s3 + $0x188] sm:$0xff]  ;;  %s7386_s26 = sld [smem:[#allocation5 + $0x88]] }
  0x96   : > { %446 = vrot.lane.b32.xlu0 %v7020_v63, %s11996_s24  ;;  %2175 = vmatprep.subr.mxu1 %v12003_v36  ;;  %12310 = vst [vmem:[#allocation30_spill] sm:$0xff] %v7152_v2  ;;  %12311 = vst [vmem:[#allocation31_spill] sm:$0xff] %v7156_v5  ;;  %12326 = sst [smem:[#allocation45_spill]] %s7330_s7  ;;  %v1125_v5 = vld [vmem:[#allocation2 + $0x40] sm:$0xff]  ;;  %v7491_v2 = vstv %s7178_s13 }
  0x97   : > { %1610 = vmatpush1.msra.mxu0 %v1536_v10  ;;  %2176 = vmatpush1.msra.mxu1 %v6002_v22  ;;  %v6026_v10 = vld [vmem:[%s12294_s3 + $0x198] sm:$0xff]  ;;  %v6025_v22 = vld [vmem:[%s12294_s3 + $0x190] sm:$0xff]  ;;  %12313 = vst [vmem:[#allocation33_spill] sm:$0xff] %v7198_v47  ;;  %s7352_s7 = sld [smem:[#allocation5 + $0xe]]  ;;  %12358 = vst [vmem:[#allocation75_spill] sm:$0xff] %v7491_v2 }
  0x98   : > { %1621 = vmatprep.subr.mxu0 %v12003_v36  ;;  %2187 = vmatprep.subr.mxu1 %v12003_v36  ;;  %s7464_s29 = sld [smem:[#allocation5 + $0x104]] }
  0x99   : > { %502 = vrot.lane.b32.xlu1 %v7030_v40, %s11996_s24  ;;  %5980 = vmatpush2.msk.msra.mxu0 %vm1575_vm1, %v1562_v31  ;;  %v7188_v31 = vadd.f32 %v1138_v54, %v1120_v38  ;;  %v7215_v38 = vld [vmem:[%s6702_s17 + $0xe0] sm:$0xff]  ;;  %12327 = sst [smem:[#allocation46_spill]] %s7342_s5 }
  0x9a   : > { %500 = vrot.lane.b32.xlu0 %v7033_v0, %s11996_s24  ;;  %6029 = vmatpush2.msk.msra.mxu1 %vm1575_vm1, %v6028_v32  ;;  %v7191_v32 = vld [vmem:[%s6702_s17 + $0x38] sm:$0xff]  ;;  %565 = vst [vmem:[#allocation2 + $0x160] sm:$0xff] %v7215_v38  ;;  %s7379_s5 = sld [smem:[#allocation5 + $0x87]] }
  0x9b   : > { %1623 = vmatprep.subr.mxu0 %v12003_v36  ;;  %2189 = vmatprep.subr.mxu1 %v12003_v36  ;;  %12312 = vst [vmem:[#allocation32_spill] sm:$0xff] %v7188_v31  ;;  %12335 = sst [smem:[#allocation53_spill]] %s7386_s26 }
  0x9c   : > { %1624 = vmatpush2.msra.mxu0 %v1561_v50  ;;  %2190 = vmatpush2.msra.mxu1 %v6027_v51  ;;  %v7201_v50 = vld [vmem:[%s6702_s17 + $0xa0] sm:$0xff]  ;;  %v1686_v51 = vmul.f32 %v7058_v11, %v7014_v61  ;;  %v1558_v61 = vld [vmem:[%s12294_s3 + $0xb0] sm:$0xff]  ;;  %s7407_s26 = sld [smem:[#allocation5 + $0x8a]] }
  0x9d   : > { %452 = vrot.lane.b32.xlu1 %v7100_v41, %s11996_s24  ;;  %1625 = vmatprep.subr.mxu0 %v12003_v36  ;;  %547 = vst [vmem:[#allocation2 + $0x120] sm:$0xff] %v7201_v50  ;;  %12331 = sst [smem:[#allocation50_spill]] %s7352_s7  ;;  %v7383_v13 = vmul.f32 %v7201_v50, %v7142_v58 }
  0x9e   : > { %450 = vrot.lane.b32.xlu0 %v7103_v42, %s11996_s24  ;;  %2191 = vmatprep.subr.mxu1 %v12003_v36  ;;  %v7226_v54 = vadd.f32 %v1704_v37, %v1686_v51  ;;  %v6021_v51 = vld [vmem:[%s12294_s3 + $0x170] sm:$0xff]  ;;  %v398_v37 = vld [vmem:[%s6702_s17 + $0x38] sm:$0xff]  ;;  %s7370_s7 = sld [smem:[#allocation5 + $0x85]] }
  0x9f   : > { %1626 = vmatpush2.msra.mxu0 %v1560_v8  ;;  %2192 = vmatpush2.msra.mxu1 %v6026_v10  ;;  %v7245_v8 = vld [vmem:[%s6702_s17 + $0x30] sm:$0xff]  ;;  %407 = vst.msk [vmem:[#allocation2 + $0x38] sm:$0xff] %vm400_vm0, %v398_v37  ;;  %12334 = vst [vmem:[#allocation52_spill] sm:$0xff] %v7383_v13  ;;  %v7473_v13 = vstv %s7148_s9  ;;  %s7478_s12 = sld [smem:[#allocation5 + $0x105]] }
  0xa0   : > { %1627 = vmatprep.subr.mxu0 %v12003_v36  ;;  %2193 = vmatprep.subr.mxu1 %v12003_v36  ;;  %12315 = vst [vmem:[#allocation35_spill] sm:$0xff] %v7226_v54  ;;  %v7248_v10 = vld [vmem:[%s6702_s17 + $0x70] sm:$0xff]  ;;  %406 = vst [vmem:[#allocation2 + $0x30] sm:$0xff] %v7245_v8  ;;  %12333 = sst [smem:[#allocation51_spill]] %s7379_s5  ;;  %v7476_v54 = vstv %s7159_s15 }
  0xa1   : > { %506 = vrot.lane.b32.xlu1 %v7137_v55, %s11996_s24  ;;  %1628 = vmatpush2.msra.mxu0 %v1559_v19  ;;  %424 = vst [vmem:[#allocation2 + $0x70] sm:$0xff] %v7248_v10  ;;  %v6022_v19 = vld [vmem:[%s12294_s3 + $0x178] sm:$0xff]  ;;  %v1140_v37 = vmul.f32 %v7248_v10, %v6978_v48  ;;  %s7413_s5 = sld [smem:[#allocation5 + $0x8b]]  ;;  %12355 = vst [vmem:[#allocation72_spill] sm:$0xff] %v7473_v13 }
  0xa2   : > { %504 = vrot.lane.b32.xlu0 %v7146_v34, %s11996_s24  ;;  %2194 = vmatpush2.msra.mxu1 %v6025_v22  ;;  %v7277_v22 = vld [vmem:[%s6702_s17 + $0x78] sm:$0xff]  ;;  %12342 = sst [smem:[#allocation59_spill]] %s7407_s26  ;;  %12356 = vst [vmem:[#allocation73_spill] sm:$0xff] %v7476_v54 }
  0xa3   : > { %1629 = vmatprep.subr.mxu0 %v12003_v36  ;;  %2195 = vmatprep.subr.mxu1 %v12003_v36  ;;  %12319 = vst [vmem:[#allocation38_spill] sm:$0xff] %v7277_v22  ;;  %s7421_s26 = sld [smem:[#allocation5 + $0x8c]] }
  0xa4   : > { %1630 = vmatpush2.msra.mxu0 %v1558_v61  ;;  %2196 = vmatpush2.msra.mxu1 %v6024_v39  ;;  %v5876_v61 = vld [vmem:[%s6702_s17 + $0x78] sm:$0xff]  ;;  %s7516_s2 = sld [smem:[#allocation5 + $0x108]] }
  0xa5   : > { %456 = vrot.lane.b32.xlu1 %v7191_v32, %s11996_s24  ;;  %1631 = vmatprep.subr.mxu0 %v12003_v36  ;;  %v7305_v39 = vld [vmem:[%s6702_s17 + $0xd8] sm:$0xff]  ;;  %425 = vst.msk [vmem:[#allocation2 + $0x78] sm:$0xff] %vm400_vm0, %v5876_v61  ;;  %s12368_s27 = sld [smem:[#allocation43_spill]] }
  0xa6   : > { %454 = vrot.lane.b32.xlu0 %v7194_v35, %s11996_s24  ;;  %2197 = vmatprep.subr.mxu1 %v12003_v36  ;;  %s7286_s24 = sld [smem:[#allocation5 + $0x7]]  ;;  %12322 = vst [vmem:[#allocation41_spill] sm:$0xff] %v7305_v39 }
  0xa7   : > { %1632 = vmatpush2.msra.mxu0 %v1557_v16  ;;  %2198 = vmatpush2.msra.mxu1 %v6023_v17  ;;  %v7308_v16 = vld [vmem:[%s6702_s17 + $0xd0] sm:$0xff]  ;;  %12343 = sst [smem:[#allocation60_spill]] %s7413_s5 }
  0xa8   : > { %1633 = vmatprep.subr.mxu0 %v12003_v36  ;;  %2199 = vmatprep.subr.mxu1 %v12003_v36  ;;  %12323 = vst [vmem:[#allocation42_spill] sm:$0xff] %v7308_v16  ;;  %v1554_v17 = vld [vmem:[%s12294_s3 + $0x90] sm:$0xff]  ;;  %s7431_s5 = sld [smem:[#allocation5 + $0x8d]] }
  0xa9   : > { %591 = vrot.lane.b32.xlu1 %v7233_v6, %s12318_s8  ;;  %1634 = vmatpush2.msra.mxu0 %v1556_v18  ;;  %v6020_v18 = vld [vmem:[%s12294_s3 + $0x168] sm:$0xff]  ;;  %12344 = sst [smem:[#allocation61_spill]] %s7421_s26  ;;  %v7519_v6 = vstv %s7242_s21 }
  0xaa   : > { %589 = vrot.lane.b32.xlu0 %v7238_v7, %s12318_s8  ;;  %2200 = vmatpush2.msra.mxu1 %v6022_v19  ;;  %v1122_v19 = vmul.f32 %v6971_v45, %v7245_v8  ;;  %s7436_s26 = sld [smem:[#allocation5 + $0x8e]]  ;;  %v2258_v7 = vld [vmem:[#allocation2 + $0x48] sm:$0xff]  ;;  %12362 = vst [vmem:[#allocation79_spill] sm:$0xff] %v7519_v6 }
  0xab   : > { %1635 = vmatprep.subr.mxu0 %v12003_v36  ;;  %2201 = vmatprep.subr.mxu1 %v12003_v36  ;;  %s12370_s9 = sld [smem:[#allocation45_spill]] }
  0xac   : > { %1636 = vmatpush2.msra.mxu0 %v1555_v27  ;;  %2202 = vmatpush2.msra.mxu1 %v6021_v51  ;;  %v1553_v27 = vld [vmem:[%s12294_s3 + $0x88] sm:$0xff]  ;;  %v6019_v51 = vld [vmem:[%s12294_s3 + $0x160] sm:$0xff]  ;;  %v7344_v61 = vadd.f32 %v1140_v37, %v1122_v19  ;;  %v1132_v37 = vld [vmem:[#allocation2 + $0x78] sm:$0xff]  ;;  %v7542_v6 = vstv %s7286_s24  ;;  %s12373_s15 = sld [smem:[#allocation50_spill]] }
  0xad   : > { %510 = vrot.lane.b32.xlu1 %v7277_v22, %s12318_s8  ;;  %1637 = vmatprep.subr.mxu0 %v12003_v36  ;;  %v1552_v19 = vld [vmem:[%s12294_s3 + $0x80] sm:$0xff]  ;;  %v1707_v3 = vmul.f32 %v7082_v29, %v1132_v37  ;;  %v2240_v22 = vld [vmem:[#allocation2 + $0x8] sm:$0xff]  ;;  %12367 = vst [vmem:[#allocation83_spill] sm:$0xff] %v7542_v6  ;;  %s7588_s13 = sld [smem:[#allocation5 + $0x185]] }
  0xae   : > { %508 = vrot.lane.b32.xlu0 %v7280_v25, %s12318_s8  ;;  %2203 = vmatprep.subr.mxu1 %v12003_v36  ;;  %12328 = vst [vmem:[#allocation47_spill] sm:$0xff] %v7344_v61  ;;  %v7347_v36 = vld [vmem:[%s6702_s17 + $0xa8] sm:$0xff]  ;;  %12345 = sst [smem:[#allocation62_spill]] %s7431_s5  ;;  %v1134_v25 = vmul.f32 %v6978_v48, %v1125_v5 }
  0xaf   : > { %12329 = vst [vmem:[#allocation48_spill] sm:$0xff] %v7347_v36  ;;  %1638 = vmatpush2.msra.mxu0 %v1554_v17  ;;  %2204 = vmatpush2.msra.mxu1 %v6020_v18  ;;  %v6018_v17 = vld [vmem:[%s12294_s3 + $0x158] sm:$0xff]  ;;  %s7396_s3 = sld [smem:[#allocation5 + $0x89]]  ;;  %v1108_v61 = vld [vmem:[#allocation2 + $0x8] sm:$0xff] }
  0xb0   : > { %1639 = vmatprep.subr.mxu0 %v12332_v21  ;;  %2205 = vmatprep.subr.mxu1 %v12332_v21  ;;  %v1114_v18 = vld [vmem:[#allocation2 + $0x38] sm:$0xff]  ;;  %s7452_s5 = sld [smem:[#allocation7 + $0x1]]  ;;  %v1117_v47 = vmul.f32 %v6971_v45, %v1108_v61 }
  0xb1   : > { %644 = vrot.lane.b32.xlu1 %v7305_v39, %s12318_s8  ;;  %1640 = vmatpush2.msra.mxu0 %v1553_v27  ;;  %v1123_v27 = vmul.f32 %v6971_v45, %v1114_v18  ;;  %v1689_v14 = vmul.f32 %v7058_v11, %v1114_v18  ;;  %v1116_v39 = vmul.f32 %v6971_v45, %v1107_v33  ;;  %s12383_s21 = sld [smem:[#allocation51_spill]] }
  0xb2   : > { %642 = vrot.lane.b32.xlu0 %v7308_v16, %s12318_s8  ;;  %2206 = vmatpush2.msra.mxu1 %v6019_v51  ;;  %v1141_v51 = vmul.f32 %v6978_v48, %v1132_v37  ;;  %v7402_v37 = vld [vmem:[%s6702_s17 + $0xe8] sm:$0xff]  ;;  %v7512_v16 = vstv %s7235_s0  ;;  %s12365_s0 = sld [smem:[#allocation40_spill]] }
  0xb3   : > { %1641 = vmatprep.subr.mxu0 %v12332_v21  ;;  %2207 = vmatprep.subr.mxu1 %v12332_v21  ;;  %12340 = vst [vmem:[#allocation57_spill] sm:$0xff] %v7402_v37  ;;  %12361 = vst [vmem:[#allocation78_spill] sm:$0xff] %v7512_v16  ;;  %v7529_v16 = vmul.f32 %v6864_v12, %v7486_v30  ;;  %v7562_v6 = vadd.f32 %v1134_v25, %v1116_v39  ;;  %v7577_v25 = vstv %s12368_s27  ;;  %s12384_s24 = sld [smem:[#allocation53_spill]] }
  0xb4   : > { %1642 = vmatpush2.msra.mxu0 %v1552_v19  ;;  %2208 = vmatpush2.msra.mxu1 %v6018_v17  ;;  %v7390_v18 = vadd.f32 %v1141_v51, %v1123_v27  ;;  %v5892_v19 = vld [vmem:[%s6702_s17 + $0xb8] sm:$0xff]  ;;  %v7399_v17 = vadd.f32 %v1707_v3, %v1689_v14  ;;  %v7411_v27 = vld [vmem:[%s6702_s17 + $0xb0] sm:$0xff]  ;;  %v1688_v3 = vmul.f32 %v7058_v11, %v7245_v8  ;;  %s7619_s27 = sld [smem:[#allocation5 + $0x10d]] }
  0xb5   : > { %595 = vrot.lane.b32.xlu1 %v7347_v36, %s12318_s8  ;;  %2711 = vmatprep.subr.mxu0 %v12332_v21  ;;  %12338 = sst [smem:[#allocation55_spill]] %s7396_s3  ;;  %550 = vst.msk [vmem:[#allocation2 + $0x138] sm:$0xff] %vm400_vm0, %v5892_v19  ;;  %v5900_v51 = vld [vmem:[%s6702_s17 + $0xf8] sm:$0xff]  ;;  %549 = vst [vmem:[#allocation2 + $0x130] sm:$0xff] %v7411_v27  ;;  %v1706_v14 = vmul.f32 %v7248_v10, %v7082_v29  ;;  %v7425_v19 = vld [vmem:[%s6702_s17 + $0xf0] sm:$0xff]  ;;  %v7509_v36 = vstv %s7217_s16  ;;  %s12382_s16 = smov 112  }
  0xb6   : > { %593 = vrot.lane.b32.xlu0 %v7350_v23, %s12318_s8  ;;  %3277 = vmatprep.subr.mxu1 %v12332_v21  ;;  %12336 = vst [vmem:[#allocation54_spill] sm:$0xff] %v7390_v18  ;;  %12339 = vst [vmem:[#allocation56_spill] sm:$0xff] %v7399_v17  ;;  %s7438_s3 = sld [smem:[#allocation5 + $0x8f]]  ;;  %v7441_v10 = vld [vmem:[%s6702_s17 + $0xb8] sm:$0xff]  ;;  %v1126_v17 = vld [vmem:[#allocation2 + $0x48] sm:$0xff]  ;;  %v7470_v18 = vstv %s7139_s14  ;;  %v7481_v21 = vstv %s7169_s30 }
  0xb7   : > { %568 = vst.msk [vmem:[#allocation2 + $0x178] sm:$0xff] %vm400_vm0, %v5900_v51  ;;  %567 = vst [vmem:[#allocation2 + $0x170] sm:$0xff] %v7425_v19  ;;  %v7434_v8 = vadd.f32 %v1706_v14, %v1688_v3  ;;  %v7444_v51 = vld [vmem:[%s6702_s17 + $0xb0] sm:$0xff]  ;;  %v7459_v3 = vstv %s7105_s11  ;;  %v7462_v14 = vstv %s7107_s20  ;;  %v1135_v31 = vmul.f32 %v6978_v48, %v1126_v17  ;;  %s7488_s11 = sld [smem:[#allocation5 + $0x106]] }
  0xb8   : > { %12347 = vst [vmem:[#allocation64_spill] sm:$0xff] %v7441_v10  ;;  %12348 = vst [vmem:[#allocation65_spill] sm:$0xff] %v7444_v51  ;;  %v7500_v23 = vstv %s7274_s25  ;;  %s7502_s20 = sld [smem:[#allocation5 + $0x107]] }
  0xb9   : > { %697 = vrot.lane.b32.xlu1 %v7017_v62, %s12337_s23  ;;  %12346 = vst [vmem:[#allocation63_spill] sm:$0xff] %v7434_v8  ;;  %12351 = vst [vmem:[#allocation68_spill] sm:$0xff] %v7459_v3  ;;  %v7467_v8 = vstv %s7115_s19  ;;  %s7531_s25 = sld [smem:[#allocation5 + $0x109]]  ;;  %v7533_v45 = vadd.f32 %v1135_v31, %v1117_v47  ;;  %v2815_v31 = vmul.f32 %v6778_v49, %v2240_v22 }
  0xba   : > { %695 = vrot.lane.b32.xlu0 %v7020_v63, %s12337_s23  ;;  %12352 = vst [vmem:[#allocation69_spill] sm:$0xff] %v7462_v14  ;;  %12353 = vst [vmem:[#allocation70_spill] sm:$0xff] %v7467_v8  ;;  %s7548_s19 = sld [smem:[#allocation5 + $0x10b]]  ;;  %v2833_v47 = vmul.f32 %v6792_v52, %v2258_v7  ;;  %v1701_v52 = vmul.f32 %v7082_v29, %v1126_v17  ;;  %v1682_v49 = vmul.f32 %v7058_v11, %v1107_v33 }
  0xbb   : > { %12354 = vst [vmem:[#allocation71_spill] sm:$0xff] %v7470_v18  ;;  %12357 = vst [vmem:[#allocation74_spill] sm:$0xff] %v7481_v21  ;;  %v7539_v18 = vstv %s7282_s28  ;;  %s12369_s14 = sld [smem:[#allocation44_spill]]  ;;  %v7607_v33 = vstv %s7356_s4  ;;  %v7610_v17 = vstv %s7361_s22 }
  0xbc   : > { %12366 = vst [vmem:[#allocation82_spill] sm:$0xff] %v7539_v18  ;;  %s12371_s28 = sld [smem:[#allocation46_spill]]  ;;  %12376 = vst [vmem:[#allocation87_spill] sm:$0xff] %v7577_v25 }
  0xbd   : > { %648 = vrot.lane.b32.xlu1 %v7402_v37, %s12318_s8  ;;  %v1230_v37 = vld [vmem:[#allocation2 + $0x148] sm:$0xff]  ;;  %s7568_s30 = sld [smem:[#allocation5 + $0x10c]]  ;;  %12385 = vst [vmem:[#allocation93_spill] sm:$0xff] %v7607_v33  ;;  %12387 = vst [vmem:[#allocation94_spill] sm:$0xff] %v7610_v17 }
  0xbe   : > { %646 = vrot.lane.b32.xlu0 %v7405_v1, %s12318_s8  ;;  %v7497_v1 = vstv %s7207_s10  ;;  %v7536_v48 = vmul.f32 %v7500_v23, %v1230_v37  ;;  %s7600_s10 = sld [smem:[#allocation5 + $0x186]] }
  0xbf   : > { %12360 = vst [vmem:[#allocation77_spill] sm:$0xff] %v7497_v1  ;;  %s12390_s4 = sld [smem:[#allocation60_spill]] }
  0xc0   : > { %s7633_s22 = sld [smem:[#allocation5 + $0x187]] }
  0xc1   : > { %751 = vrot.lane.b32.xlu1 %v7030_v40, %s12337_s23  ;;  %v7580_v39 = vstv %s12369_s14  ;;  %s12391_s14 = sld [smem:[#allocation61_spill]] }
  0xc2   : > { %749 = vrot.lane.b32.xlu0 %v7033_v0, %s12337_s23  ;;  %12377 = vst [vmem:[#allocation88_spill] sm:$0xff] %v7580_v39  ;;  %v1208_v39 = vld [vmem:[#allocation2 + $0x128] sm:$0xff] }
  0xc5   : > { %599 = vrot.lane.b32.xlu1 %v7441_v10, %s12318_s8  ;;  %v7522_v10 = vstv %s7256_s1  ;;  %s7544_s1 = sld [smem:[#allocation5 + $0x10a]] }
  0xc6   : > { %597 = vrot.lane.b32.xlu0 %v7444_v51, %s12318_s8  ;;  %12363 = vst [vmem:[#allocation80_spill] sm:$0xff] %v7522_v10  ;;  %v7525_v51 = vmul.f32 %v7486_v30, %v1204_v43  ;;  %v2267_v10 = vmul.f32 %v6770_v46, %v2258_v7  ;;  %v7560_v46 = vstv %s12365_s0  ;;  %v1683_v7 = vmul.f32 %v7058_v11, %v1108_v61  ;;  %s12388_s0 = sld [smem:[#allocation59_spill]] }
  0xc7   : > { %12374 = vst [vmem:[#allocation85_spill] sm:$0xff] %v7560_v46  ;;  %v7583_v46 = vstv %s12370_s9  ;;  %v7591_v61 = vstv %s12371_s28  ;;  %v7594_v11 = vstv %s12373_s15  ;;  %s7648_s9 = sld [smem:[#allocation5 + $0x188]] }
  0xc8   : > { %12364 = vst [vmem:[#allocation81_spill] sm:$0xff] %v7525_v51  ;;  %v2249_v51 = vmul.f32 %v6765_v44, %v2240_v22  ;;  %v7557_v44 = vstv %s7294_s6  ;;  %v7566_v22 = vmul.f32 %v6894_v20, %v7500_v23  ;;  %s7574_s6 = sld [smem:[#allocation5 + $0x184]]  ;;  %12378 = vst [vmem:[#allocation89_spill] sm:$0xff] %v7583_v46 }
  0xc9   : > { %701 = vrot.lane.b32.xlu1 %v7100_v41, %s12337_s23  ;;  %12372 = vst [vmem:[#allocation84_spill] sm:$0xff] %v7557_v44  ;;  %v1700_v44 = vmul.f32 %v7082_v29, %v1125_v5  ;;  %12379 = vst [vmem:[#allocation90_spill] sm:$0xff] %v7591_v61  ;;  %v7598_v5 = vadd.f32 %v2833_v47, %v2815_v31  ;;  %v1206_v31 = vld [vmem:[#allocation2 + $0x118] sm:$0xff]  ;;  %v5915_v47 = vld [vmem:[%s6702_s17 + $0xf0] sm:$0xff]  ;;  %v7639_v61 = vstv %s12384_s24  ;;  %s7663_s28 = sld [smem:[#allocation5 + $0x189]] }
  0xca   : > { %699 = vrot.lane.b32.xlu0 %v7103_v42, %s12337_s23  ;;  %12375 = vst [vmem:[#allocation86_spill] sm:$0xff] %v7566_v22  ;;  %v7586_v22 = vstv %s7370_s7  ;;  %12380 = vst [vmem:[#allocation91_spill] sm:$0xff] %v7594_v11  ;;  %v7596_v29 = vadd.f32 %v2267_v10, %v2249_v51  ;;  %s12386_s7 = sld [smem:[#allocation55_spill]]  ;;  %v7613_v10 = vmul.f32 %v7142_v58, %v1204_v43  ;;  %v7629_v11 = vstv %s7374_s18  ;;  %v1232_v43 = vld [vmem:[#allocation2 + $0x158] sm:$0xff] }
  0xcb   : > { %12381 = vst [vmem:[#allocation92_spill] sm:$0xff] %v7598_v5  ;;  %v7617_v51 = vmul.f32 %v6864_v12, %v7142_v58  ;;  %v7626_v33 = vmul.f32 %v7586_v22, %v1230_v37  ;;  %12389 = vst [vmem:[#allocation95_spill] sm:$0xff] %v7629_v11  ;;  %v7631_v17 = vadd.f32 %v1700_v44, %v1682_v49  ;;  %v7636_v12 = vstv %s12383_s21  ;;  %s12396_s18 = sld [smem:[#allocation62_spill]] }
  0xcc   : > { %12392 = vst [vmem:[#allocation96_spill] sm:$0xff] %v7639_v61  ;;  %v7651_v37 = vstv %s12388_s0  ;;  %v7654_v44 = vmul.f32 %v7486_v30, %v1206_v31  ;;  %v7657_v49 = vmul.f32 %v7142_v58, %v1206_v31  ;;  %v7674_v31 = vmul.f32 %v7500_v23, %v1232_v43  ;;  %s7679_s15 = sld [smem:[#allocation5 + $0x10e]] }
  0xcd   : > { %804 = vrot.lane.b32.xlu1 %v7017_v62, %s12382_s16  ;;  %v5916_v62 = vld [vmem:[%s6702_s17 + $0xf8] sm:$0xff]  ;;  %12395 = vst [vmem:[#allocation99_spill] sm:$0xff] %v7651_v37  ;;  %v7737_v37 = vstv %s7516_s2  ;;  %v7745_v5 = vstv %s7531_s25  ;;  %s12553_s25 = sld [smem:[#allocation174_spill]] }
  0xce   : > { %802 = vrot.lane.b32.xlu0 %v7020_v63, %s12382_s16  ;;  %v7623_v63 = vadd.f32 %v1701_v52, %v1683_v7  ;;  %v7646_v52 = vmul.f32 %v6894_v20, %v7586_v22  ;;  %12397 = vst [vmem:[#allocation100_spill] sm:$0xff] %v7654_v44  ;;  %12398 = vst [vmem:[#allocation101_spill] sm:$0xff] %v7657_v49  ;;  %v7661_v7 = vmul.f32 %v7050_v9, %v7486_v30  ;;  %v2336_v49 = vld [vmem:[#allocation2 + $0x108] sm:$0xff]  ;;  %s8779_s24 = sld [smem:[#allocation7 + $0x3]] }
  0xcf   : > { %v7668_v20 = vstv %s12390_s4  ;;  %v7671_v44 = vstv %s12391_s14  ;;  %12402 = vst [vmem:[#allocation105_spill] sm:$0xff] %v7674_v31  ;;  %v7677_v9 = vmul.f32 %v7586_v22, %v1232_v43  ;;  %v7693_v31 = vmul.f32 %v7073_v26, %v7586_v22  ;;  %v2362_v43 = vld [vmem:[#allocation2 + $0x148] sm:$0xff]  ;;  %12419 = vst [vmem:[#allocation122_spill] sm:$0xff] %v7737_v37  ;;  %s9378_s2 = sld [smem:[#allocation5 + $0x20c]] }
  0xd0   : > { %v7642_v46 = vstv %s12386_s7  ;;  %12394 = vst [vmem:[#allocation98_spill] sm:$0xff] %v7646_v52  ;;  %12399 = vst [vmem:[#allocation102_spill] sm:$0xff] %v7661_v7  ;;  %v1234_v7 = vld [vmem:[#allocation2 + $0x168] sm:$0xff]  ;;  %v7748_v25 = vstv %s7544_s1  ;;  %v7758_v37 = vstv %s7568_s30  ;;  %s9389_s1 = sld [smem:[#allocation5 + $0x20d]] }
  0xd1   : > { %12393 = vst [vmem:[#allocation97_spill] sm:$0xff] %v7642_v46  ;;  %652 = vrot.lane.b32.xlu1 %v5916_v62, %s12318_s8  ;;  %12400 = vst [vmem:[#allocation103_spill] sm:$0xff] %v7668_v20  ;;  %v7682_v62 = vstv %s12396_s18  ;;  %v7689_v20 = vmul.f32 %v7073_v26, %v7500_v23  ;;  %v7712_v26 = vmul.f32 %v7500_v23, %v1234_v7  ;;  %s9258_s18 = sld [smem:[#allocation5 + $0x204]] }
  0xd2   : > { %650 = vrot.lane.b32.xlu0 %v5915_v47, %s12318_s8  ;;  %12401 = vst [vmem:[#allocation104_spill] sm:$0xff] %v7671_v44  ;;  %12403 = vst [vmem:[#allocation106_spill] sm:$0xff] %v7677_v9  ;;  %v7685_v47 = vstv %s7436_s26  ;;  %s7695_s8 = sld [smem:[#allocation5 + $0x10f]]  ;;  %v7698_v9 = vstv %s7438_s3  ;;  %v7701_v44 = vstv %s7452_s5  ;;  %v7742_v46 = vmul.f32 %v7586_v22, %v1234_v7 }
  0xd3   : > { %12404 = vst [vmem:[#allocation107_spill] sm:$0xff] %v7682_v62  ;;  %12405 = vst [vmem:[#allocation108_spill] sm:$0xff] %v7685_v47  ;;  %v7704_v47 = vmul.f32 %v7486_v30, %v1208_v39  ;;  %v7707_v62 = vstv %s7464_s29  ;;  %s7709_s26 = sld [smem:[#allocation7 + $0x2]]  ;;  %v7764_v7 = vstv %s7588_s13 }
  0xd4   : > { %12406 = vst [vmem:[#allocation109_spill] sm:$0xff] %v7689_v20  ;;  %12407 = vst [vmem:[#allocation110_spill] sm:$0xff] %v7693_v31  ;;  %v7715_v31 = vmul.f32 %v7707_v62, %v2336_v49  ;;  %v7718_v20 = vstv %s7478_s12  ;;  %s7739_s3 = sld [smem:[#allocation5 + $0x18a]] }
  0xd5   : > { %12408 = vst [vmem:[#allocation111_spill] sm:$0xff] %v7698_v9  ;;  %12409 = vst [vmem:[#allocation112_spill] sm:$0xff] %v7701_v44  ;;  %v7721_v44 = vstv %s7488_s11  ;;  %755 = vrot.lane.b32.xlu1 %v7137_v55, %s12337_s23  ;;  %v7734_v9 = vstv %s7502_s20  ;;  %s7798_s5 = sld [smem:[#allocation5 + $0x18b]] }
  0xd6   : > { %12410 = vst [vmem:[#allocation113_spill] sm:$0xff] %v7704_v47  ;;  %12411 = vst [vmem:[#allocation114_spill] sm:$0xff] %v7707_v62  ;;  %753 = vrot.lane.b32.xlu0 %v7146_v34, %s12337_s23  ;;  %v7728_v47 = vmul.f32 %v7142_v58, %v1208_v39  ;;  %v7751_v39 = vstv %s7548_s19  ;;  %s7813_s29 = sld [smem:[#allocation5 + $0x18c]] }
  0xd7   : > { %12412 = vst [vmem:[#allocation115_spill] sm:$0xff] %v7712_v26  ;;  %12413 = vst [vmem:[#allocation116_spill] sm:$0xff] %v7715_v31  ;;  %v7731_v26 = vmul.f32 %v7718_v20, %v2362_v43  ;;  %s7838_s12 = sld [smem:[#allocation5 + $0x18d]] }
  0xd8   : > { %12414 = vst [vmem:[#allocation117_spill] sm:$0xff] %v7718_v20  ;;  %12415 = vst [vmem:[#allocation118_spill] sm:$0xff] %v7721_v44  ;;  %v443_v31 = vpop.permute.xlu0 %442  ;;  %s7852_s11 = sld [smem:[#allocation5 + $0x18e]] }
  0xd9   : > { %12416 = vst [vmem:[#allocation119_spill] sm:$0xff] %v7728_v47  ;;  %12417 = vst [vmem:[#allocation120_spill] sm:$0xff] %v7731_v26  ;;  %v497_v47 = vpop.permute.xlu1 %496  ;;  %v7755_v26 = vmul.f32 %v7201_v50, %v7486_v30  ;;  %v7773_v50 = vmul.f32 %v7764_v7, %v2362_v43  ;;  %858 = vrot.lane.b32.xlu1 %v7030_v40, %s12382_s16  ;;  %v7790_v43 = vmul.f32 %v7411_v27, %v7142_v58  ;;  %s8122_s20 = sld [smem:[#allocation5 + $0x18f]] }
  0xda   : > { %12418 = vst [vmem:[#allocation121_spill] sm:$0xff] %v7734_v9  ;;  %12420 = vst [vmem:[#allocation123_spill] sm:$0xff] %v7742_v46  ;;  %v7761_v9 = vstv %s7574_s6  ;;  %v1210_v46 = vld [vmem:[#allocation2 + $0x138] sm:$0xff]  ;;  %856 = vrot.lane.b32.xlu0 %v7033_v0, %s12382_s16  ;;  %v7802_v40 = vmul.f32 %v7215_v38, %v7586_v22  ;;  %v7805_v0 = vstv %s7679_s15  ;;  %s9296_s15 = sld [smem:[#allocation5 + $0x206]] }
  0xdb   : > { %12421 = vst [vmem:[#allocation124_spill] sm:$0xff] %v7745_v5  ;;  %12422 = vst [vmem:[#allocation125_spill] sm:$0xff] %v7748_v25  ;;  %v7767_v5 = vstv %s7619_s27  ;;  %v7778_v25 = vld [vmem:[#allocation2 + $0x140] sm:$0xff]  ;;  %s10093_s7 = sld [smem:[#allocation5 + $0x20e]] }
  0xdc   : > { %12423 = vst [vmem:[#allocation126_spill] sm:$0xff] %v7751_v39  ;;  %12424 = vst [vmem:[#allocation127_spill] sm:$0xff] %v7755_v26  ;;  %v7770_v39 = vmul.f32 %v7761_v9, %v2336_v49  ;;  %v7776_v26 = vstv %s7600_s10  ;;  %v7786_v49 = vmul.f32 %v7215_v38, %v7500_v23  ;;  %v7826_v38 = vmul.f32 %v7718_v20, %v7778_v25  ;;  %s10130_s14 = sld [smem:[#allocation5 + $0x284]] }
  0xdd   : > { %12425 = vst [vmem:[#allocation128_spill] sm:$0xff] %v7758_v37  ;;  %12426 = vst [vmem:[#allocation129_spill] sm:$0xff] %v7761_v9  ;;  %v2335_v37 = vld [vmem:[#allocation2 + $0x100] sm:$0xff]  ;;  %v499_v61 = vpop.permute.xlu1 %498  ;;  %705 = vrot.lane.b32.xlu1 %v7191_v32, %s12337_s23  ;;  %s10214_s19 = sld [smem:[#allocation5 + $0x28a]] }
  0xde   : > { %12427 = vst [vmem:[#allocation130_spill] sm:$0xff] %v7764_v7  ;;  %12428 = vst [vmem:[#allocation131_spill] sm:$0xff] %v7767_v5  ;;  %v1236_v5 = vld [vmem:[#allocation2 + $0x178] sm:$0xff]  ;;  %v7822_v52 = vmul.f32 %v7707_v62, %v2335_v37  ;;  %703 = vrot.lane.b32.xlu0 %v7194_v35, %s12337_s23  ;;  %s10276_s0 = sld [smem:[#allocation5 + $0x28c]] }
  0xdf   : > { %12429 = vst [vmem:[#allocation132_spill] sm:$0xff] %v7770_v39  ;;  %12430 = vst [vmem:[#allocation133_spill] sm:$0xff] %v7773_v50  ;;  %v7793_v50 = vstv %s7633_s22  ;;  %v7796_v39 = vstv %s7648_s9  ;;  %s10142_s9 = sld [smem:[#allocation5 + $0x286]] }
  0xe0   : > { %12431 = vst [vmem:[#allocation134_spill] sm:$0xff] %v7776_v26  ;;  %12432 = vst [vmem:[#allocation135_spill] sm:$0xff] %v7786_v49  ;;  %v7808_v26 = vstv %s7695_s8  ;;  %v7811_v49 = vstv %s7663_s28  ;;  %s9264_s28 = sld [smem:[#allocation5 + $0x205]] }
  0xe1   : > { %12433 = vst [vmem:[#allocation136_spill] sm:$0xff] %v7790_v43  ;;  %12434 = vst [vmem:[#allocation137_spill] sm:$0xff] %v7793_v50  ;;  %v445_v43 = vpop.permute.xlu0 %444  ;;  %v7816_v50 = vmul.f32 %v7486_v30, %v1210_v46  ;;  %808 = vrot.lane.b32.xlu1 %v7100_v41, %s12382_s16  ;;  %s9301_s8 = sld [smem:[#allocation5 + $0x207]] }
  0xe2   : > { %12435 = vst [vmem:[#allocation138_spill] sm:$0xff] %v7796_v39  ;;  %12436 = vst [vmem:[#allocation139_spill] sm:$0xff] %v7802_v40  ;;  %v7819_v39 = vstv %s7709_s26  ;;  %v512_v40 = vsel %vm458_vm2, %v497_v47, %v499_v61  ;;  %v7843_v47 = vmul.f32 %v7586_v22, %v1236_v5  ;;  %806 = vrot.lane.b32.xlu0 %v7103_v42, %s12382_s16  ;;  %s9317_s26 = sld [smem:[#allocation5 + $0x208]] }
  0xe3   : > { %12437 = vst [vmem:[#allocation140_spill] sm:$0xff] %v7805_v0  ;;  %12438 = vst [vmem:[#allocation141_spill] sm:$0xff] %v7808_v26  ;;  %v459_v26 = vsel %vm458_vm2, %v443_v31, %v445_v43  ;;  %v7850_v31 = vstv %s7739_s3  ;;  %v7906_v41 = vmul.f32 %v7462_v14, %v512_v40  ;;  %s9338_s3 = sld [smem:[#allocation5 + $0x209]] }
  0xe4   : > { %12439 = vst [vmem:[#allocation142_spill] sm:$0xff] %v7811_v49  ;;  %12440 = vst [vmem:[#allocation143_spill] sm:$0xff] %v7816_v50  ;;  %v7833_v50 = vmul.f32 %v7500_v23, %v1236_v5  ;;  %v2292_v20 = vmul.f32 %v7473_v13, %v459_v26  ;;  %v2858_v5 = vmul.f32 %v7476_v54, %v459_v26  ;;  %s10291_s22 = sld [smem:[#allocation5 + $0x28d]] }
  0xe5   : > { %12441 = vst [vmem:[#allocation144_spill] sm:$0xff] %v7819_v39  ;;  %12442 = vst [vmem:[#allocation145_spill] sm:$0xff] %v7822_v52  ;;  %v7836_v39 = vmul.f32 %v7142_v58, %v1210_v46  ;;  %v7855_v46 = vmul.f32 %v7761_v9, %v2335_v37  ;;  %v2318_v58 = vmul.f32 %v7447_v59, %v512_v40  ;;  %v588_v9 = vpop.permute.xlu1 %587  ;;  %s10398_s30 = sld [smem:[#allocation5 + $0x305]] }
  0xe6   : > { %12443 = vst [vmem:[#allocation146_spill] sm:$0xff] %v7826_v38  ;;  %526 = vst.msk [vmem:[#allocation2 + $0xc8] sm:$0xff] %vm400_vm0, %v499_v61  ;;  %v7847_v61 = vmul.f32 %v7411_v27, %v7486_v30  ;;  %v3424_v30 = vmul.f32 %v7481_v21, %v459_v26  ;;  %v3990_v27 = vmul.f32 %v7491_v2, %v459_v26  ;;  %s11270_s21 = sld [smem:[#allocation5 + $0x384]] }
  0xe7   : > { %473 = vst.msk [vmem:[#allocation2 + $0x88] sm:$0xff] %vm400_vm0, %v445_v43  ;;  %12444 = vst [vmem:[#allocation147_spill] sm:$0xff] %v7833_v50  ;;  %v2884_v43 = vmul.f32 %v7450_v56, %v512_v40  ;;  %v4556_v62 = vmul.f32 %v7494_v57, %v459_v26  ;;  %v5122_v37 = vmul.f32 %v7497_v1, %v459_v26  ;;  %s11296_s27 = sld [smem:[#allocation5 + $0x30c]] }
  0xe8   : > { %12445 = vst [vmem:[#allocation148_spill] sm:$0xff] %v7836_v39  ;;  %525 = vst [vmem:[#allocation2 + $0xc0] sm:$0xff] %v512_v40  ;;  %v2300_v38 = vadd.f32 %v2292_v20, %v6794_v53  ;;  %v1160_v50 = vmul.f32 %v7509_v36, %v459_v26  ;;  %v7873_v39 = vadd.f32 %v3424_v30, %v6846_v4  ;;  %v7897_v4 = vstv %s7798_s5  ;;  %s9345_s5 = sld [smem:[#allocation5 + $0x20a]] }
  0xe9   : > { %12446 = vst [vmem:[#allocation149_spill] sm:$0xff] %v7843_v47  ;;  %12447 = vst [vmem:[#allocation150_spill] sm:$0xff] %v7847_v61  ;;  %v2866_v61 = vadd.f32 %v2858_v5, %v6816_v60  ;;  %v7876_v52 = vadd.f32 %v3990_v27, %v6879_v15  ;;  %v7879_v0 = vadd.f32 %v4556_v62, %v6912_v24  ;;  %v7900_v15 = vstv %s7813_s29  ;;  %v641_v42 = vpop.permute.xlu1 %640  ;;  %v12464_v27 = vld [vmem:[#allocation78_spill] sm:$0xff]  ;;  %s9358_s29 = sld [smem:[#allocation5 + $0x20b]] }
  0xea   : > { %12448 = vst [vmem:[#allocation151_spill] sm:$0xff] %v7850_v31  ;;  %12449 = vst [vmem:[#allocation152_spill] sm:$0xff] %v7855_v46  ;;  %v586_v46 = vpop.permute.xlu0 %585  ;;  %v7882_v31 = vadd.f32 %v5122_v37, %v6923_v28  ;;  %v7890_v53 = vmul.f32 %v7425_v19, %v7500_v23  ;;  %v7894_v60 = vmul.f32 %v7425_v19, %v7586_v22  ;;  %v12462_v22 = vld [vmem:[#allocation71_spill] sm:$0xff]  ;;  %s11396_s6 = sld [smem:[#allocation5 + $0x38a]] }
  0xeb   : > { %615 = vst.msk [vmem:[#allocation2 + $0x188] sm:$0xff] %vm400_vm0, %v588_v9  ;;  %v601_v47 = vsel %vm458_vm2, %v586_v46, %v588_v9  ;;  %12450 = vst [vmem:[#allocation153_spill] sm:$0xff] %v7873_v39  ;;  %v7903_v28 = vmul.f32 %v7459_v3, %v512_v40  ;;  %v7908_v20 = vadd.f32 %v2318_v58, %v2300_v38  ;;  %v7927_v58 = vstv %s7852_s11  ;;  %s11369_s11 = sld [smem:[#allocation5 + $0x386]] }
  0xec   : > { %12451 = vst [vmem:[#allocation154_spill] sm:$0xff] %v7876_v52  ;;  %12452 = vst [vmem:[#allocation155_spill] sm:$0xff] %v7879_v0  ;;  %v7910_v9 = vadd.f32 %v2884_v43, %v2866_v61  ;;  %v7913_v19 = vmul.f32 %v7467_v8, %v512_v40  ;;  %v7916_v62 = vmul.f32 %v12462_v22, %v512_v40  ;;  %v7924_v61 = vstv %s7838_s12  ;;  %s10184_s12 = sld [smem:[#allocation5 + $0x288]] }
  0xed   : > { %12453 = vst [vmem:[#allocation156_spill] sm:$0xff] %v7882_v31  ;;  %614 = vst [vmem:[#allocation2 + $0x180] sm:$0xff] %v601_v47  ;;  %v2310_v24 = vld [vmem:[#allocation2 + $0xc8] sm:$0xff]  ;;  %v1168_v30 = vadd.f32 %v1160_v50, %v7562_v6  ;;  %v1726_v37 = vmul.f32 %v12464_v27, %v459_v26  ;;  %v7930_v40 = vmul.f32 %v7721_v44, %v601_v47  ;;  %s11473_s4 = sld [smem:[#allocation5 + $0x38f]] }
  0xee   : > { %12454 = vst [vmem:[#allocation157_spill] sm:$0xff] %v7890_v53  ;;  %12455 = vst [vmem:[#allocation158_spill] sm:$0xff] %v7894_v60  ;;  %v639_v23 = vpop.permute.xlu0 %638  ;;  %v2284_v46 = vld [vmem:[#allocation2 + $0x88] sm:$0xff]  ;;  %v7934_v43 = vmul.f32 %v7764_v7, %v7778_v25  ;;  %v2319_v6 = vmul.f32 %v7447_v59, %v2310_v24  ;;  %v7938_v26 = vmul.f32 %v7450_v56, %v2310_v24 }
  0xef   : > { %12456 = vst [vmem:[#allocation159_spill] sm:$0xff] %v7897_v4  ;;  %12457 = vst [vmem:[#allocation160_spill] sm:$0xff] %v7900_v15  ;;  %v1718_v5 = vld [vmem:[#allocation2 + $0x88] sm:$0xff]  ;;  %v7941_v50 = vmul.f32 %v7459_v3, %v2310_v24  ;;  %v1177_v47 = vld [vmem:[#allocation2 + $0xc0] sm:$0xff]  ;;  %v2293_v0 = vmul.f32 %v7473_v13, %v2284_v46  ;;  %v654_v25 = vsel %vm458_vm2, %v639_v23, %v641_v42 }
  0xf0   : > { %12458 = vst [vmem:[#allocation161_spill] sm:$0xff] %v7903_v28  ;;  %12459 = vst [vmem:[#allocation162_spill] sm:$0xff] %v7906_v41  ;;  %v12465_v31 = vld [vmem:[#allocation36_spill] sm:$0xff]  ;;  %v694_v41 = vpop.permute.xlu1 %693  ;;  %v1161_v28 = vmul.f32 %v2284_v46, %v7509_v36  ;;  %v1727_v39 = vmul.f32 %v12464_v27, %v1718_v5  ;;  %v7953_v7 = vmul.f32 %v7467_v8, %v2310_v24 }
  0xf1   : > { %12460 = vst [vmem:[#allocation163_spill] sm:$0xff] %v7910_v9  ;;  %12461 = vst [vmem:[#allocation164_spill] sm:$0xff] %v7913_v19  ;;  %911 = vrot.lane.b32.xlu1 %v12465_v31, %s12337_s23  ;;  %v1178_v38 = vld [vmem:[#allocation2 + $0xc8] sm:$0xff]  ;;  %v12472_v19 = vld [vmem:[#allocation37_spill] sm:$0xff]  ;;  %v7979_v8 = vmul.f32 %v7491_v2, %v2284_v46 }
  0xf2   : > { %12463 = vst [vmem:[#allocation165_spill] sm:$0xff] %v7916_v62  ;;  %668 = vst.msk [vmem:[#allocation2 + $0x1c8] sm:$0xff] %vm400_vm0, %v641_v42  ;;  %v7944_v62 = vmul.f32 %v7462_v14, %v2310_v24  ;;  %909 = vrot.lane.b32.xlu0 %v12472_v19, %s12337_s23  ;;  %v692_v52 = vpop.permute.xlu0 %691  ;;  %v12476_v42 = vld [vmem:[#allocation38_spill] sm:$0xff]  ;;  %v1169_v23 = vadd.f32 %v1161_v28, %v7533_v45  ;;  %v1735_v5 = vadd.f32 %v1727_v39, %v7623_v63  ;;  %v1256_v39 = vld [vmem:[#allocation2 + $0x188] sm:$0xff] }
  0xf3   : > { %12466 = vst [vmem:[#allocation78_spill] sm:$0xff] %v7924_v61  ;;  %12467 = vst [vmem:[#allocation36_spill] sm:$0xff] %v7927_v58 }
  0xf4   : > { %12468 = vst [vmem:[#allocation166_spill] sm:$0xff] %v7930_v40  ;;  %12469 = vst [vmem:[#allocation167_spill] sm:$0xff] %v7934_v43  ;;  %v12475_v43 = vld [vmem:[#allocation79_spill] sm:$0xff]  ;;  %v12477_v40 = vld [vmem:[#allocation80_spill] sm:$0xff]  ;;  %v748_v45 = vpop.permute.xlu1 %747 }
  0xf5   : > { %12470 = vst [vmem:[#allocation168_spill] sm:$0xff] %v7941_v50  ;;  %12471 = vst [vmem:[#allocation169_spill] sm:$0xff] %v7944_v62  ;;  %v7956_v50 = vmul.f32 %v12462_v22, %v2310_v24  ;;  %v708_v62 = vsel %vm707_vm3, %v692_v52, %v694_v41  ;;  %v1187_v9 = vmul.f32 %v12475_v43, %v1178_v38  ;;  %759 = vrot.lane.b32.xlu1 %v12476_v42, %s12337_s23  ;;  %v12479_v52 = vld [vmem:[#allocation39_spill] sm:$0xff] }
  0xf6   : > { %12473 = vst [vmem:[#allocation37_spill] sm:$0xff] %v7953_v7  ;;  %667 = vst [vmem:[#allocation2 + $0x1c0] sm:$0xff] %v654_v25  ;;  %v1753_v7 = vmul.f32 %v12477_v40, %v1178_v38  ;;  %v1186_v24 = vmul.f32 %v12475_v43, %v1177_v47  ;;  %v7968_v25 = vmul.f32 %v7476_v54, %v2284_v46  ;;  %757 = vrot.lane.b32.xlu0 %v12479_v52, %s12337_s23  ;;  %v746_v28 = vpop.permute.xlu0 %745  ;;  %v1255_v53 = vld [vmem:[#allocation2 + $0x180] sm:$0xff] }
  0xf7   : > { %12474 = vst [vmem:[#allocation170_spill] sm:$0xff] %v7956_v50  ;;  %722 = vst.msk [vmem:[#allocation2 + $0x208] sm:$0xff] %vm400_vm0, %v694_v41  ;;  %v7971_v50 = vmul.f32 %v7481_v21, %v2284_v46  ;;  %v1734_v41 = vadd.f32 %v1726_v37, %v7631_v17  ;;  %v1195_v63 = vadd.f32 %v1187_v9, %v1169_v23 }
  0xf8   : > { %721 = vst [vmem:[#allocation2 + $0x200] sm:$0xff] %v708_v62  ;;  %v1752_v62 = vmul.f32 %v12477_v40, %v1177_v47  ;;  %v1761_v38 = vadd.f32 %v1753_v7, %v1735_v5  ;;  %v1194_v60 = vadd.f32 %v1186_v24, %v1168_v30  ;;  %v2301_v22 = vadd.f32 %v2293_v0, %v7596_v29  ;;  %v12483_v7 = vld [vmem:[#allocation81_spill] sm:$0xff] }
  0xf9   : > { %12478 = vst [vmem:[#allocation79_spill] sm:$0xff] %v7971_v50  ;;  %12480 = vst [vmem:[#allocation38_spill] sm:$0xff] %v7979_v8  ;;  %v7982_v50 = vmul.f32 %v7494_v57, %v2284_v46  ;;  %v761_v17 = vsel %vm707_vm3, %v746_v28, %v748_v45  ;;  %v7987_v47 = vmul.f32 %v7497_v1, %v2284_v46  ;;  %862 = vrot.lane.b32.xlu1 %v7137_v55, %s12382_s16  ;;  %v7994_v30 = vld [vmem:[#allocation2 + $0x188] sm:$0xff]  ;;  %v801_v55 = vpop.permute.xlu1 %800 }
  0xfa   : > { %775 = vst.msk [vmem:[#allocation2 + $0x248] sm:$0xff] %vm400_vm0, %v748_v45  ;;  %v1760_v37 = vadd.f32 %v1752_v62, %v1734_v41  ;;  %774 = vst [vmem:[#allocation2 + $0x240] sm:$0xff] %v761_v17  ;;  %v1221_v29 = vadd.f32 %v12483_v7, %v1195_v63  ;;  %v1787_v0 = vadd.f32 %v7613_v10, %v1761_v38  ;;  %860 = vrot.lane.b32.xlu0 %v7146_v34, %s12382_s16  ;;  %v799_v41 = vpop.permute.xlu0 %798  ;;  %v1282_v10 = vld [vmem:[#allocation2 + $0x1c8] sm:$0xff]  ;;  %v12485_v38 = vld [vmem:[#allocation83_spill] sm:$0xff] }
  0xfb   : > { %12481 = vst [vmem:[#allocation80_spill] sm:$0xff] %v7982_v50  ;;  %12482 = vst [vmem:[#allocation39_spill] sm:$0xff] %v7987_v47  ;;  %v1220_v9 = vadd.f32 %v7529_v16, %v1194_v60  ;;  %v1265_v23 = vmul.f32 %v7539_v18, %v1256_v39  ;;  %v1831_v46 = vmul.f32 %v7629_v11, %v1256_v39  ;;  %v12484_v60 = vld [vmem:[#allocation86_spill] sm:$0xff]  ;;  %v8020_v8 = vld [vmem:[#allocation2 + $0x1c8] sm:$0xff] }
  0xfc   : > { %v1264_v5 = vmul.f32 %v7539_v18, %v1255_v53  ;;  %v1786_v24 = vadd.f32 %v7617_v51, %v1760_v37  ;;  %v1247_v62 = vadd.f32 %v7536_v48, %v1221_v29  ;;  %v1813_v16 = vadd.f32 %v7626_v33, %v1787_v0  ;;  %829 = vst.msk [vmem:[#allocation2 + $0x288] sm:$0xff] %vm400_vm0, %v801_v55  ;;  %v12486_v37 = vld [vmem:[#allocation41_spill] sm:$0xff] }
  0xfd   : > { %v1246_v28 = vadd.f32 %v12484_v60, %v1220_v9  ;;  %v1281_v63 = vld [vmem:[#allocation2 + $0x1c0] sm:$0xff]  ;;  %v2327_v34 = vadd.f32 %v2319_v6, %v2301_v22  ;;  %v815_v39 = vsel %vm814_vm4, %v799_v41, %v801_v55  ;;  %v1830_v51 = vmul.f32 %v7629_v11, %v1255_v53  ;;  %964 = vrot.lane.b32.xlu1 %v12486_v37, %s12337_s23  ;;  %v12488_v9 = vld [vmem:[#allocation42_spill] sm:$0xff]  ;;  %v12492_v18 = vld [vmem:[#allocation85_spill] sm:$0xff] }
  0xfe   : > { %v1308_v45 = vld [vmem:[#allocation2 + $0x208] sm:$0xff]  ;;  %v1290_v7 = vmul.f32 %v12485_v38, %v1281_v63  ;;  %v2397_v48 = vmul.f32 %v7721_v44, %v7994_v30  ;;  %828 = vst [vmem:[#allocation2 + $0x280] sm:$0xff] %v815_v39  ;;  %v1273_v33 = vadd.f32 %v1265_v23, %v1247_v62  ;;  %v1839_v29 = vadd.f32 %v1831_v46, %v1813_v16  ;;  %v12487_v22 = vld [vmem:[#allocation84_spill] sm:$0xff]  ;;  %v12489_v60 = vld [vmem:[#allocation98_spill] sm:$0xff]  ;;  %v855_v44 = vpop.permute.xlu1 %854  ;;  %v853_v37 = vpop.permute.xlu0 %852 }
  0xff   : > { %v1307_v47 = vld [vmem:[#allocation2 + $0x200] sm:$0xff]  ;;  %v1272_v0 = vadd.f32 %v1264_v5, %v1246_v28  ;;  %962 = vrot.lane.b32.xlu0 %v12488_v9, %s12337_s23  ;;  %v1291_v55 = vmul.f32 %v12485_v38, %v1282_v10  ;;  %v1317_v41 = vmul.f32 %v12487_v22, %v1308_v45  ;;  %v1857_v53 = vmul.f32 %v7636_v12, %v1282_v10 }
 0x100   : > { %v1316_v6 = vmul.f32 %v12487_v22, %v1307_v47  ;;  %v1812_v50 = vadd.f32 %v12489_v60, %v1786_v24  ;;  %v12490_v46 = vld [vmem:[#allocation96_spill] sm:$0xff]  ;;  %v1856_v16 = vmul.f32 %v7636_v12, %v1281_v63  ;;  %882 = vst.msk [vmem:[#allocation2 + $0x2c8] sm:$0xff] %vm400_vm0, %v855_v44  ;;  %v868_v22 = vsel %vm814_vm4, %v853_v37, %v855_v44  ;;  %v12493_v63 = vld [vmem:[#allocation121_spill] sm:$0xff] }
 0x101   : > { %v1334_v23 = vld [vmem:[#allocation2 + $0x248] sm:$0xff]  ;;  %v1883_v5 = vmul.f32 %v12490_v46, %v1308_v45  ;;  %v1298_v62 = vadd.f32 %v1290_v7, %v1272_v0  ;;  %v12491_v28 = vld [vmem:[#allocation116_spill] sm:$0xff]  ;;  %v1299_v38 = vadd.f32 %v1291_v55, %v1273_v33  ;;  %v1865_v10 = vadd.f32 %v1857_v53, %v1839_v29  ;;  %881 = vst [vmem:[#allocation2 + $0x2c0] sm:$0xff] %v868_v22  ;;  %v12494_v33 = vld [vmem:[#allocation87_spill] sm:$0xff] }
 0x102   : > { %v2353_v9 = vadd.f32 %v12491_v28, %v2327_v34  ;;  %v1838_v11 = vadd.f32 %v1830_v51, %v1812_v50  ;;  %v1899_v24 = vld [vmem:[#allocation2 + $0x240] sm:$0xff]  ;;  %812 = vrot.lane.b32.xlu1 %v7191_v32, %s12382_s16  ;;  %v1342_v45 = vmul.f32 %v12492_v18, %v761_v17  ;;  %v1882_v7 = vmul.f32 %v12490_v46, %v1307_v47  ;;  %v906_v55 = vpop.permute.xlu0 %905  ;;  %v12497_v53 = vld [vmem:[#allocation97_spill] sm:$0xff] }
 0x103   : > { %v1324_v60 = vadd.f32 %v1316_v6, %v1298_v62  ;;  %v2423_v34 = vmul.f32 %v12493_v63, %v8020_v8  ;;  %810 = vrot.lane.b32.xlu0 %v7194_v35, %s12382_s16  ;;  %v1343_v44 = vmul.f32 %v12492_v18, %v1334_v23  ;;  %v1368_v50 = vmul.f32 %v12494_v33, %v815_v39  ;;  %v12495_v51 = vld [vmem:[#allocation120_spill] sm:$0xff]  ;;  %v908_v6 = vpop.permute.xlu1 %907  ;;  %v1360_v17 = vld [vmem:[#allocation2 + $0x288] sm:$0xff] }
 0x104   : > { %v2379_v29 = vadd.f32 %v12495_v51, %v2353_v9  ;;  %v12496_v0 = vld [vmem:[#allocation92_spill] sm:$0xff]  ;;  %v1909_v47 = vmul.f32 %v12497_v53, %v1334_v23  ;;  %v1864_v62 = vadd.f32 %v1856_v16, %v1838_v11  ;;  %v1908_v28 = vmul.f32 %v12497_v53, %v1899_v24  ;;  %v8042_v63 = vld [vmem:[#allocation2 + $0x208] sm:$0xff]  ;;  %935 = vst.msk [vmem:[#allocation2 + $0x308] sm:$0xff] %vm400_vm0, %v908_v6 }
 0x105   : > { %v2867_v32 = vadd.f32 %v7968_v25, %v12496_v0  ;;  %v1350_v37 = vadd.f32 %v1342_v45, %v1324_v60  ;;  %v921_v35 = vsel %vm707_vm3, %v906_v55, %v908_v6  ;;  %v1325_v39 = vadd.f32 %v1317_v41, %v1299_v38  ;;  %v1925_v51 = vld [vmem:[#allocation2 + $0x280] sm:$0xff]  ;;  %v8046_v18 = vld [vmem:[#allocation2 + $0x248] sm:$0xff]  ;;  %v12498_v25 = vld [vmem:[#allocation134_spill] sm:$0xff] }
 0x106   : > { %v1891_v9 = vadd.f32 %v1883_v5, %v1865_v10  ;;  %v8050_v0 = vmul.f32 %v12498_v25, %v7994_v30  ;;  %934 = vst [vmem:[#allocation2 + $0x300] sm:$0xff] %v921_v35  ;;  %v12499_v11 = vld [vmem:[#allocation48_spill] sm:$0xff]  ;;  %v1890_v60 = vadd.f32 %v1882_v7, %v1864_v62  ;;  %v12501_v45 = vld [vmem:[#allocation99_spill] sm:$0xff]  ;;  %v12502_v38 = vld [vmem:[#allocation49_spill] sm:$0xff]  ;;  %v1369_v5 = vmul.f32 %v12494_v33, %v1360_v17  ;;  %v959_v25 = vpop.permute.xlu0 %958 }
 0x107   : > { %915 = vrot.lane.b32.xlu1 %v12499_v11, %s12337_s23  ;;  %v1376_v23 = vadd.f32 %v1368_v50, %v1350_v37  ;;  %v12500_v16 = vld [vmem:[#allocation88_spill] sm:$0xff]  ;;  %v1934_v53 = vmul.f32 %v12501_v45, %v1925_v51  ;;  %913 = vrot.lane.b32.xlu0 %v12502_v38, %s12337_s23  ;;  %v1351_v41 = vadd.f32 %v1343_v44, %v1325_v39  ;;  %v12503_v30 = vld [vmem:[#allocation122_spill] sm:$0xff]  ;;  %v961_v55 = vpop.permute.xlu1 %960  ;;  %v1386_v46 = vld [vmem:[#allocation2 + $0x2c8] sm:$0xff] }
 0x108   : > { %v1394_v24 = vmul.f32 %v12500_v16, %v868_v22  ;;  %v2405_v10 = vadd.f32 %v2397_v48, %v2379_v29  ;;  %v2449_v6 = vmul.f32 %v12503_v30, %v8042_v63  ;;  %v1917_v11 = vadd.f32 %v1909_v47, %v1891_v9  ;;  %v12504_v7 = vld [vmem:[#allocation124_spill] sm:$0xff]  ;;  %988 = vst.msk [vmem:[#allocation2 + $0x348] sm:$0xff] %vm400_vm0, %v961_v55  ;;  %v12505_v39 = vld [vmem:[#allocation89_spill] sm:$0xff]  ;;  %v12506_v47 = vld [vmem:[#allocation103_spill] sm:$0xff] }
 0x109   : > { %v1935_v50 = vmul.f32 %v12501_v45, %v1360_v17  ;;  %v1916_v22 = vadd.f32 %v1908_v28, %v1890_v60  ;;  %v2475_v37 = vmul.f32 %v12504_v7, %v8046_v18  ;;  %v974_v44 = vsel %vm707_vm3, %v959_v25, %v961_v55  ;;  %v1951_v29 = vld [vmem:[#allocation2 + $0x2c0] sm:$0xff]  ;;  %v8067_v51 = vld [vmem:[#allocation2 + $0x288] sm:$0xff] }
 0x10a   : > { %v1402_v62 = vadd.f32 %v1394_v24, %v1376_v23  ;;  %v1420_v48 = vmul.f32 %v12505_v39, %v921_v35  ;;  %v2893_v38 = vadd.f32 %v7938_v26, %v2867_v32  ;;  %987 = vst [vmem:[#allocation2 + $0x340] sm:$0xff] %v974_v44  ;;  %v1395_v17 = vmul.f32 %v12500_v16, %v1386_v46  ;;  %v12507_v23 = vld [vmem:[#allocation90_spill] sm:$0xff]  ;;  %v12508_v55 = vld [vmem:[#allocation104_spill] sm:$0xff]  ;;  %v1012_v30 = vpop.permute.xlu0 %1011  ;;  %v12509_v16 = vld [vmem:[#allocation125_spill] sm:$0xff] }
 0x10b   : > { %1017 = vrot.lane.b32.xlu1 %v12465_v31, %s12382_s16  ;;  %v1961_v28 = vmul.f32 %v12506_v47, %v1386_v46  ;;  %v1942_v9 = vadd.f32 %v1934_v53, %v1916_v22  ;;  %v1960_v60 = vmul.f32 %v12506_v47, %v1951_v29  ;;  %1015 = vrot.lane.b32.xlu0 %v12472_v19, %s12382_s16  ;;  %v1014_v32 = vpop.permute.xlu1 %1013  ;;  %v1412_v45 = vld [vmem:[#allocation2 + $0x308] sm:$0xff] }
 0x10c   : > { %v1377_v25 = vadd.f32 %v1369_v5, %v1351_v41  ;;  %v1446_v24 = vmul.f32 %v12507_v23, %v974_v44  ;;  %v1986_v7 = vmul.f32 %v12508_v55, %v921_v35  ;;  %v2431_v26 = vadd.f32 %v2423_v34, %v2405_v10  ;;  %v8081_v53 = vld [vmem:[#allocation2 + $0x2c8] sm:$0xff]  ;;  %1041 = vst.msk [vmem:[#allocation2 + $0x388] sm:$0xff] %vm400_vm0, %v1014_v32  ;;  %v12511_v34 = vld [vmem:[#allocation107_spill] sm:$0xff]  ;;  %v12512_v5 = vld [vmem:[#allocation132_spill] sm:$0xff] }
 0x10d   : > { %v1943_v31 = vadd.f32 %v1935_v50, %v1917_v11  ;;  %v1968_v33 = vadd.f32 %v1960_v60, %v1942_v9  ;;  %v2501_v46 = vmul.f32 %v12509_v16, %v8067_v51  ;;  %v12510_v22 = vld [vmem:[#allocation137_spill] sm:$0xff]  ;;  %v1027_v19 = vsel %vm814_vm4, %v1012_v30, %v1014_v32  ;;  %v12513_v9 = vld [vmem:[#allocation91_spill] sm:$0xff] }
 0x10e   : > { %v8085_v29 = vmul.f32 %v12510_v22, %v8020_v8  ;;  %v1428_v35 = vadd.f32 %v1420_v48, %v1402_v62  ;;  %v2012_v41 = vmul.f32 %v12511_v34, %v974_v44  ;;  %v2919_v10 = vadd.f32 %v12512_v5, %v2893_v38  ;;  %1040 = vst [vmem:[#allocation2 + $0x380] sm:$0xff] %v1027_v19  ;;  %v12514_v44 = vld [vmem:[#allocation126_spill] sm:$0xff]  ;;  %v1065_v32 = vpop.permute.xlu0 %1064 }
 0x10f   : > { %866 = vrot.lane.b32.xlu1 %v12476_v42, %s12382_s16  ;;  %v1403_v11 = vadd.f32 %v1395_v17, %v1377_v25  ;;  %v1969_v50 = vadd.f32 %v1961_v28, %v1943_v31  ;;  %v1472_v60 = vmul.f32 %v12513_v9, %v1027_v19  ;;  %v1994_v16 = vadd.f32 %v1986_v7, %v1968_v33  ;;  %v1067_v38 = vpop.permute.xlu1 %1066  ;;  %v1438_v5 = vld [vmem:[#allocation2 + $0x348] sm:$0xff]  ;;  %v12515_v28 = vld [vmem:[#allocation108_spill] sm:$0xff]  ;;  %v12516_v33 = vld [vmem:[#allocation138_spill] sm:$0xff] }
 0x110   : > { %864 = vrot.lane.b32.xlu0 %v12479_v52, %s12382_s16  ;;  %v1421_v8 = vmul.f32 %v12505_v39, %v1412_v45  ;;  %v1454_v30 = vadd.f32 %v1446_v24, %v1428_v35  ;;  %v2457_v62 = vadd.f32 %v2449_v6, %v2431_v26  ;;  %v2527_v48 = vmul.f32 %v12514_v44, %v8081_v53  ;;  %v8101_v31 = vld [vmem:[#allocation2 + $0x308] sm:$0xff]  ;;  %v12520_v44 = vld [vmem:[#allocation111_spill] sm:$0xff] }
 0x111   : > { %v1987_v42 = vmul.f32 %v12508_v55, %v1412_v45  ;;  %v2020_v17 = vadd.f32 %v2012_v41, %v1994_v16  ;;  %v2038_v25 = vmul.f32 %v12515_v28, %v1027_v19  ;;  %v8105_v52 = vmul.f32 %v12516_v33, %v8042_v63  ;;  %1094 = vst.msk [vmem:[#allocation2 + $0x3c8] sm:$0xff] %vm400_vm0, %v1067_v38  ;;  %v12517_v26 = vld [vmem:[#allocation133_spill] sm:$0xff]  ;;  %v12521_v33 = vld [vmem:[#allocation58_spill] sm:$0xff] }
 0x112   : > { %v1080_v6 = vsel %vm814_vm4, %v1065_v32, %v1067_v38  ;;  %v1480_v7 = vadd.f32 %v1472_v60, %v1454_v30  ;;  %v2483_v24 = vadd.f32 %v2475_v37, %v2457_v62  ;;  %v2945_v35 = vadd.f32 %v12517_v26, %v2919_v10  ;;  %v12518_v45 = vld [vmem:[#allocation57_spill] sm:$0xff]  ;;  %v12522_v10 = vld [vmem:[#allocation128_spill] sm:$0xff]  ;;  %v447_v32 = vpop.permute.xlu0 %446 }
 0x113   : > { %1093 = vst [vmem:[#allocation2 + $0x3c0] sm:$0xff] %v1080_v6  ;;  %968 = vrot.lane.b32.xlu1 %v12518_v45, %s12337_s23  ;;  %v1447_v16 = vmul.f32 %v12507_v23, %v1438_v5  ;;  %v12519_v19 = vld [vmem:[#allocation93_spill] sm:$0xff]  ;;  %v2046_v22 = vadd.f32 %v2038_v25, %v2020_v17  ;;  %v2064_v63 = vmul.f32 %v12520_v44, %v1080_v6  ;;  %v449_v38 = vpop.permute.xlu1 %448  ;;  %v6437_v45 = vld [vmem:[%s6702_s17 + $0xd8] sm:$0xff] }
 0x114   : > { %v1498_v41 = vmul.f32 %v12519_v19, %v1080_v6  ;;  %966 = vrot.lane.b32.xlu0 %v12521_v33, %s12337_s23  ;;  %v1429_v55 = vadd.f32 %v1421_v8, %v1403_v11  ;;  %v2013_v60 = vmul.f32 %v12511_v34, %v1438_v5  ;;  %v2509_v37 = vadd.f32 %v2501_v46, %v2483_v24  ;;  %v8120_v62 = vld [vmem:[#allocation2 + $0x348] sm:$0xff] }
 0x115   : > { %v2553_v30 = vmul.f32 %v12522_v10, %v8101_v31  ;;  %v1464_v17 = vld [vmem:[#allocation2 + $0x388] sm:$0xff]  ;;  %v1995_v25 = vadd.f32 %v1987_v42, %v1969_v50  ;;  %v2072_v26 = vadd.f32 %v2064_v63, %v2046_v22  ;;  %v8126_v11 = vmul.f32 %v7811_v49, %v8046_v18  ;;  %475 = vst.msk [vmem:[#allocation2 + $0x98] sm:$0xff] %vm400_vm0, %v449_v38  ;;  %v12523_v22 = vld [vmem:[#allocation131_spill] sm:$0xff]  ;;  %v6438_v63 = vld [vmem:[%s6702_s17 + $0xd0] sm:$0xff] }
 0x116   : > { %v1506_v6 = vadd.f32 %v1498_v41, %v1480_v7  ;;  %v460_v46 = vsel %vm458_vm2, %v447_v32, %v449_v38  ;;  %v1473_v8 = vmul.f32 %v12513_v9, %v1464_v17  ;;  %v2039_v5 = vmul.f32 %v12515_v28, %v1464_v17  ;;  %v2596_v24 = vld [vmem:[#allocation2 + $0x388] sm:$0xff]  ;;  %v12524_v7 = vld [vmem:[#allocation151_spill] sm:$0xff]  ;;  %v12526_v32 = vld [vmem:[#allocation112_spill] sm:$0xff] }
 0x117   : > { %v2535_v33 = vadd.f32 %v2527_v48, %v2509_v37  ;;  %474 = vst [vmem:[#allocation2 + $0x90] sm:$0xff] %v460_v46  ;;  %1070 = vrot.lane.b32.xlu1 %v6437_v45, %s12382_s16  ;;  %v1455_v50 = vadd.f32 %v1447_v16, %v1429_v55  ;;  %v2579_v42 = vmul.f32 %v12523_v22, %v8120_v62  ;;  %v12525_v48 = vld [vmem:[#allocation94_spill] sm:$0xff]  ;;  %v503_v16 = vpop.permute.xlu1 %502  ;;  %v501_v45 = vpop.permute.xlu0 %500 }
 0x118   : > { %v2971_v18 = vadd.f32 %v8050_v0, %v2945_v35  ;;  %v8139_v41 = vmul.f32 %v12524_v7, %v8067_v51  ;;  %1068 = vrot.lane.b32.xlu0 %v6438_v63, %s12382_s16  ;;  %v2021_v38 = vadd.f32 %v2013_v60, %v1995_v25  ;;  %v8144_v37 = vadd.f32 %v12525_v48, %v1506_v6  ;;  %v1490_v9 = vld [vmem:[#allocation2 + $0x3c8] sm:$0xff]  ;;  %v12527_v35 = vld [vmem:[#allocation140_spill] sm:$0xff] }
 0x119   : > { %v8147_v17 = vadd.f32 %v12526_v32, %v2072_v26  ;;  %v2561_v55 = vadd.f32 %v2553_v30, %v2535_v33  ;;  %v1481_v28 = vadd.f32 %v1473_v8, %v1455_v50  ;;  %v1162_v0 = vmul.f32 %v7509_v36, %v460_v46  ;;  %v2622_v63 = vld [vmem:[#allocation2 + $0x3c8] sm:$0xff]  ;;  %528 = vst.msk [vmem:[#allocation2 + $0xd8] sm:$0xff] %vm400_vm0, %v503_v16  ;;  %v12528_v26 = vld [vmem:[#allocation64_spill] sm:$0xff] }
 0x11a   : > { %v1728_v51 = vmul.f32 %v12464_v27, %v460_v46  ;;  %v2605_v7 = vmul.f32 %v12527_v35, %v2596_v24  ;;  %v513_v60 = vsel %vm458_vm2, %v501_v45, %v503_v16  ;;  %v1499_v25 = vmul.f32 %v12519_v19, %v1490_v9  ;;  %v12529_v46 = vld [vmem:[#allocation141_spill] sm:$0xff] }
 0x11b   : > { %v2047_v30 = vadd.f32 %v2039_v5, %v2021_v38  ;;  %v2065_v6 = vmul.f32 %v12520_v44, %v1490_v9  ;;  %527 = vst [vmem:[#allocation2 + $0xd0] sm:$0xff] %v513_v60  ;;  %919 = vrot.lane.b32.xlu1 %v12528_v26, %s12337_s23  ;;  %v2587_v8 = vadd.f32 %v2579_v42, %v2561_v55  ;;  %v12530_v16 = vld [vmem:[#allocation65_spill] sm:$0xff]  ;;  %v8172_v60 = vstv %s8122_s20  ;;  %v453_v55 = vpop.permute.xlu1 %452  ;;  %v451_v26 = vpop.permute.xlu0 %450  ;;  %v12532_v44 = vld [vmem:[#allocation27_spill] sm:$0xff]  ;;  %s11375_s20 = sld [smem:[#allocation5 + $0x388]] }
 0x11c   : > { %v2631_v33 = vmul.f32 %v12529_v46, %v2622_v63  ;;  %v2997_v50 = vadd.f32 %v8085_v29, %v2971_v18  ;;  %v8162_v34 = vmul.f32 %v7897_v4, %v8081_v53  ;;  %917 = vrot.lane.b32.xlu0 %v12530_v16, %s12337_s23  ;;  %v5954_v5 = vld [vmem:[%s6702_s17 + $0xa8] sm:$0xff]  ;;  %v1507_v38 = vadd.f32 %v1499_v25, %v1481_v28  ;;  %v1154_v42 = vld [vmem:[#allocation2 + $0x98] sm:$0xff]  ;;  %v5953_v29 = vld [vmem:[%s6702_s17 + $0xa0] sm:$0xff] }
 0x11d   : > { %v2073_v9 = vadd.f32 %v2065_v6, %v2047_v30  ;;  %v8169_v45 = vmul.f32 %v7900_v15, %v8101_v31  ;;  %12531 = vst [vmem:[#allocation81_spill] sm:$0xff] %v8172_v60  ;;  %v8178_v19 = vadd.f32 %v1162_v0, %v12532_v44  ;;  %v2613_v28 = vadd.f32 %v2605_v7, %v2587_v8  ;;  %v12533_v31 = vld [vmem:[#allocation30_spill] sm:$0xff] }
 0x11e   : > { %v1163_v25 = vmul.f32 %v7509_v36, %v1154_v42  ;;  %477 = vst.msk [vmem:[#allocation2 + $0xa8] sm:$0xff] %vm400_vm0, %v453_v55  ;;  %v8183_v30 = vadd.f32 %v1728_v51, %v12533_v31  ;;  %v8187_v6 = vmul.f32 %v7924_v61, %v8120_v62  ;;  %v8190_v16 = vmul.f32 %v7927_v58, %v2596_v24  ;;  %v8205_v8 = vld [vmem:[%s6702_s17 + $0xf8] sm:$0xff]  ;;  %v12554_v61 = vld [vmem:[#allocation32_spill] sm:$0xff] }
 0x11f   : > { %v1729_v53 = vmul.f32 %v12464_v27, %v1154_v42  ;;  %1021 = vrot.lane.b32.xlu1 %v5954_v5, %s12382_s16  ;;  %v2639_v44 = vadd.f32 %v2631_v33, %v2613_v28  ;;  %v8195_v7 = vadd.f32 %v8105_v52, %v2997_v50  ;;  %v8198_v0 = vmul.f32 %v8172_v60, %v2622_v63  ;;  %v12534_v5 = vld [vmem:[#allocation145_spill] sm:$0xff] }
 0x120   : > { %v461_v51 = vsel %vm458_vm2, %v451_v26, %v453_v55  ;;  %1019 = vrot.lane.b32.xlu0 %v5953_v29, %s12382_s16  ;;  %v1517_v62 = vadd.f32 %v12525_v48, %v1507_v38  ;;  %v2083_v24 = vadd.f32 %v12526_v32, %v2073_v9  ;;  %v8209_v33 = vadd.f32 %v12534_v5, %v7908_v20  ;;  %v1180_v38 = vld [vmem:[#allocation2 + $0xd8] sm:$0xff]  ;;  %v507_v9 = vpop.permute.xlu1 %506  ;;  %v505_v26 = vpop.permute.xlu0 %504  ;;  %v8224_v29 = vld [vmem:[%s6702_s17 + $0xf0] sm:$0xff]  ;;  %v12541_v5 = vld [vmem:[#allocation28_spill] sm:$0xff] }
 0x121   : > { %v8212_v52 = vmul.f32 %v7473_v13, %v1154_v42  ;;  %v8215_v63 = vmul.f32 %v7476_v54, %v1154_v42  ;;  %v8218_v50 = vmul.f32 %v7481_v21, %v1154_v42  ;;  %v8221_v55 = vmul.f32 %v7491_v2, %v1154_v42  ;;  %476 = vst [vmem:[#allocation2 + $0xa0] sm:$0xff] %v461_v51 }
 0x122   : > { %v8227_v20 = vmul.f32 %v7494_v57, %v1154_v42  ;;  %v8230_v28 = vmul.f32 %v7497_v1, %v1154_v42  ;;  %v1755_v31 = vmul.f32 %v12477_v40, %v1180_v38  ;;  %530 = vst.msk [vmem:[#allocation2 + $0xe8] sm:$0xff] %vm400_vm0, %v507_v9  ;;  %v1171_v18 = vadd.f32 %v1163_v25, %v12541_v5  ;;  %v12543_v25 = vld [vmem:[#allocation144_spill] sm:$0xff] }
 0x123   : > { %12535 = vst [vmem:[#allocation86_spill] sm:$0xff] %v8212_v52  ;;  %12536 = vst [vmem:[#allocation41_spill] sm:$0xff] %v8215_v63  ;;  %972 = vrot.lane.b32.xlu1 %v8205_v8, %s12337_s23  ;;  %v12542_v63 = vld [vmem:[#allocation29_spill] sm:$0xff]  ;;  %v1164_v48 = vmul.f32 %v7509_v36, %v461_v51  ;;  %v514_v42 = vsel %vm458_vm2, %v505_v26, %v507_v9  ;;  %v2091_v52 = vmax.f32 %v2083_v24, 0.0  ;;  %v12555_v15 = vmax.f32 %v8144_v37, 0.0 }
 0x124   : > { %12537 = vst [vmem:[#allocation42_spill] sm:$0xff] %v8218_v50  ;;  %12538 = vst [vmem:[#allocation98_spill] sm:$0xff] %v8221_v55  ;;  %v1179_v50 = vld [vmem:[#allocation2 + $0xd0] sm:$0xff]  ;;  %v1189_v55 = vmul.f32 %v12475_v43, %v1180_v38  ;;  %v1737_v32 = vadd.f32 %v1729_v53, %v12542_v63  ;;  %970 = vrot.lane.b32.xlu0 %v8224_v29, %s12337_s23  ;;  %v8247_v5 = vadd.f32 %v12543_v25, %v2639_v44  ;;  %v457_v63 = vpop.permute.xlu1 %456  ;;  %s10197_s23 = sld [smem:[#allocation5 + $0x289]] }
 0x125   : > { %12539 = vst [vmem:[#allocation116_spill] sm:$0xff] %v8227_v20  ;;  %12540 = vst [vmem:[#allocation120_spill] sm:$0xff] %v8230_v28  ;;  %v8241_v20 = vmul.f32 %v12464_v27, %v461_v51  ;;  %v1525_v28 = vmax.f32 %v1517_v62, 0.0  ;;  %v8250_v60 = vmul.f32 %v7447_v59, %v1180_v38  ;;  %v1156_v53 = vld [vmem:[#allocation2 + $0xa8] sm:$0xff]  ;;  %v455_v51 = vpop.permute.xlu0 %454  ;;  %v1188_v9 = vmul.f32 %v12475_v43, %v1179_v50 }
 0x126   : > { %12544 = vst [vmem:[#allocation92_spill] sm:$0xff] %v8247_v5  ;;  %529 = vst [vmem:[#allocation2 + $0xe0] sm:$0xff] %v514_v42  ;;  %v1763_v58 = vadd.f32 %v1755_v31, %v1737_v32  ;;  %v1754_v62 = vmul.f32 %v12477_v40, %v1179_v50  ;;  %v8255_v24 = vmul.f32 %v7450_v56, %v1180_v38  ;;  %v12549_v5 = vld [vmem:[#allocation70_spill] sm:$0xff]  ;;  %v5962_v32 = vld [vmem:[%s6702_s17 + $0xe8] sm:$0xff]  ;;  %6030 = vmatprep.mubr.msk.f32.mxu1 %vm400_vm0, %v2091_v52 }
 0x127   : > { %12545 = vst [vmem:[#allocation48_spill] sm:$0xff] %v8250_v60  ;;  %v8258_v26 = vmul.f32 %v7459_v3, %v1180_v38  ;;  %v8261_v44 = vmul.f32 %v7462_v14, %v1180_v38  ;;  %v8264_v60 = vmul.f32 %v12549_v5, %v1180_v38  ;;  %5981 = vmatprep.mubr.msk.f32.mxu0 %vm400_vm0, %v1525_v28  ;;  %479 = vst.msk [vmem:[#allocation2 + $0xb8] sm:$0xff] %vm400_vm0, %v457_v63  ;;  %v5961_v31 = vld [vmem:[%s6702_s17 + $0xe0] sm:$0xff]  ;;  %v12551_v42 = vld [vmem:[#allocation71_spill] sm:$0xff] }
 0x128   : > { %12546 = vst [vmem:[#allocation49_spill] sm:$0xff] %v8255_v24  ;;  %v8271_v50 = vmul.f32 %v12551_v42, %v1180_v38  ;;  %v1165_v24 = vmul.f32 %v7509_v36, %v1156_v53  ;;  %v8282_v28 = vmul.f32 %v12464_v27, %v1156_v53  ;;  %1644 = vmatmul.mubr.f32.vlgmr.msra.gmra.mxu0 %v12555_v15  ;;  %v12556_v38 = vmax.f32 %v8147_v17, 0.0  ;;  %v6115_v52 = vld [vmem:[%s12553_s25 + $0x300] sm:$0xff]  ;;  %v592_v15 = vpop.permute.xlu1 %591 }
 0x129   : > { %12547 = vst [vmem:[#allocation89_spill] sm:$0xff] %v8258_v26  ;;  %12548 = vst [vmem:[#allocation103_spill] sm:$0xff] %v8261_v44  ;;  %v6066_v44 = vld [vmem:[%s12553_s25 + $0x228] sm:$0xff]  ;;  %v1197_v26 = vadd.f32 %v1189_v55, %v1171_v18  ;;  %1074 = vrot.lane.b32.xlu1 %v5962_v32, %s12382_s16  ;;  %1072 = vrot.lane.b32.xlu0 %v5961_v31, %s12382_s16  ;;  %v590_v37 = vpop.permute.xlu0 %589  ;;  %v1196_v17 = vadd.f32 %v1188_v9, %v8178_v19  ;;  %v5956_v32 = vld [vmem:[%s6702_s17 + $0xb8] sm:$0xff] }
 0x12a   : > { %12550 = vst [vmem:[#allocation132_spill] sm:$0xff] %v8264_v60  ;;  %12552 = vst [vmem:[#allocation133_spill] sm:$0xff] %v8271_v50  ;;  %v8279_v60 = vadd.f32 %v1164_v48, %v12554_v61  ;;  %2210 = vmatmul.mubr.f32.vlgmr.msra.gmra.mxu1 %v12556_v38  ;;  %v8289_v50 = vsel %vm458_vm2, %v455_v51, %v457_v63  ;;  %v12557_v18 = vld [vmem:[#allocation101_spill] sm:$0xff]  ;;  %v8296_v48 = vmul.f32 %v7473_v13, %v1156_v53  ;;  %v5955_v31 = vld [vmem:[%s6702_s17 + $0xb0] sm:$0xff]  ;;  %s10249_s17 = sld [smem:[#allocation5 + $0x28b]] }
 0x12b   : > { %v1789_v61 = vadd.f32 %v12557_v18, %v1763_v58  ;;  %v1182_v55 = vld [vmem:[#allocation2 + $0xe8] sm:$0xff]  ;;  %478 = vst [vmem:[#allocation2 + $0xb0] sm:$0xff] %v8289_v50  ;;  %v1762_v63 = vadd.f32 %v1754_v62, %v8183_v30  ;;  %v8304_v51 = vmul.f32 %v7476_v54, %v1156_v53  ;;  %v8307_v58 = vmul.f32 %v7481_v21, %v1156_v53  ;;  %v6065_v9 = vld [vmem:[%s12553_s25 + $0x220] sm:$0xff] }
 0x12c   : > { %12558 = vst [vmem:[#allocation57_spill] sm:$0xff] %v8296_v48  ;;  %v8310_v38 = vmul.f32 %v7491_v2, %v1156_v53  ;;  %v8313_v18 = vmul.f32 %v7494_v57, %v1156_v53  ;;  %617 = vst.msk [vmem:[#allocation2 + $0x198] sm:$0xff] %vm400_vm0, %v592_v15  ;;  %2712 = vmatpush1.msra.mxu0 %v6066_v44  ;;  %v8319_v19 = vmul.f32 %v7497_v1, %v1156_v53  ;;  %v12564_v62 = vld [vmem:[#allocation100_spill] sm:$0xff]  ;;  %v12567_v44 = vmov 0.0  }
 0x12d   : > { %12559 = vst [vmem:[#allocation58_spill] sm:$0xff] %v8304_v51  ;;  %12560 = vst [vmem:[#allocation64_spill] sm:$0xff] %v8307_v58  ;;  %v1191_v30 = vmul.f32 %v12475_v43, %v1182_v55  ;;  %3278 = vmatpush1.msra.mxu1 %v6115_v52  ;;  %v12565_v58 = vld [vmem:[#allocation33_spill] sm:$0xff]  ;;  %v8331_v48 = vmul.f32 %v7447_v59, %v1182_v55  ;;  %v602_v53 = vsel %vm458_vm2, %v590_v37, %v592_v15  ;;  %v6114_v52 = vld [vmem:[%s12553_s25 + $0x2f8] sm:$0xff]  ;;  %v509_v15 = vpop.permute.xlu0 %508 }
 0x12e   : > { %12561 = vst [vmem:[#allocation141_spill] sm:$0xff] %v8310_v38  ;;  %12562 = vst [vmem:[#allocation65_spill] sm:$0xff] %v8313_v18  ;;  %v1223_v38 = vadd.f32 %v12564_v62, %v1197_v26  ;;  %v1173_v51 = vadd.f32 %v1165_v24, %v12565_v58  ;;  %v8328_v18 = vmul.f32 %v12477_v40, %v1182_v55  ;;  %2713 = vmatprep.subr.mxu0 %v12567_v44  ;;  %v8342_v24 = vld [vmem:[#allocation2 + $0xb8] sm:$0xff]  ;;  %v511_v58 = vpop.permute.xlu1 %510  ;;  %v12569_v37 = vld [vmem:[#allocation102_spill] sm:$0xff] }
 0x12f   : > { %12563 = vst [vmem:[#allocation27_spill] sm:$0xff] %v8319_v19  ;;  %12566 = vst [vmem:[#allocation30_spill] sm:$0xff] %v8331_v48  ;;  %3279 = vmatprep.subr.mxu1 %v12567_v44  ;;  %v8340_v26 = vmul.f32 %v7450_v56, %v1182_v55  ;;  %1025 = vrot.lane.b32.xlu1 %v5956_v32, %s12382_s16  ;;  %v1222_v62 = vadd.f32 %v12569_v37, %v1196_v17  ;;  %v12570_v19 = vld [vmem:[#allocation31_spill] sm:$0xff]  ;;  %v6113_v32 = vld [vmem:[%s12553_s25 + $0x2f0] sm:$0xff] }
 0x130   : > { %616 = vst [vmem:[#allocation2 + $0x190] sm:$0xff] %v602_v53  ;;  %1023 = vrot.lane.b32.xlu0 %v5955_v31, %s12382_s16  ;;  %v1788_v48 = vadd.f32 %v12570_v19, %v1762_v63  ;;  %v8349_v25 = vmul.f32 %v7459_v3, %v1182_v55  ;;  %v8352_v4 = vmul.f32 %v7462_v14, %v1182_v55  ;;  %532 = vst.msk [vmem:[#allocation2 + $0xf8] sm:$0xff] %vm400_vm0, %v511_v58  ;;  %v6064_v63 = vld [vmem:[%s12553_s25 + $0x218] sm:$0xff]  ;;  %v12575_v31 = vld [vmem:[#allocation105_spill] sm:$0xff] }
 0x131   : > { %12568 = vst [vmem:[#allocation145_spill] sm:$0xff] %v8340_v26  ;;  %v8355_v26 = vmul.f32 %v12549_v5, %v1182_v55  ;;  %v8358_v49 = vmul.f32 %v12551_v42, %v1182_v55  ;;  %2714 = vmatpush1.msra.mxu0 %v6065_v9  ;;  %v8363_v17 = vmul.f32 %v7509_v36, %v8342_v24  ;;  %v12576_v55 = vld [vmem:[#allocation106_spill] sm:$0xff] }
 0x132   : > { %12571 = vst [vmem:[#allocation28_spill] sm:$0xff] %v8349_v25  ;;  %12572 = vst [vmem:[#allocation29_spill] sm:$0xff] %v8352_v4  ;;  %3280 = vmatpush1.msra.mxu1 %v6114_v52  ;;  %v1249_v19 = vadd.f32 %v12575_v31, %v1223_v38  ;;  %v1815_v37 = vadd.f32 %v12576_v55, %v1789_v61  ;;  %v515_v9 = vsel %vm458_vm2, %v509_v15, %v511_v58  ;;  %v12578_v52 = vld [vmem:[#allocation109_spill] sm:$0xff]  ;;  %v12579_v25 = vld [vmem:[#allocation110_spill] sm:$0xff]  ;;  %v645_v61 = vpop.permute.xlu1 %644  ;;  %v643_v38 = vpop.permute.xlu0 %642 }
 0x133   : > { %12573 = vst [vmem:[#allocation32_spill] sm:$0xff] %v8355_v26  ;;  %12574 = vst [vmem:[#allocation101_spill] sm:$0xff] %v8358_v49  ;;  %v12577_v49 = vld [vmem:[#allocation82_spill] sm:$0xff]  ;;  %2715 = vmatprep.subr.mxu0 %v12567_v44  ;;  %3281 = vmatprep.subr.mxu1 %v12567_v44  ;;  %v1248_v4 = vadd.f32 %v12578_v52, %v1222_v62  ;;  %v1814_v23 = vadd.f32 %v12579_v25, %v1788_v48  ;;  %v6112_v15 = vld [vmem:[%s12553_s25 + $0x2e8] sm:$0xff] }
 0x134   : > { %v1266_v26 = vmul.f32 %v12577_v49, %v602_v53  ;;  %531 = vst [vmem:[#allocation2 + $0xf0] sm:$0xff] %v515_v9  ;;  %1078 = vrot.lane.b32.xlu1 %v8205_v8, %s12382_s16  ;;  %1076 = vrot.lane.b32.xlu0 %v8224_v29, %s12382_s16  ;;  %v6063_v58 = vld [vmem:[%s12553_s25 + $0x210] sm:$0xff]  ;;  %v1258_v62 = vld [vmem:[#allocation2 + $0x198] sm:$0xff]  ;;  %v1199_v48 = vadd.f32 %v1191_v30, %v1173_v51  ;;  %670 = vst.msk [vmem:[#allocation2 + $0x1d8] sm:$0xff] %vm400_vm0, %v645_v61  ;;  %s10108_s16 = sld [smem:[#allocation5 + $0x20f]] }
 0x135   : > { %v12580_v31 = vld [vmem:[#allocation95_spill] sm:$0xff]  ;;  %v655_v29 = vsel %vm458_vm2, %v643_v38, %v645_v61  ;;  %2716 = vmatpush1.msra.mxu0 %v6064_v63  ;;  %3282 = vmatpush1.msra.mxu1 %v6113_v32  ;;  %v1267_v9 = vmul.f32 %v12577_v49, %v1258_v62  ;;  %v6062_v51 = vld [vmem:[%s12553_s25 + $0x208] sm:$0xff]  ;;  %v8404_v63 = vmul.f32 %v12464_v27, %v8342_v24  ;;  %v6111_v61 = vld [vmem:[%s12553_s25 + $0x2e0] sm:$0xff] }
 0x136   : > { %v1832_v25 = vmul.f32 %v12580_v31, %v602_v53  ;;  %v12581_v55 = vld [vmem:[#allocation34_spill] sm:$0xff]  ;;  %v1833_v52 = vmul.f32 %v12580_v31, %v1258_v62  ;;  %669 = vst [vmem:[#allocation2 + $0x1d0] sm:$0xff] %v655_v29  ;;  %2717 = vmatprep.subr.mxu0 %v12567_v44  ;;  %3283 = vmatprep.subr.mxu1 %v12567_v44  ;;  %v594_v62 = vpop.permute.xlu0 %593 }
 0x137   : > { %v1739_v8 = vadd.f32 %v8282_v28, %v12581_v55  ;;  %v1274_v28 = vadd.f32 %v1266_v26, %v1248_v4  ;;  %v12582_v30 = vld [vmem:[#allocation83_spill] sm:$0xff]  ;;  %v8408_v32 = vmul.f32 %v7473_v13, %v8342_v24  ;;  %2718 = vmatpush1.msra.mxu0 %v6063_v58  ;;  %3284 = vmatpush1.msra.mxu1 %v6112_v15  ;;  %v596_v26 = vpop.permute.xlu1 %595 }
 0x138   : > { %v1292_v53 = vmul.f32 %v12582_v30, %v655_v29  ;;  %v1840_v55 = vadd.f32 %v1832_v25, %v1814_v23  ;;  %v1858_v38 = vmul.f32 %v7636_v12, %v655_v29  ;;  %v8416_v4 = vmul.f32 %v7476_v54, %v8342_v24  ;;  %v8418_v23 = vld [vmem:[#allocation2 + $0xf8] sm:$0xff]  ;;  %2719 = vmatprep.subr.mxu0 %v12567_v44 }
 0x139   : > { %12583 = vst [vmem:[#allocation100_spill] sm:$0xff] %v8408_v32  ;;  %3285 = vmatprep.subr.mxu1 %v12567_v44  ;;  %v1765_v15 = vadd.f32 %v8328_v18, %v1739_v8  ;;  %v8425_v25 = vmul.f32 %v7481_v21, %v8342_v24  ;;  %v8429_v29 = vmul.f32 %v7491_v2, %v8342_v24  ;;  %619 = vst.msk [vmem:[#allocation2 + $0x1a8] sm:$0xff] %vm400_vm0, %v596_v26  ;;  %v6061_v18 = vld [vmem:[%s12553_s25 + $0x200] sm:$0xff]  ;;  %v6110_v8 = vld [vmem:[%s12553_s25 + $0x2d8] sm:$0xff] }
 0x13a   : > { %12584 = vst [vmem:[#allocation33_spill] sm:$0xff] %v8416_v4  ;;  %v1300_v58 = vadd.f32 %v1292_v53, %v1274_v28  ;;  %v8433_v4 = vmul.f32 %v7494_v57, %v8342_v24  ;;  %v8437_v32 = vmul.f32 %v7497_v1, %v8342_v24  ;;  %2720 = vmatpush1.msra.mxu0 %v6062_v51  ;;  %v1181_v28 = vld [vmem:[#allocation2 + $0xe0] sm:$0xff]  ;;  %v6058_v2 = vld [vmem:[%s12553_s25 + $0x1e8] sm:$0xff] }
 0x13b   : > { %12585 = vst [vmem:[#allocation102_spill] sm:$0xff] %v8425_v25  ;;  %12586 = vst [vmem:[#allocation31_spill] sm:$0xff] %v8429_v29  ;;  %v8448_v53 = vmul.f32 %v12475_v43, %v8418_v23  ;;  %3286 = vmatpush1.msra.mxu1 %v6111_v61  ;;  %v8452_v24 = vadd.f32 %v1833_v52, %v1815_v37  ;;  %v8459_v1 = vmul.f32 %v12477_v40, %v8418_v23  ;;  %v6109_v37 = vld [vmem:[%s12553_s25 + $0x2d0] sm:$0xff]  ;;  %v698_v52 = vpop.permute.xlu1 %697  ;;  %v1284_v61 = vld [vmem:[#allocation2 + $0x1d8] sm:$0xff] }
 0x13c   : > { %12587 = vst [vmem:[#allocation105_spill] sm:$0xff] %v8433_v4  ;;  %12588 = vst [vmem:[#allocation106_spill] sm:$0xff] %v8437_v32  ;;  %v8450_v4 = vadd.f32 %v1267_v9, %v1249_v19  ;;  %v12589_v32 = vld [vmem:[#allocation113_spill] sm:$0xff]  ;;  %v603_v57 = vsel %vm458_vm2, %v594_v62, %v596_v26  ;;  %2721 = vmatprep.subr.mxu0 %v12567_v44  ;;  %3287 = vmatprep.subr.mxu1 %v12567_v44  ;;  %v6060_v19 = vld [vmem:[%s12553_s25 + $0x1f8] sm:$0xff] }
 0x13d   : > { %v8455_v51 = vadd.f32 %v12589_v32, %v1199_v48  ;;  %v1866_v48 = vadd.f32 %v1858_v38, %v1840_v55  ;;  %v8472_v9 = vmul.f32 %v7447_v59, %v8418_v23  ;;  %618 = vst [vmem:[#allocation2 + $0x1a0] sm:$0xff] %v603_v57  ;;  %v696_v32 = vpop.permute.xlu0 %695  ;;  %2722 = vmatpush1.msra.mxu0 %v6061_v18  ;;  %v12591_v26 = vld [vmem:[#allocation119_spill] sm:$0xff]  ;;  %724 = vst.msk [vmem:[#allocation2 + $0x218] sm:$0xff] %vm400_vm0, %v698_v52  ;;  %v6059_v38 = vld [vmem:[%s12553_s25 + $0x1f0] sm:$0xff] }
 0x13e   : > { %3288 = vmatpush1.msra.mxu1 %v6110_v8  ;;  %v1791_v62 = vadd.f32 %v12591_v26, %v1765_v15  ;;  %v1190_v29 = vmul.f32 %v12475_v43, %v1181_v28  ;;  %v8478_v25 = vmul.f32 %v7450_v56, %v8418_v23  ;;  %v8482_v55 = vmul.f32 %v7459_v3, %v8418_v23  ;;  %v6108_v15 = vld [vmem:[%s12553_s25 + $0x2c8] sm:$0xff]  ;;  %v12594_v18 = vld [vmem:[#allocation84_spill] sm:$0xff] }
 0x13f   : > { %12590 = vst [vmem:[#allocation82_spill] sm:$0xff] %v8472_v9  ;;  %v709_v57 = vsel %vm707_vm3, %v696_v32, %v698_v52  ;;  %2723 = vmatprep.subr.mxu0 %v12567_v44  ;;  %3289 = vmatprep.subr.mxu1 %v12567_v44  ;;  %v12595_v26 = vld [vmem:[#allocation96_spill] sm:$0xff]  ;;  %v1859_v3 = vmul.f32 %v7636_v12, %v1284_v61  ;;  %v649_v21 = vpop.permute.xlu1 %648 }
 0x140   : > { %12592 = vst [vmem:[#allocation109_spill] sm:$0xff] %v8478_v25  ;;  %12593 = vst [vmem:[#allocation110_spill] sm:$0xff] %v8482_v55  ;;  %2724 = vmatpush1.msra.mxu0 %v6060_v19  ;;  %3290 = vmatpush1.msra.mxu1 %v6109_v37  ;;  %v1318_v8 = vmul.f32 %v12594_v18, %v709_v57  ;;  %v1884_v55 = vmul.f32 %v12595_v26, %v709_v57  ;;  %v12596_v52 = vld [vmem:[#allocation35_spill] sm:$0xff] }
 0x141   : > { %723 = vst [vmem:[#allocation2 + $0x210] sm:$0xff] %v709_v57  ;;  %v1738_v32 = vadd.f32 %v8241_v20, %v12596_v52  ;;  %2725 = vmatprep.subr.mxu0 %v12567_v44  ;;  %3291 = vmatprep.subr.mxu1 %v12567_v44  ;;  %v6107_v19 = vld [vmem:[%s12553_s25 + $0x2c0] sm:$0xff]  ;;  %v1293_v37 = vmul.f32 %v12582_v30, %v1284_v61  ;;  %v647_v20 = vpop.permute.xlu0 %646  ;;  %672 = vst.msk [vmem:[#allocation2 + $0x1e8] sm:$0xff] %vm400_vm0, %v649_v21 }
 0x142   : > { %v1198_v57 = vadd.f32 %v1190_v29, %v8279_v60  ;;  %2726 = vmatpush1.msra.mxu0 %v6059_v38  ;;  %3292 = vmatpush1.msra.mxu1 %v6108_v15  ;;  %v1326_v52 = vadd.f32 %v1318_v8, %v1300_v58  ;;  %v1892_v25 = vadd.f32 %v1884_v55, %v1866_v48  ;;  %v6057_v58 = vld [vmem:[%s12553_s25 + $0x1e0] sm:$0xff]  ;;  %v6106_v29 = vld [vmem:[%s12553_s25 + $0x2b8] sm:$0xff] }
 0x143   : > { %v1756_v9 = vmul.f32 %v12477_v40, %v1181_v28  ;;  %v8512_v56 = vmul.f32 %v7462_v14, %v8418_v23  ;;  %v8516_v54 = vmul.f32 %v12549_v5, %v8418_v23  ;;  %v656_v60 = vsel %vm458_vm2, %v647_v20, %v649_v21  ;;  %2727 = vmatprep.subr.mxu0 %v12567_v44  ;;  %v1260_v21 = vld [vmem:[#allocation2 + $0x1a8] sm:$0xff]  ;;  %v12600_v48 = vld [vmem:[#allocation127_spill] sm:$0xff] }
 0x144   : > { %3293 = vmatprep.subr.mxu1 %v12567_v44  ;;  %v8530_v28 = vmul.f32 %v12551_v42, %v8418_v23  ;;  %671 = vst [vmem:[#allocation2 + $0x1e0] sm:$0xff] %v656_v60  ;;  %2728 = vmatpush1.msra.mxu0 %v6058_v2  ;;  %v1224_v61 = vadd.f32 %v12600_v48, %v1198_v57  ;;  %v6056_v38 = vld [vmem:[%s12553_s25 + $0x1d8] sm:$0xff]  ;;  %v6105_v23 = vld [vmem:[%s12553_s25 + $0x2b0] sm:$0xff] }
 0x145   : > { %12597 = vst [vmem:[#allocation95_spill] sm:$0xff] %v8512_v56  ;;  %12598 = vst [vmem:[#allocation34_spill] sm:$0xff] %v8516_v54  ;;  %3294 = vmatpush1.msra.mxu1 %v6107_v19  ;;  %v1764_v55 = vadd.f32 %v1756_v9, %v1738_v32  ;;  %2729 = vmatprep.subr.mxu0 %v12567_v44  ;;  %v1301_v15 = vadd.f32 %v1293_v37, %v8450_v4  ;;  %v12601_v2 = vld [vmem:[#allocation115_spill] sm:$0xff]  ;;  %v1259_v9 = vld [vmem:[#allocation2 + $0x1a0] sm:$0xff]  ;;  %v752_v32 = vpop.permute.xlu1 %751  ;;  %v750_v20 = vpop.permute.xlu0 %749 }
 0x146   : > { %12599 = vst [vmem:[#allocation83_spill] sm:$0xff] %v8530_v28  ;;  %3295 = vmatprep.subr.mxu1 %v12567_v44  ;;  %v1251_v8 = vadd.f32 %v12601_v2, %v8455_v51  ;;  %v12602_v19 = vld [vmem:[#allocation123_spill] sm:$0xff]  ;;  %2730 = vmatpush1.msra.mxu0 %v6057_v58  ;;  %v1867_v48 = vadd.f32 %v1859_v3, %v8452_v24  ;;  %v12604_v42 = vld [vmem:[#allocation52_spill] sm:$0xff]  ;;  %777 = vst.msk [vmem:[#allocation2 + $0x258] sm:$0xff] %vm400_vm0, %v752_v32 }
 0x147   : > { %v1817_v57 = vadd.f32 %v12602_v19, %v1791_v62  ;;  %3296 = vmatpush1.msra.mxu1 %v6106_v29  ;;  %v1310_v60 = vld [vmem:[#allocation2 + $0x218] sm:$0xff]  ;;  %v1790_v5 = vadd.f32 %v12604_v42, %v1764_v55  ;;  %v762_v4 = vsel %vm707_vm3, %v750_v20, %v752_v32  ;;  %2731 = vmatprep.subr.mxu0 %v12567_v44  ;;  %v6055_v51 = vld [vmem:[%s12553_s25 + $0x1d0] sm:$0xff]  ;;  %v6104_v3 = vld [vmem:[%s12553_s25 + $0x2a8] sm:$0xff] }
 0x148   : > { %v12603_v28 = vld [vmem:[#allocation135_spill] sm:$0xff]  ;;  %3297 = vmatprep.subr.mxu1 %v12567_v44  ;;  %v1269_v24 = vmul.f32 %v12577_v49, %v1260_v21  ;;  %v1835_v42 = vmul.f32 %v12580_v31, %v1260_v21  ;;  %776 = vst [vmem:[#allocation2 + $0x250] sm:$0xff] %v762_v4  ;;  %2732 = vmatpush1.msra.mxu0 %v6056_v38  ;;  %v12605_v62 = vld [vmem:[#allocation85_spill] sm:$0xff]  ;;  %v6103_v21 = vld [vmem:[%s12553_s25 + $0x2a0] sm:$0xff] }
 0x149   : > { %v1250_v54 = vadd.f32 %v12603_v28, %v1224_v61  ;;  %3298 = vmatpush1.msra.mxu1 %v6105_v23  ;;  %v1344_v37 = vmul.f32 %v12605_v62, %v762_v4  ;;  %v12606_v58 = vld [vmem:[#allocation97_spill] sm:$0xff]  ;;  %v1268_v28 = vmul.f32 %v12577_v49, %v1259_v9  ;;  %2733 = vmatprep.subr.mxu0 %v12567_v44  ;;  %v12607_v23 = vld [vmem:[#allocation139_spill] sm:$0xff]  ;;  %v600_v19 = vpop.permute.xlu1 %599  ;;  %v598_v32 = vpop.permute.xlu0 %597 }
 0x14a   : > { %v1910_v29 = vmul.f32 %v12606_v58, %v762_v4  ;;  %3299 = vmatprep.subr.mxu1 %v12567_v44  ;;  %v6054_v61 = vld [vmem:[%s12553_s25 + $0x1c8] sm:$0xff]  ;;  %v1319_v55 = vmul.f32 %v12594_v18, %v1310_v60  ;;  %v1885_v38 = vmul.f32 %v12595_v26, %v1310_v60  ;;  %v1816_v2 = vadd.f32 %v12607_v23, %v1790_v5  ;;  %v12608_v14 = vld [vmem:[#allocation54_spill] sm:$0xff]  ;;  %v6053_v5 = vld [vmem:[%s12553_s25 + $0x1c0] sm:$0xff] }
 0x14b   : > { %2734 = vmatpush1.msra.mxu0 %v6055_v51  ;;  %3300 = vmatpush1.msra.mxu1 %v6104_v3  ;;  %v8574_v20 = vadd.f32 %v1344_v37, %v1326_v52  ;;  %v1286_v56 = vld [vmem:[#allocation2 + $0x1e8] sm:$0xff]  ;;  %v1175_v59 = vadd.f32 %v8363_v17, %v12608_v14  ;;  %621 = vst.msk [vmem:[#allocation2 + $0x1b8] sm:$0xff] %vm400_vm0, %v600_v19  ;;  %v1285_v51 = vld [vmem:[#allocation2 + $0x1e0] sm:$0xff] }
 0x14c   : > { %v8576_v4 = vadd.f32 %v1910_v29, %v1892_v25  ;;  %v604_v13 = vsel %vm458_vm2, %v598_v32, %v600_v19  ;;  %2735 = vmatprep.subr.mxu0 %v12567_v44  ;;  %3301 = vmatprep.subr.mxu1 %v12567_v44  ;;  %v6102_v25 = vld [vmem:[%s12553_s25 + $0x298] sm:$0xff]  ;;  %v1277_v52 = vadd.f32 %v1269_v24, %v1251_v8  ;;  %v12609_v3 = vld [vmem:[#allocation56_spill] sm:$0xff] }
 0x14d   : > { %v1834_v60 = vmul.f32 %v12580_v31, %v1259_v9  ;;  %620 = vst [vmem:[#allocation2 + $0x1b0] sm:$0xff] %v604_v13  ;;  %2736 = vmatpush1.msra.mxu0 %v6054_v61  ;;  %3302 = vmatpush1.msra.mxu1 %v6103_v21  ;;  %v1843_v14 = vadd.f32 %v1835_v42, %v1817_v57  ;;  %v6052_v8 = vld [vmem:[%s12553_s25 + $0x1b8] sm:$0xff]  ;;  %v6101_v13 = vld [vmem:[%s12553_s25 + $0x290] sm:$0xff]  ;;  %v702_v57 = vpop.permute.xlu1 %701  ;;  %v700_v9 = vpop.permute.xlu0 %699  ;;  %v12610_v21 = vld [vmem:[#allocation148_spill] sm:$0xff] }
 0x14e   : > { %v1276_v17 = vadd.f32 %v1268_v28, %v1250_v54  ;;  %v1741_v37 = vadd.f32 %v8404_v63, %v12609_v3  ;;  %v1327_v29 = vadd.f32 %v1319_v55, %v1301_v15  ;;  %v1893_v23 = vadd.f32 %v1885_v38, %v1867_v48  ;;  %2737 = vmatprep.subr.mxu0 %v12567_v44  ;;  %v1336_v24 = vld [vmem:[#allocation2 + $0x258] sm:$0xff]  ;;  %v8605_v42 = vld [vmem:[#allocation2 + $0xf0] sm:$0xff] }
 0x14f   : > { %3303 = vmatprep.subr.mxu1 %v12567_v44  ;;  %v1295_v54 = vmul.f32 %v12582_v30, %v1286_v56  ;;  %2738 = vmatpush1.msra.mxu0 %v6053_v5  ;;  %v1861_v63 = vmul.f32 %v7636_v12, %v1286_v56  ;;  %v1201_v15 = vadd.f32 %v8448_v53, %v1175_v59  ;;  %v6051_v61 = vld [vmem:[%s12553_s25 + $0x1b0] sm:$0xff]  ;;  %v6100_v56 = vld [vmem:[%s12553_s25 + $0x288] sm:$0xff]  ;;  %v6126_v5 = vld [vmem:[%s12553_s25 + $0x358] sm:$0x3] }
 0x150   : > { %3304 = vmatpush1.msra.mxu1 %v6102_v25  ;;  %v1767_v48 = vadd.f32 %v8459_v1, %v1741_v37  ;;  %726 = vst.msk [vmem:[#allocation2 + $0x228] sm:$0xff] %vm400_vm0, %v702_v57  ;;  %v710_v28 = vsel %vm707_vm3, %v700_v9, %v702_v57  ;;  %2739 = vmatprep.subr.mxu0 %v12567_v44  ;;  %v12611_v3 = vld [vmem:[#allocation143_spill] sm:$0xff] }
 0x151   : > { %3305 = vmatprep.subr.mxu1 %v12567_v44  ;;  %v1294_v59 = vmul.f32 %v12582_v30, %v1285_v51  ;;  %v1842_v1 = vadd.f32 %v1834_v60, %v1816_v2  ;;  %725 = vst [vmem:[#allocation2 + $0x220] sm:$0xff] %v710_v28  ;;  %2740 = vmatpush1.msra.mxu0 %v6052_v8  ;;  %v6077_v2 = vld [vmem:[%s12553_s25 + $0x280] sm:$0x3]  ;;  %v803_v60 = vpop.permute.xlu0 %802 }
 0x152   : > { %3306 = vmatpush1.msra.mxu1 %v6101_v13  ;;  %v1860_v53 = vmul.f32 %v7636_v12, %v1285_v51  ;;  %v1793_v55 = vadd.f32 %v12610_v21, %v1767_v48  ;;  %v1166_v38 = vmul.f32 %v7509_v36, %v8289_v50  ;;  %v1345_v19 = vmul.f32 %v12605_v62, %v1336_v24  ;;  %v805_v36 = vpop.permute.xlu1 %804  ;;  %v1262_v8 = vld [vmem:[#allocation2 + $0x1b8] sm:$0xff] }
 0x153   : > { %v1911_v32 = vmul.f32 %v12606_v58, %v1336_v24  ;;  %2741 = vmatprep.subr.mxu0 %v12567_v44  ;;  %3307 = vmatprep.subr.mxu1 %v12567_v44  ;;  %v1192_v25 = vmul.f32 %v12475_v43, %v8605_v42  ;;  %v8634_v51 = vadd.f32 %v1295_v54, %v1277_v52  ;;  %v12612_v13 = vld [vmem:[#allocation47_spill] sm:$0xff]  ;;  %v6125_v52 = vld [vmem:[%s12553_s25 + $0x350] sm:$0xff] }
 0x154   : > { %2742 = vmatpush1.msra.mxu0 %v6051_v61  ;;  %3308 = vmatpush1.msra.mxu1 %v6100_v56  ;;  %v1227_v37 = vadd.f32 %v12611_v3, %v1201_v15  ;;  %v1174_v57 = vadd.f32 %v1166_v38, %v12612_v13  ;;  %831 = vst.msk [vmem:[#allocation2 + $0x298] sm:$0xff] %vm400_vm0, %v805_v36  ;;  %v6076_v43 = vld [vmem:[%s12553_s25 + $0x278] sm:$0xff] }
 0x155   : > { %v816_v9 = vsel %vm814_vm4, %v803_v60, %v805_v36  ;;  %2753 = vmatprep.subr.mxu0 %v12567_v44  ;;  %3319 = vmatprep.subr.mxu1 %v12567_v44  ;;  %v8648_v54 = vadd.f32 %v1861_v63, %v1843_v14  ;;  %v8650_v24 = vadd.f32 %v1294_v59, %v1276_v17  ;;  %v6075_v14 = vld [vmem:[%s12553_s25 + $0x270] sm:$0xff]  ;;  %v6124_v17 = vld [vmem:[%s12553_s25 + $0x348] sm:$0xff]  ;;  %v651_v21 = vpop.permute.xlu0 %650  ;;  %v12613_v38 = vld [vmem:[#allocation147_spill] sm:$0xff] }
 0x156   : > { %830 = vst [vmem:[#allocation2 + $0x290] sm:$0xff] %v816_v9  ;;  %6078 = vmatpush2.msk.msra.mxu0 %vm1575_vm1, %v6077_v2  ;;  %6127 = vmatpush2.msk.msra.mxu1 %vm1575_vm1, %v6126_v5  ;;  %v1271_v15 = vmul.f32 %v12577_v49, %v1262_v8  ;;  %v1837_v48 = vmul.f32 %v12580_v31, %v1262_v8  ;;  %v653_v59 = vpop.permute.xlu1 %652  ;;  %v12615_v5 = vld [vmem:[#allocation150_spill] sm:$0xff]  ;;  %v12617_v60 = vld [vmem:[#allocation99_spill] sm:$0xff] }
 0x157   : > { %v1200_v28 = vadd.f32 %v1192_v25, %v1174_v57  ;;  %v8656_v61 = vadd.f32 %v1345_v19, %v1327_v29  ;;  %v8658_v56 = vadd.f32 %v1911_v32, %v1893_v23  ;;  %2755 = vmatprep.subr.mxu0 %v12567_v44  ;;  %3321 = vmatprep.subr.mxu1 %v12567_v44  ;;  %v6074_v29 = vld [vmem:[%s12553_s25 + $0x268] sm:$0xff] }
 0x158   : > { %v8668_v63 = vadd.f32 %v1860_v53, %v1842_v1  ;;  %2756 = vmatpush2.msra.mxu0 %v6076_v43  ;;  %3322 = vmatpush2.msra.mxu1 %v6125_v52  ;;  %v1312_v23 = vld [vmem:[#allocation2 + $0x228] sm:$0xff]  ;;  %v1253_v19 = vadd.f32 %v12613_v38, %v1227_v37  ;;  %674 = vst.msk [vmem:[#allocation2 + $0x1f8] sm:$0xff] %vm400_vm0, %v653_v59  ;;  %v12616_v53 = vld [vmem:[#allocation87_spill] sm:$0xff]  ;;  %v6123_v37 = vld [vmem:[%s12553_s25 + $0x340] sm:$0xff] }
 0x159   : > { %v12614_v32 = vld [vmem:[#allocation149_spill] sm:$0xff]  ;;  %v1226_v25 = vadd.f32 %v12615_v5, %v1200_v28  ;;  %v657_v1 = vsel %vm458_vm2, %v651_v21, %v653_v59  ;;  %v1370_v36 = vmul.f32 %v12616_v53, %v816_v9  ;;  %v1936_v3 = vmul.f32 %v12617_v60, %v816_v9  ;;  %2757 = vmatprep.subr.mxu0 %v12567_v44  ;;  %v1311_v8 = vld [vmem:[#allocation2 + $0x220] sm:$0xff]  ;;  %v6122_v28 = vld [vmem:[%s12553_s25 + $0x338] sm:$0xff]  ;;  %v754_v59 = vpop.permute.xlu0 %753 }
 0x15a   : > { %v1819_v2 = vadd.f32 %v12614_v32, %v1793_v55  ;;  %3323 = vmatprep.subr.mxu1 %v12567_v44  ;;  %v1261_v55 = vld [vmem:[#allocation2 + $0x1b0] sm:$0xff]  ;;  %673 = vst [vmem:[#allocation2 + $0x1f0] sm:$0xff] %v657_v1  ;;  %2758 = vmatpush2.msra.mxu0 %v6075_v14  ;;  %v8685_v13 = vadd.f32 %v1271_v15, %v1253_v19  ;;  %v12618_v43 = vld [vmem:[#allocation157_spill] sm:$0xff]  ;;  %v6073_v9 = vld [vmem:[%s12553_s25 + $0x260] sm:$0xff] }
 0x15b   : > { %3324 = vmatpush2.msra.mxu1 %v6124_v17  ;;  %v1252_v52 = vadd.f32 %v12618_v43, %v1226_v25  ;;  %2759 = vmatprep.subr.mxu0 %v12567_v44  ;;  %v1321_v14 = vmul.f32 %v12594_v18, %v1312_v23  ;;  %v1887_v15 = vmul.f32 %v12595_v26, %v1312_v23  ;;  %v756_v17 = vpop.permute.xlu1 %755  ;;  %v1362_v21 = vld [vmem:[#allocation2 + $0x298] sm:$0xff] }
 0x15c   : > { %v8687_v57 = vadd.f32 %v1837_v48, %v1819_v2  ;;  %3325 = vmatprep.subr.mxu1 %v12567_v44  ;;  %v1732_v48 = vmul.f32 %v12464_v27, %v8289_v50  ;;  %2760 = vmatpush2.msra.mxu0 %v6074_v29  ;;  %v1320_v38 = vmul.f32 %v12594_v18, %v1311_v8  ;;  %v6072_v27 = vld [vmem:[%s12553_s25 + $0x258] sm:$0xff] }
 0x15d   : > { %3326 = vmatpush2.msra.mxu1 %v6123_v37  ;;  %v1886_v19 = vmul.f32 %v12595_v26, %v1311_v8  ;;  %v1270_v32 = vmul.f32 %v12577_v49, %v1261_v55  ;;  %779 = vst.msk [vmem:[#allocation2 + $0x268] sm:$0xff] %vm400_vm0, %v756_v17  ;;  %v763_v2 = vsel %vm707_vm3, %v754_v59, %v756_v17  ;;  %v6121_v49 = vld [vmem:[%s12553_s25 + $0x330] sm:$0xff]  ;;  %v12619_v29 = vld [vmem:[#allocation63_spill] sm:$0xff] }
 0x15e   : > { %v1371_v23 = vmul.f32 %v12616_v53, %v1362_v21  ;;  %v8709_v5 = vadd.f32 %v1370_v36, %v8574_v20  ;;  %2761 = vmatprep.subr.mxu0 %v12567_v44  ;;  %3327 = vmatprep.subr.mxu1 %v12567_v44  ;;  %778 = vst [vmem:[#allocation2 + $0x260] sm:$0xff] %v763_v2  ;;  %v6071_v8 = vld [vmem:[%s12553_s25 + $0x250] sm:$0xff] }
 0x15f   : > { %v1937_v50 = vmul.f32 %v12617_v60, %v1362_v21  ;;  %2762 = vmatpush2.msra.mxu0 %v6073_v9  ;;  %3328 = vmatpush2.msra.mxu1 %v6122_v28  ;;  %v1740_v20 = vadd.f32 %v1732_v48, %v12619_v29  ;;  %v1758_v25 = vmul.f32 %v12477_v40, %v8605_v42  ;;  %v6120_v40 = vld [vmem:[%s12553_s25 + $0x328] sm:$0xff]  ;;  %v857_v42 = vpop.permute.xlu0 %856  ;;  %v8766_v21 = vld [vmem:[#allocation2 + $0x1c0] sm:$0xff] }
 0x160   : > { %v8724_v1 = vadd.f32 %v1936_v3, %v8576_v4  ;;  %v8727_v36 = vadd.f32 %v1321_v14, %v8634_v51  ;;  %v8730_v37 = vadd.f32 %v1887_v15, %v8648_v54  ;;  %2763 = vmatprep.subr.mxu0 %v12567_v44  ;;  %3329 = vmatprep.subr.mxu1 %v12567_v44  ;;  %v859_v4 = vpop.permute.xlu1 %858  ;;  %v1288_v3 = vld [vmem:[#allocation2 + $0x1f8] sm:$0xff] }
 0x161   : > { %v8741_v51 = vadd.f32 %v1320_v38, %v8650_v24  ;;  %v8744_v54 = vadd.f32 %v1886_v19, %v8668_v63  ;;  %2764 = vmatpush2.msra.mxu0 %v6072_v27  ;;  %3330 = vmatpush2.msra.mxu1 %v6121_v49  ;;  %v1766_v43 = vadd.f32 %v1758_v25, %v1740_v20  ;;  %v6070_v24 = vld [vmem:[%s12553_s25 + $0x248] sm:$0xff]  ;;  %v6119_v63 = vld [vmem:[%s12553_s25 + $0x320] sm:$0xff]  ;;  %v1287_v59 = vld [vmem:[#allocation2 + $0x1f0] sm:$0xff] }
 0x162   : > { %884 = vst.msk [vmem:[#allocation2 + $0x2d8] sm:$0xff] %vm400_vm0, %v859_v4  ;;  %v869_v9 = vsel %vm814_vm4, %v857_v42, %v859_v4  ;;  %2765 = vmatprep.subr.mxu0 %v12567_v44  ;;  %3331 = vmatprep.subr.mxu1 %v12567_v44  ;;  %v1278_v28 = vadd.f32 %v1270_v32, %v1252_v52  ;;  %v12620_v38 = vld [vmem:[#allocation88_spill] sm:$0xff]  ;;  %v12622_v49 = vld [vmem:[#allocation146_spill] sm:$0xff]  ;;  %v6068_v4 = vld [vmem:[%s12553_s25 + $0x238] sm:$0xff] }
 0x163   : > { %v8757_v14 = vmul.f32 %v12580_v31, %v1261_v55  ;;  %883 = vst [vmem:[#allocation2 + $0x2d0] sm:$0xff] %v869_v9  ;;  %v8760_v15 = vadd.f32 %v1371_v23, %v8656_v61  ;;  %v8763_v48 = vadd.f32 %v1937_v50, %v8658_v56  ;;  %2766 = vmatpush2.msra.mxu0 %v6071_v8  ;;  %v6069_v31 = vld [vmem:[%s12553_s25 + $0x240] sm:$0xff]  ;;  %v6118_v61 = vld [vmem:[%s12553_s25 + $0x318] sm:$0xff]  ;;  %v704_v29 = vpop.permute.xlu0 %703  ;;  %v12623_v8 = vld [vmem:[#allocation158_spill] sm:$0xff] }
 0x164   : > { %3332 = vmatpush2.msra.mxu1 %v6120_v40  ;;  %v1297_v17 = vmul.f32 %v12582_v30, %v1288_v3  ;;  %v1396_v19 = vmul.f32 %v12620_v38, %v869_v9  ;;  %2767 = vmatprep.subr.mxu0 %v12567_v44  ;;  %v1863_v56 = vmul.f32 %v7636_v12, %v1288_v3  ;;  %v12621_v55 = vld [vmem:[#allocation136_spill] sm:$0xff]  ;;  %v706_v32 = vpop.permute.xlu1 %705  ;;  %v1338_v23 = vld [vmem:[#allocation2 + $0x268] sm:$0xff] }
 0x165   : > { %3333 = vmatprep.subr.mxu1 %v12567_v44  ;;  %v1792_v52 = vadd.f32 %v12621_v55, %v1766_v43  ;;  %v1962_v2 = vmul.f32 %v12506_v47, %v869_v9  ;;  %2768 = vmatpush2.msra.mxu0 %v6070_v24  ;;  %v3049_v27 = vadd.f32 %v8126_v11, %v8195_v7  ;;  %v1337_v20 = vld [vmem:[#allocation2 + $0x260] sm:$0xff]  ;;  %v6117_v11 = vld [vmem:[%s12553_s25 + $0x310] sm:$0xff]  ;;  %v12624_v7 = vld [vmem:[#allocation121_spill] sm:$0xff] }
 0x166   : > { %3334 = vmatpush2.msra.mxu1 %v6119_v63  ;;  %v2378_v50 = vadd.f32 %v12622_v49, %v8209_v33  ;;  %728 = vst.msk [vmem:[#allocation2 + $0x238] sm:$0xff] %vm400_vm0, %v706_v32  ;;  %2769 = vmatprep.subr.mxu0 %v12567_v44  ;;  %v1296_v25 = vmul.f32 %v12582_v30, %v1287_v59  ;;  %v6067_v63 = vld [vmem:[%s12553_s25 + $0x230] sm:$0xff]  ;;  %v8844_v49 = vstv %s8779_s24  ;;  %s11278_s24 = sld [smem:[#allocation5 + $0x385]] }
 0x167   : > { %3335 = vmatprep.subr.mxu1 %v12567_v44  ;;  %v1818_v40 = vadd.f32 %v12623_v8, %v1792_v52  ;;  %v2422_v33 = vmul.f32 %v12624_v7, %v8766_v21  ;;  %v711_v42 = vsel %vm707_vm3, %v704_v29, %v706_v32  ;;  %v1347_v3 = vmul.f32 %v12605_v62, %v1338_v23  ;;  %v12626_v8 = vld [vmem:[#allocation166_spill] sm:$0xff] }
 0x168   : > { %v1913_v43 = vmul.f32 %v12606_v58, %v1338_v23  ;;  %2770 = vmatpush2.msra.mxu0 %v6069_v31  ;;  %3336 = vmatpush2.msra.mxu1 %v6118_v61  ;;  %727 = vst [vmem:[#allocation2 + $0x230] sm:$0xff] %v711_v42  ;;  %v8803_v30 = vadd.f32 %v1396_v19, %v8709_v5  ;;  %v6116_v31 = vld [vmem:[%s12553_s25 + $0x308] sm:$0xff]  ;;  %v809_v5 = vpop.permute.xlu1 %808  ;;  %v807_v61 = vpop.permute.xlu0 %806  ;;  %12625 = vst [vmem:[#allocation113_spill] sm:$0xff] %v8844_v49 }
 0x169   : > { %v8806_v9 = vadd.f32 %v1297_v17, %v8685_v13  ;;  %v8809_v24 = vadd.f32 %v1863_v56, %v8687_v57  ;;  %2771 = vmatprep.subr.mxu0 %v12567_v44  ;;  %3337 = vmatprep.subr.mxu1 %v12567_v44  ;;  %v1388_v19 = vld [vmem:[#allocation2 + $0x2d8] sm:$0xff]  ;;  %v8820_v13 = vadd.f32 %v1962_v2, %v8724_v1  ;;  %v8831_v1 = vld [vmem:[#allocation2 + $0x200] sm:$0xff] }
 0x16a   : > { %v1346_v57 = vmul.f32 %v12605_v62, %v1337_v20  ;;  %v1912_v17 = vmul.f32 %v12606_v58, %v1337_v20  ;;  %2772 = vmatpush2.msra.mxu0 %v6068_v4  ;;  %3338 = vmatpush2.msra.mxu1 %v6117_v11  ;;  %833 = vst.msk [vmem:[#allocation2 + $0x2a8] sm:$0xff] %vm400_vm0, %v809_v5 }
 0x16b   : > { %v1397_v56 = vmul.f32 %v12620_v38, %v1388_v19  ;;  %v8826_v55 = vadd.f32 %v1296_v25, %v1278_v28  ;;  %v1862_v52 = vmul.f32 %v7636_v12, %v1287_v59  ;;  %2773 = vmatprep.subr.mxu0 %v12567_v44  ;;  %3339 = vmatprep.subr.mxu1 %v12567_v44 }
 0x16c   : > { %v817_v32 = vsel %vm814_vm4, %v807_v61, %v809_v5  ;;  %v8835_v2 = vadd.f32 %v1347_v3, %v8727_v36  ;;  %v8838_v23 = vadd.f32 %v1913_v43, %v8730_v37  ;;  %2774 = vmatpush2.msra.mxu0 %v6067_v63  ;;  %3340 = vmatpush2.msra.mxu1 %v6116_v31  ;;  %v8848_v36 = vld [vmem:[#allocation2 + $0x240] sm:$0xff]  ;;  %v912_v29 = vpop.permute.xlu1 %911  ;;  %v910_v4 = vpop.permute.xlu0 %909 }
 0x16d   : > { %832 = vst [vmem:[#allocation2 + $0x2a0] sm:$0xff] %v817_v32  ;;  %v1963_v28 = vmul.f32 %v12506_v47, %v1388_v19  ;;  %v1844_v12 = vadd.f32 %v8757_v14, %v1818_v40  ;;  %v3075_v59 = vadd.f32 %v8139_v41, %v3049_v27  ;;  %3843 = vmatprep.subr.mxu0 %v12567_v44  ;;  %v1314_v25 = vld [vmem:[#allocation2 + $0x238] sm:$0xff]  ;;  %v12627_v41 = vld [vmem:[#allocation122_spill] sm:$0xff]  ;;  %v8859_v40 = vld [vmem:[#allocation2 + $0x280] sm:$0xff] }
 0x16e   : > { %4409 = vmatprep.subr.mxu1 %v12567_v44  ;;  %v8851_v37 = vadd.f32 %v1346_v57, %v8741_v51  ;;  %v8854_v20 = vadd.f32 %v1912_v17, %v8744_v54  ;;  %v2404_v14 = vadd.f32 %v12626_v8, %v2378_v50  ;;  %v2448_v27 = vmul.f32 %v12627_v41, %v8831_v1  ;;  %v8867_v3 = vld [vmem:[#allocation2 + $0x2c0] sm:$0xff] }
 0x16f   : > { %937 = vst.msk [vmem:[#allocation2 + $0x318] sm:$0xff] %vm400_vm0, %v912_v29  ;;  %v8863_v11 = vadd.f32 %v1397_v56, %v8760_v15  ;;  %v1323_v51 = vmul.f32 %v12594_v18, %v1314_v25  ;;  %v1870_v42 = vadd.f32 %v1862_v52, %v1844_v12  ;;  %v3101_v54 = vadd.f32 %v8162_v34, %v3075_v59  ;;  %v8869_v43 = vld [vmem:[#allocation2 + $0x300] sm:$0xff]  ;;  %v1313_v31 = vld [vmem:[#allocation2 + $0x230] sm:$0xff]  ;;  %v12629_v56 = vld [vmem:[#allocation125_spill] sm:$0xff] }
 0x170   : > { %v922_v50 = vsel %vm707_vm3, %v910_v4, %v912_v29  ;;  %v1889_v63 = vmul.f32 %v12595_v26, %v1314_v25  ;;  %v2430_v5 = vadd.f32 %v2422_v33, %v2404_v14  ;;  %v12628_v19 = vld [vmem:[#allocation124_spill] sm:$0xff]  ;;  %v1971_v17 = vadd.f32 %v1963_v28, %v8763_v48  ;;  %v760_v32 = vpop.permute.xlu1 %759  ;;  %v12631_v25 = vld [vmem:[#allocation126_spill] sm:$0xff]  ;;  %v758_v48 = vpop.permute.xlu0 %757 }
 0x171   : > { %v2474_v57 = vmul.f32 %v12628_v19, %v8848_v36  ;;  %v8875_v15 = vld [vmem:[#allocation2 + $0x340] sm:$0xff]  ;;  %936 = vst [vmem:[#allocation2 + $0x310] sm:$0xff] %v922_v50  ;;  %v1422_v34 = vmul.f32 %v12505_v39, %v922_v50  ;;  %v3127_v61 = vadd.f32 %v8169_v45, %v3101_v54  ;;  %v2500_v52 = vmul.f32 %v12629_v56, %v8859_v40  ;;  %v1364_v29 = vld [vmem:[#allocation2 + $0x2a8] sm:$0xff] }
 0x172   : > { %v12630_v12 = vld [vmem:[#allocation104_spill] sm:$0xff]  ;;  %v2456_v33 = vadd.f32 %v2448_v27, %v2430_v5  ;;  %v2526_v8 = vmul.f32 %v12631_v25, %v8867_v3  ;;  %v2552_v14 = vmul.f32 %v12522_v10, %v8869_v43  ;;  %781 = vst.msk [vmem:[#allocation2 + $0x278] sm:$0xff] %vm400_vm0, %v760_v32  ;;  %v8889_v28 = vadd.f32 %v1323_v51, %v8806_v9 }
 0x173   : > { %v1988_v59 = vmul.f32 %v12630_v12, %v922_v50  ;;  %v1322_v45 = vmul.f32 %v12594_v18, %v1313_v31  ;;  %v3153_v4 = vadd.f32 %v8187_v6, %v3127_v61  ;;  %v2578_v54 = vmul.f32 %v12523_v22, %v8875_v15 }
 0x174   : > { %v764_v27 = vsel %vm707_vm3, %v758_v48, %v760_v32  ;;  %v1363_v50 = vld [vmem:[#allocation2 + $0x2a0] sm:$0xff]  ;;  %v8897_v5 = vadd.f32 %v1889_v63, %v8809_v24  ;;  %v1888_v44 = vmul.f32 %v12595_v26, %v1313_v31  ;;  %v2482_v10 = vadd.f32 %v2474_v57, %v2456_v33  ;;  %v863_v61 = vpop.permute.xlu1 %862  ;;  %v861_v57 = vpop.permute.xlu0 %860 }
 0x175   : > { %780 = vst [vmem:[#allocation2 + $0x270] sm:$0xff] %v764_v27  ;;  %v8901_v9 = vadd.f32 %v1422_v34, %v8803_v30  ;;  %v1373_v18 = vmul.f32 %v12616_v53, %v1364_v29  ;;  %v1939_v6 = vmul.f32 %v12617_v60, %v1364_v29  ;;  %v3179_v51 = vadd.f32 %v8190_v16, %v3153_v4  ;;  %v8911_v31 = vld [vmem:[#allocation2 + $0x380] sm:$0xff] }
 0x176   : > { %v1414_v22 = vld [vmem:[#allocation2 + $0x318] sm:$0xff]  ;;  %v8907_v32 = vadd.f32 %v1988_v59, %v8820_v13  ;;  %v1372_v24 = vmul.f32 %v12616_v53, %v1363_v50  ;;  %v1938_v26 = vmul.f32 %v12617_v60, %v1363_v50  ;;  %v2508_v63 = vadd.f32 %v2500_v52, %v2482_v10  ;;  %v8913_v30 = vld [vmem:[#allocation2 + $0x3c0] sm:$0xff]  ;;  %886 = vst.msk [vmem:[#allocation2 + $0x2e8] sm:$0xff] %vm400_vm0, %v863_v61 }
 0x177   : > { %v1423_v34 = vmul.f32 %v12505_v39, %v1414_v22  ;;  %v1989_v16 = vmul.f32 %v12630_v12, %v1414_v22  ;;  %v1330_v29 = vadd.f32 %v1322_v45, %v8826_v55  ;;  %v3205_v13 = vadd.f32 %v8198_v0, %v3179_v51  ;;  %v12632_v52 = vld [vmem:[#allocation163_spill] sm:$0xff]  ;;  %v12633_v48 = vld [vmem:[#allocation152_spill] sm:$0xff] }
 0x178   : > { %v870_v59 = vsel %vm814_vm4, %v861_v57, %v863_v61  ;;  %v8921_v33 = vadd.f32 %v1888_v44, %v1870_v42  ;;  %v2534_v10 = vadd.f32 %v2526_v8, %v2508_v63  ;;  %v2918_v4 = vadd.f32 %v12633_v48, %v12632_v52  ;;  %v965_v55 = vpop.permute.xlu1 %964  ;;  %v12634_v51 = vld [vmem:[#allocation167_spill] sm:$0xff]  ;;  %v12637_v57 = vld [vmem:[#allocation137_spill] sm:$0xff] }
 0x179   : > { %885 = vst [vmem:[#allocation2 + $0x2e0] sm:$0xff] %v870_v59  ;;  %v1381_v27 = vadd.f32 %v1373_v18, %v8835_v2  ;;  %v8927_v50 = vadd.f32 %v1939_v6, %v8838_v23  ;;  %v2604_v22 = vmul.f32 %v12527_v35, %v8911_v31  ;;  %v2630_v0 = vmul.f32 %v12529_v46, %v8913_v30  ;;  %v1340_v8 = vld [vmem:[#allocation2 + $0x278] sm:$0xff]  ;;  %v963_v23 = vpop.permute.xlu0 %962 }
 0x17a   : > { %v8934_v44 = vadd.f32 %v1372_v24, %v8851_v37  ;;  %v8937_v42 = vadd.f32 %v1938_v26, %v8854_v20  ;;  %v2560_v45 = vadd.f32 %v2552_v14, %v2534_v10  ;;  %v2944_v2 = vadd.f32 %v12634_v51, %v2918_v4  ;;  %990 = vst.msk [vmem:[#allocation2 + $0x358] sm:$0xff] %vm400_vm0, %v965_v55  ;;  %v6439_v37 = vld [vmem:[#allocation2 + $0x180] sm:$0xff]  ;;  %v12636_v24 = vld [vmem:[#allocation134_spill] sm:$0xff] }
 0x17b   : > { %v8942_v18 = vadd.f32 %v1423_v34, %v8863_v11  ;;  %v8944_v6 = vadd.f32 %v1989_v16, %v1971_v17  ;;  %v8947_v61 = vadd.f32 %v8844_v49, %v3205_v13  ;;  %v2962_v63 = vmul.f32 %v6439_v37, %v12636_v24  ;;  %v12638_v10 = vld [vmem:[#allocation138_spill] sm:$0xff] }
 0x17c   : > { %v975_v20 = vsel %vm707_vm3, %v963_v23, %v965_v55  ;;  %v1339_v26 = vld [vmem:[#allocation2 + $0x270] sm:$0xff]  ;;  %v2586_v14 = vadd.f32 %v2578_v54, %v2560_v45  ;;  %v2988_v59 = vmul.f32 %v12637_v57, %v8766_v21  ;;  %v3014_v52 = vmul.f32 %v12638_v10, %v8831_v1  ;;  %v813_v4 = vpop.permute.xlu1 %812  ;;  %v12641_v55 = vld [vmem:[#allocation107_spill] sm:$0xff] }
 0x17d   : > { %12635 = vst [vmem:[#allocation119_spill] sm:$0xff] %v8947_v61  ;;  %989 = vst [vmem:[#allocation2 + $0x350] sm:$0xff] %v975_v20  ;;  %v12639_v11 = vld [vmem:[#allocation90_spill] sm:$0xff]  ;;  %v1349_v34 = vmul.f32 %v12605_v62, %v1340_v8  ;;  %v1915_v16 = vmul.f32 %v12606_v58, %v1340_v8  ;;  %v2014_v51 = vmul.f32 %v12641_v55, %v975_v20  ;;  %v1390_v54 = vld [vmem:[#allocation2 + $0x2e8] sm:$0xff]  ;;  %v811_v1 = vpop.permute.xlu0 %810 }
 0x17e   : > { %v1448_v17 = vmul.f32 %v12639_v11, %v975_v20  ;;  %v12640_v13 = vld [vmem:[#allocation142_spill] sm:$0xff]  ;;  %v1348_v45 = vmul.f32 %v12605_v62, %v1339_v26  ;;  %v2612_v21 = vadd.f32 %v2604_v22, %v2586_v14  ;;  %v2970_v23 = vadd.f32 %v2962_v63, %v2944_v2  ;;  %835 = vst.msk [vmem:[#allocation2 + $0x2b8] sm:$0xff] %vm400_vm0, %v813_v4  ;;  %v12642_v8 = vld [vmem:[#allocation151_spill] sm:$0xff] }
 0x17f   : > { %v3040_v48 = vmul.f32 %v12640_v13, %v8848_v36  ;;  %v1399_v37 = vmul.f32 %v12620_v38, %v1390_v54  ;;  %v1914_v61 = vmul.f32 %v12606_v58, %v1339_v26  ;;  %v3066_v10 = vmul.f32 %v12642_v8, %v8859_v40  ;;  %v12643_v36 = vld [vmem:[#allocation159_spill] sm:$0xff] }
 0x180   : > { %v3092_v13 = vmul.f32 %v12643_v36, %v8867_v3  ;;  %v818_v20 = vsel %vm814_vm4, %v811_v1, %v813_v4  ;;  %v1965_v57 = vmul.f32 %v12506_v47, %v1390_v54  ;;  %v1389_v62 = vld [vmem:[#allocation2 + $0x2e0] sm:$0xff]  ;;  %v2638_v22 = vadd.f32 %v2630_v0, %v2612_v21  ;;  %v916_v26 = vpop.permute.xlu1 %915  ;;  %v8985_v21 = vld [vmem:[#allocation2 + $0x18] sm:$0xff]  ;;  %v12658_v36 = vld [vmem:[#allocation86_spill] sm:$0xff] }
 0x181   : > { %v2996_v2 = vadd.f32 %v2988_v59, %v2970_v23  ;;  %834 = vst [vmem:[#allocation2 + $0x2b0] sm:$0xff] %v818_v20  ;;  %v8972_v63 = vadd.f32 %v1448_v17, %v8901_v9  ;;  %v1398_v14 = vmul.f32 %v12620_v38, %v1389_v62  ;;  %v1357_v58 = vadd.f32 %v1349_v34, %v8889_v28  ;;  %v1440_v3 = vld [vmem:[#allocation2 + $0x358] sm:$0xff]  ;;  %v914_v9 = vpop.permute.xlu0 %913 }
 0x182   : > { %v8977_v40 = vadd.f32 %v1915_v16, %v8897_v5  ;;  %v8980_v4 = vadd.f32 %v2014_v51, %v8907_v32  ;;  %v1964_v54 = vmul.f32 %v12506_v47, %v1389_v62  ;;  %v8983_v0 = vadd.f32 %v1348_v45, %v1330_v29  ;;  %939 = vst.msk [vmem:[#allocation2 + $0x328] sm:$0xff] %vm400_vm0, %v916_v26  ;;  %v8995_v32 = vld [vmem:[#allocation2 + $0x58] sm:$0xff]  ;;  %v12644_v16 = vld [vmem:[#allocation144_spill] sm:$0xff] }
 0x183   : > { %v3022_v59 = vadd.f32 %v3014_v52, %v2996_v2  ;;  %v1449_v28 = vmul.f32 %v12639_v11, %v1440_v3  ;;  %v2015_v5 = vmul.f32 %v12641_v55, %v1440_v3  ;;  %v8990_v17 = vadd.f32 %v1399_v37, %v1381_v27  ;;  %v12646_v27 = vld [vmem:[#allocation160_spill] sm:$0xff]  ;;  %v9013_v62 = vld [vmem:[#allocation2 + $0x118] sm:$0xff] }
 0x184   : > { %v8993_v34 = vadd.f32 %v1914_v61, %v8921_v33  ;;  %v923_v29 = vsel %vm707_vm3, %v914_v9, %v916_v26  ;;  %v8999_v52 = vadd.f32 %v1965_v57, %v8927_v50  ;;  %v9002_v51 = vadd.f32 %v12644_v16, %v2638_v22  ;;  %v12647_v33 = vld [vmem:[#allocation78_spill] sm:$0xff]  ;;  %v12648_v37 = vld [vmem:[#allocation15_spill] sm:$0xff]  ;;  %v1018_v50 = vpop.permute.xlu1 %1017  ;;  %v9022_v26 = vld [vmem:[#allocation2 + $0x158] sm:$0xff] }
 0x185   : > { %v3048_v45 = vadd.f32 %v3040_v48, %v3022_v59  ;;  %938 = vst [vmem:[#allocation2 + $0x320] sm:$0xff] %v923_v29  ;;  %v9005_v23 = vadd.f32 %v1398_v14, %v8934_v44  ;;  %v3118_v1 = vmul.f32 %v12646_v27, %v8869_v43  ;;  %v3144_v61 = vmul.f32 %v12647_v33, %v8875_v15  ;;  %v1366_v48 = vld [vmem:[#allocation2 + $0x2b8] sm:$0xff]  ;;  %v12649_v44 = vld [vmem:[#allocation36_spill] sm:$0xff]  ;;  %v1016_v3 = vpop.permute.xlu0 %1015 }
 0x186   : > { %12645 = vst [vmem:[#allocation84_spill] sm:$0xff] %v9002_v51  ;;  %v2251_v20 = vmul.f32 %v12648_v37, %v8985_v21  ;;  %v9016_v57 = vadd.f32 %v1964_v54, %v8937_v42  ;;  %v3170_v2 = vmul.f32 %v12649_v44, %v8911_v31  ;;  %v12650_v14 = vld [vmem:[#allocation16_spill] sm:$0xff]  ;;  %v9024_v15 = vld [vmem:[#allocation2 + $0x198] sm:$0xff]  ;;  %1043 = vst.msk [vmem:[#allocation2 + $0x398] sm:$0xff] %vm400_vm0, %v1018_v50 }
 0x187   : > { %v3074_v22 = vadd.f32 %v3066_v10, %v3048_v45  ;;  %v2269_v43 = vmul.f32 %v12650_v14, %v8995_v32  ;;  %v9028_v59 = vadd.f32 %v1449_v28, %v8942_v18  ;;  %v9031_v42 = vadd.f32 %v2015_v5, %v8944_v6  ;;  %v12651_v31 = vld [vmem:[#allocation81_spill] sm:$0xff]  ;;  %v9036_v9 = vld [vmem:[#allocation2 + $0x1d8] sm:$0xff]  ;;  %v12653_v14 = vld [vmem:[#allocation114_spill] sm:$0xff] }
 0x188   : > { %v1375_v10 = vmul.f32 %v12616_v53, %v1366_v48  ;;  %v3196_v54 = vmul.f32 %v12651_v31, %v8913_v30  ;;  %12652 = vst [vmem:[#allocation96_spill] sm:$0xff] %v9036_v9  ;;  %v1028_v29 = vsel %vm814_vm4, %v1016_v3, %v1018_v50  ;;  %v1365_v45 = vld [vmem:[#allocation2 + $0x2b0] sm:$0xff]  ;;  %v2347_v37 = vmul.f32 %v12653_v14, %v9013_v62  ;;  %v9041_v18 = vld [vmem:[#allocation2 + $0x218] sm:$0xff]  ;;  %v12655_v44 = vld [vmem:[#allocation117_spill] sm:$0xff]  ;;  %v867_v50 = vpop.permute.xlu1 %866 }
 0x189   : > { %v3100_v16 = vadd.f32 %v3092_v13, %v3074_v22  ;;  %v2277_v51 = vadd.f32 %v2269_v43, %v2251_v20  ;;  %1042 = vst [vmem:[#allocation2 + $0x390] sm:$0xff] %v1028_v29  ;;  %v12654_v6 = vld [vmem:[#allocation91_spill] sm:$0xff]  ;;  %v1941_v5 = vmul.f32 %v12617_v60, %v1366_v48  ;;  %v2373_v30 = vmul.f32 %v12655_v44, %v9022_v26  ;;  %v12656_v31 = vld [vmem:[#allocation118_spill] sm:$0xff]  ;;  %v12657_v13 = vld [vmem:[#allocation108_spill] sm:$0xff]  ;;  %v865_v48 = vpop.permute.xlu0 %864 }
 0x18a   : > { %v1474_v28 = vmul.f32 %v12654_v6, %v1028_v29  ;;  %v9049_v33 = vmul.f32 %v12656_v31, %v9024_v15  ;;  %v2040_v20 = vmul.f32 %v12657_v13, %v1028_v29  ;;  %v1416_v22 = vld [vmem:[#allocation2 + $0x328] sm:$0xff]  ;;  %v1374_v43 = vmul.f32 %v12616_v53, %v1365_v45  ;;  %888 = vst.msk [vmem:[#allocation2 + $0x2f8] sm:$0xff] %vm400_vm0, %v867_v50 }
 0x18b   : > { %v3126_v3 = vadd.f32 %v3118_v1, %v3100_v16  ;;  %v9055_v14 = vmul.f32 %v12624_v7, %v9036_v9  ;;  %v1425_v44 = vmul.f32 %v12505_v39, %v1416_v22  ;;  %v9059_v27 = vadd.f32 %v1375_v10, %v1357_v58 }
 0x18c   : > { %v1940_v31 = vmul.f32 %v12617_v60, %v1365_v45  ;;  %v9064_v29 = vmul.f32 %v12627_v41, %v9041_v18  ;;  %v871_v53 = vsel %vm814_vm4, %v865_v48, %v867_v50  ;;  %v1991_v16 = vmul.f32 %v12630_v12, %v1416_v22  ;;  %v1415_v1 = vld [vmem:[#allocation2 + $0x320] sm:$0xff]  ;;  %v969_v45 = vpop.permute.xlu1 %968 }
 0x18d   : > { %v3152_v7 = vadd.f32 %v3144_v61, %v3126_v3  ;;  %v2303_v8 = vadd.f32 %v12658_v36, %v2277_v51  ;;  %887 = vst [vmem:[#allocation2 + $0x2f0] sm:$0xff] %v871_v53  ;;  %v1482_v9 = vadd.f32 %v1474_v28, %v8972_v63  ;;  %v1424_v58 = vmul.f32 %v12505_v39, %v1415_v1  ;;  %v1466_v41 = vld [vmem:[#allocation2 + $0x398] sm:$0xff]  ;;  %v12659_v3 = vld [vmem:[#allocation48_spill] sm:$0xff]  ;;  %v967_v28 = vpop.permute.xlu0 %966 }
 0x18e   : > { %v1990_v10 = vmul.f32 %v12630_v12, %v1415_v1  ;;  %v9073_v60 = vadd.f32 %v1941_v5, %v8977_v40  ;;  %v2048_v50 = vadd.f32 %v2040_v20, %v8980_v4  ;;  %v9077_v22 = vadd.f32 %v1374_v43, %v8983_v0  ;;  %v9080_v51 = vld [vmem:[#allocation2 + $0x258] sm:$0xff]  ;;  %992 = vst.msk [vmem:[#allocation2 + $0x368] sm:$0xff] %vm400_vm0, %v969_v45 }
 0x18f   : > { %v3178_v61 = vadd.f32 %v3170_v2, %v3152_v7  ;;  %v2329_v36 = vadd.f32 %v12659_v3, %v2303_v8  ;;  %v9082_v63 = vld [vmem:[#allocation2 + $0x298] sm:$0xff]  ;;  %v1475_v40 = vmul.f32 %v12654_v6, %v1466_v41  ;;  %v2041_v5 = vmul.f32 %v12657_v13, %v1466_v41 }
 0x190   : > { %v9088_v48 = vadd.f32 %v1425_v44, %v8990_v17  ;;  %v1948_v4 = vadd.f32 %v1940_v31, %v8993_v34  ;;  %v9091_v0 = vld [vmem:[#allocation2 + $0x2d8] sm:$0xff]  ;;  %v976_v7 = vsel %vm707_vm3, %v967_v28, %v969_v45  ;;  %v9095_v8 = vadd.f32 %v1991_v16, %v8999_v52  ;;  %v1071_v52 = vpop.permute.xlu1 %1070  ;;  %v12665_v28 = vld [vmem:[#allocation17_spill] sm:$0xff] }
 0x191   : > { %v3204_v2 = vadd.f32 %v3196_v54, %v3178_v61  ;;  %v2355_v20 = vadd.f32 %v2347_v37, %v2329_v36  ;;  %v9097_v43 = vld [vmem:[#allocation2 + $0x318] sm:$0xff]  ;;  %991 = vst [vmem:[#allocation2 + $0x360] sm:$0xff] %v976_v7  ;;  %v1432_v41 = vadd.f32 %v1424_v58, %v9005_v23  ;;  %v9103_v17 = vadd.f32 %v1990_v10, %v9016_v57  ;;  %v1069_v23 = vpop.permute.xlu0 %1068  ;;  %v12662_v10 = vld [vmem:[#allocation128_spill] sm:$0xff] }
 0x192   : > { %v9099_v53 = vld [vmem:[#allocation2 + $0x358] sm:$0xff]  ;;  %v2477_v34 = vmul.f32 %v12628_v19, %v9080_v51  ;;  %v2503_v44 = vmul.f32 %v12629_v56, %v9082_v63  ;;  %v1483_v31 = vadd.f32 %v1475_v40, %v9028_v59  ;;  %v2049_v37 = vadd.f32 %v2041_v5, %v9031_v42  ;;  %1096 = vst.msk [vmem:[#allocation2 + $0x3d8] sm:$0xff] %vm400_vm0, %v1071_v52 }
 0x193   : > { %12660 = vst [vmem:[#allocation35_spill] sm:$0xff] %v9099_v53  ;;  %v1392_v54 = vld [vmem:[#allocation2 + $0x2f8] sm:$0xff]  ;;  %v2381_v16 = vadd.f32 %v2373_v30, %v2355_v20  ;;  %v9113_v1 = vmul.f32 %v12631_v25, %v9091_v0  ;;  %v1450_v57 = vmul.f32 %v12639_v11, %v976_v7  ;;  %v9118_v58 = vadd.f32 %v8844_v49, %v3204_v2  ;;  %v12667_v2 = vld [vmem:[#allocation93_spill] sm:$0xff] }
 0x194   : > { %v9122_v45 = vmul.f32 %v12662_v10, %v9097_v43  ;;  %v12663_v59 = vld [vmem:[#allocation131_spill] sm:$0xff]  ;;  %v1081_v61 = vsel %vm814_vm4, %v1069_v23, %v1071_v52  ;;  %v1391_v3 = vld [vmem:[#allocation2 + $0x2f0] sm:$0xff]  ;;  %v2817_v40 = vmul.f32 %v12665_v28, %v8985_v21  ;;  %v1967_v25 = vmul.f32 %v12506_v47, %v1392_v54  ;;  %v920_v56 = vpop.permute.xlu1 %919 }
 0x195   : > { %12661 = vst [vmem:[#allocation127_spill] sm:$0xff] %v9118_v58  ;;  %v9126_v42 = vmul.f32 %v12663_v59, %v9099_v53  ;;  %v9128_v30 = vld [vmem:[#allocation2 + $0x398] sm:$0xff]  ;;  %v2407_v36 = vadd.f32 %v9049_v33, %v2381_v16  ;;  %1095 = vst [vmem:[#allocation2 + $0x3d0] sm:$0xff] %v1081_v61  ;;  %v1500_v20 = vmul.f32 %v12667_v2, %v1081_v61  ;;  %v1442_v52 = vld [vmem:[#allocation2 + $0x368] sm:$0xff]  ;;  %v918_v16 = vpop.permute.xlu0 %917 }
 0x196   : > { %12664 = vst [vmem:[#allocation115_spill] sm:$0xff] %v9128_v30  ;;  %v12666_v5 = vld [vmem:[#allocation18_spill] sm:$0xff]  ;;  %v1401_v59 = vmul.f32 %v12620_v38, %v1392_v54  ;;  %v1400_v23 = vmul.f32 %v12620_v38, %v1391_v3  ;;  %v1966_v33 = vmul.f32 %v12506_v47, %v1391_v3  ;;  %941 = vst.msk [vmem:[#allocation2 + $0x338] sm:$0xff] %vm400_vm0, %v920_v56  ;;  %v12669_v3 = vld [vmem:[#allocation94_spill] sm:$0xff] }
 0x197   : > { %v2835_v7 = vmul.f32 %v12666_v5, %v8995_v32  ;;  %v12668_v10 = vld [vmem:[#allocation111_spill] sm:$0xff]  ;;  %v2433_v21 = vadd.f32 %v9055_v14, %v2407_v36  ;;  %v9145_v32 = vmul.f32 %v12527_v35, %v9128_v30  ;;  %v1451_v28 = vmul.f32 %v12639_v11, %v1442_v52  ;;  %v12670_v35 = vld [vmem:[#allocation112_spill] sm:$0xff] }
 0x198   : > { %v2066_v49 = vmul.f32 %v12668_v10, %v1081_v61  ;;  %v1508_v61 = vadd.f32 %v1500_v20, %v1482_v9  ;;  %v2017_v54 = vmul.f32 %v12641_v55, %v1442_v52  ;;  %v924_v19 = vsel %vm707_vm3, %v918_v16, %v920_v56  ;;  %v2007_v58 = vld [vmem:[#allocation2 + $0x360] sm:$0xff]  ;;  %v1022_v9 = vpop.permute.xlu1 %1021  ;;  %v12673_v16 = vld [vmem:[#allocation49_spill] sm:$0xff] }
 0x199   : > { %v1458_v38 = vadd.f32 %v1450_v57, %v1432_v41  ;;  %v2459_v47 = vadd.f32 %v9064_v29, %v2433_v21  ;;  %v2843_v14 = vadd.f32 %v2835_v7, %v2817_v40  ;;  %940 = vst [vmem:[#allocation2 + $0x330] sm:$0xff] %v924_v19  ;;  %v1409_v53 = vadd.f32 %v1401_v59, %v9059_v27  ;;  %v1020_v29 = vpop.permute.xlu0 %1019  ;;  %v9164_v59 = vld [vmem:[#allocation2 + $0x3d8] sm:$0xff] }
 0x19a   : > { %v2074_v5 = vadd.f32 %v2066_v49, %v2048_v50  ;;  %v1518_v36 = vadd.f32 %v12669_v3, %v1508_v61  ;;  %v1975_v49 = vadd.f32 %v1967_v25, %v9073_v60  ;;  %v1492_v50 = vld [vmem:[#allocation2 + $0x3d8] sm:$0xff]  ;;  %v2016_v20 = vmul.f32 %v12641_v55, %v2007_v58  ;;  %1045 = vst.msk [vmem:[#allocation2 + $0x3a8] sm:$0xff] %vm400_vm0, %v1022_v9  ;;  %v12671_v58 = vld [vmem:[#allocation41_spill] sm:$0xff] }
 0x19b   : > { %v1408_v56 = vadd.f32 %v1400_v23, %v9077_v22  ;;  %v1974_v41 = vadd.f32 %v1966_v33, %v1948_v4  ;;  %v2485_v57 = vadd.f32 %v2477_v34, %v2459_v47  ;;  %v1501_v19 = vmul.f32 %v12667_v2, %v1492_v50  ;;  %v12672_v4 = vld [vmem:[#allocation129_spill] sm:$0xff] }
 0x19c   : > { %v2084_v30 = vadd.f32 %v12670_v35, %v2074_v5  ;;  %v2067_v40 = vmul.f32 %v12668_v10, %v1492_v50  ;;  %v1459_v5 = vadd.f32 %v1451_v28, %v9088_v48  ;;  %v2025_v27 = vadd.f32 %v2017_v54, %v9095_v8  ;;  %v973_v21 = vpop.permute.xlu1 %972 }
 0x19d   : > { %v1029_v25 = vsel %vm814_vm4, %v1020_v29, %v1022_v9  ;;  %v2511_v60 = vadd.f32 %v2503_v44, %v2485_v57  ;;  %v2869_v22 = vadd.f32 %v12671_v58, %v2843_v14  ;;  %v2913_v34 = vmul.f32 %v12672_v4, %v9013_v62  ;;  %v1418_v28 = vld [vmem:[#allocation2 + $0x338] sm:$0xff]  ;;  %994 = vst.msk [vmem:[#allocation2 + $0x378] sm:$0xff] %vm400_vm0, %v973_v21  ;;  %v971_v54 = vpop.permute.xlu0 %970 }
 0x19e   : > { %1044 = vst [vmem:[#allocation2 + $0x3a0] sm:$0xff] %v1029_v25  ;;  %v1509_v7 = vadd.f32 %v1501_v19, %v1483_v31  ;;  %v2075_v52 = vadd.f32 %v2067_v40, %v2049_v37  ;;  %v1526_v23 = vmax.f32 %v1518_v36, 0.0  ;;  %v2092_v33 = vmax.f32 %v2084_v30, 0.0 }
 0x19f   : > { %v1476_v48 = vmul.f32 %v12654_v6, %v1029_v25  ;;  %v2024_v8 = vadd.f32 %v2016_v20, %v9103_v17  ;;  %v2537_v44 = vadd.f32 %v9113_v1, %v2511_v60  ;;  %v2895_v61 = vadd.f32 %v12673_v16, %v2869_v22 }
 0x1a0   : > { %v1519_v62 = vadd.f32 %v12669_v3, %v1509_v7  ;;  %v2085_v31 = vadd.f32 %v12670_v35, %v2075_v52  ;;  %v2042_v37 = vmul.f32 %v12657_v13, %v1029_v25  ;;  %v2633_v30 = vmul.f32 %v12529_v46, %v9164_v59  ;;  %v1417_v14 = vld [vmem:[#allocation2 + $0x330] sm:$0xff] }
 0x1a1   : > { %v977_v47 = vsel %vm707_vm3, %v971_v54, %v973_v21  ;;  %v1427_v17 = vmul.f32 %v12505_v39, %v1418_v28  ;;  %v1993_v1 = vmul.f32 %v12630_v12, %v1418_v28  ;;  %v2563_v36 = vadd.f32 %v9122_v45, %v2537_v44  ;;  %v1468_v29 = vld [vmem:[#allocation2 + $0x3a8] sm:$0xff]  ;;  %v12674_v25 = vld [vmem:[#allocation130_spill] sm:$0xff]  ;;  %v1073_v7 = vpop.permute.xlu0 %1072 }
 0x1a2   : > { %993 = vst [vmem:[#allocation2 + $0x370] sm:$0xff] %v977_v47  ;;  %v1527_v9 = vmax.f32 %v1519_v62, 0.0  ;;  %v2093_v50 = vmax.f32 %v2085_v31, 0.0  ;;  %v1426_v20 = vmul.f32 %v12505_v39, %v1417_v14  ;;  %v1992_v57 = vmul.f32 %v12630_v12, %v1417_v14  ;;  %v1075_v12 = vpop.permute.xlu1 %1074  ;;  %v12677_v47 = vld [vmem:[#allocation138_spill] sm:$0xff] }
 0x1a3   : > { %v1484_v19 = vadd.f32 %v1476_v48, %v1458_v38  ;;  %v2921_v40 = vadd.f32 %v2913_v34, %v2895_v61  ;;  %v2939_v60 = vmul.f32 %v12674_v25, %v9022_v26  ;;  %v2965_v58 = vmul.f32 %v12636_v24, %v9024_v15  ;;  %1098 = vst.msk [vmem:[#allocation2 + $0x3e8] sm:$0xff] %vm400_vm0, %v1075_v12  ;;  %v12678_v14 = vld [vmem:[#allocation142_spill] sm:$0xff] }
 0x1a4   : > { %5982 = vmatprep.mubr.msk.f32.mxu0 %vm400_vm0, %v1527_v9  ;;  %6031 = vmatprep.mubr.msk.f32.mxu1 %vm400_vm0, %v2093_v50  ;;  %v1477_v45 = vmul.f32 %v12654_v6, %v1468_v29  ;;  %v2043_v22 = vmul.f32 %v12657_v13, %v1468_v29  ;;  %v2589_v39 = vadd.f32 %v9126_v42, %v2563_v36  ;;  %v1444_v44 = vld [vmem:[#allocation2 + $0x378] sm:$0xff] }
 0x1a5   : > { %1649 = vmatmul.mubr.f32.gmra.mxu0 %v1526_v23  ;;  %2215 = vmatmul.mubr.f32.gmra.mxu1 %v2092_v33  ;;  %v2050_v38 = vadd.f32 %v2042_v37, %v2024_v8  ;;  %v1435_v34 = vadd.f32 %v1427_v17, %v1409_v53  ;;  %v2001_v26 = vadd.f32 %v1993_v1, %v1975_v49  ;;  %v12675_v23 = vld [vmem:[#allocation96_spill] sm:$0xff]  ;;  %v12676_v33 = vld [vmem:[#allocation137_spill] sm:$0xff] }
 0x1a6   : > { %v1082_v15 = vsel %vm814_vm4, %v1073_v7, %v1075_v12  ;;  %v1434_v52 = vadd.f32 %v1426_v20, %v1408_v56  ;;  %v2000_v21 = vadd.f32 %v1992_v57, %v1974_v41  ;;  %v2615_v48 = vadd.f32 %v9145_v32, %v2589_v39  ;;  %v1026_v56 = vpop.permute.xlu1 %1025  ;;  %v1024_v41 = vpop.permute.xlu0 %1023 }
 0x1a7   : > { %1097 = vst [vmem:[#allocation2 + $0x3e0] sm:$0xff] %v1082_v15  ;;  %v1502_v28 = vmul.f32 %v12667_v2, %v1082_v15  ;;  %v2068_v42 = vmul.f32 %v12668_v10, %v1082_v15  ;;  %v2947_v16 = vadd.f32 %v2939_v60, %v2921_v40  ;;  %v2991_v8 = vmul.f32 %v12676_v33, %v12675_v23 }
 0x1a8   : > { %v1485_v53 = vadd.f32 %v1477_v45, %v1459_v5  ;;  %v2051_v49 = vadd.f32 %v2043_v22, %v2025_v27  ;;  %v1453_v61 = vmul.f32 %v12639_v11, %v1444_v44  ;;  %v2019_v54 = vmul.f32 %v12641_v55, %v1444_v44  ;;  %1047 = vst.msk [vmem:[#allocation2 + $0x3b8] sm:$0xff] %vm400_vm0, %v1026_v56  ;;  %v12679_v22 = vld [vmem:[#allocation151_spill] sm:$0xff] }
 0x1a9   : > { %v1510_v62 = vadd.f32 %v1502_v28, %v1484_v19  ;;  %v2076_v32 = vadd.f32 %v2068_v42, %v2050_v38  ;;  %v1443_v31 = vld [vmem:[#allocation2 + $0x370] sm:$0xff]  ;;  %v2973_v37 = vadd.f32 %v2965_v58, %v2947_v16  ;;  %v3017_v17 = vmul.f32 %v12677_v47, %v9041_v18 }
 0x1aa   : > { %v1030_v1 = vsel %vm814_vm4, %v1024_v41, %v1026_v56  ;;  %v1452_v5 = vmul.f32 %v12639_v11, %v1443_v31  ;;  %v9208_v27 = vadd.f32 %v2633_v30, %v2615_v48  ;;  %v3043_v36 = vmul.f32 %v12678_v14, %v9080_v51  ;;  %v1079_v60 = vpop.permute.xlu1 %1078  ;;  %v1077_v11 = vpop.permute.xlu0 %1076  ;;  %v1494_v30 = vld [vmem:[#allocation2 + $0x3e8] sm:$0xff] }
 0x1ab   : > { %1046 = vst [vmem:[#allocation2 + $0x3b0] sm:$0xff] %v1030_v1  ;;  %v1461_v9 = vadd.f32 %v1453_v61, %v1435_v34  ;;  %v2027_v50 = vadd.f32 %v2019_v54, %v2001_v26  ;;  %v2018_v20 = vmul.f32 %v12641_v55, %v1443_v31  ;;  %v2999_v57 = vadd.f32 %v2991_v8, %v2973_v37  ;;  %v12681_v61 = vld [vmem:[#allocation160_spill] sm:$0xff]  ;;  %v12683_v37 = vld [vmem:[#allocation78_spill] sm:$0xff] }
 0x1ac   : > { %v1520_v29 = vadd.f32 %v12669_v3, %v1510_v62  ;;  %v2086_v18 = vadd.f32 %v12670_v35, %v2076_v32  ;;  %v1460_v19 = vadd.f32 %v1452_v5, %v1434_v52  ;;  %v1478_v40 = vmul.f32 %v12654_v6, %v1030_v1  ;;  %1100 = vst.msk [vmem:[#allocation2 + $0x3f8] sm:$0xff] %vm400_vm0, %v1079_v60  ;;  %v12682_v31 = vld [vmem:[#allocation35_spill] sm:$0xff] }
 0x1ad   : > { %v2026_v58 = vadd.f32 %v2018_v20, %v2000_v21  ;;  %v2044_v45 = vmul.f32 %v12657_v13, %v1030_v1  ;;  %v3025_v51 = vadd.f32 %v3017_v17, %v2999_v57  ;;  %v3069_v39 = vmul.f32 %v12679_v22, %v9082_v63  ;;  %v12680_v63 = vld [vmem:[#allocation159_spill] sm:$0xff]  ;;  %v9238_v1 = vld [vmem:[#allocation2 + $0x10] sm:$0xff]  ;;  %v12685_v57 = vld [vmem:[#allocation36_spill] sm:$0xff] }
 0x1ae   : > { %v1083_v55 = vsel %vm814_vm4, %v1077_v11, %v1079_v60  ;;  %v1503_v12 = vmul.f32 %v12667_v2, %v1494_v30  ;;  %v2069_v7 = vmul.f32 %v12668_v10, %v1494_v30  ;;  %v1486_v38 = vadd.f32 %v1478_v40, %v1460_v19  ;;  %v12684_v20 = vld [vmem:[#allocation115_spill] sm:$0xff]  ;;  %v12686_v60 = vld [vmem:[#allocation81_spill] sm:$0xff] }
 0x1af   : > { %1099 = vst [vmem:[#allocation2 + $0x3f0] sm:$0xff] %v1083_v55  ;;  %v1504_v34 = vmul.f32 %v12667_v2, %v1083_v55  ;;  %v2052_v26 = vadd.f32 %v2044_v45, %v2026_v58  ;;  %v2070_v15 = vmul.f32 %v12668_v10, %v1083_v55  ;;  %v3051_v52 = vadd.f32 %v3043_v36, %v3025_v51  ;;  %v1470_v44 = vld [vmem:[#allocation2 + $0x3b8] sm:$0xff]  ;;  %v12687_v45 = vld [vmem:[#allocation92_spill] sm:$0xff] }
 0x1b0   : > { %v1511_v21 = vadd.f32 %v1503_v12, %v1485_v53  ;;  %v2077_v48 = vadd.f32 %v2069_v7, %v2051_v49  ;;  %v1528_v28 = vmax.f32 %v1520_v29, 0.0  ;;  %v3095_v42 = vmul.f32 %v12680_v63, %v9091_v0  ;;  %v9245_v29 = vld [vmem:[#allocation2 + $0x50] sm:$0xff]  ;;  %v12690_v7 = vld [vmem:[#allocation16_spill] sm:$0xff]  ;;  %v12705_v51 = vld [vmem:[#allocation18_spill] sm:$0xff] }
 0x1b1   : > { %v1512_v16 = vadd.f32 %v1504_v34, %v1486_v38  ;;  %v2078_v23 = vadd.f32 %v2070_v15, %v2052_v26  ;;  %v3077_v8 = vadd.f32 %v3069_v39, %v3051_v52  ;;  %v3121_v54 = vmul.f32 %v12681_v61, %v9097_v43  ;;  %v12688_v39 = vld [vmem:[#allocation15_spill] sm:$0xff] }
 0x1b2   : > { %v1521_v56 = vadd.f32 %v12669_v3, %v1511_v21  ;;  %v2087_v41 = vadd.f32 %v12670_v35, %v2077_v48  ;;  %v1479_v62 = vmul.f32 %v12654_v6, %v1470_v44  ;;  %v2045_v53 = vmul.f32 %v12657_v13, %v1470_v44  ;;  %v12691_v34 = vld [vmem:[#allocation72_spill] sm:$0xff]  ;;  %v12693_v48 = vld [vmem:[#allocation127_spill] sm:$0xff]  ;;  %v9268_v44 = vld [vmem:[#allocation2 + $0x110] sm:$0xff] }
 0x1b3   : > { %v2094_v49 = vmax.f32 %v2086_v18, 0.0  ;;  %v9234_v32 = vadd.f32 %v12669_v3, %v1512_v16  ;;  %v3103_v0 = vadd.f32 %v3095_v42, %v3077_v8  ;;  %v3147_v17 = vmul.f32 %v12683_v37, %v12682_v31  ;;  %v1496_v18 = vld [vmem:[#allocation2 + $0x3f8] sm:$0xff]  ;;  %v12692_v52 = vld [vmem:[#allocation84_spill] sm:$0xff]  ;;  %v12704_v42 = vld [vmem:[#allocation17_spill] sm:$0xff] }
 0x1b4   : > { %v1529_v5 = vmax.f32 %v1521_v56, 0.0  ;;  %v2095_v43 = vmax.f32 %v2087_v41, 0.0  ;;  %v9241_v36 = vadd.f32 %v12670_v35, %v2078_v23  ;;  %v3173_v6 = vmul.f32 %v12685_v57, %v12684_v20  ;;  %v12694_v16 = vld [vmem:[#allocation144_spill] sm:$0xff]  ;;  %v12695_v56 = vld [vmem:[#allocation66_spill] sm:$0xff] }
 0x1b5   : > { %v1487_v13 = vadd.f32 %v1479_v62, %v1461_v9  ;;  %v2053_v19 = vadd.f32 %v2045_v53, %v2027_v50  ;;  %v3129_v40 = vadd.f32 %v3121_v54, %v3103_v0  ;;  %v3199_v11 = vmul.f32 %v12686_v60, %v9164_v59  ;;  %v9256_v9 = vld [vmem:[#allocation2 + $0xd0] sm:$0xff]  ;;  %v12689_v59 = vld [vmem:[#allocation119_spill] sm:$0xff] }
 0x1b6   : > { %5983 = vmatprep.mubr.msk.f32.mxu0 %vm400_vm0, %v1529_v5  ;;  %6032 = vmatprep.mubr.msk.f32.mxu1 %vm400_vm0, %v2095_v43  ;;  %v1505_v30 = vmul.f32 %v12667_v2, %v1496_v18  ;;  %v2071_v58 = vmul.f32 %v12668_v10, %v1496_v18  ;;  %v2250_v55 = vmul.f32 %v12688_v39, %v9238_v1  ;;  %v3223_v50 = vmax.f32 %v12689_v59, 0.0  ;;  %v6440_v2 = vld [vmem:[#allocation2 + $0x90] sm:$0xff] }
 0x1b7   : > { %1654 = vmatmul.mubr.f32.gmra.mxu0 %v1528_v28  ;;  %2220 = vmatmul.mubr.f32.gmra.mxu1 %v2094_v49  ;;  %v3155_v12 = vadd.f32 %v3147_v17, %v3129_v40  ;;  %v2268_v38 = vmul.f32 %v12690_v7, %v9245_v29  ;;  %v2294_v10 = vmul.f32 %v6440_v2, %v12691_v34  ;;  %v9270_v28 = vld [vmem:[#allocation2 + $0x150] sm:$0xff]  ;;  %v1530_v31 = vmax.f32 %v9234_v32, 0.0 }
 0x1b8   : > { %v1513_v26 = vadd.f32 %v1505_v30, %v1487_v13  ;;  %v2079_v15 = vadd.f32 %v2071_v58, %v2053_v19  ;;  %v9274_v23 = vadd.f32 %v12694_v16, %v9208_v27  ;;  %v2320_v41 = vmul.f32 %v12695_v56, %v9256_v9  ;;  %v2389_v62 = vld [vmem:[#allocation2 + $0x190] sm:$0xff]  ;;  %v12697_v19 = vld [vmem:[#allocation117_spill] sm:$0xff] }
 0x1b9   : > { %v3181_v8 = vadd.f32 %v3173_v6, %v3155_v12  ;;  %v2276_v54 = vadd.f32 %v2268_v38, %v2250_v55  ;;  %v9278_v53 = vld [vmem:[#allocation2 + $0x1d0] sm:$0xff]  ;;  %v2096_v17 = vmax.f32 %v9241_v36, 0.0  ;;  %v12699_v58 = vld [vmem:[#allocation121_spill] sm:$0xff]  ;;  %v12701_v38 = vld [vmem:[#allocation124_spill] sm:$0xff]  ;;  %v2816_v21 = vmul.f32 %v12704_v42, %v9238_v1 }
 0x1ba   : > { %v1523_v49 = vadd.f32 %v12669_v3, %v1513_v26  ;;  %v2089_v0 = vadd.f32 %v12670_v35, %v2079_v15  ;;  %v9284_v5 = vld [vmem:[#allocation2 + $0x210] sm:$0xff]  ;;  %v2372_v3 = vmul.f32 %v12697_v19, %v9270_v28  ;;  %v2424_v55 = vmul.f32 %v12699_v58, %v9278_v53  ;;  %v12702_v26 = vld [vmem:[#allocation125_spill] sm:$0xff] }
 0x1bb   : > { %v9286_v27 = vld [vmem:[#allocation2 + $0x250] sm:$0xff]  ;;  %v3207_v20 = vadd.f32 %v3199_v11, %v3181_v8  ;;  %v2302_v6 = vadd.f32 %v2294_v10, %v2276_v54  ;;  %v2834_v16 = vmul.f32 %v12705_v51, %v9245_v29  ;;  %v9336_v56 = vstv %s9258_s18  ;;  %s10303_s18 = sld [smem:[#allocation5 + $0x28e]] }
 0x1bc   : > { %v9288_v43 = vld [vmem:[#allocation2 + $0x290] sm:$0xff]  ;;  %v1531_v35 = vmax.f32 %v1523_v49, 0.0  ;;  %v2097_v32 = vmax.f32 %v2089_v0, 0.0  ;;  %v9309_v10 = vmul.f32 %v12701_v38, %v9286_v27  ;;  %12706 = vst [vmem:[#allocation123_spill] sm:$0xff] %v9336_v56  ;;  %v9343_v38 = vstv %s9264_s28  ;;  %s10319_s28 = sld [smem:[#allocation5 + $0x28f]] }
 0x1bd   : > { %v12696_v13 = vld [vmem:[#allocation114_spill] sm:$0xff]  ;;  %v2328_v11 = vadd.f32 %v2320_v41, %v2302_v6  ;;  %v9313_v15 = vmul.f32 %v12702_v26, %v9288_v43  ;;  %12709 = vst [vmem:[#allocation135_spill] sm:$0xff] %v9343_v38  ;;  %v12710_v1 = vmax.f32 %v12687_v45, 0.0  ;;  %v2659_v29 = vmax.f32 %v9274_v23, 0.0  ;;  %v6164_v45 = vld [vmem:[%s12553_s25 + $0x3d8] sm:$0xff] }
 0x1be   : > { %v2346_v18 = vmul.f32 %v12696_v13, %v9268_v44  ;;  %v9294_v40 = vld [vmem:[#allocation2 + $0x2d0] sm:$0xff]  ;;  %5984 = vmatprep.mubr.msk.f32.mxu0 %vm400_vm0, %v1531_v35  ;;  %6033 = vmatprep.mubr.msk.f32.mxu1 %vm400_vm0, %v2097_v32  ;;  %v12707_v35 = vld [vmem:[#allocation113_spill] sm:$0xff]  ;;  %v12713_v23 = vld [vmem:[#allocation131_spill] sm:$0xff]  ;;  %v2912_v56 = vmul.f32 %v12672_v4, %v9268_v44 }
 0x1bf   : > { %v12698_v36 = vld [vmem:[#allocation118_spill] sm:$0xff]  ;;  %1659 = vmatmul.mubr.f32.gmra.mxu0 %v1530_v31  ;;  %2225 = vmatmul.mubr.f32.gmra.mxu1 %v2096_v17  ;;  %v3217_v32 = vadd.f32 %v12707_v35, %v3207_v20  ;;  %v12711_v31 = vld [vmem:[#allocation128_spill] sm:$0xff]  ;;  %v2842_v20 = vadd.f32 %v2834_v16, %v2816_v21  ;;  %v9387_v35 = vld [vmem:[#allocation2 + $0x68] sm:$0xff] }
 0x1c0   : > { %v2398_v30 = vmul.f32 %v12698_v36, %v2389_v62  ;;  %v12700_v59 = vld [vmem:[#allocation122_spill] sm:$0xff]  ;;  %v2354_v34 = vadd.f32 %v2346_v18, %v2328_v11  ;;  %6079 = vmatprep.mubr.msk.f32.mxu0 %vm400_vm0, %v12710_v1  ;;  %6128 = vmatprep.mubr.msk.f32.mxu1 %vm400_vm0, %v3223_v50  ;;  %v12712_v18 = vld [vmem:[#allocation67_spill] sm:$0xff]  ;;  %v12714_v21 = vld [vmem:[#allocation140_spill] sm:$0xff] }
 0x1c1   : > { %v9305_v12 = vmul.f32 %v12700_v59, %v9284_v5  ;;  %v9315_v8 = vld [vmem:[#allocation2 + $0x310] sm:$0xff] }
 0x1c2   : > { %v12703_v54 = vld [vmem:[#allocation126_spill] sm:$0xff]  ;;  %v9354_v17 = vmul.f32 %v12711_v31, %v9315_v8  ;;  %v2380_v11 = vadd.f32 %v2372_v3, %v2354_v34  ;;  %v2938_v34 = vmul.f32 %v12674_v25, %v9270_v28  ;;  %v2964_v3 = vmul.f32 %v12636_v24, %v2389_v62 }
 0x1c3   : > { %v9323_v41 = vmul.f32 %v12703_v54, %v9294_v40  ;;  %v9325_v49 = vld [vmem:[#allocation2 + $0x350] sm:$0xff]  ;;  %v12708_v54 = vld [vmem:[#allocation73_spill] sm:$0xff]  ;;  %v9397_v28 = vmul.f32 %v12676_v33, %v9278_v53  ;;  %v9401_v62 = vmul.f32 %v12677_v47, %v9284_v5  ;;  %v9415_v53 = vmul.f32 %v12679_v22, %v9288_v43 }
 0x1c4   : > { %v9327_v0 = vld [vmem:[#allocation2 + $0x390] sm:$0xff]  ;;  %v2860_v26 = vmul.f32 %v6440_v2, %v12708_v54  ;;  %v2886_v2 = vmul.f32 %v12712_v18, %v9256_v9  ;;  %v9368_v1 = vmul.f32 %v12713_v23, %v9325_v49  ;;  %v9385_v18 = vld [vmem:[#allocation2 + $0x28] sm:$0xff]  ;;  %v12715_v54 = vmax.f32 %v12692_v52, 0.0 }
 0x1c5   : > { %v9329_v6 = vld [vmem:[#allocation2 + $0x3d0] sm:$0xff]  ;;  %v9372_v16 = vmul.f32 %v12714_v21, %v9327_v0  ;;  %v2406_v44 = vadd.f32 %v2398_v30, %v2380_v11  ;;  %v9418_v5 = vstv %s9296_s15  ;;  %v6211_v11 = vld [vmem:[%s12553_s25 + $0x4a0] sm:$0xff]  ;;  %s10156_s15 = sld [smem:[#allocation5 + $0x285]] }
 0x1c6   : > { %v6213_v50 = vld [vmem:[%s12553_s25 + $0x4b0] sm:$0xff]  ;;  %v9376_v9 = vmul.f32 %v12529_v46, %v9329_v6  ;;  %v2868_v38 = vadd.f32 %v2860_v26, %v2842_v20  ;;  %2776 = vmatmul.mubr.f32.vlgmr.msra.gmra.mxu0 %v12715_v54  ;;  %v12716_v26 = vmax.f32 %v12693_v48, 0.0  ;;  %v3225_v20 = vmax.f32 %v3217_v32, 0.0  ;;  %v6212_v48 = vld [vmem:[%s12553_s25 + $0x4a8] sm:$0xff]  ;;  %12717 = vst [vmem:[#allocation52_spill] sm:$0xff] %v9418_v5 }
 0x1c7   : > { %3844 = vmatpush1.msra.mxu0 %v6164_v45  ;;  %v6163_v52 = vld [vmem:[%s12553_s25 + $0x3d0] sm:$0xff]  ;;  %v9411_v54 = vmul.f32 %v12678_v14, %v9286_v27  ;;  %6080 = vmatprep.mubr.msk.f32.mxu0 %vm400_vm0, %v2659_v29  ;;  %v2432_v32 = vadd.f32 %v2424_v55, %v2406_v44  ;;  %v2253_v45 = vmul.f32 %v12688_v39, %v9385_v18  ;;  %v9427_v27 = vstv %s9301_s8  ;;  %v9455_v44 = vld [vmem:[#allocation2 + $0x168] sm:$0xff]  ;;  %s11338_s8 = sld [smem:[#allocation5 + $0x30f]] }
 0x1c8   : > { %3342 = vmatmul.mubr.f32.vlgmr.msra.gmra.mxu1 %v12716_v26  ;;  %v2894_v30 = vadd.f32 %v2886_v2, %v2868_v38  ;;  %v2271_v38 = vmul.f32 %v12690_v7, %v9387_v35  ;;  %12718 = vst [vmem:[#allocation85_spill] sm:$0xff] %v9427_v27  ;;  %v12719_v2 = vmov 0.0   ;;  %v9433_v29 = vmul.f32 %v12680_v63, %v9294_v40  ;;  %v9445_v26 = vld [vmem:[#allocation2 + $0x128] sm:$0xff] }
 0x1c9   : > { %4410 = vmatpush1.msra.mxu1 %v6213_v50  ;;  %6129 = vmatprep.mubr.msk.f32.mxu1 %vm400_vm0, %v3225_v20  ;;  %v9437_v55 = vmul.f32 %v12681_v61, %v9315_v8  ;;  %v6162_v50 = vld [vmem:[%s12553_s25 + $0x3c8] sm:$0xff]  ;;  %v2458_v40 = vadd.f32 %v9305_v12, %v2432_v32  ;;  %v9453_v8 = vmul.f32 %v12683_v37, %v9325_v49  ;;  %v9473_v32 = vstv %s9345_s5 }
 0x1ca   : > { %3845 = vmatprep.subr.mxu0 %v12719_v2  ;;  %4411 = vmatprep.subr.mxu1 %v12719_v2  ;;  %v2920_v43 = vadd.f32 %v2912_v56, %v2894_v30  ;;  %v9448_v56 = vstv %s9317_s26  ;;  %v2279_v20 = vadd.f32 %v2271_v38, %v2253_v45  ;;  %v9458_v30 = vstv %s9338_s3  ;;  %v2392_v49 = vld [vmem:[#allocation2 + $0x1a8] sm:$0xff]  ;;  %12724 = vst [vmem:[#allocation148_spill] sm:$0xff] %v9473_v32  ;;  %s10169_s3 = sld [smem:[#allocation5 + $0x287]] }
 0x1cb   : > { %12720 = vst [vmem:[#allocation97_spill] sm:$0xff] %v9448_v56  ;;  %3846 = vmatpush1.msra.mxu0 %v6163_v52  ;;  %4412 = vmatpush1.msra.mxu1 %v6212_v48  ;;  %12721 = vst [vmem:[#allocation139_spill] sm:$0xff] %v9458_v30  ;;  %v9464_v52 = vmul.f32 %v12685_v57, %v9327_v0  ;;  %v9468_v12 = vmul.f32 %v12686_v60, %v9329_v6  ;;  %v9470_v48 = vld [vmem:[#allocation2 + $0x1e8] sm:$0xff]  ;;  %v6161_v6 = vld [vmem:[%s12553_s25 + $0x3c0] sm:$0xff]  ;;  %v9483_v30 = vstv %s9358_s29  ;;  %s11206_s29 = sld [smem:[#allocation5 + $0x307]] }
 0x1cc   : > { %3847 = vmatprep.subr.mxu0 %v12719_v2  ;;  %4413 = vmatprep.subr.mxu1 %v12719_v2  ;;  %v2946_v27 = vadd.f32 %v2938_v34, %v2920_v43  ;;  %v2484_v45 = vadd.f32 %v9309_v10, %v2458_v40  ;;  %v12725_v34 = vld [vmem:[#allocation57_spill] sm:$0xff]  ;;  %v2349_v0 = vmul.f32 %v12696_v13, %v9445_v26  ;;  %v9499_v40 = vstv %s9389_s1  ;;  %s11350_s26 = sld [smem:[#allocation5 + $0x387]] }
 0x1cd   : > { %12722 = vst [vmem:[#allocation54_spill] sm:$0xff] %v9464_v52  ;;  %12723 = vst [vmem:[#allocation56_spill] sm:$0xff] %v9468_v12  ;;  %3848 = vmatpush1.msra.mxu0 %v6162_v50  ;;  %4414 = vmatpush1.msra.mxu1 %v6211_v11  ;;  %v2305_v38 = vadd.f32 %v12725_v34, %v2279_v20  ;;  %v2444_v43 = vld [vmem:[#allocation2 + $0x228] sm:$0xff]  ;;  %v2375_v32 = vmul.f32 %v12697_v19, %v9455_v44  ;;  %v6210_v50 = vld [vmem:[%s12553_s25 + $0x498] sm:$0xff]  ;;  %v9496_v11 = vstv %s9378_s2 }
 0x1ce   : > { %12726 = vst [vmem:[#allocation143_spill] sm:$0xff] %v9483_v30  ;;  %v2972_v56 = vadd.f32 %v2964_v3, %v2946_v27  ;;  %v9487_v5 = vld [vmem:[#allocation2 + $0x268] sm:$0xff]  ;;  %3849 = vmatprep.subr.mxu0 %v12719_v2  ;;  %12727 = vst [vmem:[#allocation47_spill] sm:$0xff] %v9496_v11  ;;  %v2510_v20 = vadd.f32 %v9313_v15, %v2484_v45  ;;  %v12729_v3 = vld [vmem:[#allocation30_spill] sm:$0xff]  ;;  %v2401_v34 = vmul.f32 %v12698_v36, %v2392_v49 }
 0x1cf   : > { %v9489_v10 = vld [vmem:[#allocation2 + $0x2a8] sm:$0xff]  ;;  %12728 = vst [vmem:[#allocation147_spill] sm:$0xff] %v9499_v40  ;;  %v2331_v27 = vadd.f32 %v12729_v3, %v2305_v38  ;;  %v2427_v30 = vmul.f32 %v12699_v58, %v9470_v48  ;;  %4415 = vmatprep.subr.mxu1 %v12719_v2  ;;  %v2453_v11 = vmul.f32 %v12700_v59, %v2444_v43  ;;  %v12730_v36 = vld [vmem:[#allocation124_spill] sm:$0xff]  ;;  %1102 = vst.msk [vmem:[#allocation3] sm:$0xff] %vm1101_vm5, %v12719_v2 }
 0x1d0   : > { %v9506_v12 = vld [vmem:[#allocation2 + $0x2e8] sm:$0xff]  ;;  %v2998_v57 = vadd.f32 %v9397_v28, %v2972_v56  ;;  %v2819_v45 = vmul.f32 %v12704_v42, %v9385_v18  ;;  %v2837_v38 = vmul.f32 %v12705_v51, %v9387_v35  ;;  %3850 = vmatpush1.msra.mxu0 %v6161_v6  ;;  %v2536_v3 = vadd.f32 %v9323_v41, %v2510_v20  ;;  %v6160_v18 = vld [vmem:[%s12553_s25 + $0x3b8] sm:$0xff]  ;;  %v12732_v6 = vld [vmem:[#allocation126_spill] sm:$0xff] }
 0x1d1   : > { %v9508_v60 = vld [vmem:[#allocation2 + $0x328] sm:$0xff]  ;;  %v2357_v58 = vadd.f32 %v2349_v0, %v2331_v27  ;;  %v2479_v52 = vmul.f32 %v12730_v36, %v9487_v5  ;;  %4416 = vmatpush1.msra.mxu1 %v6210_v50  ;;  %v9536_v41 = vmul.f32 %v12732_v6, %v9506_v12  ;;  %3851 = vmatprep.subr.mxu0 %v12719_v2  ;;  %v6209_v50 = vld [vmem:[%s12553_s25 + $0x490] sm:$0xff] }
 0x1d2   : > { %v9513_v40 = vld [vmem:[#allocation2 + $0x368] sm:$0xff]  ;;  %v3024_v35 = vadd.f32 %v9401_v62, %v2998_v57  ;;  %v9540_v0 = vmul.f32 %v12711_v31, %v9508_v60  ;;  %v2845_v20 = vadd.f32 %v2837_v38, %v2819_v45  ;;  %v2562_v27 = vadd.f32 %v9354_v17, %v2536_v3  ;;  %4417 = vmatprep.subr.mxu1 %v12719_v2  ;;  %v12734_v31 = vld [vmem:[#allocation58_spill] sm:$0xff]  ;;  %v9564_v17 = vld [vmem:[#allocation2 + $0x20] sm:$0xff] }
 0x1d3   : > { %v9515_v15 = vld [vmem:[#allocation2 + $0x3a8] sm:$0xff]  ;;  %v9549_v57 = vmul.f32 %v12713_v23, %v9513_v40  ;;  %3852 = vmatpush1.msra.mxu0 %v6160_v18  ;;  %4418 = vmatpush1.msra.mxu1 %v6209_v50  ;;  %v2993_v18 = vmul.f32 %v12676_v33, %v9470_v48  ;;  %v9597_v50 = vmul.f32 %v12678_v14, %v9487_v5 }
 0x1d4   : > { %v12731_v28 = vld [vmem:[#allocation125_spill] sm:$0xff]  ;;  %v9553_v62 = vmul.f32 %v12714_v21, %v9515_v15  ;;  %v3050_v45 = vadd.f32 %v9411_v54, %v3024_v35  ;;  %v2871_v6 = vadd.f32 %v12734_v31, %v2845_v20  ;;  %v2588_v3 = vadd.f32 %v9368_v1, %v2562_v27  ;;  %v6159_v31 = vld [vmem:[%s12553_s25 + $0x3b0] sm:$0xff]  ;;  %3853 = vmatprep.subr.mxu0 %v12719_v2  ;;  %v6441_v27 = vld [vmem:[#allocation2 + $0xa0] sm:$0xff] }
 0x1d5   : > { %v9526_v56 = vmul.f32 %v12731_v28, %v9489_v10  ;;  %v9528_v59 = vld [vmem:[#allocation2 + $0x3e8] sm:$0xff]  ;;  %v2383_v28 = vadd.f32 %v2375_v32, %v2357_v58  ;;  %v2915_v58 = vmul.f32 %v12672_v4, %v9445_v26  ;;  %v9566_v32 = vld [vmem:[#allocation2 + $0x60] sm:$0xff]  ;;  %v2941_v54 = vmul.f32 %v12674_v25, %v9455_v44  ;;  %4419 = vmatprep.subr.mxu1 %v12719_v2 }
 0x1d6   : > { %v9559_v38 = vmul.f32 %v12529_v46, %v9528_v59  ;;  %v2967_v35 = vmul.f32 %v12636_v24, %v2392_v49  ;;  %v3076_v26 = vadd.f32 %v9415_v53, %v3050_v45  ;;  %v12735_v20 = vld [vmem:[#allocation145_spill] sm:$0xff]  ;;  %v9580_v1 = vmul.f32 %v12677_v47, %v2444_v43  ;;  %v12736_v45 = vld [vmem:[#allocation72_spill] sm:$0xff]  ;;  %3854 = vmatpush1.msra.mxu0 %v6159_v31 }
 0x1d7   : > { %v2409_v21 = vadd.f32 %v2401_v34, %v2383_v28  ;;  %v9582_v34 = vld [vmem:[#allocation2 + $0xe0] sm:$0xff]  ;;  %v6208_v44 = vld [vmem:[%s12553_s25 + $0x488] sm:$0xff]  ;;  %v2614_v49 = vadd.f32 %v9372_v16, %v2588_v3  ;;  %v2252_v53 = vmul.f32 %v12688_v39, %v9564_v17  ;;  %v2270_v48 = vmul.f32 %v12690_v7, %v9566_v32  ;;  %v12737_v7 = vld [vmem:[#allocation66_spill] sm:$0xff]  ;;  %3855 = vmatprep.subr.mxu0 %v12719_v2 }
 0x1d8   : > { %12733 = vst [vmem:[#allocation149_spill] sm:$0xff] %v9559_v38  ;;  %v2897_v38 = vadd.f32 %v12735_v20, %v2871_v6  ;;  %v3102_v43 = vadd.f32 %v9433_v29, %v3076_v26  ;;  %v2296_v20 = vmul.f32 %v6441_v27, %v12736_v45  ;;  %v9600_v16 = vld [vmem:[#allocation2 + $0x120] sm:$0xff]  ;;  %v2322_v39 = vmul.f32 %v12737_v7, %v9582_v34  ;;  %v6158_v29 = vld [vmem:[%s12553_s25 + $0x3a8] sm:$0xff]  ;;  %v12745_v7 = vld [vmem:[#allocation122_spill] sm:$0xff] }
 0x1d9   : > { %v2435_v28 = vadd.f32 %v2427_v30, %v2409_v21  ;;  %v2640_v21 = vadd.f32 %v9376_v9, %v2614_v49  ;;  %v2278_v3 = vadd.f32 %v2270_v48, %v2252_v53  ;;  %4420 = vmatpush1.msra.mxu1 %v6208_v44  ;;  %v9615_v9 = vmul.f32 %v12680_v63, %v9506_v12  ;;  %v6207_v31 = vld [vmem:[%s12553_s25 + $0x480] sm:$0xff] }
 0x1da   : > { %v2923_v6 = vadd.f32 %v2915_v58, %v2897_v38  ;;  %v3128_v5 = vadd.f32 %v9437_v55, %v3102_v43  ;;  %v9611_v58 = vmul.f32 %v12679_v22, %v9489_v10  ;;  %v12738_v26 = vld [vmem:[#allocation144_spill] sm:$0xff]  ;;  %v2348_v10 = vmul.f32 %v12696_v13, %v9600_v16  ;;  %4421 = vmatprep.subr.mxu1 %v12719_v2 }
 0x1db   : > { %v2461_v30 = vadd.f32 %v2453_v11, %v2435_v28  ;;  %v9617_v11 = vld [vmem:[#allocation2 + $0x160] sm:$0xff]  ;;  %v2650_v44 = vadd.f32 %v12738_v26, %v2640_v21  ;;  %v9630_v28 = vmul.f32 %v12681_v61, %v9508_v60  ;;  %v9634_v53 = vmul.f32 %v12683_v37, %v9513_v40  ;;  %3856 = vmatpush1.msra.mxu0 %v6158_v29  ;;  %v12739_v40 = vld [vmem:[#allocation54_spill] sm:$0xff] }
 0x1dc   : > { %v2949_v38 = vadd.f32 %v2941_v54, %v2923_v6  ;;  %v2304_v54 = vadd.f32 %v2296_v20, %v2278_v3  ;;  %v3154_v12 = vadd.f32 %v9453_v8, %v3128_v5  ;;  %v9636_v48 = vld [vmem:[#allocation2 + $0x1a0] sm:$0xff]  ;;  %v2374_v8 = vmul.f32 %v12697_v19, %v9617_v11  ;;  %4422 = vmatpush1.msra.mxu1 %v6207_v31  ;;  %v12740_v3 = vld [vmem:[#allocation36_spill] sm:$0xff]  ;;  %v6206_v5 = vld [vmem:[%s12553_s25 + $0x478] sm:$0xff] }
 0x1dd   : > { %v2487_v55 = vadd.f32 %v2479_v52, %v2461_v30  ;;  %v9638_v52 = vld [vmem:[#allocation2 + $0x1e0] sm:$0xff]  ;;  %v2658_v43 = vmax.f32 %v2650_v44, 0.0  ;;  %3857 = vmatprep.subr.mxu0 %v12719_v2  ;;  %v9652_v29 = vmul.f32 %v12740_v3, %v9515_v15  ;;  %4423 = vmatprep.subr.mxu1 %v12719_v2  ;;  %v12743_v15 = vld [vmem:[#allocation121_spill] sm:$0xff]  ;;  %1103 = vst.msk [vmem:[#allocation3 + $0x8] sm:$0xff] %vm1101_vm5, %v12719_v2  ;;  %1104 = vst.msk [vmem:[#allocation3 + $0x10] sm:$0xff] %vm1101_vm5, %v12719_v2 }
 0x1de   : > { %v2975_v49 = vadd.f32 %v2967_v35, %v2949_v38  ;;  %v2330_v20 = vadd.f32 %v2322_v39, %v2304_v54  ;;  %v9643_v35 = vld [vmem:[#allocation2 + $0x220] sm:$0xff]  ;;  %v3180_v21 = vadd.f32 %v12739_v40, %v3154_v12  ;;  %v12741_v39 = vld [vmem:[#allocation81_spill] sm:$0xff]  ;;  %4424 = vmatpush1.msra.mxu1 %v6206_v5  ;;  %1105 = vst.msk [vmem:[#allocation3 + $0x18] sm:$0xff] %vm1101_vm5, %v12719_v2 }
 0x1df   : > { %v2513_v6 = vadd.f32 %v9526_v56, %v2487_v55  ;;  %v6157_v60 = vld [vmem:[%s12553_s25 + $0x3a0] sm:$0xff]  ;;  %v9656_v56 = vmul.f32 %v12741_v39, %v9528_v59  ;;  %2781 = vmatmul.mubr.f32.gmra.mxu0 %v2658_v43  ;;  %v2426_v55 = vmul.f32 %v12743_v15, %v9638_v52  ;;  %v2452_v43 = vmul.f32 %v12745_v7, %v9643_v35 }
 0x1e0   : > { %v3001_v30 = vadd.f32 %v2993_v18, %v2975_v49  ;;  %v2356_v31 = vadd.f32 %v2348_v10, %v2330_v20  ;;  %v12742_v18 = vld [vmem:[#allocation118_spill] sm:$0xff]  ;;  %v9667_v54 = vld [vmem:[#allocation2 + $0x260] sm:$0xff]  ;;  %3858 = vmatpush1.msra.mxu0 %v6157_v60  ;;  %v2836_v15 = vmul.f32 %v12705_v51, %v9566_v32  ;;  %v12747_v60 = vld [vmem:[#allocation113_spill] sm:$0xff]  ;;  %4425 = vmatprep.subr.mxu1 %v12719_v2 }
 0x1e1   : > { %v2539_v38 = vadd.f32 %v9536_v41, %v2513_v6  ;;  %v2400_v44 = vmul.f32 %v12742_v18, %v9636_v48  ;;  %v9669_v59 = vld [vmem:[#allocation2 + $0x2a0] sm:$0xff]  ;;  %v2818_v41 = vmul.f32 %v12704_v42, %v9564_v17  ;;  %v6205_v17 = vld [vmem:[%s12553_s25 + $0x470] sm:$0xff]  ;;  %v12748_v32 = vld [vmem:[#allocation125_spill] sm:$0xff]  ;;  %3859 = vmatprep.subr.mxu0 %v12719_v2 }
 0x1e2   : > { %v12744_v12 = vld [vmem:[#allocation56_spill] sm:$0xff]  ;;  %v3027_v40 = vadd.f32 %v9580_v1, %v3001_v30  ;;  %v2382_v6 = vadd.f32 %v2374_v8, %v2356_v31  ;;  %v6156_v1 = vld [vmem:[%s12553_s25 + $0x398] sm:$0xff]  ;;  %v2478_v8 = vmul.f32 %v12730_v36, %v9667_v54  ;;  %4426 = vmatpush1.msra.mxu1 %v6205_v17 }
 0x1e3   : > { %v3206_v49 = vadd.f32 %v12744_v12, %v3180_v21  ;;  %v9675_v45 = vld [vmem:[#allocation2 + $0x2e0] sm:$0xff]  ;;  %v2565_v10 = vadd.f32 %v9540_v0, %v2539_v38  ;;  %v12746_v21 = vld [vmem:[#allocation73_spill] sm:$0xff]  ;;  %v2504_v38 = vmul.f32 %v12748_v32, %v9669_v59  ;;  %v2844_v42 = vadd.f32 %v2836_v15, %v2818_v41  ;;  %v12750_v32 = vld [vmem:[#allocation126_spill] sm:$0xff]  ;;  %3860 = vmatpush1.msra.mxu0 %v6156_v1 }
 0x1e4   : > { %v9680_v20 = vld [vmem:[#allocation2 + $0x320] sm:$0xff]  ;;  %v2862_v12 = vmul.f32 %v6441_v27, %v12746_v21  ;;  %v3053_v0 = vadd.f32 %v9597_v50, %v3027_v40  ;;  %v2408_v5 = vadd.f32 %v2400_v44, %v2382_v6  ;;  %v2530_v7 = vmul.f32 %v12750_v32, %v9675_v45  ;;  %3861 = vmatprep.subr.mxu0 %v12719_v2 }
 0x1e5   : > { %v3216_v30 = vadd.f32 %v12747_v60, %v3206_v49  ;;  %v2591_v27 = vadd.f32 %v9549_v57, %v2565_v10  ;;  %v2573_v31 = vld [vmem:[#allocation2 + $0x360] sm:$0xff]  ;;  %v12749_v49 = vld [vmem:[#allocation67_spill] sm:$0xff]  ;;  %4427 = vmatprep.subr.mxu1 %v12719_v2 }
 0x1e6   : > { %v9699_v21 = vld [vmem:[#allocation2 + $0x3a0] sm:$0xff]  ;;  %v2888_v50 = vmul.f32 %v12749_v49, %v9582_v34  ;;  %v3079_v36 = vadd.f32 %v9611_v58, %v3053_v0  ;;  %v2434_v15 = vadd.f32 %v2426_v55, %v2408_v5  ;;  %v2870_v41 = vadd.f32 %v2862_v12, %v2844_v42  ;;  %v6155_v58 = vld [vmem:[%s12553_s25 + $0x390] sm:$0xff]  ;;  %v6204_v55 = vld [vmem:[%s12553_s25 + $0x468] sm:$0xff] }
 0x1e7   : > { %v9701_v51 = vld [vmem:[#allocation2 + $0x3e0] sm:$0xff]  ;;  %v3224_v40 = vmax.f32 %v3216_v30, 0.0  ;;  %v2617_v10 = vadd.f32 %v9553_v62, %v2591_v27  ;;  %v2914_v34 = vmul.f32 %v12672_v4, %v9600_v16  ;;  %v9722_v30 = vmul.f32 %v12713_v23, %v2573_v31  ;;  %v9732_v16 = vld [vmem:[#allocation2 + $0x38] sm:$0xff]  ;;  %v12753_v12 = vld [vmem:[#allocation149_spill] sm:$0xff]  ;;  %3862 = vmatpush1.msra.mxu0 %v6155_v58  ;;  %4428 = vmatpush1.msra.mxu1 %v6204_v55 }
 0x1e8   : > { %v12751_v57 = vld [vmem:[#allocation128_spill] sm:$0xff]  ;;  %v3105_v6 = vadd.f32 %v9615_v9, %v3079_v36  ;;  %v9730_v42 = vmul.f32 %v12529_v46, %v9701_v51  ;;  %v2460_v36 = vadd.f32 %v2452_v43, %v2434_v15  ;;  %v2896_v9 = vadd.f32 %v2888_v50, %v2870_v41  ;;  %v9740_v27 = vld [vmem:[#allocation2 + $0x78] sm:$0xff]  ;;  %3863 = vmatprep.subr.mxu0 %v12719_v2 }
 0x1e9   : > { %v9711_v44 = vmul.f32 %v12751_v57, %v9680_v20  ;;  %3347 = vmatmul.mubr.f32.gmra.mxu1 %v3224_v40  ;;  %v12752_v1 = vld [vmem:[#allocation140_spill] sm:$0xff]  ;;  %v2643_v17 = vadd.f32 %v12753_v12, %v2617_v10  ;;  %v2940_v0 = vmul.f32 %v12674_v25, %v9617_v11  ;;  %v2966_v40 = vmul.f32 %v12636_v24, %v9636_v48  ;;  %v6154_v11 = vld [vmem:[%s12553_s25 + $0x388] sm:$0xff] }
 0x1ea   : > { %v9726_v62 = vmul.f32 %v12752_v1, %v9699_v21  ;;  %v3131_v5 = vadd.f32 %v9630_v28, %v3105_v6  ;;  %v2992_v49 = vmul.f32 %v12676_v33, %v9638_v52  ;;  %v3018_v10 = vmul.f32 %v12677_v47, %v9643_v35  ;;  %v12754_v28 = vld [vmem:[#allocation15_spill] sm:$0xff]  ;;  %4429 = vmatprep.subr.mxu1 %v12719_v2 }
 0x1eb   : > { %v2653_v43 = vadd.f32 %v12738_v26, %v2643_v17  ;;  %v2486_v50 = vadd.f32 %v2478_v8, %v2460_v36  ;;  %v2922_v15 = vadd.f32 %v2914_v34, %v2896_v9  ;;  %v2255_v41 = vmul.f32 %v12754_v28, %v9732_v16  ;;  %v6203_v48 = vld [vmem:[%s12553_s25 + $0x460] sm:$0xff]  ;;  %v12755_v8 = vld [vmem:[#allocation16_spill] sm:$0xff]  ;;  %3864 = vmatpush1.msra.mxu0 %v6154_v11 }
 0x1ec   : > { %v3157_v52 = vadd.f32 %v9634_v53, %v3131_v5  ;;  %v9762_v35 = vmul.f32 %v12678_v14, %v9667_v54  ;;  %v9766_v58 = vmul.f32 %v12679_v22, %v9669_v59  ;;  %v2273_v34 = vmul.f32 %v12755_v8, %v9740_v27  ;;  %v9775_v53 = vld [vmem:[#allocation2 + $0x138] sm:$0xff]  ;;  %4430 = vmatpush1.msra.mxu1 %v6203_v48  ;;  %v6153_v11 = vld [vmem:[%s12553_s25 + $0x380] sm:$0xff] }
 0x1ed   : > { %v2661_v6 = vmax.f32 %v2653_v43, 0.0  ;;  %v2512_v55 = vadd.f32 %v2504_v38, %v2486_v50  ;;  %v2948_v12 = vadd.f32 %v2940_v0, %v2922_v15  ;;  %v9773_v17 = vmul.f32 %v12680_v63, %v9675_v45  ;;  %v9777_v54 = vld [vmem:[#allocation2 + $0x178] sm:$0xff]  ;;  %v12757_v15 = vld [vmem:[#allocation100_spill] sm:$0xff]  ;;  %3865 = vmatprep.subr.mxu0 %v12719_v2  ;;  %4431 = vmatprep.subr.mxu1 %v12719_v2 }
 0x1ee   : > { %v3183_v59 = vadd.f32 %v9652_v29, %v3157_v52  ;;  %v9783_v36 = vmul.f32 %v12681_v61, %v9680_v20  ;;  %v9786_v38 = vmul.f32 %v12683_v37, %v2573_v31  ;;  %v2281_v9 = vadd.f32 %v2273_v34, %v2255_v41  ;;  %v9788_v0 = vld [vmem:[#allocation2 + $0x1b8] sm:$0xff]  ;;  %v12758_v34 = vld [vmem:[#allocation121_spill] sm:$0xff]  ;;  %3866 = vmatpush1.msra.mxu0 %v6153_v11 }
 0x1ef   : > { %v9790_v45 = vld [vmem:[#allocation2 + $0x1f8] sm:$0xff]  ;;  %6081 = vmatprep.mubr.msk.f32.mxu0 %vm400_vm0, %v2661_v6  ;;  %v2538_v5 = vadd.f32 %v2530_v7, %v2512_v55  ;;  %v2974_v43 = vadd.f32 %v2966_v40, %v2948_v12  ;;  %v9795_v29 = vmul.f32 %v12740_v3, %v9699_v21  ;;  %v9799_v20 = vmul.f32 %v12741_v39, %v9701_v51  ;;  %v12764_v3 = vld [vmem:[#allocation125_spill] sm:$0xff] }
 0x1f0   : > { %v9801_v31 = vld [vmem:[#allocation2 + $0x238] sm:$0xff]  ;;  %v3209_v50 = vadd.f32 %v9656_v56, %v3183_v59  ;;  %v2307_v41 = vadd.f32 %v12757_v15, %v2281_v9  ;;  %v2351_v7 = vmul.f32 %v12696_v13, %v9775_v53  ;;  %v2377_v21 = vmul.f32 %v12697_v19, %v9777_v54  ;;  %v12759_v9 = vld [vmem:[#allocation82_spill] sm:$0xff]  ;;  %3867 = vmatprep.subr.mxu0 %v12719_v2 }
 0x1f1   : > { %12756 = vst [vmem:[#allocation150_spill] sm:$0xff] %v9799_v20  ;;  %v9812_v40 = vld [vmem:[#allocation2 + $0x278] sm:$0xff]  ;;  %v2564_v48 = vadd.f32 %v9711_v44, %v2538_v5  ;;  %v3000_v52 = vadd.f32 %v2992_v49, %v2974_v43  ;;  %v2403_v56 = vmul.f32 %v12742_v18, %v9788_v0  ;;  %v2429_v6 = vmul.f32 %v12758_v34, %v9790_v45  ;;  %v12760_v20 = vld [vmem:[#allocation122_spill] sm:$0xff] }
 0x1f2   : > { %v6202_v51 = vld [vmem:[%s12553_s25 + $0x458] sm:$0xff]  ;;  %v3219_v59 = vadd.f32 %v12747_v60, %v3209_v50  ;;  %v2333_v15 = vadd.f32 %v12759_v9, %v2307_v41  ;;  %v9832_v44 = vmul.f32 %v12760_v20, %v9801_v31  ;;  %v12761_v5 = vld [vmem:[#allocation17_spill] sm:$0xff]  ;;  %v12762_v50 = vld [vmem:[#allocation124_spill] sm:$0xff] }
 0x1f3   : > { %v9823_v55 = vld [vmem:[#allocation2 + $0x2b8] sm:$0xff]  ;;  %v2821_v43 = vmul.f32 %v12761_v5, %v9732_v16  ;;  %v2590_v18 = vadd.f32 %v9722_v30, %v2564_v48  ;;  %v3026_v19 = vadd.f32 %v3018_v10, %v3000_v52  ;;  %v9844_v41 = vmul.f32 %v12762_v50, %v9812_v40  ;;  %4432 = vmatpush1.msra.mxu1 %v6202_v51  ;;  %v6201_v48 = vld [vmem:[%s12553_s25 + $0x450] sm:$0xff] }
 0x1f4   : > { %v9825_v12 = vld [vmem:[#allocation2 + $0x2f8] sm:$0xff]  ;;  %v3227_v5 = vmax.f32 %v3219_v59, 0.0  ;;  %v2359_v39 = vadd.f32 %v2351_v7, %v2333_v15  ;;  %v9856_v30 = vmul.f32 %v12764_v3, %v9823_v55  ;;  %4433 = vmatprep.subr.mxu1 %v12719_v2 }
 0x1f5   : > { %v9834_v49 = vld [vmem:[#allocation2 + $0x338] sm:$0xff]  ;;  %v9860_v10 = vmul.f32 %v12750_v32, %v9825_v12  ;;  %v3052_v7 = vadd.f32 %v9762_v35, %v3026_v19  ;;  %v12766_v35 = vld [vmem:[#allocation33_spill] sm:$0xff]  ;;  %4434 = vmatpush1.msra.mxu1 %v6201_v48  ;;  %v9908_v48 = vpop.f32.mrf.mxu0 }
 0x1f6   : > { %v6152_v34 = vld [vmem:[%s12553_s25 + $0x378] sm:$0xff]  ;;  %v9871_v51 = vmul.f32 %v12751_v57, %v9834_v49  ;;  %6130 = vmatprep.mubr.msk.f32.mxu1 %vm400_vm0, %v3227_v5  ;;  %v2385_v59 = vadd.f32 %v2377_v21, %v2359_v39  ;;  %v2917_v39 = vmul.f32 %v12672_v4, %v9775_v53  ;;  %v9891_v21 = vld [vmem:[#allocation2 + $0x30] sm:$0xff]  ;;  %v6200_v53 = vld [vmem:[%s12553_s25 + $0x448] sm:$0xff]  ;;  %12767 = vst [vmem:[#allocation99_spill] sm:$0xff] %v9908_v48 }
 0x1f7   : > { %v9846_v9 = vld [vmem:[#allocation2 + $0x378] sm:$0xff]  ;;  %3868 = vmatpush1.msra.mxu0 %v6152_v34  ;;  %v9893_v5 = vld [vmem:[#allocation2 + $0x70] sm:$0xff]  ;;  %4435 = vmatprep.subr.mxu1 %v12719_v2  ;;  %v2254_v48 = vmul.f32 %v12754_v28, %v9891_v21 }
 0x1f8   : > { %v9848_v60 = vld [vmem:[#allocation2 + $0x3b8] sm:$0xff]  ;;  %v9876_v15 = vmul.f32 %v12713_v23, %v9846_v9  ;;  %3869 = vmatprep.subr.mxu0 %v12719_v2  ;;  %4436 = vmatpush1.msra.mxu1 %v6200_v53 }
 0x1f9   : > { %v9850_v20 = vld [vmem:[#allocation2 + $0x3f8] sm:$0xff]  ;;  %v9880_v32 = vmul.f32 %v12752_v1, %v9848_v60  ;;  %4437 = vmatprep.subr.mxu1 %v12719_v2 }
 0x1fa   : > { %v12763_v16 = vld [vmem:[#allocation18_spill] sm:$0xff]  ;;  %v9884_v19 = vmul.f32 %v12529_v46, %v9850_v20 }
 0x1fb   : > { %v2839_v11 = vmul.f32 %v12763_v16, %v9740_v27  ;;  %v2616_v27 = vadd.f32 %v9726_v62, %v2590_v18  ;;  %v3078_v62 = vadd.f32 %v9766_v58, %v3052_v7  ;;  %v2969_v58 = vmul.f32 %v12636_v24, %v9788_v0  ;;  %v9910_v7 = vpop.f32.mrf.mxu1 }
 0x1fc   : > { %12765 = vst [vmem:[#allocation87_spill] sm:$0xff] %v9884_v19  ;;  %12768 = vst [vmem:[#allocation157_spill] sm:$0xff] %v9910_v7  ;;  %v9917_v0 = vmul.f32 %v12677_v47, %v9801_v31  ;;  %v2272_v7 = vmul.f32 %v12755_v8, %v9893_v5  ;;  %v9930_v19 = vmul.f32 %v12678_v14, %v9812_v40 }
 0x1fd   : > { %v2847_v52 = vadd.f32 %v2839_v11, %v2821_v43  ;;  %v2642_v18 = vadd.f32 %v9730_v42, %v2616_v27  ;;  %v6151_v43 = vld [vmem:[%s12553_s25 + $0x370] sm:$0xff]  ;;  %v2411_v11 = vadd.f32 %v2403_v56, %v2385_v59  ;;  %v2943_v42 = vmul.f32 %v12674_v25, %v9777_v54 }
 0x1fe   : > { %v2995_v27 = vmul.f32 %v12676_v33, %v9790_v45  ;;  %v3104_v54 = vadd.f32 %v9773_v17, %v3078_v62  ;;  %v9919_v45 = vld [vmem:[#allocation2 + $0xf0] sm:$0xff]  ;;  %3870 = vmatpush1.msra.mxu0 %v6151_v43  ;;  %v1647_v62 = vpop.f32.mrf.mxu0  ;;  %v9941_v8 = vmul.f32 %v12679_v22, %v9823_v55  ;;  %v6199_v43 = vld [vmem:[%s12553_s25 + $0x440] sm:$0xff]  ;;  %v9956_v55 = vmul.f32 %v12681_v61, %v9834_v49 }
 0x1ff   : > { %v2873_v34 = vadd.f32 %v12766_v35, %v2847_v52  ;;  %v2652_v56 = vadd.f32 %v12738_v26, %v2642_v18  ;;  %v12769_v52 = vld [vmem:[#allocation109_spill] sm:$0xff]  ;;  %v2437_v35 = vadd.f32 %v2429_v6, %v2411_v11  ;;  %v6442_v18 = vld [vmem:[#allocation2 + $0xb0] sm:$0xff]  ;;  %v12770_v26 = vld [vmem:[#allocation72_spill] sm:$0xff]  ;;  %3871 = vmatprep.subr.mxu0 %v12719_v2  ;;  %4438 = vmatpush1.msra.mxu1 %v6199_v43 }
 0x200   : > { %v2298_v17 = vmul.f32 %v6442_v18, %v12770_v26  ;;  %v3130_v31 = vadd.f32 %v9783_v36, %v3104_v54  ;;  %v9932_v6 = vld [vmem:[#allocation2 + $0x130] sm:$0xff]  ;;  %v6150_v26 = vld [vmem:[%s12553_s25 + $0x368] sm:$0xff]  ;;  %v2280_v36 = vadd.f32 %v2272_v7, %v2254_v48  ;;  %v9965_v54 = vmul.f32 %v12683_v37, %v9846_v9  ;;  %4439 = vmatprep.subr.mxu1 %v12719_v2 }
 0x201   : > { %v2899_v59 = vadd.f32 %v12769_v52, %v2873_v34  ;;  %v2213_v34 = vpop.f32.mrf.mxu1  ;;  %v2660_v52 = vmax.f32 %v2652_v56, 0.0  ;;  %v2463_v28 = vadd.f32 %v9832_v44, %v2437_v35  ;;  %v9952_v44 = vmul.f32 %v12680_v63, %v9825_v12  ;;  %v9958_v48 = vld [vmem:[#allocation2 + $0x170] sm:$0xff]  ;;  %3872 = vmatpush1.msra.mxu0 %v6150_v26  ;;  %v12772_v35 = vld [vmem:[#allocation36_spill] sm:$0xff] }
 0x202   : > { %v3156_v11 = vadd.f32 %v9786_v38, %v3130_v31  ;;  %v9960_v7 = vld [vmem:[#allocation2 + $0x1b0] sm:$0xff]  ;;  %v2306_v38 = vadd.f32 %v2298_v17, %v2280_v36  ;;  %v9976_v62 = vmul.f32 %v12772_v35, %v9848_v60  ;;  %3873 = vmatprep.subr.mxu0 %v12719_v2 }
 0x203   : > { %v2925_v47 = vadd.f32 %v2917_v39, %v2899_v59  ;;  %v12771_v39 = vld [vmem:[#allocation66_spill] sm:$0xff]  ;;  %2786 = vmatmul.mubr.f32.gmra.mxu0 %v2660_v52  ;;  %v2489_v56 = vadd.f32 %v9844_v41, %v2463_v28  ;;  %v12773_v41 = vld [vmem:[#allocation81_spill] sm:$0xff] }
 0x204   : > { %v2324_v40 = vmul.f32 %v12771_v39, %v9919_v45  ;;  %v9969_v12 = vld [vmem:[#allocation2 + $0x1f0] sm:$0xff]  ;;  %v3182_v49 = vadd.f32 %v9795_v29, %v3156_v11  ;;  %v9980_v9 = vmul.f32 %v12773_v41, %v9850_v20  ;;  %v12774_v52 = vld [vmem:[#allocation117_spill] sm:$0xff]  ;;  %v6198_v20 = vld [vmem:[%s12553_s25 + $0x438] sm:$0xff] }
 0x205   : > { %v2951_v53 = vadd.f32 %v2943_v42, %v2925_v47  ;;  %v2350_v47 = vmul.f32 %v12696_v13, %v9932_v6  ;;  %v9971_v42 = vld [vmem:[#allocation2 + $0x230] sm:$0xff]  ;;  %v6149_v13 = vld [vmem:[%s12553_s25 + $0x360] sm:$0xff]  ;;  %v2515_v17 = vadd.f32 %v9856_v30, %v2489_v56  ;;  %v2376_v29 = vmul.f32 %v12774_v52, %v9958_v48  ;;  %v12777_v30 = vld [vmem:[#allocation121_spill] sm:$0xff]  ;;  %4440 = vmatpush1.msra.mxu1 %v6198_v20 }
 0x206   : > { %v2332_v34 = vadd.f32 %v2324_v40, %v2306_v38  ;;  %v9990_v60 = vld [vmem:[#allocation2 + $0x270] sm:$0xff]  ;;  %v2428_v39 = vmul.f32 %v12777_v30, %v9969_v12  ;;  %3874 = vmatpush1.msra.mxu0 %v6149_v13  ;;  %4451 = vmatprep.subr.mxu1 %v12719_v2 }
 0x207   : > { %v2977_v59 = vadd.f32 %v2969_v58, %v2951_v53  ;;  %v12775_v58 = vld [vmem:[#allocation118_spill] sm:$0xff]  ;;  %v2541_v11 = vadd.f32 %v9860_v10, %v2515_v17  ;;  %v12781_v17 = vld [vmem:[#allocation73_spill] sm:$0xff]  ;;  %3885 = vmatprep.subr.mxu0 %v12719_v2 }
 0x208   : > { %v2402_v31 = vmul.f32 %v12775_v58, %v9960_v7  ;;  %v12776_v26 = vld [vmem:[#allocation150_spill] sm:$0xff]  ;;  %v2358_v53 = vadd.f32 %v2350_v47, %v2332_v34  ;;  %v2480_v47 = vmul.f32 %v12762_v50, %v9990_v60  ;;  %v2864_v34 = vmul.f32 %v6442_v18, %v12781_v17 }
 0x209   : > { %v3208_v28 = vadd.f32 %v12776_v26, %v3182_v49  ;;  %v3003_v36 = vadd.f32 %v2995_v27, %v2977_v59  ;;  %v12778_v40 = vld [vmem:[#allocation122_spill] sm:$0xff]  ;;  %v2838_v27 = vmul.f32 %v12763_v16, %v9893_v5  ;;  %v12780_v59 = vld [vmem:[#allocation113_spill] sm:$0xff]  ;;  %v2567_v16 = vadd.f32 %v9871_v51, %v2541_v11 }
 0x20a   : > { %v2454_v43 = vmul.f32 %v12778_v40, %v9971_v42  ;;  %v10003_v56 = vld [vmem:[#allocation2 + $0x2b0] sm:$0xff]  ;;  %v2384_v5 = vadd.f32 %v2376_v29, %v2358_v53 }
 0x20b   : > { %v10005_v38 = vld [vmem:[#allocation2 + $0x2f0] sm:$0xff]  ;;  %v3218_v26 = vadd.f32 %v12780_v59, %v3208_v28  ;;  %v3029_v10 = vadd.f32 %v9917_v0, %v3003_v36  ;;  %v12782_v0 = vld [vmem:[#allocation67_spill] sm:$0xff]  ;;  %v2506_v20 = vmul.f32 %v12764_v3, %v10003_v56  ;;  %v2593_v11 = vadd.f32 %v9876_v15, %v2567_v16 }
 0x20c   : > { %v12779_v52 = vld [vmem:[#allocation17_spill] sm:$0xff]  ;;  %v2890_v36 = vmul.f32 %v12782_v0, %v9919_v45  ;;  %v2410_v53 = vadd.f32 %v2402_v31, %v2384_v5  ;;  %v10106_v0 = vld [vmem:[#allocation2 + $0x108] sm:$0xff] }
 0x20d   : > { %v2820_v58 = vmul.f32 %v12779_v52, %v9891_v21  ;;  %v6175_v49 = vld [vmem:[%s12553_s25 + $0x430] sm:$0x3]  ;;  %v6224_v21 = vld [vmem:[%s12553_s25 + $0x508] sm:$0x3]  ;;  %v3226_v50 = vmax.f32 %v3218_v26, 0.0  ;;  %v3055_v18 = vadd.f32 %v9930_v19, %v3029_v10  ;;  %v2916_v19 = vmul.f32 %v12672_v4, %v9932_v6 }
 0x20e   : > { %v2549_v13 = vld [vmem:[#allocation2 + $0x330] sm:$0xff]  ;;  %6176 = vmatpush2.msk.msra.mxu0 %vm1575_vm1, %v6175_v49  ;;  %6225 = vmatpush2.msk.msra.mxu1 %vm1575_vm1, %v6224_v21  ;;  %v6174_v4 = vld [vmem:[%s12553_s25 + $0x428] sm:$0xff]  ;;  %v2619_v6 = vadd.f32 %v9880_v32, %v2593_v11  ;;  %v2436_v31 = vadd.f32 %v2428_v39, %v2410_v53  ;;  %v2968_v39 = vmul.f32 %v12636_v24, %v9960_v7  ;;  %v12786_v24 = vld [vmem:[#allocation19_spill] sm:$0xff] }
 0x20f   : > { %v10023_v30 = vld [vmem:[#allocation2 + $0x370] sm:$0xff]  ;;  %v2846_v28 = vadd.f32 %v2838_v27, %v2820_v58  ;;  %3352 = vmatmul.mubr.f32.gmra.mxu1 %v3226_v50  ;;  %v3081_v3 = vadd.f32 %v9941_v8, %v3055_v18  ;;  %v10047_v58 = vmul.f32 %v12751_v57, %v2549_v13  ;;  %v2942_v57 = vmul.f32 %v12674_v25, %v9958_v48  ;;  %v10063_v8 = vld [vmem:[#allocation2 + $0x8] sm:$0xff]  ;;  %v12784_v48 = vld [vmem:[#allocation87_spill] sm:$0xff] }
 0x210   : > { %v10025_v40 = vld [vmem:[#allocation2 + $0x3b0] sm:$0xff]  ;;  %v10051_v27 = vmul.f32 %v12713_v23, %v10023_v30  ;;  %v10065_v26 = vld [vmem:[#allocation2 + $0x48] sm:$0xff]  ;;  %3887 = vmatprep.subr.mxu0 %v12719_v2  ;;  %v6223_v23 = vld [vmem:[%s12553_s25 + $0x500] sm:$0xff]  ;;  %v2994_v25 = vmul.f32 %v12676_v33, %v9969_v12  ;;  %4453 = vmatprep.subr.mxu1 %v12719_v2  ;;  %v2645_v10 = vadd.f32 %v12784_v48, %v2619_v6 }
 0x211   : > { %v12783_v51 = vld [vmem:[#allocation126_spill] sm:$0xff]  ;;  %v2872_v52 = vadd.f32 %v2864_v34, %v2846_v28  ;;  %v10055_v15 = vmul.f32 %v12752_v1, %v10025_v40  ;;  %v3107_v1 = vadd.f32 %v9952_v44, %v3081_v3  ;;  %v2462_v17 = vadd.f32 %v2454_v43, %v2436_v31  ;;  %3888 = vmatpush2.msra.mxu0 %v6174_v4  ;;  %v12787_v33 = vld [vmem:[#allocation20_spill] sm:$0xff]  ;;  %v12788_v43 = vld [vmem:[#allocation144_spill] sm:$0xff] }
 0x212   : > { %v10035_v29 = vmul.f32 %v12783_v51, %v10005_v38  ;;  %v10040_v45 = vld [vmem:[#allocation2 + $0x3f0] sm:$0xff]  ;;  %v3381_v7 = vmul.f32 %v12786_v24, %v10063_v8  ;;  %v3399_v12 = vmul.f32 %v12787_v33, %v10065_v26  ;;  %4454 = vmatpush2.msra.mxu1 %v6223_v23  ;;  %v10104_v28 = vmul.f32 %v12679_v22, %v10003_v56  ;;  %v10119_v51 = vld [vmem:[#allocation2 + $0x148] sm:$0xff]  ;;  %v12791_v3 = vld [vmem:[#allocation135_spill] sm:$0xff] }
 0x213   : > { %v2898_v49 = vadd.f32 %v2890_v36, %v2872_v52  ;;  %v10074_v32 = vmul.f32 %v12529_v46, %v10040_v45  ;;  %v12785_v21 = vld [vmem:[#allocation138_spill] sm:$0xff]  ;;  %v3133_v44 = vadd.f32 %v9956_v55, %v3107_v1  ;;  %v10087_v46 = vmul.f32 %v12678_v14, %v9990_v60  ;;  %v6222_v55 = vld [vmem:[%s12553_s25 + $0x4f8] sm:$0xff]  ;;  %3889 = vmatprep.subr.mxu0 %v12719_v2  ;;  %v10128_v52 = vld [vmem:[#allocation2 + $0x1c8] sm:$0xff] }
 0x214   : > { %v3020_v16 = vmul.f32 %v12785_v21, %v9971_v42  ;;  %v6173_v42 = vld [vmem:[%s12553_s25 + $0x420] sm:$0xff]  ;;  %v2655_v14 = vadd.f32 %v12788_v43, %v2645_v10  ;;  %v2488_v60 = vadd.f32 %v2480_v47, %v2462_v17  ;;  %v10114_v50 = vmul.f32 %v12680_v63, %v10005_v38  ;;  %4455 = vmatprep.subr.mxu1 %v12719_v2  ;;  %v12789_v38 = vld [vmem:[#allocation79_spill] sm:$0xff]  ;;  %v6221_v6 = vld [vmem:[%s12553_s25 + $0x4f0] sm:$0xff] }
 0x215   : > { %v2924_v34 = vadd.f32 %v2916_v19, %v2898_v49  ;;  %v3159_v36 = vadd.f32 %v9965_v54, %v3133_v44  ;;  %v10117_v18 = vmul.f32 %v12681_v61, %v2549_v13  ;;  %v3407_v47 = vadd.f32 %v3399_v12, %v3381_v7  ;;  %v10126_v54 = vld [vmem:[#allocation2 + $0x188] sm:$0xff]  ;;  %3890 = vmatpush2.msra.mxu0 %v6173_v42  ;;  %v6172_v19 = vld [vmem:[%s12553_s25 + $0x418] sm:$0xff]  ;;  %v12792_v49 = vld [vmem:[#allocation168_spill] sm:$0xff] }
 0x216   : > { %v2663_v22 = vmax.f32 %v2655_v14, 0.0  ;;  %v2514_v56 = vadd.f32 %v2506_v20, %v2488_v60  ;;  %v10124_v53 = vmul.f32 %v12683_v37, %v10023_v30  ;;  %4456 = vmatpush2.msra.mxu1 %v6222_v55  ;;  %v10135_v61 = vmul.f32 %v12772_v35, %v10025_v40  ;;  %v12790_v20 = vld [vmem:[#allocation123_spill] sm:$0xff]  ;;  %v10140_v30 = vld [vmem:[#allocation2 + $0x208] sm:$0xff]  ;;  %3891 = vmatprep.subr.mxu0 %v12719_v2 }
 0x217   : > { %v2950_v5 = vadd.f32 %v2942_v57, %v2924_v34  ;;  %v3185_v63 = vadd.f32 %v9976_v62, %v3159_v36  ;;  %v3433_v13 = vadd.f32 %v12789_v38, %v3407_v47  ;;  %v3477_v37 = vmul.f32 %v12790_v20, %v10106_v0  ;;  %v12794_v1 = vld [vmem:[#allocation85_spill] sm:$0xff]  ;;  %4457 = vmatprep.subr.mxu1 %v12719_v2  ;;  %v12796_v34 = vld [vmem:[#allocation21_spill] sm:$0xff]  ;;  %v12798_v42 = vld [vmem:[#allocation22_spill] sm:$0xff] }
 0x218   : > { %6082 = vmatprep.mubr.msk.f32.mxu0 %vm400_vm0, %v2663_v22  ;;  %v2540_v35 = vadd.f32 %v10035_v29, %v2514_v56  ;;  %v10152_v40 = vmul.f32 %v12773_v41, %v10040_v45  ;;  %v3503_v4 = vmul.f32 %v12791_v3, %v10119_v51  ;;  %v12793_v29 = vld [vmem:[#allocation52_spill] sm:$0xff]  ;;  %v3555_v41 = vmul.f32 %v12794_v1, %v10128_v52  ;;  %v10167_v45 = vld [vmem:[#allocation2 + $0x248] sm:$0xff]  ;;  %v6219_v38 = vld [vmem:[%s12553_s25 + $0x4e0] sm:$0xff] }
 0x219   : > { %v2976_v11 = vadd.f32 %v2968_v39, %v2950_v5  ;;  %v3211_v31 = vadd.f32 %v9980_v9, %v3185_v63  ;;  %v3459_v57 = vadd.f32 %v12792_v49, %v3433_v13  ;;  %v3529_v23 = vmul.f32 %v12793_v29, %v10126_v54  ;;  %v6171_v39 = vld [vmem:[%s12553_s25 + $0x410] sm:$0xff]  ;;  %v12795_v48 = vld [vmem:[#allocation97_spill] sm:$0xff]  ;;  %3892 = vmatpush2.msra.mxu0 %v6172_v19  ;;  %v12799_v5 = vld [vmem:[#allocation139_spill] sm:$0xff] }
 0x21a   : > { %v2566_v9 = vadd.f32 %v10047_v58, %v2540_v35  ;;  %v10178_v10 = vmul.f32 %v12795_v48, %v10140_v30  ;;  %v10180_v17 = vld [vmem:[#allocation2 + $0x288] sm:$0xff]  ;;  %v3947_v21 = vmul.f32 %v12796_v34, %v10063_v8  ;;  %v10193_v12 = vstv %s10093_s7  ;;  %4458 = vmatpush2.msra.mxu1 %v6221_v6  ;;  %3893 = vmatprep.subr.mxu0 %v12719_v2  ;;  %v12802_v19 = vld [vmem:[#allocation143_spill] sm:$0xff]  ;;  %s10263_s7 = sld [smem:[#allocation7 + $0x4]] }
 0x21b   : > { %v3002_v62 = vadd.f32 %v2994_v25, %v2976_v11  ;;  %v6220_v44 = vld [vmem:[%s12553_s25 + $0x4e8] sm:$0xff]  ;;  %v3221_v58 = vadd.f32 %v12780_v59, %v3211_v31  ;;  %12797 = vst [vmem:[#allocation63_spill] sm:$0xff] %v10193_v12  ;;  %v3965_v55 = vmul.f32 %v12798_v42, %v10065_v26  ;;  %v10207_v36 = vmul.f32 %v12799_v5, %v10167_v45  ;;  %v12804_v31 = vld [vmem:[#allocation47_spill] sm:$0xff] }
 0x21c   : > { %v10190_v7 = vld [vmem:[#allocation2 + $0x2c8] sm:$0xff]  ;;  %v2592_v14 = vadd.f32 %v10051_v27, %v2566_v9  ;;  %v10212_v26 = vstv %s10108_s16  ;;  %4459 = vmatprep.subr.mxu1 %v12719_v2  ;;  %3894 = vmatpush2.msra.mxu0 %v6171_v39  ;;  %v12801_v27 = vld [vmem:[#allocation148_spill] sm:$0xff]  ;;  %v12805_v49 = vld [vmem:[#allocation38_spill] sm:$0xff]  ;;  %s11310_s16 = sld [smem:[#allocation5 + $0x30d]] }
 0x21d   : > { %v3028_v25 = vadd.f32 %v3020_v16, %v3002_v62  ;;  %v3485_v16 = vadd.f32 %v3477_v37, %v3459_v57  ;;  %v6170_v8 = vld [vmem:[%s12553_s25 + $0x408] sm:$0xff]  ;;  %12800 = vst [vmem:[#allocation88_spill] sm:$0xff] %v10212_v26  ;;  %v3229_v22 = vmax.f32 %v3221_v58, 0.0  ;;  %v10219_v11 = vmul.f32 %v12801_v27, %v10180_v17  ;;  %4460 = vmatpush2.msra.mxu1 %v6220_v44  ;;  %v6169_v9 = vld [vmem:[%s12553_s25 + $0x400] sm:$0xff]  ;;  %v12806_v44 = vld [vmem:[#allocation147_spill] sm:$0xff] }
 0x21e   : > { %v10209_v47 = vld [vmem:[#allocation2 + $0x308] sm:$0xff]  ;;  %v3973_v63 = vadd.f32 %v3965_v55, %v3947_v21  ;;  %3895 = vmatprep.subr.mxu0 %v12719_v2  ;;  %v2618_v13 = vadd.f32 %v10055_v15, %v2592_v14  ;;  %v10231_v35 = vmul.f32 %v12802_v19, %v10190_v7  ;;  %4461 = vmatprep.subr.mxu1 %v12719_v2  ;;  %v6168_v14 = vld [vmem:[%s12553_s25 + $0x3f8] sm:$0xff] }
 0x21f   : > { %v3054_v60 = vadd.f32 %v10087_v46, %v3028_v25  ;;  %v3511_v56 = vadd.f32 %v3503_v4, %v3485_v16  ;;  %v10221_v46 = vld [vmem:[#allocation2 + $0x348] sm:$0xff]  ;;  %v10236_v4 = vstv %s10130_s14  ;;  %3896 = vmatpush2.msra.mxu0 %v6170_v8  ;;  %6131 = vmatprep.mubr.msk.f32.mxu1 %vm400_vm0, %v3229_v22  ;;  %v10242_v15 = vmul.f32 %v12804_v31, %v10209_v47 }
 0x220   : > { %v10233_v62 = vld [vmem:[#allocation2 + $0x388] sm:$0xff]  ;;  %12803 = vst [vmem:[#allocation136_spill] sm:$0xff] %v10236_v4  ;;  %v3999_v57 = vadd.f32 %v12805_v49, %v3973_v63  ;;  %v4043_v39 = vmul.f32 %v10236_v4, %v10106_v0  ;;  %v2644_v25 = vadd.f32 %v10074_v32, %v2618_v13  ;;  %v10261_v58 = vmul.f32 %v12806_v44, %v10221_v46 }
 0x221   : > { %v3080_v37 = vadd.f32 %v10104_v28, %v3054_v60  ;;  %v3537_v6 = vadd.f32 %v3529_v23, %v3511_v56  ;;  %v10244_v28 = vld [vmem:[#allocation2 + $0x3c8] sm:$0xff]  ;;  %v6218_v23 = vld [vmem:[%s12553_s25 + $0x4d8] sm:$0xff]  ;;  %v10266_v0 = vstv %s10156_s15  ;;  %4462 = vmatpush2.msra.mxu1 %v6219_v38  ;;  %3897 = vmatprep.subr.mxu0 %v12719_v2  ;;  %v10271_v55 = vmul.f32 %v10193_v12, %v10233_v62  ;;  %s11178_s15 = sld [smem:[#allocation5 + $0x306]] }
 0x222   : > { %12807 = vst [vmem:[#allocation146_spill] sm:$0xff] %v10266_v0  ;;  %v12808_v32 = vld [vmem:[#allocation169_spill] sm:$0xff]  ;;  %v4069_v8 = vmul.f32 %v10266_v0, %v10119_v51  ;;  %4463 = vmatprep.subr.mxu1 %v12719_v2  ;;  %v10286_v22 = vmul.f32 %v10212_v26, %v10244_v28  ;;  %v10289_v56 = vstv %s10169_s3  ;;  %3898 = vmatpush2.msra.mxu0 %v6169_v9  ;;  %v6217_v51 = vld [vmem:[%s12553_s25 + $0x4d0] sm:$0xff]  ;;  %v10298_v38 = vstv %s10184_s12  ;;  %s10334_s3 = sld [smem:[#allocation7 + $0x5]] }
 0x223   : > { %v3106_v21 = vadd.f32 %v10114_v50, %v3080_v37  ;;  %v3563_v16 = vadd.f32 %v3555_v41, %v3537_v6  ;;  %v4025_v50 = vadd.f32 %v12808_v32, %v3999_v57  ;;  %v2654_v41 = vadd.f32 %v12788_v43, %v2644_v25  ;;  %12809 = vst [vmem:[#allocation158_spill] sm:$0xff] %v10289_v56  ;;  %s11212_s12 = sld [smem:[#allocation5 + $0x308]] }
 0x224   : > { %4464 = vmatpush2.msra.mxu1 %v6218_v23  ;;  %12810 = vst [vmem:[#allocation166_spill] sm:$0xff] %v10298_v38  ;;  %3899 = vmatprep.subr.mxu0 %v12719_v2  ;;  %v10308_v6 = vstv %s10142_s9  ;;  %v10311_v49 = vstv %s10214_s19  ;;  %v4121_v9 = vmul.f32 %v10289_v56, %v10128_v52  ;;  %v6216_v23 = vld [vmem:[%s12553_s25 + $0x4c8] sm:$0xff]  ;;  %v4147_v52 = vmul.f32 %v10298_v38, %v10140_v30  ;;  %s10388_s19 = sld [smem:[#allocation5 + $0x304]] }
 0x225   : > { %v3132_v60 = vadd.f32 %v10117_v18, %v3106_v21  ;;  %v3589_v43 = vadd.f32 %v10178_v10, %v3563_v16  ;;  %v4051_v63 = vadd.f32 %v4043_v39, %v4025_v50  ;;  %v10301_v18 = vstv %s10197_s23  ;;  %12811 = vst [vmem:[#allocation104_spill] sm:$0xff] %v10308_v6  ;;  %4465 = vmatprep.subr.mxu1 %v12719_v2  ;;  %v10337_v21 = vld [vmem:[#allocation2 + $0x140] sm:$0xff]  ;;  %v6166_v30 = vld [vmem:[%s12553_s25 + $0x3e8] sm:$0xff]  ;;  %s11226_s23 = sld [smem:[#allocation5 + $0x309]] }
 0x226   : > { %v2662_v13 = vmax.f32 %v2654_v41, 0.0  ;;  %3900 = vmatpush2.msra.mxu0 %v6168_v14  ;;  %v4095_v39 = vmul.f32 %v10308_v6, %v10126_v54  ;;  %4466 = vmatpush2.msra.mxu1 %v6217_v51  ;;  %v4173_v25 = vmul.f32 %v10301_v18, %v10167_v45  ;;  %v4199_v50 = vmul.f32 %v10311_v49, %v10180_v17  ;;  %v6215_v45 = vld [vmem:[%s12553_s25 + $0x4c0] sm:$0xff]  ;;  %v12813_v14 = vld [vmem:[#allocation161_spill] sm:$0xff] }
 0x227   : > { %v3158_v37 = vadd.f32 %v10124_v53, %v3132_v60  ;;  %v3615_v10 = vadd.f32 %v10207_v36, %v3589_v43  ;;  %v4077_v57 = vadd.f32 %v4069_v8, %v4051_v63  ;;  %v6167_v53 = vld [vmem:[%s12553_s25 + $0x3f0] sm:$0xff]  ;;  %v10327_v36 = vld [vmem:[#allocation2 + $0x100] sm:$0xff]  ;;  %3901 = vmatprep.subr.mxu0 %v12719_v2  ;;  %4467 = vmatprep.subr.mxu1 %v12719_v2  ;;  %v10359_v51 = vstv %s10263_s7 }
 0x228   : > { %2791 = vmatmul.mubr.f32.gmra.mxu0 %v2662_v13  ;;  %4468 = vmatpush2.msra.mxu1 %v6216_v23  ;;  %v3476_v41 = vmul.f32 %v12790_v20, %v10327_v36  ;;  %12814 = vst [vmem:[#allocation163_spill] sm:$0xff] %v10359_v51  ;;  %v3502_v63 = vmul.f32 %v12791_v3, %v10337_v21  ;;  %v10379_v13 = vld [vmem:[#allocation2 + $0x1c0] sm:$0xff] }
 0x229   : > { %v3184_v54 = vadd.f32 %v10135_v61, %v3158_v37  ;;  %v3641_v16 = vadd.f32 %v10219_v11, %v3615_v10  ;;  %v4103_v32 = vadd.f32 %v4095_v39, %v4077_v57  ;;  %v10343_v61 = vstv %s10249_s17  ;;  %3902 = vmatpush2.msra.mxu0 %v6167_v53  ;;  %v12812_v11 = vld [vmem:[#allocation153_spill] sm:$0xff]  ;;  %4469 = vmatprep.subr.mxu1 %v12719_v2  ;;  %s13018_s17 = sld [smem:[#allocation12_spill]] }
 0x22a   : > { %v3458_v17 = vadd.f32 %v12813_v14, %v12812_v11  ;;  %3903 = vmatprep.subr.mxu0 %v12719_v2  ;;  %v10383_v10 = vstv %s10276_s0  ;;  %v10386_v57 = vstv %s10291_s22  ;;  %4470 = vmatpush2.msra.mxu1 %v6215_v45  ;;  %v4225_v23 = vmul.f32 %v10343_v61, %v10190_v7  ;;  %v3597_v14 = vld [vmem:[#allocation2 + $0x240] sm:$0xff]  ;;  %s11414_s0 = sld [smem:[#allocation5 + $0x38b]] }
 0x22b   : > { %v3210_v8 = vadd.f32 %v10152_v40, %v3184_v54  ;;  %v3667_v60 = vadd.f32 %v10231_v35, %v3641_v16  ;;  %v4129_v43 = vadd.f32 %v4121_v9, %v4103_v32  ;;  %v6165_v40 = vld [vmem:[%s12553_s25 + $0x3e0] sm:$0xff]  ;;  %v6214_v35 = vld [vmem:[%s12553_s25 + $0x4b8] sm:$0xff]  ;;  %3904 = vmatpush2.msra.mxu0 %v6166_v30  ;;  %v10394_v54 = vstv %s10303_s18  ;;  %4471 = vmatprep.subr.mxu1 %v12719_v2  ;;  %s11510_s22 = sld [smem:[#allocation7 + $0x7]] }
 0x22c   : > { %v3484_v39 = vadd.f32 %v3476_v41, %v3458_v17  ;;  %3905 = vmatprep.subr.mxu0 %v12719_v2  ;;  %4472 = vmatpush2.msra.mxu1 %v6214_v35  ;;  %v3554_v7 = vmul.f32 %v12794_v1, %v10379_v13  ;;  %v4277_v11 = vmul.f32 %v10386_v57, %v10221_v46  ;;  %v10410_v17 = vstv %s10319_s28  ;;  %v12815_v35 = vld [vmem:[#allocation154_spill] sm:$0xff]  ;;  %s11329_s28 = sld [smem:[#allocation5 + $0x30e]] }
 0x22d   : > { %v3220_v37 = vadd.f32 %v12780_v59, %v3210_v8  ;;  %v3693_v9 = vadd.f32 %v10242_v15, %v3667_v60  ;;  %v4155_v53 = vadd.f32 %v4147_v52, %v4129_v43  ;;  %v3571_v59 = vld [vmem:[#allocation2 + $0x200] sm:$0xff]  ;;  %3906 = vmatpush2.msra.mxu0 %v6165_v40  ;;  %v4251_v8 = vmul.f32 %v10383_v10, %v10209_v47  ;;  %v12816_v46 = vld [vmem:[#allocation162_spill] sm:$0xff]  ;;  %s13016_s18 = sld [smem:[#allocation176_spill]] }
 0x22e   : > { %v3510_v32 = vadd.f32 %v3502_v63, %v3484_v39  ;;  %v6443_v15 = vld [vmem:[#allocation2 + $0x180] sm:$0xff]  ;;  %4975 = vmatprep.subr.mxu0 %v12719_v2  ;;  %v10413_v41 = vstv %s10334_s3  ;;  %v3580_v43 = vmul.f32 %v12795_v48, %v3571_v59  ;;  %v4303_v47 = vmul.f32 %v10394_v54, %v10233_v62  ;;  %5541 = vmatprep.subr.mxu1 %v12719_v2 }
 0x22f   : > { %v3228_v16 = vmax.f32 %v3220_v37, 0.0  ;;  %v3528_v52 = vmul.f32 %v6443_v15, %v12793_v29  ;;  %v3719_v30 = vadd.f32 %v10261_v58, %v3693_v9  ;;  %v4181_v45 = vadd.f32 %v4173_v25, %v4155_v53  ;;  %v3623_v40 = vld [vmem:[#allocation2 + $0x280] sm:$0xff]  ;;  %s13019_s13 = sadd.s32 4294967295, %s13018_s17  }
 0x230   : > { %v4024_v63 = vadd.f32 %v12816_v46, %v12815_v35  ;;  %v1532_v37 = vld [vmem:[#allocation3] sm:$0xff]  ;;  %v3606_v9 = vmul.f32 %v12799_v5, %v3597_v14  ;;  %v10433_v46 = vstv %s10388_s19  ;;  %s11241_s19 = sld [smem:[#allocation5 + $0x30a]]  ;;  %s5867_s10 = sshll.u32 %s13019_s13, 2 }
 0x231   : > { %3357 = vmatmul.mubr.f32.gmra.mxu1 %v3228_v16  ;;  %v3536_v60 = vadd.f32 %v3528_v52, %v3510_v32  ;;  %v3745_v58 = vadd.f32 %v10271_v55, %v3719_v30  ;;  %v4207_v25 = vadd.f32 %v4199_v50, %v4181_v45  ;;  %v3649_v53 = vld [vmem:[#allocation2 + $0x2c0] sm:$0xff]  ;;  %v4042_v16 = vmul.f32 %v10236_v4, %v10327_v36  ;;  %v12817_v52 = vld [vmem:[#allocation99_spill] sm:$0xff]  ;;  %p386_p7 = scmp.lt.s32.totalorder %s5867_s10, 7 }
 0x232   : > { %v4068_v55 = vmul.f32 %v10266_v0, %v10337_v21  ;;  %v4329_v32 = vmul.f32 %v10410_v17, %v10244_v28  ;;  %v1664_v30 = vadd.f32 %v12817_v52, %v1532_v37  ;;  %12818 = vst [vmem:[#allocation152_spill] sm:$0xff] %v10433_v46  ;;  %v3374_v21 = vld [vmem:[#allocation2 + $0x18] sm:$0xff]  ;;  %v3753_v37 = vld [vmem:[#allocation2 + $0x3c0] sm:$0xff]  ;;  %v4146_v52 = vmul.f32 %v10298_v38, %v3571_v59 }
 0x233   : > { %v3562_v39 = vadd.f32 %v3554_v7, %v3536_v60  ;;  %v3771_v62 = vadd.f32 %v10286_v22, %v3745_v58  ;;  %v4233_v50 = vadd.f32 %v4225_v23, %v4207_v25  ;;  %v3632_v7 = vmul.f32 %v12801_v27, %v3623_v40  ;;  %v3675_v60 = vld [vmem:[#allocation2 + $0x300] sm:$0xff]  ;;  %v3392_v23 = vld [vmem:[#allocation2 + $0x58] sm:$0xff]  ;;  %s13026_s10 = smov (!%p386_p7, %s5867_s10), 7 }
 0x234   : > { %v4050_v35 = vadd.f32 %v4042_v16, %v4024_v63  ;;  %1668 = vst.msk [vmem:[#allocation3] sm:$0xff] %vm1101_vm5, %v1664_v30  ;;  %v3658_v22 = vmul.f32 %v12802_v19, %v3649_v53  ;;  %v10439_v58 = vstv %s10398_s30  ;;  %v3701_v25 = vld [vmem:[#allocation2 + $0x340] sm:$0xff]  ;;  %v4094_v63 = vmul.f32 %v6443_v15, %v10308_v6  ;;  %s11251_s30 = sld [smem:[#allocation5 + $0x30b]]  ;;  %s5868_s7 = sshll.u32 %s13026_s10, 3 }
 0x235   : > { %v3588_v45 = vadd.f32 %v3580_v43, %v3562_v39  ;;  %v3781_v36 = vadd.f32 %v10359_v51, %v3771_v62  ;;  %v4259_v2 = vadd.f32 %v4251_v8, %v4233_v50  ;;  %12819 = vst [vmem:[#allocation167_spill] sm:$0xff] %v10439_v58  ;;  %v3727_v43 = vld [vmem:[#allocation2 + $0x380] sm:$0xff]  ;;  %v4120_v16 = vmul.f32 %v10289_v56, %v10379_v13  ;;  %v12820_v56 = vld [vmem:[#allocation42_spill] sm:$0xff] }
 0x236   : > { %v4076_v39 = vadd.f32 %v4068_v55, %v4050_v35  ;;  %v3684_v50 = vmul.f32 %v12804_v31, %v3675_v60  ;;  %v3383_v58 = vmul.f32 %v12786_v24, %v3374_v21  ;;  %v3710_v15 = vmul.f32 %v12806_v44, %v3701_v25 }
 0x237   : > { %v3614_v28 = vadd.f32 %v3606_v9, %v3588_v45  ;;  %v3789_v62 = vmax.f32 %v3781_v36, 0.0  ;;  %v4285_v8 = vadd.f32 %v4277_v11, %v4259_v2  ;;  %v3401_v9 = vmul.f32 %v12787_v33, %v3392_v23  ;;  %v3470_v2 = vld [vmem:[#allocation2 + $0x118] sm:$0xff] }
 0x238   : > { %v4102_v46 = vadd.f32 %v4094_v63, %v4076_v39  ;;  %v3736_v45 = vmul.f32 %v10193_v12, %v3727_v43  ;;  %v3762_v13 = vmul.f32 %v10212_v26, %v3753_v37  ;;  %v4172_v59 = vmul.f32 %v10301_v18, %v3597_v14 }
 0x239   : > { %v3640_v30 = vadd.f32 %v3632_v7, %v3614_v28  ;;  %6177 = vmatprep.mubr.msk.f32.mxu0 %vm400_vm0, %v3789_v62  ;;  %v4311_v55 = vadd.f32 %v4303_v47, %v4285_v8  ;;  %v3409_v7 = vadd.f32 %v3401_v9, %v3383_v58  ;;  %v4198_v28 = vmul.f32 %v10311_v49, %v3623_v40  ;;  %v3496_v47 = vld [vmem:[#allocation2 + $0x158] sm:$0xff] }
 0x23a   : > { %v4128_v35 = vadd.f32 %v4120_v16, %v4102_v46  ;;  %v4224_v39 = vmul.f32 %v10343_v61, %v3649_v53  ;;  %v4250_v63 = vmul.f32 %v10383_v10, %v3675_v60  ;;  %v3479_v6 = vmul.f32 %v12790_v20, %v3470_v2  ;;  %v3522_v58 = vld [vmem:[#allocation2 + $0x198] sm:$0xff]  ;;  %v12822_v60 = vld [vmem:[#allocation89_spill] sm:$0xff] }
 0x23b   : > { %v3666_v11 = vadd.f32 %v3658_v22, %v3640_v30  ;;  %v4337_v36 = vadd.f32 %v4329_v32, %v4311_v55  ;;  %v2098_v62 = vld [vmem:[#allocation3] sm:$0xff]  ;;  %v3435_v33 = vadd.f32 %v12820_v56, %v3409_v7  ;;  %v12821_v22 = vld [vmem:[#allocation157_spill] sm:$0xff]  ;;  %v4276_v32 = vmul.f32 %v10386_v57, %v3701_v25  ;;  %v3574_v9 = vld [vmem:[#allocation2 + $0x218] sm:$0xff] }
 0x23c   : > { %v4154_v38 = vadd.f32 %v4146_v52, %v4128_v35  ;;  %v2230_v14 = vadd.f32 %v12821_v22, %v2098_v62  ;;  %v4302_v40 = vmul.f32 %v10394_v54, %v3727_v43  ;;  %v3548_v52 = vld [vmem:[#allocation2 + $0x1d8] sm:$0xff]  ;;  %v3949_v25 = vmul.f32 %v12796_v34, %v3374_v21 }
 0x23d   : > { %v3692_v8 = vadd.f32 %v3684_v50, %v3666_v11  ;;  %v4347_v46 = vadd.f32 %v10413_v41, %v4337_v36  ;;  %v3461_v30 = vadd.f32 %v12822_v60, %v3435_v33  ;;  %v3505_v50 = vmul.f32 %v12791_v3, %v3496_v47  ;;  %v3600_v56 = vld [vmem:[#allocation2 + $0x258] sm:$0xff]  ;;  %v12823_v60 = vld [vmem:[#allocation98_spill] sm:$0xff] }
 0x23e   : > { %v4180_v16 = vadd.f32 %v4172_v59, %v4154_v38  ;;  %2234 = vst.msk [vmem:[#allocation3] sm:$0xff] %vm1101_vm5, %v2230_v14  ;;  %v4328_v11 = vmul.f32 %v10410_v17, %v3753_v37  ;;  %v3626_v35 = vld [vmem:[#allocation2 + $0x298] sm:$0xff]  ;;  %v3967_v43 = vmul.f32 %v12798_v42, %v3392_v23  ;;  %v3531_v33 = vmul.f32 %v12793_v29, %v3522_v58 }
 0x23f   : > { %v3718_v53 = vadd.f32 %v3710_v15, %v3692_v8  ;;  %v4355_v55 = vmax.f32 %v4347_v46, 0.0  ;;  %v3487_v38 = vadd.f32 %v3479_v6, %v3461_v30  ;;  %v3652_v59 = vld [vmem:[#allocation2 + $0x2d8] sm:$0xff]  ;;  %v3557_v62 = vmul.f32 %v12794_v1, %v3548_v52 }
 0x240   : > { %v4206_v15 = vadd.f32 %v4198_v28, %v4180_v16  ;;  %v3678_v36 = vld [vmem:[#allocation2 + $0x318] sm:$0xff]  ;;  %v3583_v8 = vmul.f32 %v12795_v48, %v3574_v9  ;;  %v3609_v37 = vmul.f32 %v12799_v5, %v3600_v56  ;;  %v3975_v22 = vadd.f32 %v3967_v43, %v3949_v25  ;;  %v10482_v5 = vld [vmem:[#allocation2 + $0x10] sm:$0xff] }
 0x241   : > { %v3744_v7 = vadd.f32 %v3736_v45, %v3718_v53  ;;  %6226 = vmatprep.mubr.msk.f32.mxu1 %vm400_vm0, %v4355_v55  ;;  %v3704_v46 = vld [vmem:[#allocation2 + $0x358] sm:$0xff]  ;;  %v3513_v23 = vadd.f32 %v3505_v50, %v3487_v38  ;;  %v3635_v45 = vmul.f32 %v12801_v27, %v3626_v35  ;;  %v10475_v53 = vmul.f32 %v12802_v19, %v3652_v59  ;;  %v3391_v43 = vld [vmem:[#allocation2 + $0x50] sm:$0xff] }
 0x242   : > { %v4232_v14 = vadd.f32 %v4224_v39, %v4206_v15  ;;  %v3730_v6 = vld [vmem:[#allocation2 + $0x398] sm:$0xff]  ;;  %v10478_v16 = vmul.f32 %v12804_v31, %v3678_v36  ;;  %v4001_v30 = vadd.f32 %v12823_v60, %v3975_v22  ;;  %v4045_v55 = vmul.f32 %v10236_v4, %v3470_v2 }
 0x243   : > { %v3770_v21 = vadd.f32 %v3762_v13, %v3744_v7  ;;  %v3756_v28 = vld [vmem:[#allocation2 + $0x3d8] sm:$0xff]  ;;  %v3539_v50 = vadd.f32 %v3531_v33, %v3513_v23  ;;  %v10486_v25 = vmul.f32 %v12806_v44, %v3704_v46  ;;  %v10489_v7 = vmul.f32 %v10193_v12, %v3730_v6  ;;  %v12826_v23 = vld [vmem:[#allocation104_spill] sm:$0xff] }
 0x244   : > { %v4258_v39 = vadd.f32 %v4250_v63, %v4232_v14  ;;  %v10492_v15 = vmul.f32 %v10212_v26, %v3756_v28  ;;  %v12825_v38 = vld [vmem:[#allocation103_spill] sm:$0xff]  ;;  %v4071_v2 = vmul.f32 %v10266_v0, %v3496_v47  ;;  %v6262_v63 = vld [vmem:[%s12553_s25 + $0x588] sm:$0xff]  ;;  %v3382_v33 = vmul.f32 %v12786_v24, %v10482_v5  ;;  %v6261_v24 = vld [vmem:[%s12553_s25 + $0x580] sm:$0xff] }
 0x245   : > { %v3780_v13 = vadd.f32 %v10359_v51, %v3770_v21  ;;  %v4027_v22 = vadd.f32 %v12825_v38, %v4001_v30  ;;  %v3565_v19 = vadd.f32 %v3557_v62, %v3539_v50  ;;  %v10501_v21 = vld [vmem:[#allocation2 + $0xd0] sm:$0xff]  ;;  %v4097_v51 = vmul.f32 %v12826_v23, %v3522_v58  ;;  %v12827_v26 = vld [vmem:[#allocation20_spill] sm:$0xff] }
 0x246   : > { %12824 = vst [vmem:[#allocation134_spill] sm:$0xff] %v10492_v15  ;;  %v4284_v31 = vadd.f32 %v4276_v32, %v4258_v39  ;;  %v3400_v15 = vmul.f32 %v12827_v26, %v3391_v43  ;;  %v6444_v30 = vld [vmem:[#allocation2 + $0x90] sm:$0xff]  ;;  %v4175_v58 = vmul.f32 %v10301_v18, %v3600_v56  ;;  %v6260_v56 = vld [vmem:[%s12553_s25 + $0x578] sm:$0xff] }
 0x247   : > { %v3788_v60 = vmax.f32 %v3780_v13, 0.0  ;;  %v4053_v14 = vadd.f32 %v4045_v55, %v4027_v22  ;;  %v12828_v38 = vld [vmem:[#allocation74_spill] sm:$0xff]  ;;  %v3591_v62 = vadd.f32 %v3583_v8, %v3565_v19 }
 0x248   : > { %v3426_v47 = vmul.f32 %v6444_v30, %v12828_v38  ;;  %v4310_v32 = vadd.f32 %v4302_v40, %v4284_v31  ;;  %v12829_v13 = vld [vmem:[#allocation158_spill] sm:$0xff]  ;;  %v3408_v22 = vadd.f32 %v3400_v15, %v3382_v33  ;;  %v12831_v38 = vld [vmem:[#allocation68_spill] sm:$0xff]  ;;  %v4201_v40 = vmul.f32 %v10311_v49, %v3626_v35 }
 0x249   : > { %3908 = vmatmul.mubr.f32.vlgmr.msra.gmra.mxu0 %v3788_v60  ;;  %v4123_v39 = vmul.f32 %v12829_v13, %v3548_v52  ;;  %v12830_v50 = vld [vmem:[#allocation166_spill] sm:$0xff]  ;;  %v4079_v55 = vadd.f32 %v4071_v2, %v4053_v14  ;;  %v3452_v60 = vmul.f32 %v12831_v38, %v10501_v21  ;;  %v3617_v19 = vadd.f32 %v3609_v37, %v3591_v62  ;;  %v6311_v62 = vld [vmem:[%s12553_s25 + $0x660] sm:$0xff]  ;;  %v10600_v38 = vld [vmem:[#allocation2 + $0x28] sm:$0xff] }
 0x24a   : > { %v4149_v12 = vmul.f32 %v12830_v50, %v3574_v9  ;;  %v10511_v0 = vld [vmem:[#allocation2 + $0x110] sm:$0xff]  ;;  %4976 = vmatpush1.msra.mxu0 %v6262_v63  ;;  %v4336_v31 = vadd.f32 %v4328_v11, %v4310_v32  ;;  %v10518_v52 = vmul.f32 %v10343_v61, %v3652_v59  ;;  %v12832_v9 = vmov 0.0  }
 0x24b   : > { %4977 = vmatprep.subr.mxu0 %v12832_v9  ;;  %v10521_v8 = vld [vmem:[#allocation2 + $0x150] sm:$0xff]  ;;  %v4105_v2 = vadd.f32 %v4097_v51, %v4079_v55  ;;  %v10527_v15 = vmul.f32 %v10383_v10, %v3678_v36  ;;  %v3434_v11 = vadd.f32 %v3426_v47, %v3408_v22  ;;  %v3478_v35 = vmul.f32 %v12790_v20, %v10511_v0 }
 0x24c   : > { %4978 = vmatpush1.msra.mxu0 %v6261_v24  ;;  %v4346_v59 = vadd.f32 %v10413_v41, %v4336_v31  ;;  %v3643_v37 = vadd.f32 %v3635_v45, %v3617_v19  ;;  %v10533_v63 = vmul.f32 %v10386_v57, %v3704_v46  ;;  %v10536_v33 = vmul.f32 %v10394_v54, %v3730_v6  ;;  %v3521_v14 = vld [vmem:[#allocation2 + $0x190] sm:$0xff] }
 0x24d   : > { %4979 = vmatprep.subr.mxu0 %v12832_v9  ;;  %v6259_v24 = vld [vmem:[%s12553_s25 + $0x570] sm:$0xff]  ;;  %v4131_v51 = vadd.f32 %v4123_v39, %v4105_v2  ;;  %v10543_v36 = vmul.f32 %v10410_v17, %v3756_v28  ;;  %v3460_v47 = vadd.f32 %v3452_v60, %v3434_v11  ;;  %v3504_v45 = vmul.f32 %v12791_v3, %v10521_v8 }
 0x24e   : > { %v10547_v46 = vld [vmem:[#allocation2 + $0x1d0] sm:$0xff]  ;;  %4980 = vmatpush1.msra.mxu0 %v6260_v56  ;;  %v4354_v6 = vmax.f32 %v4346_v59, 0.0  ;;  %v3669_v32 = vadd.f32 %v10475_v53, %v3643_v37  ;;  %v3948_v28 = vmul.f32 %v12796_v34, %v10482_v5  ;;  %v3966_v22 = vmul.f32 %v12798_v42, %v3391_v43  ;;  %v12833_v56 = vld [vmem:[#allocation75_spill] sm:$0xff]  ;;  %v12834_v37 = vld [vmem:[#allocation69_spill] sm:$0xff] }
 0x24f   : > { %v10553_v55 = vld [vmem:[#allocation2 + $0x210] sm:$0xff]  ;;  %4981 = vmatprep.subr.mxu0 %v12832_v9  ;;  %v4157_v60 = vadd.f32 %v4149_v12, %v4131_v51  ;;  %v3486_v31 = vadd.f32 %v3478_v35, %v3460_v47  ;;  %v3530_v19 = vmul.f32 %v12793_v29, %v3521_v14  ;;  %v3992_v2 = vmul.f32 %v6444_v30, %v12833_v56  ;;  %v6310_v5 = vld [vmem:[%s12553_s25 + $0x658] sm:$0xff] }
 0x250   : > { %v10555_v39 = vld [vmem:[#allocation2 + $0x250] sm:$0xff]  ;;  %4982 = vmatpush1.msra.mxu0 %v6259_v24  ;;  %4474 = vmatmul.mubr.f32.vlgmr.msra.gmra.mxu1 %v4354_v6  ;;  %v3695_v11 = vadd.f32 %v10478_v16, %v3669_v32  ;;  %v3556_v43 = vmul.f32 %v12794_v1, %v10547_v46  ;;  %v3974_v35 = vadd.f32 %v3966_v22, %v3948_v28  ;;  %v12835_v47 = vld [vmem:[#allocation139_spill] sm:$0xff] }
 0x251   : > { %v10562_v53 = vld [vmem:[#allocation2 + $0x290] sm:$0xff]  ;;  %v4018_v51 = vmul.f32 %v12834_v37, %v10501_v21  ;;  %v4183_v30 = vadd.f32 %v4175_v58, %v4157_v60  ;;  %5542 = vmatpush1.msra.mxu1 %v6311_v62  ;;  %v3512_v24 = vadd.f32 %v3504_v45, %v3486_v31  ;;  %v3582_v16 = vmul.f32 %v12795_v48, %v10553_v55 }
 0x252   : > { %v10571_v59 = vld [vmem:[#allocation2 + $0x2d0] sm:$0xff]  ;;  %v3608_v6 = vmul.f32 %v12835_v47, %v10555_v39  ;;  %v3721_v56 = vadd.f32 %v10486_v25, %v3695_v11  ;;  %5543 = vmatprep.subr.mxu1 %v12832_v9  ;;  %v3634_v28 = vmul.f32 %v12801_v27, %v10562_v53  ;;  %v4000_v21 = vadd.f32 %v3992_v2, %v3974_v35  ;;  %v12836_v25 = vld [vmem:[#allocation143_spill] sm:$0xff]  ;;  %v10602_v2 = vld [vmem:[#allocation2 + $0x68] sm:$0xff] }
 0x253   : > { %v10573_v12 = vld [vmem:[#allocation2 + $0x310] sm:$0xff]  ;;  %v4044_v58 = vmul.f32 %v10236_v4, %v10511_v0  ;;  %v4209_v62 = vadd.f32 %v4201_v40, %v4183_v30  ;;  %5544 = vmatpush1.msra.mxu1 %v6310_v5  ;;  %v3538_v60 = vadd.f32 %v3530_v19, %v3512_v24  ;;  %v3660_v31 = vmul.f32 %v12836_v25, %v10571_v59  ;;  %v12837_v11 = vld [vmem:[#allocation47_spill] sm:$0xff]  ;;  %v6308_v24 = vld [vmem:[%s12553_s25 + $0x648] sm:$0xff] }
 0x254   : > { %v10581_v32 = vld [vmem:[#allocation2 + $0x350] sm:$0xff]  ;;  %v10598_v37 = vmul.f32 %v12837_v11, %v10573_v12  ;;  %v3747_v0 = vadd.f32 %v10489_v7, %v3721_v56  ;;  %v4026_v19 = vadd.f32 %v4018_v51, %v4000_v21  ;;  %5545 = vmatprep.subr.mxu1 %v12832_v9  ;;  %v12839_v7 = vld [vmem:[#allocation63_spill] sm:$0xff]  ;;  %v3403_v27 = vmul.f32 %v12827_v26, %v10602_v2 }
 0x255   : > { %v10587_v22 = vld [vmem:[#allocation2 + $0x390] sm:$0xff]  ;;  %v10607_v35 = vmul.f32 %v12806_v44, %v10581_v32  ;;  %v4235_v11 = vadd.f32 %v10518_v52, %v4209_v62  ;;  %v3564_v25 = vadd.f32 %v3556_v43, %v3538_v60  ;;  %v4096_v44 = vmul.f32 %v12826_v23, %v3521_v14  ;;  %v12842_v62 = vld [vmem:[#allocation88_spill] sm:$0xff]  ;;  %4983 = vmatprep.subr.mxu0 %v12832_v9 }
 0x256   : > { %v6309_v45 = vld [vmem:[%s12553_s25 + $0x650] sm:$0xff]  ;;  %v10620_v56 = vmul.f32 %v12839_v7, %v10587_v22  ;;  %v4052_v4 = vadd.f32 %v4044_v58, %v4026_v19  ;;  %v4122_v14 = vmul.f32 %v12829_v13, %v10547_v46  ;;  %v6258_v58 = vld [vmem:[%s12553_s25 + $0x568] sm:$0xff] }
 0x257   : > { %v10609_v40 = vld [vmem:[#allocation2 + $0x3d0] sm:$0xff]  ;;  %5546 = vmatpush1.msra.mxu1 %v6309_v45  ;;  %v4261_v52 = vadd.f32 %v10527_v15, %v4235_v11  ;;  %v3590_v43 = vadd.f32 %v3582_v16, %v3564_v25  ;;  %v10636_v45 = vld [vmem:[#allocation2 + $0x128] sm:$0xff]  ;;  %v12843_v15 = vld [vmem:[#allocation163_spill] sm:$0xff]  ;;  %v4148_v11 = vmul.f32 %v12830_v50, %v10553_v55  ;;  %4984 = vmatpush1.msra.mxu0 %v6258_v58 }
 0x258   : > { %v12838_v5 = vld [vmem:[#allocation146_spill] sm:$0xff]  ;;  %5547 = vmatprep.subr.mxu1 %v12832_v9  ;;  %v10632_v60 = vmul.f32 %v12842_v62, %v10609_v40  ;;  %v4200_v62 = vmul.f32 %v10311_v49, %v10562_v53  ;;  %v10653_v13 = vld [vmem:[#allocation2 + $0x168] sm:$0xff]  ;;  %v4226_v53 = vmul.f32 %v10343_v61, %v10571_v59  ;;  %4985 = vmatprep.subr.mxu0 %v12832_v9  ;;  %v6306_v58 = vld [vmem:[%s12553_s25 + $0x638] sm:$0xff] }
 0x259   : > { %v4070_v30 = vmul.f32 %v12838_v5, %v10521_v8  ;;  %v12840_v51 = vld [vmem:[#allocation134_spill] sm:$0xff]  ;;  %v12841_v8 = vld [vmem:[#allocation19_spill] sm:$0xff]  ;;  %5548 = vmatpush1.msra.mxu1 %v6308_v24  ;;  %v4287_v46 = vadd.f32 %v10533_v63, %v4261_v52  ;;  %v3616_v24 = vadd.f32 %v3608_v6, %v3590_v43  ;;  %v10666_v6 = vmul.f32 %v10383_v10, %v10573_v12  ;;  %v10680_v12 = vld [vmem:[#allocation2 + $0x1e8] sm:$0xff] }
 0x25a   : > { %v3773_v21 = vadd.f32 %v12840_v51, %v3747_v0  ;;  %v3385_v5 = vmul.f32 %v12841_v8, %v10600_v38  ;;  %v6307_v0 = vld [vmem:[%s12553_s25 + $0x640] sm:$0xff]  ;;  %v4174_v51 = vmul.f32 %v10301_v18, %v10555_v39  ;;  %5549 = vmatprep.subr.mxu1 %v12832_v9  ;;  %v3507_v59 = vmul.f32 %v12791_v3, %v10653_v13 }
 0x25b   : > { %v4078_v25 = vadd.f32 %v4070_v30, %v4052_v4  ;;  %5550 = vmatpush1.msra.mxu1 %v6307_v0  ;;  %v4313_v63 = vadd.f32 %v10536_v33, %v4287_v46  ;;  %v3642_v39 = vadd.f32 %v3634_v28, %v3616_v24  ;;  %v10675_v33 = vmul.f32 %v10386_v57, %v10581_v32  ;;  %v12845_v28 = vld [vmem:[#allocation28_spill] sm:$0xff] }
 0x25c   : > { %v3783_v16 = vadd.f32 %v12843_v15, %v3773_v21  ;;  %v3411_v19 = vadd.f32 %v3403_v27, %v3385_v5  ;;  %v12844_v21 = vld [vmem:[#allocation64_spill] sm:$0xff]  ;;  %v3481_v27 = vmul.f32 %v12790_v20, %v10636_v45  ;;  %v10659_v5 = vld [vmem:[#allocation2 + $0x1a8] sm:$0xff]  ;;  %5551 = vmatprep.subr.mxu1 %v12832_v9 }
 0x25d   : > { %v4104_v30 = vadd.f32 %v4096_v44, %v4078_v25  ;;  %v6257_v44 = vld [vmem:[%s12553_s25 + $0x560] sm:$0xff]  ;;  %v4339_v0 = vadd.f32 %v10543_v36, %v4313_v63  ;;  %v3533_v32 = vmul.f32 %v12793_v29, %v10659_v5  ;;  %v10692_v25 = vld [vmem:[#allocation2 + $0x228] sm:$0xff]  ;;  %v3951_v36 = vmul.f32 %v12796_v34, %v10600_v38  ;;  %5552 = vmatpush1.msra.mxu1 %v6306_v58  ;;  %v6305_v38 = vld [vmem:[%s12553_s25 + $0x630] sm:$0xff] }
 0x25e   : > { %v3791_v4 = vmax.f32 %v3783_v16, 0.0  ;;  %v3437_v55 = vadd.f32 %v12844_v21, %v3411_v19  ;;  %v3668_v16 = vadd.f32 %v3660_v31, %v3642_v39  ;;  %v10695_v24 = vld [vmem:[#allocation2 + $0x268] sm:$0xff]  ;;  %4986 = vmatpush1.msra.mxu0 %v6257_v44  ;;  %v6256_v31 = vld [vmem:[%s12553_s25 + $0x558] sm:$0xff]  ;;  %v10710_v21 = vmul.f32 %v10410_v17, %v10609_v40  ;;  %5553 = vmatprep.subr.mxu1 %v12832_v9 }
 0x25f   : > { %v4130_v52 = vadd.f32 %v4122_v14, %v4104_v30  ;;  %v10688_v14 = vmul.f32 %v10394_v54, %v10587_v22  ;;  %v3969_v22 = vmul.f32 %v12798_v42, %v10602_v2  ;;  %v4349_v30 = vadd.f32 %v10413_v41, %v4339_v0  ;;  %v10719_v39 = vld [vmem:[#allocation2 + $0x2e8] sm:$0xff]  ;;  %4987 = vmatprep.subr.mxu0 %v12832_v9 }
 0x260   : > { %6178 = vmatprep.mubr.msk.f32.mxu0 %vm400_vm0, %v3791_v4  ;;  %v3463_v43 = vadd.f32 %v12845_v28, %v3437_v55  ;;  %v10697_v4 = vld [vmem:[#allocation2 + $0x2a8] sm:$0xff]  ;;  %v3559_v55 = vmul.f32 %v12794_v1, %v10680_v12  ;;  %v3585_v63 = vmul.f32 %v12795_v48, %v10692_v25  ;;  %4988 = vmatpush1.msra.mxu0 %v6256_v31  ;;  %v12851_v31 = vld [vmem:[#allocation147_spill] sm:$0xff] }
 0x261   : > { %v4156_v19 = vadd.f32 %v4148_v11, %v4130_v52  ;;  %v3694_v11 = vadd.f32 %v10598_v37, %v3668_v16  ;;  %v10721_v37 = vld [vmem:[#allocation2 + $0x328] sm:$0xff]  ;;  %v3977_v40 = vadd.f32 %v3969_v22, %v3951_v36  ;;  %v4357_v52 = vmax.f32 %v4349_v30, 0.0  ;;  %v12848_v36 = vld [vmem:[#allocation136_spill] sm:$0xff]  ;;  %5554 = vmatpush1.msra.mxu1 %v6305_v38  ;;  %4989 = vmatprep.subr.mxu0 %v12832_v9 }
 0x262   : > { %v3489_v46 = vadd.f32 %v3481_v27, %v3463_v43  ;;  %v10723_v44 = vld [vmem:[#allocation2 + $0x368] sm:$0xff]  ;;  %v3611_v43 = vmul.f32 %v12835_v47, %v10695_v24  ;;  %v4047_v22 = vmul.f32 %v12848_v36, %v10636_v45  ;;  %v10737_v30 = vld [vmem:[#allocation2 + $0x20] sm:$0xff]  ;;  %v6255_v45 = vld [vmem:[%s12553_s25 + $0x550] sm:$0xff]  ;;  %5555 = vmatprep.subr.mxu1 %v12832_v9 }
 0x263   : > { %v4182_v2 = vadd.f32 %v4174_v51, %v4156_v19  ;;  %v3720_v28 = vadd.f32 %v10607_v35, %v3694_v11  ;;  %v12846_v51 = vld [vmem:[#allocation148_spill] sm:$0xff]  ;;  %v10732_v16 = vld [vmem:[#allocation2 + $0x3a8] sm:$0xff]  ;;  %6227 = vmatprep.mubr.msk.f32.mxu1 %vm400_vm0, %v4357_v52  ;;  %v12849_v11 = vld [vmem:[#allocation143_spill] sm:$0xff]  ;;  %4990 = vmatpush1.msra.mxu0 %v6255_v45 }
 0x264   : > { %v3515_v27 = vadd.f32 %v3507_v59, %v3489_v46  ;;  %v3637_v59 = vmul.f32 %v12846_v51, %v10697_v4  ;;  %v12847_v19 = vld [vmem:[#allocation141_spill] sm:$0xff]  ;;  %v3663_v51 = vmul.f32 %v12849_v11, %v10719_v39  ;;  %v10759_v36 = vld [vmem:[#allocation2 + $0xe0] sm:$0xff]  ;;  %v10768_v11 = vmul.f32 %v12839_v7, %v10732_v16  ;;  %4991 = vmatprep.subr.mxu0 %v12832_v9 }
 0x265   : > { %v4208_v58 = vadd.f32 %v4200_v62, %v4182_v2  ;;  %v4003_v46 = vadd.f32 %v12847_v19, %v3977_v40  ;;  %v3746_v35 = vadd.f32 %v10620_v56, %v3720_v28  ;;  %v12850_v62 = vld [vmem:[#allocation47_spill] sm:$0xff]  ;;  %v10749_v2 = vmul.f32 %v12851_v31, %v10723_v44  ;;  %v12852_v56 = vld [vmem:[#allocation29_spill] sm:$0xff]  ;;  %v6304_v31 = vld [vmem:[%s12553_s25 + $0x628] sm:$0xff] }
 0x266   : > { %v3541_v0 = vadd.f32 %v3533_v32, %v3515_v27  ;;  %v10745_v32 = vmul.f32 %v12850_v62, %v10721_v37  ;;  %v10751_v27 = vld [vmem:[#allocation2 + $0x60] sm:$0xff]  ;;  %v12853_v28 = vld [vmem:[#allocation146_spill] sm:$0xff]  ;;  %5556 = vmatpush1.msra.mxu1 %v6304_v31  ;;  %v4151_v31 = vmul.f32 %v12830_v50, %v10692_v25  ;;  %v4203_v25 = vmul.f32 %v10311_v49, %v10697_v4 }
 0x267   : > { %v4234_v38 = vadd.f32 %v4226_v53, %v4208_v58  ;;  %v4029_v52 = vadd.f32 %v12852_v56, %v4003_v46  ;;  %v4073_v19 = vmul.f32 %v12853_v28, %v10653_v13  ;;  %v3772_v62 = vadd.f32 %v10632_v60, %v3746_v35  ;;  %v10780_v35 = vld [vmem:[#allocation2 + $0x120] sm:$0xff]  ;;  %5557 = vmatprep.subr.mxu1 %v12832_v9 }
 0x268   : > { %v3567_v40 = vadd.f32 %v3559_v55, %v3541_v0  ;;  %v4099_v53 = vmul.f32 %v12826_v23, %v10659_v5  ;;  %v3384_v13 = vmul.f32 %v12841_v8, %v10737_v30  ;;  %v10776_v0 = vld [vmem:[#allocation2 + $0x3e8] sm:$0xff]  ;;  %v3402_v60 = vmul.f32 %v12827_v26, %v10751_v27  ;;  %v12854_v8 = vld [vmem:[#allocation158_spill] sm:$0xff]  ;;  %v6303_v45 = vld [vmem:[%s12553_s25 + $0x620] sm:$0xff] }
 0x269   : > { %v4260_v55 = vadd.f32 %v10666_v6, %v4234_v38  ;;  %v4055_v46 = vadd.f32 %v4047_v22, %v4029_v52  ;;  %v6254_v5 = vld [vmem:[%s12553_s25 + $0x548] sm:$0xff]  ;;  %v3782_v56 = vadd.f32 %v12843_v15, %v3772_v62  ;;  %v4125_v23 = vmul.f32 %v12854_v8, %v10680_v12  ;;  %v6445_v6 = vld [vmem:[#allocation2 + $0xa0] sm:$0xff]  ;;  %5558 = vmatpush1.msra.mxu1 %v6303_v45 }
 0x26a   : > { %v3593_v58 = vadd.f32 %v3585_v63, %v3567_v40  ;;  %v12855_v63 = vld [vmem:[#allocation74_spill] sm:$0xff]  ;;  %v12856_v22 = vld [vmem:[#allocation68_spill] sm:$0xff]  ;;  %v3410_v7 = vadd.f32 %v3402_v60, %v3384_v13  ;;  %4992 = vmatpush1.msra.mxu0 %v6254_v5  ;;  %v4255_v4 = vmul.f32 %v10383_v10, %v10721_v37  ;;  %5559 = vmatprep.subr.mxu1 %v12832_v9 }
 0x26b   : > { %v3428_v38 = vmul.f32 %v6445_v6, %v12855_v63  ;;  %v3454_v40 = vmul.f32 %v12856_v22, %v10759_v36  ;;  %v4286_v52 = vadd.f32 %v10675_v33, %v4260_v55  ;;  %v4081_v28 = vadd.f32 %v4073_v19, %v4055_v46  ;;  %v10795_v62 = vld [vmem:[#allocation2 + $0x160] sm:$0xff]  ;;  %4993 = vmatprep.subr.mxu0 %v12832_v9 }
 0x26c   : > { %v3619_v26 = vadd.f32 %v3611_v43, %v3593_v58  ;;  %v3790_v12 = vmax.f32 %v3782_v56, 0.0  ;;  %v12857_v63 = vld [vmem:[#allocation88_spill] sm:$0xff]  ;;  %v3480_v22 = vmul.f32 %v12790_v20, %v10780_v35  ;;  %v4177_v58 = vmul.f32 %v10301_v18, %v10695_v24  ;;  %v6302_v24 = vld [vmem:[%s12553_s25 + $0x618] sm:$0xff] }
 0x26d   : > { %v10800_v8 = vmul.f32 %v12857_v63, %v10776_v0  ;;  %v4312_v33 = vadd.f32 %v10688_v14, %v4286_v52  ;;  %v4107_v19 = vadd.f32 %v4099_v53, %v4081_v28  ;;  %v3436_v13 = vadd.f32 %v3428_v38, %v3410_v7  ;;  %v10808_v55 = vld [vmem:[#allocation2 + $0x1a0] sm:$0xff]  ;;  %v12858_v52 = vld [vmem:[#allocation75_spill] sm:$0xff]  ;;  %5560 = vmatpush1.msra.mxu1 %v6302_v24 }
 0x26e   : > { %v3645_v43 = vadd.f32 %v3637_v59, %v3619_v26  ;;  %3913 = vmatmul.mubr.f32.gmra.mxu0 %v3790_v12  ;;  %v4229_v46 = vmul.f32 %v10343_v61, %v10719_v39  ;;  %v3506_v60 = vmul.f32 %v12791_v3, %v10795_v62  ;;  %v6253_v26 = vld [vmem:[%s12553_s25 + $0x540] sm:$0xff]  ;;  %v10832_v39 = vmul.f32 %v10386_v57, %v10723_v44  ;;  %v6252_v44 = vld [vmem:[%s12553_s25 + $0x538] sm:$0xff] }
 0x26f   : > { %v4338_v7 = vadd.f32 %v10710_v21, %v4312_v33  ;;  %v4133_v59 = vadd.f32 %v4125_v23, %v4107_v19  ;;  %v3462_v28 = vadd.f32 %v3454_v40, %v3436_v13  ;;  %v10822_v53 = vld [vmem:[#allocation2 + $0x1e0] sm:$0xff]  ;;  %v10836_v21 = vmul.f32 %v10394_v54, %v10732_v16  ;;  %4994 = vmatpush1.msra.mxu0 %v6253_v26 }
 0x270   : > { %v3671_v14 = vadd.f32 %v3663_v51, %v3645_v43  ;;  %v3532_v23 = vmul.f32 %v12793_v29, %v10808_v55  ;;  %v10843_v37 = vld [vmem:[#allocation2 + $0x220] sm:$0xff]  ;;  %v3558_v16 = vmul.f32 %v12794_v1, %v10822_v53  ;;  %v3950_v45 = vmul.f32 %v12796_v34, %v10737_v30  ;;  %4995 = vmatprep.subr.mxu0 %v12832_v9  ;;  %v6301_v30 = vld [vmem:[%s12553_s25 + $0x610] sm:$0xff] }
 0x271   : > { %v4348_v51 = vadd.f32 %v10413_v41, %v4338_v7  ;;  %v4159_v56 = vadd.f32 %v4151_v31, %v4133_v59  ;;  %v3488_v38 = vadd.f32 %v3480_v22, %v3462_v28  ;;  %v10850_v40 = vld [vmem:[#allocation2 + $0x260] sm:$0xff]  ;;  %v3994_v22 = vmul.f32 %v6445_v6, %v12858_v52  ;;  %5561 = vmatprep.subr.mxu1 %v12832_v9 }
 0x272   : > { %v3697_v5 = vadd.f32 %v10745_v32, %v3671_v14  ;;  %v3968_v32 = vmul.f32 %v12798_v42, %v10751_v27  ;;  %v10858_v19 = vld [vmem:[#allocation2 + $0x2a0] sm:$0xff]  ;;  %v10869_v27 = vmul.f32 %v10410_v17, %v10776_v0  ;;  %4996 = vmatpush1.msra.mxu0 %v6252_v44  ;;  %v3610_v28 = vmul.f32 %v12835_v47, %v10850_v40 }
 0x273   : > { %v4356_v12 = vmax.f32 %v4348_v51, 0.0  ;;  %v4185_v33 = vadd.f32 %v4177_v58, %v4159_v56  ;;  %v3514_v43 = vadd.f32 %v3506_v60, %v3488_v38  ;;  %v10860_v13 = vld [vmem:[#allocation2 + $0x2e0] sm:$0xff]  ;;  %v12859_v60 = vld [vmem:[#allocation69_spill] sm:$0xff]  ;;  %v12861_v56 = vld [vmem:[#allocation143_spill] sm:$0xff]  ;;  %5562 = vmatpush1.msra.mxu1 %v6301_v30  ;;  %4997 = vmatprep.subr.mxu0 %v12832_v9 }
 0x274   : > { %v3723_v31 = vadd.f32 %v10749_v2, %v3697_v5  ;;  %v3584_v2 = vmul.f32 %v12795_v48, %v10843_v37  ;;  %v3679_v6 = vld [vmem:[#allocation2 + $0x320] sm:$0xff]  ;;  %v3976_v58 = vadd.f32 %v3968_v32, %v3950_v45  ;;  %v4020_v26 = vmul.f32 %v12859_v60, %v10759_v36  ;;  %v10893_v60 = vld [vmem:[#allocation2 + $0x78] sm:$0xff]  ;;  %5563 = vmatprep.subr.mxu1 %v12832_v9 }
 0x275   : > { %4479 = vmatmul.mubr.f32.gmra.mxu1 %v4356_v12  ;;  %v4211_v14 = vadd.f32 %v4203_v25, %v4185_v33  ;;  %v3540_v59 = vadd.f32 %v3532_v23, %v3514_v43  ;;  %v3705_v24 = vld [vmem:[#allocation2 + $0x360] sm:$0xff]  ;;  %v3662_v38 = vmul.f32 %v12861_v56, %v10860_v13  ;;  %v10891_v43 = vld [vmem:[#allocation2 + $0x38] sm:$0xff] }
 0x276   : > { %v3749_v7 = vadd.f32 %v10768_v11, %v3723_v31  ;;  %v3731_v0 = vld [vmem:[#allocation2 + $0x3a0] sm:$0xff]  ;;  %v4002_v36 = vadd.f32 %v3994_v22, %v3976_v58  ;;  %v6251_v11 = vld [vmem:[%s12553_s25 + $0x530] sm:$0xff]  ;;  %v12863_v31 = vld [vmem:[#allocation47_spill] sm:$0xff] }
 0x277   : > { %v12860_v51 = vld [vmem:[#allocation148_spill] sm:$0xff]  ;;  %v4237_v23 = vadd.f32 %v4229_v46, %v4211_v14  ;;  %v3566_v12 = vadd.f32 %v3558_v16, %v3540_v59  ;;  %v3688_v33 = vmul.f32 %v12863_v31, %v3679_v6  ;;  %v12864_v22 = vld [vmem:[#allocation147_spill] sm:$0xff]  ;;  %v12866_v46 = vld [vmem:[#allocation146_spill] sm:$0xff]  ;;  %4998 = vmatpush1.msra.mxu0 %v6251_v11 }
 0x278   : > { %v3636_v5 = vmul.f32 %v12860_v51, %v10858_v19  ;;  %v10882_v45 = vld [vmem:[#allocation2 + $0x3e0] sm:$0xff]  ;;  %v3775_v25 = vadd.f32 %v10800_v8, %v3749_v7  ;;  %v10900_v30 = vmul.f32 %v12864_v22, %v3705_v24  ;;  %v12865_v58 = vld [vmem:[#allocation63_spill] sm:$0xff]  ;;  %v4028_v8 = vadd.f32 %v4020_v26, %v4002_v36  ;;  %v12870_v11 = vld [vmem:[#allocation158_spill] sm:$0xff]  ;;  %4999 = vmatprep.subr.mxu0 %v12832_v9 }
 0x279   : > { %v12862_v44 = vld [vmem:[#allocation136_spill] sm:$0xff]  ;;  %v10903_v52 = vmul.f32 %v12865_v58, %v3731_v0  ;;  %v4072_v16 = vmul.f32 %v12866_v46, %v10795_v62  ;;  %v4263_v14 = vadd.f32 %v4255_v4, %v4237_v23  ;;  %v3592_v59 = vadd.f32 %v3584_v2, %v3566_v12  ;;  %v6250_v58 = vld [vmem:[%s12553_s25 + $0x528] sm:$0xff] }
 0x27a   : > { %v4046_v32 = vmul.f32 %v12862_v44, %v10780_v35  ;;  %v6300_v35 = vld [vmem:[%s12553_s25 + $0x608] sm:$0xff]  ;;  %v3785_v7 = vadd.f32 %v12843_v15, %v3775_v25  ;;  %v10911_v31 = vmul.f32 %v12857_v63, %v10882_v45  ;;  %v12867_v26 = vld [vmem:[#allocation104_spill] sm:$0xff]  ;;  %v4124_v63 = vmul.f32 %v12870_v11, %v10822_v53  ;;  %v10925_v15 = vld [vmem:[#allocation2 + $0x138] sm:$0xff]  ;;  %5000 = vmatpush1.msra.mxu0 %v6250_v58 }
 0x27b   : > { %v4098_v36 = vmul.f32 %v12867_v26, %v10808_v55  ;;  %v12868_v62 = vld [vmem:[#allocation19_spill] sm:$0xff]  ;;  %v12869_v25 = vld [vmem:[#allocation20_spill] sm:$0xff]  ;;  %5564 = vmatpush1.msra.mxu1 %v6300_v35  ;;  %v4289_v23 = vadd.f32 %v10832_v39, %v4263_v14  ;;  %v3618_v12 = vadd.f32 %v3610_v28, %v3592_v59  ;;  %v4150_v35 = vmul.f32 %v12830_v50, %v10843_v37 }
 0x27c   : > { %v4054_v22 = vadd.f32 %v4046_v32, %v4028_v8  ;;  %v3387_v46 = vmul.f32 %v12868_v62, %v10891_v43  ;;  %v3405_v4 = vmul.f32 %v12869_v25, %v10893_v60  ;;  %v3793_v2 = vmax.f32 %v3785_v7, 0.0  ;;  %5565 = vmatprep.subr.mxu1 %v12832_v9  ;;  %v6299_v55 = vld [vmem:[%s12553_s25 + $0x600] sm:$0xff]  ;;  %5001 = vmatprep.subr.mxu0 %v12832_v9 }
 0x27d   : > { %v4176_v39 = vmul.f32 %v10301_v18, %v10850_v40  ;;  %v4315_v53 = vadd.f32 %v10836_v21, %v4289_v23  ;;  %v3644_v8 = vadd.f32 %v3636_v5, %v3618_v12  ;;  %v4202_v7 = vmul.f32 %v10311_v49, %v10858_v19  ;;  %v12871_v40 = vld [vmem:[#allocation102_spill] sm:$0xff]  ;;  %5566 = vmatpush1.msra.mxu1 %v6299_v55  ;;  %v6249_v21 = vld [vmem:[%s12553_s25 + $0x520] sm:$0xff]  ;;  %v10975_v23 = vld [vmem:[#allocation2 + $0x238] sm:$0xff] }
 0x27e   : > { %v4080_v32 = vadd.f32 %v4072_v16, %v4054_v22  ;;  %v3413_v28 = vadd.f32 %v3405_v4, %v3387_v46  ;;  %6179 = vmatprep.mubr.msk.f32.mxu0 %vm400_vm0, %v3793_v2  ;;  %v10942_v14 = vmul.f32 %v10343_v61, %v10860_v13  ;;  %v10944_v22 = vld [vmem:[#allocation2 + $0x178] sm:$0xff]  ;;  %v10947_v16 = vmul.f32 %v10383_v10, %v3679_v6 }
 0x27f   : > { %v3483_v46 = vmul.f32 %v12790_v20, %v10925_v15  ;;  %v4341_v19 = vadd.f32 %v10869_v27, %v4315_v53  ;;  %v3670_v13 = vadd.f32 %v3662_v38, %v3644_v8  ;;  %v10957_v5 = vmul.f32 %v10386_v57, %v3705_v24  ;;  %v3526_v6 = vld [vmem:[#allocation2 + $0x1b8] sm:$0xff]  ;;  %v12872_v38 = vld [vmem:[#allocation110_spill] sm:$0xff]  ;;  %5567 = vmatprep.subr.mxu1 %v12832_v9 }
 0x280   : > { %v4106_v37 = vadd.f32 %v4098_v36, %v4080_v32  ;;  %v3439_v58 = vadd.f32 %v12871_v40, %v3413_v28  ;;  %v10960_v59 = vmul.f32 %v10394_v54, %v3731_v0  ;;  %v10962_v36 = vld [vmem:[#allocation2 + $0x1f8] sm:$0xff]  ;;  %v10970_v27 = vmul.f32 %v10410_v17, %v10882_v45  ;;  %5002 = vmatpush1.msra.mxu0 %v6249_v21 }
 0x281   : > { %v6298_v4 = vld [vmem:[%s12553_s25 + $0x5f8] sm:$0xff]  ;;  %v3509_v0 = vmul.f32 %v12791_v3, %v10944_v22  ;;  %v4351_v12 = vadd.f32 %v10413_v41, %v4341_v19  ;;  %v3696_v55 = vadd.f32 %v3688_v33, %v3670_v13  ;;  %v3971_v45 = vmul.f32 %v12798_v42, %v10893_v60  ;;  %5003 = vmatprep.subr.mxu0 %v12832_v9 }
 0x282   : > { %v4132_v2 = vadd.f32 %v4124_v63, %v4106_v37  ;;  %v3465_v24 = vadd.f32 %v12872_v38, %v3439_v58  ;;  %v10979_v32 = vld [vmem:[#allocation2 + $0x278] sm:$0xff]  ;;  %v3953_v63 = vmul.f32 %v12796_v34, %v10891_v43  ;;  %v3535_v40 = vmul.f32 %v12793_v29, %v3526_v6  ;;  %5568 = vmatpush1.msra.mxu1 %v6298_v4 }
 0x283   : > { %v10981_v28 = vld [vmem:[#allocation2 + $0x2b8] sm:$0xff]  ;;  %v3561_v33 = vmul.f32 %v12794_v1, %v10962_v36  ;;  %v4359_v19 = vmax.f32 %v4351_v12, 0.0  ;;  %v3722_v43 = vadd.f32 %v10900_v30, %v3696_v55  ;;  %v3587_v60 = vmul.f32 %v12795_v48, %v10975_v23  ;;  %5569 = vmatprep.subr.mxu1 %v12832_v9 }
 0x284   : > { %v6248_v53 = vld [vmem:[%s12553_s25 + $0x518] sm:$0xff]  ;;  %v4158_v8 = vadd.f32 %v4150_v35, %v4132_v2  ;;  %v3491_v37 = vadd.f32 %v3483_v46, %v3465_v24  ;;  %v3979_v35 = vadd.f32 %v3971_v45, %v3953_v63  ;;  %v6297_v46 = vld [vmem:[%s12553_s25 + $0x5f0] sm:$0xff]  ;;  %v3613_v30 = vmul.f32 %v12835_v47, %v10979_v32  ;;  %v12873_v63 = vld [vmem:[#allocation31_spill] sm:$0xff] }
 0x285   : > { %v10993_v58 = vld [vmem:[#allocation2 + $0x2f8] sm:$0xff]  ;;  %v3639_v38 = vmul.f32 %v12860_v51, %v10981_v28  ;;  %5004 = vmatpush1.msra.mxu0 %v6248_v53  ;;  %6228 = vmatprep.mubr.msk.f32.mxu1 %vm400_vm0, %v4359_v19  ;;  %v3748_v12 = vadd.f32 %v10903_v52, %v3722_v43  ;;  %v11022_v45 = vld [vmem:[#allocation2 + $0x30] sm:$0xff] }
 0x286   : > { %v10998_v21 = vld [vmem:[#allocation2 + $0x338] sm:$0xff]  ;;  %v4184_v4 = vadd.f32 %v4176_v39, %v4158_v8  ;;  %v3517_v2 = vadd.f32 %v3509_v0, %v3491_v37  ;;  %v11017_v55 = vmul.f32 %v12861_v56, %v10993_v58  ;;  %v4005_v39 = vadd.f32 %v12873_v63, %v3979_v35  ;;  %v11032_v43 = vld [vmem:[#allocation2 + $0x70] sm:$0xff]  ;;  %5570 = vmatpush1.msra.mxu1 %v6297_v46  ;;  %v6296_v46 = vld [vmem:[%s12553_s25 + $0x5e8] sm:$0xff] }
 0x287   : > { %v11000_v13 = vld [vmem:[#allocation2 + $0x378] sm:$0xff]  ;;  %v4049_v0 = vmul.f32 %v12862_v44, %v10925_v15  ;;  %v6247_v35 = vld [vmem:[%s12553_s25 + $0x510] sm:$0xff]  ;;  %v3774_v15 = vadd.f32 %v10911_v31, %v3748_v12  ;;  %5005 = vmatprep.subr.mxu0 %v12832_v9  ;;  %v4101_v12 = vmul.f32 %v12867_v26, %v3526_v6  ;;  %5571 = vmatprep.subr.mxu1 %v12832_v9 }
 0x288   : > { %v11011_v24 = vld [vmem:[#allocation2 + $0x3b8] sm:$0xff]  ;;  %v4210_v8 = vadd.f32 %v4202_v7, %v4184_v4  ;;  %v3543_v37 = vadd.f32 %v3535_v40, %v3517_v2  ;;  %v11055_v47 = vld [vmem:[#allocation2 + $0xf0] sm:$0xff]  ;;  %5006 = vmatpush1.msra.mxu0 %v6247_v35  ;;  %5572 = vmatpush1.msra.mxu1 %v6296_v46  ;;  %v4205_v46 = vmul.f32 %v10311_v49, %v10981_v28 }
 0x289   : > { %v12874_v51 = vld [vmem:[#allocation47_spill] sm:$0xff]  ;;  %v12881_v44 = vld [vmem:[#allocation74_spill] sm:$0xff]  ;;  %5017 = vmatprep.subr.mxu0 %v12832_v9  ;;  %5583 = vmatprep.subr.mxu1 %v12832_v9 }
 0x28a   : > { %v11026_v53 = vmul.f32 %v12874_v51, %v10998_v21  ;;  %v12875_v19 = vld [vmem:[#allocation147_spill] sm:$0xff]  ;;  %v4236_v56 = vadd.f32 %v10942_v14, %v4210_v8  ;;  %v3569_v31 = vadd.f32 %v3561_v33, %v3543_v37  ;;  %v6273_v14 = vld [vmem:[%s12553_s25 + $0x5e0] sm:$0x3]  ;;  %v11072_v37 = vld [vmem:[#allocation2 + $0x130] sm:$0xff] }
 0x28b   : > { %v11030_v52 = vmul.f32 %v12875_v19, %v11000_v13  ;;  %v12876_v7 = vld [vmem:[#allocation63_spill] sm:$0xff]  ;;  %v12879_v19 = vld [vmem:[#allocation146_spill] sm:$0xff]  ;;  %v12882_v33 = vld [vmem:[#allocation88_spill] sm:$0xff]  ;;  %6274 = vmatpush2.msk.msra.mxu0 %vm1575_vm1, %v6273_v14 }
 0x28c   : > { %v11040_v40 = vmul.f32 %v12876_v7, %v11011_v24  ;;  %v11042_v4 = vld [vmem:[#allocation2 + $0x3f8] sm:$0xff]  ;;  %v4075_v51 = vmul.f32 %v12879_v19, %v10944_v22  ;;  %v3386_v7 = vmul.f32 %v12868_v62, %v11022_v45  ;;  %v3404_v19 = vmul.f32 %v12869_v25, %v11032_v43  ;;  %5019 = vmatprep.subr.mxu0 %v12832_v9 }
 0x28d   : > { %v12878_v2 = vld [vmem:[#allocation95_spill] sm:$0xff]  ;;  %v4262_v62 = vadd.f32 %v10947_v16, %v4236_v56  ;;  %v3595_v6 = vadd.f32 %v3587_v60, %v3569_v31  ;;  %v11068_v8 = vmul.f32 %v12882_v33, %v11042_v4  ;;  %v4153_v60 = vmul.f32 %v12830_v50, %v10975_v23 }
 0x28e   : > { %12877 = vst [vmem:[#allocation90_spill] sm:$0xff] %v11040_v40  ;;  %v4031_v63 = vadd.f32 %v12878_v2, %v4005_v39  ;;  %v12880_v39 = vld [vmem:[#allocation163_spill] sm:$0xff]  ;;  %v6446_v40 = vld [vmem:[#allocation2 + $0xb0] sm:$0xff]  ;;  %v3412_v35 = vadd.f32 %v3404_v19, %v3386_v7 }
 0x28f   : > { %v3784_v22 = vadd.f32 %v12880_v39, %v3774_v15  ;;  %v3430_v48 = vmul.f32 %v6446_v40, %v12881_v44  ;;  %v12883_v15 = vld [vmem:[#allocation68_spill] sm:$0xff]  ;;  %v6322_v56 = vld [vmem:[%s12553_s25 + $0x6b8] sm:$0x3]  ;;  %v4288_v16 = vadd.f32 %v10957_v5, %v4262_v62  ;;  %v11086_v19 = vld [vmem:[#allocation2 + $0x170] sm:$0xff]  ;;  %v3482_v5 = vmul.f32 %v12790_v20, %v11072_v37 }
 0x290   : > { %v4057_v2 = vadd.f32 %v4049_v0, %v4031_v63  ;;  %v4127_v0 = vmul.f32 %v12870_v11, %v10962_v36  ;;  %v3456_v63 = vmul.f32 %v12883_v15, %v11055_v47  ;;  %v3621_v36 = vadd.f32 %v3613_v30, %v3595_v6  ;;  %v11093_v30 = vld [vmem:[#allocation2 + $0x1b0] sm:$0xff]  ;;  %6323 = vmatpush2.msk.msra.mxu1 %vm1575_vm1, %v6322_v56 }
 0x291   : > { %v3792_v25 = vmax.f32 %v3784_v22, 0.0  ;;  %v3438_v31 = vadd.f32 %v3430_v48, %v3412_v35  ;;  %v4314_v23 = vadd.f32 %v10960_v59, %v4288_v16  ;;  %v6272_v48 = vld [vmem:[%s12553_s25 + $0x5d8] sm:$0xff]  ;;  %v11108_v20 = vmul.f32 %v10386_v57, %v11000_v13  ;;  %5585 = vmatprep.subr.mxu1 %v12832_v9  ;;  %v11148_v56 = vld [vmem:[#allocation2 + $0x2f0] sm:$0xff] }
 0x292   : > { %v4083_v44 = vadd.f32 %v4075_v51, %v4057_v2  ;;  %v4179_v51 = vmul.f32 %v10301_v18, %v10979_v32  ;;  %v3647_v22 = vadd.f32 %v3639_v38, %v3621_v36  ;;  %v4231_v32 = vmul.f32 %v10343_v61, %v10993_v58  ;;  %v11112_v58 = vld [vmem:[#allocation2 + $0x1f0] sm:$0xff]  ;;  %5020 = vmatpush2.msra.mxu0 %v6272_v48  ;;  %v12884_v35 = vld [vmem:[#allocation75_spill] sm:$0xff] }
 0x293   : > { %3918 = vmatmul.mubr.f32.gmra.mxu0 %v3792_v25  ;;  %v11100_v2 = vmul.f32 %v10383_v10, %v10998_v21  ;;  %v3464_v59 = vadd.f32 %v3456_v63, %v3438_v31  ;;  %v3508_v38 = vmul.f32 %v12791_v3, %v11086_v19  ;;  %v6321_v21 = vld [vmem:[%s12553_s25 + $0x6b0] sm:$0xff]  ;;  %v11122_v13 = vmul.f32 %v10394_v54, %v11011_v24 }
 0x294   : > { %v4109_v7 = vadd.f32 %v4101_v12, %v4083_v44  ;;  %v4340_v12 = vadd.f32 %v10970_v27, %v4314_v23  ;;  %v3673_v14 = vadd.f32 %v11017_v55, %v3647_v22  ;;  %v3534_v62 = vmul.f32 %v12793_v29, %v11093_v30  ;;  %v6271_v24 = vld [vmem:[%s12553_s25 + $0x5d0] sm:$0xff]  ;;  %5586 = vmatpush2.msra.mxu1 %v6321_v21 }
 0x295   : > { %v3490_v6 = vadd.f32 %v3482_v5, %v3464_v59  ;;  %v3952_v25 = vmul.f32 %v12796_v34, %v11022_v45  ;;  %v3970_v27 = vmul.f32 %v12798_v42, %v11032_v43  ;;  %v3560_v44 = vmul.f32 %v12794_v1, %v11112_v58  ;;  %v6320_v34 = vld [vmem:[%s12553_s25 + $0x6a8] sm:$0xff]  ;;  %v11144_v43 = vld [vmem:[#allocation2 + $0x270] sm:$0xff]  ;;  %5021 = vmatprep.subr.mxu0 %v12832_v9 }
 0x296   : > { %v4135_v28 = vadd.f32 %v4127_v0, %v4109_v7  ;;  %v11127_v0 = vld [vmem:[#allocation2 + $0x230] sm:$0xff]  ;;  %v4350_v55 = vadd.f32 %v10413_v41, %v4340_v12  ;;  %v3699_v29 = vadd.f32 %v11026_v53, %v3673_v14  ;;  %v3996_v15 = vmul.f32 %v6446_v40, %v12884_v35  ;;  %v12885_v53 = vld [vmem:[#allocation69_spill] sm:$0xff]  ;;  %5587 = vmatprep.subr.mxu1 %v12832_v9  ;;  %v12891_v14 = vld [vmem:[#allocation143_spill] sm:$0xff] }
 0x297   : > { %v3516_v45 = vadd.f32 %v3508_v38, %v3490_v6  ;;  %v11146_v63 = vld [vmem:[#allocation2 + $0x2b0] sm:$0xff]  ;;  %v3978_v16 = vadd.f32 %v3970_v27, %v3952_v25  ;;  %v4022_v36 = vmul.f32 %v12885_v53, %v11055_v47  ;;  %5022 = vmatpush2.msra.mxu0 %v6271_v24  ;;  %5588 = vmatpush2.msra.mxu1 %v6320_v34  ;;  %v12889_v38 = vld [vmem:[#allocation139_spill] sm:$0xff]  ;;  %v11187_v35 = vld [vmem:[#allocation2 + $0x48] sm:$0xff] }
 0x298   : > { %v4161_v3 = vadd.f32 %v4153_v60, %v4135_v28  ;;  %v4358_v1 = vmax.f32 %v4350_v55, 0.0  ;;  %v3725_v40 = vadd.f32 %v11030_v52, %v3699_v29  ;;  %v11156_v60 = vmul.f32 %v10410_v17, %v11042_v4  ;;  %v11161_v23 = vld [vmem:[#allocation2 + $0x330] sm:$0xff]  ;;  %v12887_v52 = vld [vmem:[#allocation136_spill] sm:$0xff]  ;;  %5023 = vmatprep.subr.mxu0 %v12832_v9  ;;  %5589 = vmatprep.subr.mxu1 %v12832_v9 }
 0x299   : > { %v3542_v5 = vadd.f32 %v3534_v62, %v3516_v45  ;;  %v11163_v47 = vld [vmem:[#allocation2 + $0x370] sm:$0xff]  ;;  %v4004_v48 = vadd.f32 %v3996_v15, %v3978_v16  ;;  %v4048_v28 = vmul.f32 %v12887_v52, %v11072_v37  ;;  %v3612_v21 = vmul.f32 %v12889_v38, %v11144_v43  ;;  %v6270_v37 = vld [vmem:[%s12553_s25 + $0x5c8] sm:$0xff]  ;;  %v6319_v15 = vld [vmem:[%s12553_s25 + $0x6a0] sm:$0xff] }
 0x29a   : > { %v4187_v42 = vadd.f32 %v4179_v51, %v4161_v3  ;;  %v12886_v51 = vld [vmem:[#allocation97_spill] sm:$0xff]  ;;  %v11165_v22 = vld [vmem:[#allocation2 + $0x3b0] sm:$0xff]  ;;  %4484 = vmatmul.mubr.f32.gmra.mxu1 %v4358_v1  ;;  %v3664_v62 = vmul.f32 %v12891_v14, %v11148_v56  ;;  %v4100_v1 = vmul.f32 %v12867_v26, %v11093_v30  ;;  %5024 = vmatpush2.msra.mxu0 %v6270_v37  ;;  %v6318_v26 = vld [vmem:[%s12553_s25 + $0x698] sm:$0xff] }
 0x29b   : > { %v3586_v7 = vmul.f32 %v12886_v51, %v11127_v0  ;;  %v12888_v4 = vld [vmem:[#allocation90_spill] sm:$0xff]  ;;  %v11176_v3 = vld [vmem:[#allocation2 + $0x8] sm:$0xff]  ;;  %v3568_v25 = vadd.f32 %v3560_v44, %v3542_v5  ;;  %v4030_v24 = vadd.f32 %v4022_v36, %v4004_v48  ;;  %v12894_v44 = vld [vmem:[#allocation147_spill] sm:$0xff]  ;;  %5590 = vmatpush2.msra.mxu1 %v6319_v15  ;;  %5025 = vmatprep.subr.mxu0 %v12832_v9 }
 0x29c   : > { %v4213_v31 = vadd.f32 %v4205_v46, %v4187_v42  ;;  %v3751_v59 = vadd.f32 %v12888_v4, %v3725_v40  ;;  %v12890_v46 = vld [vmem:[#allocation148_spill] sm:$0xff]  ;;  %v11183_v27 = vld [vmem:[#allocation2 + $0x3f0] sm:$0xff]  ;;  %v12893_v42 = vld [vmem:[#allocation47_spill] sm:$0xff]  ;;  %v11200_v45 = vmul.f32 %v12894_v44, %v11163_v47  ;;  %v4152_v38 = vmul.f32 %v12830_v50, %v11127_v0  ;;  %5591 = vmatprep.subr.mxu1 %v12832_v9 }
 0x29d   : > { %v3638_v12 = vmul.f32 %v12890_v46, %v11146_v63  ;;  %v12892_v55 = vld [vmem:[#allocation146_spill] sm:$0xff]  ;;  %v3594_v36 = vadd.f32 %v3586_v7, %v3568_v25  ;;  %v6269_v40 = vld [vmem:[%s12553_s25 + $0x5c0] sm:$0xff]  ;;  %v12897_v5 = vld [vmem:[#allocation24_spill] sm:$0xff]  ;;  %v4178_v46 = vmul.f32 %v10301_v18, %v11144_v43  ;;  %5592 = vmatpush2.msra.mxu1 %v6318_v26 }
 0x29e   : > { %v4239_v6 = vadd.f32 %v4231_v32, %v4213_v31  ;;  %v4074_v29 = vmul.f32 %v12892_v55, %v11086_v19  ;;  %v3777_v34 = vadd.f32 %v11068_v8, %v3751_v59  ;;  %v11196_v32 = vmul.f32 %v12893_v42, %v11161_v23  ;;  %v12895_v19 = vld [vmem:[#allocation63_spill] sm:$0xff]  ;;  %v11234_v4 = vld [vmem:[#allocation2 + $0x108] sm:$0xff]  ;;  %5026 = vmatpush2.msra.mxu0 %v6269_v40  ;;  %v6317_v50 = vld [vmem:[%s12553_s25 + $0x690] sm:$0xff] }
 0x29f   : > { %v11204_v16 = vmul.f32 %v12895_v19, %v11165_v22  ;;  %v4056_v8 = vadd.f32 %v4048_v28, %v4030_v24  ;;  %v11220_v31 = vmul.f32 %v12882_v33, %v11183_v27  ;;  %v4531_v48 = vmul.f32 %v12897_v5, %v11187_v35  ;;  %v11249_v37 = vld [vmem:[#allocation2 + $0x148] sm:$0xff]  ;;  %v6268_v18 = vld [vmem:[%s12553_s25 + $0x5b8] sm:$0xff]  ;;  %v12899_v43 = vld [vmem:[#allocation152_spill] sm:$0xff]  ;;  %5027 = vmatprep.subr.mxu0 %v12832_v9 }
 0x2a0   : > { %v4265_v53 = vadd.f32 %v11100_v2, %v4239_v6  ;;  %v3787_v51 = vadd.f32 %v12880_v39, %v3777_v34  ;;  %v12896_v2 = vld [vmem:[#allocation23_spill] sm:$0xff]  ;;  %v3620_v52 = vadd.f32 %v3612_v21, %v3594_v36  ;;  %v4126_v33 = vmul.f32 %v12870_v11, %v11112_v58  ;;  %5593 = vmatprep.subr.mxu1 %v12832_v9  ;;  %v6316_v34 = vld [vmem:[%s12553_s25 + $0x688] sm:$0xff] }
 0x2a1   : > { %v4513_v7 = vmul.f32 %v12896_v2, %v11176_v3  ;;  %v4082_v28 = vadd.f32 %v4074_v29, %v4056_v8  ;;  %v11247_v21 = vmul.f32 %v10311_v49, %v11146_v63  ;;  %v12898_v49 = vld [vmem:[#allocation80_spill] sm:$0xff]  ;;  %v4609_v63 = vmul.f32 %v12899_v43, %v11234_v4  ;;  %v12901_v29 = vld [vmem:[#allocation167_spill] sm:$0xff]  ;;  %5028 = vmatpush2.msra.mxu0 %v6268_v18  ;;  %v11303_v44 = vld [vmem:[#allocation2 + $0x1c8] sm:$0xff] }
 0x2a2   : > { %v4291_v30 = vadd.f32 %v11108_v20, %v4265_v53  ;;  %v3795_v59 = vmax.f32 %v3787_v51, 0.0  ;;  %v3646_v20 = vadd.f32 %v3638_v12, %v3620_v52  ;;  %v11268_v12 = vstv %s11178_s15  ;;  %5594 = vmatpush2.msra.mxu1 %v6317_v50  ;;  %v11305_v19 = vld [vmem:[#allocation2 + $0x208] sm:$0xff]  ;;  %5029 = vmatprep.subr.mxu0 %v12832_v9  ;;  %v12906_v50 = vld [vmem:[#allocation26_spill] sm:$0xff] }
 0x2a3   : > { %v4539_v14 = vadd.f32 %v4531_v48, %v4513_v7  ;;  %v4108_v58 = vadd.f32 %v4100_v1, %v4082_v28  ;;  %v11286_v55 = vmul.f32 %v10386_v57, %v11163_v47  ;;  %v4635_v15 = vmul.f32 %v12901_v29, %v11249_v37  ;;  %v6266_v36 = vld [vmem:[%s12553_s25 + $0x5a8] sm:$0xff]  ;;  %5595 = vmatprep.subr.mxu1 %v12832_v9  ;;  %v6265_v28 = vld [vmem:[%s12553_s25 + $0x5a0] sm:$0xff] }
 0x2a4   : > { %v4317_v11 = vadd.f32 %v11122_v13, %v4291_v30  ;;  %6180 = vmatprep.mubr.msk.f32.mxu0 %vm400_vm0, %v3795_v59  ;;  %v11262_v13 = vmul.f32 %v10343_v61, %v11148_v56  ;;  %v3672_v25 = vadd.f32 %v3664_v62, %v3646_v20  ;;  %v11276_v61 = vmul.f32 %v10383_v10, %v11161_v23  ;;  %v6267_v56 = vld [vmem:[%s12553_s25 + $0x5b0] sm:$0xff]  ;;  %v11291_v10 = vld [vmem:[#allocation2 + $0x188] sm:$0xff] }
 0x2a5   : > { %v4565_v0 = vadd.f32 %v12898_v49, %v4539_v14  ;;  %v4134_v24 = vadd.f32 %v4126_v33, %v4108_v58  ;;  %v11294_v23 = vstv %s11206_s29  ;;  %v11308_v53 = vstv %s11212_s12  ;;  %v11324_v40 = vld [vmem:[#allocation2 + $0x248] sm:$0xff]  ;;  %5030 = vmatpush2.msra.mxu0 %v6267_v56  ;;  %5596 = vmatpush2.msra.mxu1 %v6316_v34  ;;  %v6314_v33 = vld [vmem:[%s12553_s25 + $0x678] sm:$0xff]  ;;  %v12905_v58 = vld [vmem:[#allocation25_spill] sm:$0xff] }
 0x2a6   : > { %v4343_v6 = vadd.f32 %v11156_v60, %v4317_v11  ;;  %v12900_v60 = vld [vmem:[#allocation37_spill] sm:$0xff]  ;;  %v3698_v47 = vadd.f32 %v11196_v32, %v3672_v25  ;;  %v11318_v8 = vmul.f32 %v10394_v54, %v11165_v22  ;;  %v11322_v32 = vmul.f32 %v10410_v17, %v11183_v27  ;;  %v6315_v54 = vld [vmem:[%s12553_s25 + $0x680] sm:$0xff]  ;;  %5031 = vmatprep.subr.mxu0 %v12832_v9  ;;  %v11345_v52 = vld [vmem:[#allocation2 + $0x288] sm:$0xff] }
 0x2a7   : > { %v4591_v62 = vadd.f32 %v12900_v60, %v4565_v0  ;;  %v4160_v42 = vadd.f32 %v4152_v38, %v4134_v24  ;;  %v11327_v51 = vstv %s11226_s23  ;;  %v4661_v27 = vmul.f32 %v11268_v12, %v11291_v10  ;;  %5597 = vmatprep.subr.mxu1 %v12832_v9  ;;  %5032 = vmatpush2.msra.mxu0 %v6266_v36  ;;  %v11364_v14 = vld [vmem:[#allocation2 + $0x2c8] sm:$0xff]  ;;  %v6313_v49 = vld [vmem:[%s12553_s25 + $0x670] sm:$0xff] }
 0x2a8   : > { %v4353_v57 = vadd.f32 %v10413_v41, %v4343_v6  ;;  %12902 = vst [vmem:[#allocation107_spill] sm:$0xff] %v11327_v51  ;;  %v3724_v7 = vadd.f32 %v11200_v45, %v3698_v47  ;;  %v4687_v26 = vmul.f32 %v11294_v23, %v11303_v44  ;;  %v4713_v30 = vmul.f32 %v11308_v53, %v11305_v19  ;;  %v11418_v47 = vld [vmem:[#allocation2 + $0x348] sm:$0xff] }
 0x2a9   : > { %v4617_v1 = vadd.f32 %v4609_v63, %v4591_v62  ;;  %v4186_v17 = vadd.f32 %v4178_v46, %v4160_v42  ;;  %v11348_v45 = vstv %s11241_s19  ;;  %v4739_v46 = vmul.f32 %v11327_v51, %v11324_v40  ;;  %5598 = vmatpush2.msra.mxu1 %v6315_v54  ;;  %5033 = vmatprep.subr.mxu0 %v12832_v9  ;;  %v11420_v42 = vld [vmem:[#allocation2 + $0x388] sm:$0xff] }
 0x2aa   : > { %v4361_v22 = vmax.f32 %v4353_v57, 0.0  ;;  %12903 = vst [vmem:[#allocation91_spill] sm:$0xff] %v11348_v45  ;;  %v3750_v59 = vadd.f32 %v11204_v16, %v3724_v7  ;;  %v11367_v11 = vstv %s11251_s30  ;;  %v5079_v18 = vmul.f32 %v12905_v58, %v11176_v3  ;;  %5599 = vmatprep.subr.mxu1 %v12832_v9  ;;  %s11389_s30 = sld [smem:[#allocation5 + $0x389]]  ;;  %5034 = vmatpush2.msra.mxu0 %v6265_v28  ;;  %v11416_v57 = vld [vmem:[#allocation2 + $0x308] sm:$0xff] }
 0x2ab   : > { %v4643_v48 = vadd.f32 %v4635_v15, %v4617_v1  ;;  %v4212_v38 = vadd.f32 %v11247_v21, %v4186_v17  ;;  %12904 = vst [vmem:[#allocation108_spill] sm:$0xff] %v11367_v11  ;;  %v5097_v16 = vmul.f32 %v12906_v50, %v11187_v35  ;;  %v6264_v21 = vld [vmem:[%s12553_s25 + $0x598] sm:$0xff]  ;;  %v4765_v35 = vmul.f32 %v11348_v45, %v11345_v52 }
 0x2ac   : > { %6229 = vmatprep.mubr.msk.f32.mxu1 %vm400_vm0, %v4361_v22  ;;  %v3776_v0 = vadd.f32 %v11220_v31, %v3750_v59  ;;  %5600 = vmatpush2.msra.mxu1 %v6314_v33  ;;  %v4791_v6 = vmul.f32 %v11367_v11, %v11364_v14  ;;  %v11394_v25 = vstv %s11296_s27  ;;  %v6263_v31 = vld [vmem:[%s12553_s25 + $0x590] sm:$0xff]  ;;  %v11409_v62 = vstv %s11310_s16  ;;  %s11449_s27 = sld [smem:[#allocation5 + $0x38d]] }
 0x2ad   : > { %v4669_v20 = vadd.f32 %v4661_v27, %v4643_v48  ;;  %v4238_v3 = vadd.f32 %v11262_v13, %v4212_v38  ;;  %12907 = vst [vmem:[#allocation86_spill] sm:$0xff] %v11394_v25  ;;  %v5105_v24 = vadd.f32 %v5097_v16, %v5079_v18  ;;  %5035 = vmatprep.subr.mxu0 %v12832_v9  ;;  %v6312_v13 = vld [vmem:[%s12553_s25 + $0x668] sm:$0xff]  ;;  %12908 = vst [vmem:[#allocation48_spill] sm:$0xff] %v11409_v62  ;;  %s11425_s25 = sld [smem:[#allocation7 + $0x6]] }
 0x2ae   : > { %5601 = vmatprep.subr.mxu1 %v12832_v9  ;;  %v3786_v56 = vadd.f32 %v12880_v39, %v3776_v0  ;;  %v11412_v15 = vstv %s11270_s21  ;;  %5036 = vmatpush2.msra.mxu0 %v6264_v21  ;;  %v11423_v39 = vstv %s11329_s28  ;;  %v11434_v7 = vstv %s11338_s8  ;;  %s11439_s21 = sld [smem:[#allocation5 + $0x38c]]  ;;  %v11441_v48 = vld [vmem:[#allocation2 + $0x3c8] sm:$0xff]  ;;  %v4625_v0 = vld [vmem:[#allocation2 + $0x140] sm:$0xff] }
 0x2af   : > { %v4695_v63 = vadd.f32 %v4687_v26, %v4669_v20  ;;  %v4264_v60 = vadd.f32 %v11276_v61, %v4238_v3  ;;  %12909 = vst [vmem:[#allocation93_spill] sm:$0xff] %v11412_v15  ;;  %5602 = vmatpush2.msra.mxu1 %v6313_v49  ;;  %12910 = vst [vmem:[#allocation111_spill] sm:$0xff] %v11423_v39  ;;  %v12911_v61 = vld [vmem:[#allocation39_spill] sm:$0xff]  ;;  %v5175_v1 = vmul.f32 %v11412_v15, %v11234_v4  ;;  %v12913_v4 = vld [vmem:[#allocation170_spill] sm:$0xff] }
 0x2b0   : > { %v5131_v36 = vadd.f32 %v12911_v61, %v5105_v24  ;;  %5037 = vmatprep.subr.mxu0 %v12832_v9  ;;  %5603 = vmatprep.subr.mxu1 %v12832_v9  ;;  %v3794_v54 = vmax.f32 %v3786_v56, 0.0  ;;  %v11437_v17 = vstv %s11278_s24  ;;  %v4817_v28 = vmul.f32 %v11394_v25, %v11416_v57  ;;  %s11458_s24 = sld [smem:[#allocation5 + $0x38e]]  ;;  %v4599_v49 = vld [vmem:[#allocation2 + $0x100] sm:$0xff] }
 0x2b1   : > { %v4721_v34 = vadd.f32 %v4713_v30, %v4695_v63  ;;  %v4290_v22 = vadd.f32 %v11286_v55, %v4264_v60  ;;  %12912 = vst [vmem:[#allocation94_spill] sm:$0xff] %v11437_v17  ;;  %5038 = vmatpush2.msra.mxu0 %v6263_v31  ;;  %5604 = vmatpush2.msra.mxu1 %v6312_v13  ;;  %v11447_v30 = vstv %s11350_s26  ;;  %v11464_v20 = vstv %s11375_s20  ;;  %v12918_v13 = vld [vmem:[#allocation164_spill] sm:$0xff] }
 0x2b2   : > { %v5157_v26 = vadd.f32 %v12913_v4, %v5131_v36  ;;  %v5201_v9 = vmul.f32 %v11437_v17, %v11249_v37  ;;  %12914 = vst [vmem:[#allocation112_spill] sm:$0xff] %v11447_v30  ;;  %3923 = vmatmul.mubr.f32.gmra.mxu0 %v3794_v54  ;;  %v4843_v33 = vmul.f32 %v11409_v62, %v11418_v47  ;;  %12916 = vst [vmem:[#allocation129_spill] sm:$0xff] %v11464_v20  ;;  %v4677_v54 = vld [vmem:[#allocation2 + $0x1c0] sm:$0xff] }
 0x2b3   : > { %v4747_v27 = vadd.f32 %v4739_v46, %v4721_v34  ;;  %v4316_v55 = vadd.f32 %v11318_v8, %v4290_v22  ;;  %v4869_v59 = vmul.f32 %v11423_v39, %v11420_v42  ;;  %v11461_v46 = vstv %s11369_s11 }
 0x2b4   : > { %v5183_v38 = vadd.f32 %v5175_v1, %v5157_v26  ;;  %12915 = vst [vmem:[#allocation41_spill] sm:$0xff] %v11461_v46  ;;  %v4895_v18 = vmul.f32 %v11434_v7, %v11441_v48  ;;  %v5227_v16 = vmul.f32 %v11461_v46, %v11291_v10  ;;  %v5253_v21 = vmul.f32 %v11447_v30, %v11303_v44  ;;  %v12917_v44 = vld [vmem:[#allocation155_spill] sm:$0xff] }
 0x2b5   : > { %v4773_v37 = vadd.f32 %v4765_v35, %v4747_v27  ;;  %v4342_v8 = vadd.f32 %v11322_v32, %v4316_v55  ;;  %v11476_v63 = vstv %s11389_s30  ;;  %v11479_v24 = vstv %s11396_s6  ;;  %s13017_s6 = sld [smem:[#allocation175_spill]] }
 0x2b6   : > { %v5209_v35 = vadd.f32 %v5201_v9, %v5183_v38  ;;  %v5279_v10 = vmul.f32 %v11464_v20, %v11305_v19  ;;  %v11485_v31 = vstv %s11414_s0  ;;  %v4590_v56 = vadd.f32 %v12918_v13, %v12917_v44  ;;  %v4703_v38 = vld [vmem:[#allocation2 + $0x200] sm:$0xff] }
 0x2b7   : > { %v4799_v3 = vadd.f32 %v4791_v6, %v4773_v37  ;;  %v4352_v32 = vadd.f32 %v10413_v41, %v4342_v8  ;;  %v4608_v34 = vmul.f32 %v12899_v43, %v4599_v49  ;;  %v4634_v61 = vmul.f32 %v12901_v29, %v4625_v0  ;;  %v6447_v37 = vld [vmem:[#allocation2 + $0x180] sm:$0xff] }
 0x2b8   : > { %v5235_v6 = vadd.f32 %v5227_v16, %v5209_v35  ;;  %v11492_v1 = vstv %s11425_s25  ;;  %v5305_v41 = vmul.f32 %v11476_v63, %v11324_v40  ;;  %v5331_v19 = vmul.f32 %v11479_v24, %v11345_v52  ;;  %v12921_v35 = vld [vmem:[#allocation156_spill] sm:$0xff] }
 0x2b9   : > { %v4825_v60 = vadd.f32 %v4817_v28, %v4799_v3  ;;  %v4360_v36 = vmax.f32 %v4352_v32, 0.0  ;;  %12919 = vst [vmem:[#allocation49_spill] sm:$0xff] %v11492_v1  ;;  %v11499_v4 = vstv %s11439_s21  ;;  %v4616_v26 = vadd.f32 %v4608_v34, %v4590_v56  ;;  %v4729_v3 = vld [vmem:[#allocation2 + $0x240] sm:$0xff]  ;;  %v11523_v34 = vpop.f32.mrf.mxu1  ;;  %s13020_s21 = sld [smem:[#allocation177_spill]] }
 0x2ba   : > { %v5261_v27 = vadd.f32 %v5253_v21, %v5235_v6  ;;  %v5357_v9 = vmul.f32 %v11485_v31, %v11364_v14  ;;  %v11504_v55 = vstv %s11449_s27  ;;  %v11507_v28 = vstv %s11458_s24  ;;  %v12922_v14 = vld [vmem:[#allocation165_spill] sm:$0xff]  ;;  %12924 = vst [vmem:[#allocation137_spill] sm:$0xff] %v11523_v34 }
 0x2bb   : > { %v4851_v22 = vadd.f32 %v4843_v33, %v4825_v60  ;;  %4489 = vmatmul.mubr.f32.gmra.mxu1 %v4360_v36  ;;  %v4660_v40 = vmul.f32 %v6447_v37, %v11268_v12  ;;  %v4642_v33 = vadd.f32 %v4634_v61, %v4616_v26  ;;  %v4686_v16 = vmul.f32 %v11294_v23, %v4677_v54 }
 0x2bc   : > { %v5287_v8 = vadd.f32 %v5279_v10, %v5261_v27  ;;  %v11514_v21 = vstv %s11473_s4  ;;  %v5156_v32 = vadd.f32 %v12922_v14, %v12921_v35  ;;  %v5174_v44 = vmul.f32 %v11412_v15, %v4599_v49  ;;  %v11521_v10 = vpop.f32.mrf.mxu0  ;;  %v4781_v35 = vld [vmem:[#allocation2 + $0x2c0] sm:$0xff]  ;;  %s13021_s4 = sld [smem:[#allocation178_spill]] }
 0x2bd   : > { %v4877_v52 = vadd.f32 %v4869_v59, %v4851_v22  ;;  %12920 = vst [vmem:[#allocation130_spill] sm:$0xff] %v11514_v21  ;;  %v5200_v13 = vmul.f32 %v11437_v17, %v4625_v0  ;;  %v4668_v6 = vadd.f32 %v4660_v40, %v4642_v33  ;;  %v4712_v59 = vmul.f32 %v11308_v53, %v4703_v38  ;;  %v4755_v22 = vld [vmem:[#allocation2 + $0x280] sm:$0xff]  ;;  %v4506_v40 = vld [vmem:[#allocation2 + $0x18] sm:$0xff]  ;;  %v2218_v33 = vpop.f32.mrf.mxu1 }
 0x2be   : > { %v5313_v60 = vadd.f32 %v5305_v41, %v5287_v8  ;;  %12923 = vst [vmem:[#allocation96_spill] sm:$0xff] %v11521_v10  ;;  %v5383_v61 = vmul.f32 %v11499_v4, %v11416_v57  ;;  %v5409_v36 = vmul.f32 %v11504_v55, %v11418_v47  ;;  %v5435_v49 = vmul.f32 %v11507_v28, %v11420_v42  ;;  %v1652_v8 = vpop.f32.mrf.mxu0  ;;  %v4859_v33 = vld [vmem:[#allocation2 + $0x380] sm:$0xff] }
 0x2bf   : > { %v4903_v56 = vadd.f32 %v4895_v18, %v4877_v52  ;;  %v5182_v0 = vadd.f32 %v5174_v44, %v5156_v32  ;;  %v4694_v27 = vadd.f32 %v4686_v16, %v4668_v6  ;;  %v4738_v26 = vmul.f32 %v11327_v51, %v4729_v3  ;;  %v4524_v52 = vld [vmem:[#allocation2 + $0x58] sm:$0xff]  ;;  %v11540_v6 = vpop.f32.mrf.mxu1  ;;  %v4833_v8 = vld [vmem:[#allocation2 + $0x340] sm:$0xff] }
 0x2c0   : > { %v5339_v41 = vadd.f32 %v5331_v19, %v5313_v60  ;;  %v5461_v57 = vmul.f32 %v11514_v21, %v11441_v48  ;;  %v5226_v14 = vmul.f32 %v6447_v37, %v11461_v46  ;;  %v5252_v42 = vmul.f32 %v11447_v30, %v4677_v54  ;;  %v11538_v60 = vpop.f32.mrf.mxu0  ;;  %12926 = vst [vmem:[#allocation151_spill] sm:$0xff] %v11540_v6 }
 0x2c1   : > { %v4913_v18 = vadd.f32 %v11492_v1, %v4903_v56  ;;  %v5208_v47 = vadd.f32 %v5200_v13, %v5182_v0  ;;  %v4720_v19 = vadd.f32 %v4712_v59, %v4694_v27  ;;  %v4764_v16 = vmul.f32 %v11348_v45, %v4755_v22  ;;  %v4807_v56 = vld [vmem:[#allocation2 + $0x300] sm:$0xff]  ;;  %12925 = vst [vmem:[#allocation142_spill] sm:$0xff] %v11538_v60  ;;  %v2223_v6 = vpop.f32.mrf.mxu1 }
 0x2c2   : > { %v5365_v44 = vadd.f32 %v5357_v9, %v5339_v41  ;;  %v5278_v13 = vmul.f32 %v11464_v20, %v4703_v38  ;;  %v4515_v37 = vmul.f32 %v12896_v2, %v4506_v40  ;;  %v4533_v54 = vmul.f32 %v12897_v5, %v4524_v52  ;;  %v4602_v41 = vld [vmem:[#allocation2 + $0x118] sm:$0xff]  ;;  %v1657_v27 = vpop.f32.mrf.mxu0 }
 0x2c3   : > { %v4921_v32 = vmax.f32 %v4913_v18, 0.0  ;;  %v5234_v48 = vadd.f32 %v5226_v14, %v5208_v47  ;;  %v11547_v59 = vstv %s11510_s22  ;;  %v4746_v0 = vadd.f32 %v4738_v26, %v4720_v19  ;;  %v4885_v47 = vld [vmem:[#allocation2 + $0x3c0] sm:$0xff]  ;;  %v11556_v19 = vpop.f32.mrf.mxu1  ;;  %s389_s22 = scalar_lea.vmem %s13021_s4, %s5868_s7 }
 0x2c4   : > { %v5391_v9 = vadd.f32 %v5383_v61, %v5365_v44  ;;  %v4790_v18 = vmul.f32 %v11367_v11, %v4781_v35  ;;  %v4816_v34 = vmul.f32 %v11394_v25, %v4807_v56  ;;  %v5304_v38 = vmul.f32 %v11476_v63, %v4729_v3  ;;  %v4628_v44 = vld [vmem:[#allocation2 + $0x158] sm:$0xff]  ;;  %v11554_v26 = vpop.f32.mrf.mxu0  ;;  %12928 = vst [vmem:[#allocation160_spill] sm:$0xff] %v11556_v19  ;;  %v12929_v25 = vld [vmem:[#allocation116_spill] sm:$0xff] }
 0x2c5   : > { %6275 = vmatprep.mubr.msk.f32.mxu0 %vm400_vm0, %v4921_v32  ;;  %v5260_v14 = vadd.f32 %v5252_v42, %v5234_v48  ;;  %v4541_v60 = vadd.f32 %v4533_v54, %v4515_v37  ;;  %v4772_v20 = vadd.f32 %v4764_v16, %v4746_v0  ;;  %v4842_v32 = vmul.f32 %v11409_v62, %v4833_v8  ;;  %v4654_v37 = vld [vmem:[#allocation2 + $0x198] sm:$0xff]  ;;  %v12930_v19 = vld [vmem:[#allocation132_spill] sm:$0xff] }
 0x2c6   : > { %v5417_v10 = vadd.f32 %v5409_v36, %v5391_v9  ;;  %v4868_v61 = vmul.f32 %v11423_v39, %v4859_v33  ;;  %12927 = vst [vmem:[#allocation159_spill] sm:$0xff] %v11554_v26  ;;  %v5330_v6 = vmul.f32 %v11479_v24, %v4755_v22  ;;  %v4611_v42 = vmul.f32 %v12899_v43, %v4602_v41  ;;  %v1662_v54 = vpop.f32.mrf.mxu0  ;;  %v2228_v9 = vpop.f32.mrf.mxu1 }
 0x2c7   : > { %v5286_v27 = vadd.f32 %v5278_v13, %v5260_v14  ;;  %v4567_v30 = vadd.f32 %v12929_v25, %v4541_v60  ;;  %v4798_v48 = vadd.f32 %v4790_v18, %v4772_v20  ;;  %v4894_v36 = vmul.f32 %v11434_v7, %v4885_v47  ;;  %v4680_v60 = vld [vmem:[#allocation2 + $0x1d8] sm:$0xff] }
 0x2c8   : > { %v5443_v3 = vadd.f32 %v5435_v49, %v5417_v10  ;;  %v5356_v16 = vmul.f32 %v11485_v31, %v4781_v35  ;;  %v5382_v26 = vmul.f32 %v11499_v4, %v4807_v56  ;;  %v4637_v22 = vmul.f32 %v12901_v29, %v4628_v44  ;;  %v11568_v49 = vpop.f32.mrf.mxu0  ;;  %v11570_v35 = vpop.f32.mrf.mxu1 }
 0x2c9   : > { %v5312_v0 = vadd.f32 %v5304_v38, %v5286_v27  ;;  %v4593_v13 = vadd.f32 %v12930_v19, %v4567_v30  ;;  %v4824_v25 = vadd.f32 %v4816_v34, %v4798_v48  ;;  %v5081_v10 = vmul.f32 %v12905_v58, %v4506_v40  ;;  %12931 = vst [vmem:[#allocation35_spill] sm:$0xff] %v11568_v49  ;;  %v4862_v49 = vld [vmem:[#allocation2 + $0x398] sm:$0xff] }
 0x2ca   : > { %v5469_v14 = vadd.f32 %v5461_v57, %v5443_v3  ;;  %v5099_v20 = vmul.f32 %v12906_v50, %v4524_v52  ;;  %12932 = vst [vmem:[#allocation78_spill] sm:$0xff] %v11570_v35  ;;  %v5408_v38 = vmul.f32 %v11504_v55, %v4833_v8  ;;  %v4663_v56 = vmul.f32 %v11268_v12, %v4654_v37  ;;  %v4706_v57 = vld [vmem:[#allocation2 + $0x218] sm:$0xff]  ;;  %v2779_v52 = vpop.f32.mrf.mxu0  ;;  %v3345_v48 = vpop.f32.mrf.mxu1 }
 0x2cb   : > { %v5338_v18 = vadd.f32 %v5330_v6, %v5312_v0  ;;  %v4619_v27 = vadd.f32 %v4611_v42, %v4593_v13  ;;  %v4850_v19 = vadd.f32 %v4842_v32, %v4824_v25  ;;  %v5434_v34 = vmul.f32 %v11507_v28, %v4859_v33  ;;  %v11576_v3 = vld [vmem:[#allocation2 + $0x258] sm:$0xff]  ;;  %v12933_v32 = vld [vmem:[#allocation120_spill] sm:$0xff] }
 0x2cc   : > { %v5479_v30 = vadd.f32 %v11547_v59, %v5469_v14  ;;  %v5107_v40 = vadd.f32 %v5099_v20, %v5081_v10  ;;  %v5460_v9 = vmul.f32 %v11514_v21, %v4885_v47  ;;  %v4689_v8 = vmul.f32 %v11294_v23, %v4680_v60  ;;  %v11580_v42 = vld [vmem:[#allocation2 + $0x298] sm:$0xff]  ;;  %v11586_v35 = vpop.f32.mrf.mxu0  ;;  %v11588_v10 = vpop.f32.mrf.mxu1 }
 0x2cd   : > { %v5364_v54 = vadd.f32 %v5356_v16, %v5338_v18  ;;  %v4645_v6 = vadd.f32 %v4637_v22, %v4619_v27  ;;  %v4876_v13 = vadd.f32 %v4868_v61, %v4850_v19  ;;  %v11582_v14 = vld [vmem:[#allocation2 + $0x2d8] sm:$0xff]  ;;  %v5177_v25 = vmul.f32 %v11412_v15, %v4602_v41  ;;  %12934 = vst [vmem:[#allocation115_spill] sm:$0xff] %v11586_v35  ;;  %v4505_v18 = vld [vmem:[#allocation2 + $0x10] sm:$0xff] }
 0x2ce   : > { %v5487_v0 = vmax.f32 %v5479_v30, 0.0  ;;  %v5133_v33 = vadd.f32 %v12933_v32, %v5107_v40  ;;  %12935 = vst [vmem:[#allocation92_spill] sm:$0xff] %v11588_v10  ;;  %v4715_v47 = vmul.f32 %v11308_v53, %v4706_v57  ;;  %v4741_v22 = vmul.f32 %v11327_v51, %v11576_v3  ;;  %v11593_v27 = vld [vmem:[#allocation2 + $0x50] sm:$0xff]  ;;  %v12936_v30 = vld [vmem:[#allocation133_spill] sm:$0xff] }
 0x2cf   : > { %v5390_v16 = vadd.f32 %v5382_v26, %v5364_v54  ;;  %v4671_v20 = vadd.f32 %v4663_v56, %v4645_v6  ;;  %v4902_v61 = vadd.f32 %v4894_v36, %v4876_v13  ;;  %v4767_v41 = vmul.f32 %v11348_v45, %v11580_v42  ;;  %v2784_v26 = vpop.f32.mrf.mxu0  ;;  %v3350_v56 = vpop.f32.mrf.mxu1  ;;  %v11603_v32 = vld [vmem:[#allocation2 + $0xd0] sm:$0xff]  ;;  %v4836_v13 = vld [vmem:[#allocation2 + $0x358] sm:$0xff] }
 0x2d0   : > { %6324 = vmatprep.mubr.msk.f32.mxu1 %vm400_vm0, %v5487_v0  ;;  %v5159_v19 = vadd.f32 %v12936_v30, %v5133_v33  ;;  %v5203_v40 = vmul.f32 %v11437_v17, %v4628_v44  ;;  %v4793_v54 = vmul.f32 %v11367_v11, %v11582_v14  ;;  %v5229_v6 = vmul.f32 %v11461_v46, %v4654_v37  ;;  %v4810_v0 = vld [vmem:[#allocation2 + $0x318] sm:$0xff]  ;;  %v6448_v26 = vld [vmem:[#allocation2 + $0x90] sm:$0xff]  ;;  %v12939_v37 = vld [vmem:[#allocation76_spill] sm:$0xff] }
 0x2d1   : > { %v5416_v52 = vadd.f32 %v5408_v38, %v5390_v16  ;;  %v4697_v48 = vadd.f32 %v4689_v8, %v4671_v20  ;;  %v4912_v36 = vadd.f32 %v11492_v1, %v4902_v61  ;;  %v4514_v33 = vmul.f32 %v12896_v2, %v4505_v18  ;;  %v11609_v30 = vpop.f32.mrf.mxu0  ;;  %v12938_v16 = vld [vmem:[#allocation112_spill] sm:$0xff]  ;;  %v11613_v35 = vld [vmem:[#allocation2 + $0x110] sm:$0xff]  ;;  %v4888_v46 = vld [vmem:[#allocation2 + $0x3d8] sm:$0xff] }
 0x2d2   : > { %v5185_v10 = vadd.f32 %v5177_v25, %v5159_v19  ;;  %v4532_v44 = vmul.f32 %v12897_v5, %v11593_v27  ;;  %12937 = vst [vmem:[#allocation119_spill] sm:$0xff] %v11609_v30  ;;  %v5255_v20 = vmul.f32 %v12938_v16, %v4680_v60  ;;  %v4558_v56 = vmul.f32 %v6448_v26, %v12939_v37  ;;  %v12940_v1 = vld [vmem:[#allocation70_spill] sm:$0xff]  ;;  %v12942_v37 = vld [vmem:[#allocation129_spill] sm:$0xff] }
 0x2d3   : > { %v5442_v38 = vadd.f32 %v5434_v34, %v5416_v52  ;;  %v4723_v8 = vadd.f32 %v4715_v47, %v4697_v48  ;;  %v4920_v61 = vmax.f32 %v4912_v36, 0.0  ;;  %v4584_v2 = vmul.f32 %v12940_v1, %v11603_v32  ;;  %v2789_v5 = vpop.f32.mrf.mxu0  ;;  %v12941_v34 = vld [vmem:[#allocation86_spill] sm:$0xff] }
 0x2d4   : > { %v5211_v25 = vadd.f32 %v5203_v40, %v5185_v10  ;;  %v4540_v19 = vadd.f32 %v4532_v44, %v4514_v33  ;;  %v4819_v47 = vmul.f32 %v12941_v34, %v4810_v0  ;;  %v4845_v60 = vmul.f32 %v11409_v62, %v4836_v13  ;;  %v11619_v52 = vld [vmem:[#allocation2 + $0x150] sm:$0xff] }
 0x2d5   : > { %v5468_v17 = vadd.f32 %v5460_v9, %v5442_v38  ;;  %v4749_v30 = vadd.f32 %v4741_v22, %v4723_v8  ;;  %5040 = vmatmul.mubr.f32.vlgmr.msra.gmra.mxu0 %v4920_v61  ;;  %v5281_v36 = vmul.f32 %v12942_v37, %v4706_v57  ;;  %v4610_v10 = vmul.f32 %v12899_v43, %v11613_v35  ;;  %v4653_v22 = vld [vmem:[#allocation2 + $0x190] sm:$0xff] }
 0x2d6   : > { %v5237_v48 = vadd.f32 %v5229_v6, %v5211_v25  ;;  %v4566_v16 = vadd.f32 %v4558_v56, %v4540_v19  ;;  %v4871_v5 = vmul.f32 %v11423_v39, %v4862_v49  ;;  %v4897_v9 = vmul.f32 %v11434_v7, %v4888_v46 }
 0x2d7   : > { %v5478_v40 = vadd.f32 %v11547_v59, %v5468_v17  ;;  %v4775_v33 = vadd.f32 %v4767_v41, %v4749_v30  ;;  %v5307_v38 = vmul.f32 %v11476_v63, %v11576_v3  ;;  %v4636_v57 = vmul.f32 %v12901_v29, %v11619_v52  ;;  %v4679_v41 = vld [vmem:[#allocation2 + $0x1d0] sm:$0xff]  ;;  %v11637_v3 = vpop.f32.mrf.mxu1 }
 0x2d8   : > { %v5263_v44 = vadd.f32 %v5255_v20, %v5237_v48  ;;  %v4592_v8 = vadd.f32 %v4584_v2, %v4566_v16  ;;  %v5333_v61 = vmul.f32 %v11479_v24, %v11580_v42  ;;  %v5359_v17 = vmul.f32 %v11485_v31, %v11582_v14  ;;  %12943 = vst [vmem:[#allocation84_spill] sm:$0xff] %v11637_v3  ;;  %v12944_v48 = vld [vmem:[#allocation77_spill] sm:$0xff]  ;;  %v12945_v3 = vld [vmem:[#allocation71_spill] sm:$0xff] }
 0x2d9   : > { %v5486_v6 = vmax.f32 %v5478_v40, 0.0  ;;  %v4801_v56 = vadd.f32 %v4793_v54, %v4775_v33  ;;  %v4662_v20 = vmul.f32 %v11268_v12, %v4653_v22  ;;  %v5080_v19 = vmul.f32 %v12905_v58, %v4505_v18  ;;  %v4705_v54 = vld [vmem:[#allocation2 + $0x210] sm:$0xff]  ;;  %v3355_v18 = vpop.f32.mrf.mxu1 }
 0x2da   : > { %v5289_v30 = vadd.f32 %v5281_v36, %v5263_v44  ;;  %v4618_v25 = vadd.f32 %v4610_v10, %v4592_v8  ;;  %v5385_v16 = vmul.f32 %v11499_v4, %v4810_v0  ;;  %v5098_v42 = vmul.f32 %v12906_v50, %v11593_v27  ;;  %v4731_v44 = vld [vmem:[#allocation2 + $0x250] sm:$0xff] }
 0x2db   : > { %5606 = vmatmul.mubr.f32.vlgmr.msra.gmra.mxu1 %v5486_v6  ;;  %v4827_v2 = vadd.f32 %v4819_v47, %v4801_v56  ;;  %v5124_v40 = vmul.f32 %v6448_v26, %v12944_v48  ;;  %v5411_v36 = vmul.f32 %v11504_v55, %v4836_v13  ;;  %v4688_v33 = vmul.f32 %v11294_v23, %v4679_v41  ;;  %v4757_v47 = vld [vmem:[#allocation2 + $0x290] sm:$0xff]  ;;  %v12947_v48 = vld [vmem:[#allocation23_spill] sm:$0xff] }
 0x2dc   : > { %v5315_v14 = vadd.f32 %v5307_v38, %v5289_v30  ;;  %v4644_v10 = vadd.f32 %v4636_v57, %v4618_v25  ;;  %v5437_v6 = vmul.f32 %v11507_v28, %v4862_v49  ;;  %v4783_v56 = vld [vmem:[#allocation2 + $0x2d0] sm:$0xff]  ;;  %v5106_v0 = vadd.f32 %v5098_v42, %v5080_v19 }
 0x2dd   : > { %v4853_v8 = vadd.f32 %v4845_v60, %v4827_v2  ;;  %v5150_v1 = vmul.f32 %v12945_v3, %v11603_v32  ;;  %v5463_v26 = vmul.f32 %v11514_v21, %v4888_v46  ;;  %v4714_v13 = vmul.f32 %v11308_v53, %v4705_v54  ;;  %v4809_v57 = vld [vmem:[#allocation2 + $0x310] sm:$0xff]  ;;  %v4508_v60 = vld [vmem:[#allocation2 + $0x28] sm:$0xff] }
 0x2de   : > { %v5341_v27 = vadd.f32 %v5333_v61, %v5315_v14  ;;  %v4670_v38 = vadd.f32 %v4662_v20, %v4644_v10  ;;  %v4740_v25 = vmul.f32 %v11327_v51, %v4731_v44  ;;  %v5132_v18 = vadd.f32 %v5124_v40, %v5106_v0  ;;  %v4526_v2 = vld [vmem:[#allocation2 + $0x68] sm:$0xff]  ;;  %v4835_v46 = vld [vmem:[#allocation2 + $0x350] sm:$0xff] }
 0x2df   : > { %v4879_v30 = vadd.f32 %v4871_v5, %v4853_v8  ;;  %v5176_v49 = vmul.f32 %v11412_v15, %v11613_v35  ;;  %v4766_v32 = vmul.f32 %v11348_v45, %v4757_v47  ;;  %v4792_v61 = vmul.f32 %v11367_v11, %v4783_v56  ;;  %v4861_v10 = vld [vmem:[#allocation2 + $0x390] sm:$0xff] }
 0x2e0   : > { %v5367_v19 = vadd.f32 %v5359_v17, %v5341_v27  ;;  %v4696_v42 = vadd.f32 %v4688_v33, %v4670_v38  ;;  %v4818_v14 = vmul.f32 %v12941_v34, %v4809_v57  ;;  %v5158_v5 = vadd.f32 %v5150_v1, %v5132_v18  ;;  %v12946_v8 = vld [vmem:[#allocation94_spill] sm:$0xff]  ;;  %v12948_v17 = vld [vmem:[#allocation24_spill] sm:$0xff] }
 0x2e1   : > { %v4905_v20 = vadd.f32 %v4897_v9, %v4879_v30  ;;  %v5202_v40 = vmul.f32 %v12946_v8, %v11619_v52  ;;  %v4887_v35 = vld [vmem:[#allocation2 + $0x3d0] sm:$0xff]  ;;  %v4517_v51 = vmul.f32 %v12947_v48, %v4508_v60  ;;  %v4535_v33 = vmul.f32 %v12948_v17, %v4526_v2  ;;  %v12949_v27 = vld [vmem:[#allocation49_spill] sm:$0xff] }
 0x2e2   : > { %v5393_v0 = vadd.f32 %v5385_v16, %v5367_v19  ;;  %v4722_v3 = vadd.f32 %v4714_v13, %v4696_v42  ;;  %v4844_v11 = vmul.f32 %v11409_v62, %v4835_v46  ;;  %v5184_v45 = vadd.f32 %v5176_v49, %v5158_v5  ;;  %v12950_v9 = vld [vmem:[#allocation41_spill] sm:$0xff]  ;;  %v12951_v42 = vld [vmem:[#allocation112_spill] sm:$0xff] }
 0x2e3   : > { %v4915_v38 = vadd.f32 %v12949_v27, %v4905_v20  ;;  %v5228_v30 = vmul.f32 %v12950_v9, %v4653_v22  ;;  %v4604_v34 = vld [vmem:[#allocation2 + $0x128] sm:$0xff]  ;;  %v4870_v18 = vmul.f32 %v11423_v39, %v4861_v10  ;;  %v4543_v52 = vadd.f32 %v4535_v33, %v4517_v51 }
 0x2e4   : > { %v5419_v15 = vadd.f32 %v5411_v36, %v5393_v0  ;;  %v4748_v1 = vadd.f32 %v4740_v25, %v4722_v3  ;;  %v4896_v13 = vmul.f32 %v11434_v7, %v4887_v35  ;;  %v5210_v19 = vadd.f32 %v5202_v40, %v5184_v45  ;;  %v4630_v17 = vld [vmem:[#allocation2 + $0x168] sm:$0xff] }
 0x2e5   : > { %v4923_v16 = vmax.f32 %v4915_v38, 0.0  ;;  %v5254_v48 = vmul.f32 %v12951_v42, %v4679_v41  ;;  %v12952_v27 = vld [vmem:[#allocation65_spill] sm:$0xff]  ;;  %v4613_v49 = vmul.f32 %v12899_v43, %v4604_v34  ;;  %v5280_v36 = vmul.f32 %v12942_v37, %v4705_v54 }
 0x2e6   : > { %v5445_v8 = vadd.f32 %v5437_v6, %v5419_v15  ;;  %v4774_v20 = vadd.f32 %v4766_v32, %v4748_v1  ;;  %v4569_v62 = vadd.f32 %v12952_v27, %v4543_v52  ;;  %v4656_v22 = vld [vmem:[#allocation2 + $0x1a8] sm:$0xff]  ;;  %v5236_v3 = vadd.f32 %v5228_v30, %v5210_v19 }
 0x2e7   : > { %6276 = vmatprep.mubr.msk.f32.mxu0 %vm400_vm0, %v4923_v16  ;;  %v5306_v51 = vmul.f32 %v11476_v63, %v4731_v44  ;;  %v5332_v25 = vmul.f32 %v11479_v24, %v4757_v47  ;;  %v12953_v41 = vld [vmem:[#allocation32_spill] sm:$0xff]  ;;  %v4639_v15 = vmul.f32 %v12901_v29, %v4630_v17  ;;  %v5358_v0 = vmul.f32 %v11485_v31, %v4783_v56 }
 0x2e8   : > { %v5471_v45 = vadd.f32 %v5463_v26, %v5445_v8  ;;  %v4800_v5 = vadd.f32 %v4792_v61, %v4774_v20  ;;  %v4595_v40 = vadd.f32 %v12953_v41, %v4569_v62  ;;  %v11674_v6 = vld [vmem:[#allocation2 + $0x1e8] sm:$0xff]  ;;  %v5262_v32 = vadd.f32 %v5254_v48, %v5236_v3  ;;  %v11702_v41 = vld [vmem:[#allocation2 + $0x60] sm:$0xff] }
 0x2e9   : > { %v4665_v33 = vmul.f32 %v11268_v12, %v4656_v22  ;;  %v5083_v27 = vmul.f32 %v12905_v58, %v4508_v60  ;;  %v11680_v47 = vld [vmem:[#allocation2 + $0x228] sm:$0xff]  ;;  %v5101_v26 = vmul.f32 %v12906_v50, %v4526_v2  ;;  %v5384_v61 = vmul.f32 %v11499_v4, %v4809_v57 }
 0x2ea   : > { %v5481_v54 = vadd.f32 %v11547_v59, %v5471_v45  ;;  %v4826_v44 = vadd.f32 %v4818_v14, %v4800_v5  ;;  %v4621_v38 = vadd.f32 %v4613_v49, %v4595_v40  ;;  %v5288_v62 = vadd.f32 %v5280_v36, %v5262_v32  ;;  %v11687_v60 = vld [vmem:[#allocation2 + $0x268] sm:$0xff]  ;;  %v12954_v49 = vld [vmem:[#allocation27_spill] sm:$0xff] }
 0x2eb   : > { %v5410_v8 = vmul.f32 %v11504_v55, %v4835_v46  ;;  %v4691_v48 = vmul.f32 %v11294_v23, %v11674_v6  ;;  %v11689_v52 = vld [vmem:[#allocation2 + $0x2a8] sm:$0xff]  ;;  %v5109_v16 = vadd.f32 %v5101_v26, %v5083_v27  ;;  %v5436_v2 = vmul.f32 %v11507_v28, %v4861_v10  ;;  %v11700_v5 = vld [vmem:[#allocation2 + $0x20] sm:$0xff]  ;;  %v12956_v10 = vld [vmem:[#allocation107_spill] sm:$0xff] }
 0x2ec   : > { %v5489_v56 = vmax.f32 %v5481_v54, 0.0  ;;  %v4852_v30 = vadd.f32 %v4844_v11, %v4826_v44  ;;  %v4647_v1 = vadd.f32 %v4639_v15, %v4621_v38  ;;  %v11691_v14 = vld [vmem:[#allocation2 + $0x2e8] sm:$0xff]  ;;  %v5314_v19 = vadd.f32 %v5306_v51, %v5288_v62  ;;  %v12958_v32 = vld [vmem:[#allocation108_spill] sm:$0xff]  ;;  %v12960_v38 = vld [vmem:[#allocation94_spill] sm:$0xff] }
 0x2ed   : > { %v5462_v57 = vmul.f32 %v11514_v21, %v4887_v35  ;;  %v4717_v46 = vmul.f32 %v11308_v53, %v11680_v47  ;;  %v5135_v3 = vadd.f32 %v12954_v49, %v5109_v16  ;;  %v12955_v36 = vld [vmem:[#allocation93_spill] sm:$0xff]  ;;  %v4743_v40 = vmul.f32 %v12956_v10, %v11687_v60  ;;  %v12957_v35 = vld [vmem:[#allocation91_spill] sm:$0xff]  ;;  %v11714_v62 = vld [vmem:[#allocation2 + $0xe0] sm:$0xff]  ;;  %v11721_v49 = vpop.f32.mrf.mxu0 }
 0x2ee   : > { %6325 = vmatprep.mubr.msk.f32.mxu1 %vm400_vm0, %v5489_v56  ;;  %v4878_v20 = vadd.f32 %v4870_v18, %v4852_v30  ;;  %v4673_v11 = vadd.f32 %v4665_v33, %v4647_v1  ;;  %v5179_v45 = vmul.f32 %v12955_v36, %v4604_v34  ;;  %v5340_v51 = vadd.f32 %v5332_v25, %v5314_v19  ;;  %v11710_v54 = vld [vmem:[#allocation2 + $0x328] sm:$0xff]  ;;  %v12961_v30 = vld [vmem:[#allocation23_spill] sm:$0xff] }
 0x2ef   : > { %v4769_v15 = vmul.f32 %v12957_v35, %v11689_v52  ;;  %v4795_v27 = vmul.f32 %v12958_v32, %v11691_v14  ;;  %v12959_v44 = vld [vmem:[#allocation101_spill] sm:$0xff]  ;;  %v5205_v26 = vmul.f32 %v12960_v38, %v4630_v17  ;;  %v5231_v56 = vmul.f32 %v12950_v9, %v4656_v22  ;;  %12963 = vst [vmem:[#allocation127_spill] sm:$0xff] %v11721_v49  ;;  %v6449_v17 = vld [vmem:[#allocation2 + $0xa0] sm:$0xff]  ;;  %v12966_v22 = vld [vmem:[#allocation86_spill] sm:$0xff]  ;;  %v2794_v49 = vpop.f32.mrf.mxu0 }
 0x2f0   : > { %v4904_v18 = vadd.f32 %v4896_v13, %v4878_v20  ;;  %v4699_v33 = vadd.f32 %v4691_v48, %v4673_v11  ;;  %v5161_v34 = vadd.f32 %v12959_v44, %v5135_v3  ;;  %v5366_v25 = vadd.f32 %v5358_v0, %v5340_v51  ;;  %v12962_v16 = vld [vmem:[#allocation24_spill] sm:$0xff]  ;;  %v12965_v44 = vld [vmem:[#allocation76_spill] sm:$0xff] }
 0x2f1   : > { %v4516_v1 = vmul.f32 %v12961_v30, %v11700_v5  ;;  %v4534_v19 = vmul.f32 %v12962_v16, %v11702_v41  ;;  %v12964_v13 = vld [vmem:[#allocation49_spill] sm:$0xff]  ;;  %v4560_v32 = vmul.f32 %v6449_v17, %v12965_v44  ;;  %v4603_v0 = vld [vmem:[#allocation2 + $0x120] sm:$0xff]  ;;  %v4821_v9 = vmul.f32 %v12966_v22, %v11710_v54  ;;  %v12967_v16 = vld [vmem:[#allocation70_spill] sm:$0xff] }
 0x2f2   : > { %v4914_v48 = vadd.f32 %v12964_v13, %v4904_v18  ;;  %v4725_v20 = vadd.f32 %v4717_v46, %v4699_v33  ;;  %v11724_v11 = vld [vmem:[#allocation2 + $0x368] sm:$0xff]  ;;  %v5187_v3 = vadd.f32 %v5179_v45, %v5161_v34  ;;  %v5392_v51 = vadd.f32 %v5384_v61, %v5366_v25  ;;  %v4629_v34 = vld [vmem:[#allocation2 + $0x160] sm:$0xff] }
 0x2f3   : > { %v4864_v30 = vld [vmem:[#allocation2 + $0x3a8] sm:$0xff]  ;;  %v4542_v35 = vadd.f32 %v4534_v19, %v4516_v1  ;;  %v4586_v21 = vmul.f32 %v12967_v16, %v11714_v62  ;;  %v5257_v45 = vmul.f32 %v12951_v42, %v11674_v6  ;;  %v12968_v61 = vld [vmem:[#allocation48_spill] sm:$0xff]  ;;  %v4612_v1 = vmul.f32 %v12899_v43, %v4603_v0 }
 0x2f4   : > { %v4922_v38 = vmax.f32 %v4914_v48, 0.0  ;;  %v4751_v18 = vadd.f32 %v4743_v40, %v4725_v20  ;;  %v11731_v46 = vld [vmem:[#allocation2 + $0x3e8] sm:$0xff]  ;;  %v5213_v33 = vadd.f32 %v5205_v26, %v5187_v3  ;;  %v5418_v44 = vadd.f32 %v5410_v8, %v5392_v51  ;;  %v4655_v26 = vld [vmem:[#allocation2 + $0x1a0] sm:$0xff] }
 0x2f5   : > { %v4847_v25 = vmul.f32 %v12968_v61, %v11724_v11  ;;  %v4568_v22 = vadd.f32 %v4560_v32, %v4542_v35  ;;  %v4873_v49 = vmul.f32 %v11423_v39, %v4864_v30  ;;  %v5283_v40 = vmul.f32 %v12942_v37, %v11680_v47 }
 0x2f6   : > { %5045 = vmatmul.mubr.f32.gmra.mxu0 %v4922_v38  ;;  %v4777_v19 = vadd.f32 %v4769_v15, %v4751_v18  ;;  %v5239_v48 = vadd.f32 %v5231_v56, %v5213_v33  ;;  %v5444_v20 = vadd.f32 %v5436_v2, %v5418_v44  ;;  %v4899_v6 = vmul.f32 %v11434_v7, %v11731_v46  ;;  %v4681_v38 = vld [vmem:[#allocation2 + $0x1e0] sm:$0xff]  ;;  %v11751_v18 = vpop.f32.mrf.mxu1 }
 0x2f7   : > { %v4594_v8 = vadd.f32 %v4586_v21, %v4568_v22  ;;  %v4638_v3 = vmul.f32 %v12901_v29, %v4629_v34  ;;  %v5309_v32 = vmul.f32 %v11476_v63, %v11687_v60  ;;  %v5335_v15 = vmul.f32 %v11479_v24, %v11689_v52  ;;  %12969 = vst [vmem:[#allocation114_spill] sm:$0xff] %v11751_v18  ;;  %v4759_v18 = vld [vmem:[#allocation2 + $0x2a0] sm:$0xff] }
 0x2f8   : > { %v4803_v51 = vadd.f32 %v4795_v27, %v4777_v19  ;;  %v5265_v35 = vadd.f32 %v5257_v45, %v5239_v48  ;;  %v5470_v56 = vadd.f32 %v5462_v57, %v5444_v20  ;;  %v5361_v47 = vmul.f32 %v11485_v31, %v11691_v14  ;;  %v11753_v27 = vld [vmem:[#allocation2 + $0x220] sm:$0xff]  ;;  %v12970_v45 = vld [vmem:[#allocation77_spill] sm:$0xff]  ;;  %v3360_v19 = vpop.f32.mrf.mxu1 }
 0x2f9   : > { %v4620_v2 = vadd.f32 %v4612_v1, %v4594_v8  ;;  %v4664_v44 = vmul.f32 %v11268_v12, %v4655_v26  ;;  %v5082_v60 = vmul.f32 %v12905_v58, %v11700_v5  ;;  %v5100_v52 = vmul.f32 %v12906_v50, %v11702_v41  ;;  %v12971_v8 = vld [vmem:[#allocation71_spill] sm:$0xff] }
 0x2fa   : > { %v4829_v21 = vadd.f32 %v4821_v9, %v4803_v51  ;;  %v5291_v22 = vadd.f32 %v5283_v40, %v5265_v35  ;;  %v5480_v57 = vadd.f32 %v11547_v59, %v5470_v56  ;;  %v4690_v14 = vmul.f32 %v11294_v23, %v4681_v38  ;;  %v4733_v9 = vld [vmem:[#allocation2 + $0x260] sm:$0xff] }
 0x2fb   : > { %v4646_v33 = vadd.f32 %v4638_v3, %v4620_v2  ;;  %v5126_v1 = vmul.f32 %v6449_v17, %v12970_v45  ;;  %v5108_v40 = vadd.f32 %v5100_v52, %v5082_v60  ;;  %v5152_v51 = vmul.f32 %v12971_v8, %v11714_v62  ;;  %v4785_v17 = vld [vmem:[#allocation2 + $0x2e0] sm:$0xff] }
 0x2fc   : > { %v4855_v48 = vadd.f32 %v4847_v25, %v4829_v21  ;;  %v5317_v20 = vadd.f32 %v5309_v32, %v5291_v22  ;;  %v5488_v35 = vmax.f32 %v5480_v57, 0.0  ;;  %v5387_v5 = vmul.f32 %v11499_v4, %v11710_v54  ;;  %v4811_v60 = vld [vmem:[#allocation2 + $0x320] sm:$0xff]  ;;  %v4510_v57 = vld [vmem:[#allocation2 + $0x38] sm:$0xff] }
 0x2fd   : > { %v4672_v41 = vadd.f32 %v4664_v44, %v4646_v33  ;;  %v4716_v3 = vmul.f32 %v11308_v53, %v11753_v27  ;;  %v5134_v19 = vadd.f32 %v5126_v1, %v5108_v40  ;;  %v5178_v25 = vmul.f32 %v12955_v36, %v4603_v0  ;;  %v4528_v33 = vld [vmem:[#allocation2 + $0x78] sm:$0xff]  ;;  %v12973_v1 = vld [vmem:[#allocation130_spill] sm:$0xff]  ;;  %v4889_v8 = vld [vmem:[#allocation2 + $0x3e0] sm:$0xff] }
 0x2fe   : > { %v4881_v56 = vadd.f32 %v4873_v49, %v4855_v48  ;;  %v5343_v2 = vadd.f32 %v5335_v15, %v5317_v20  ;;  %5611 = vmatmul.mubr.f32.gmra.mxu1 %v5488_v35  ;;  %v5413_v32 = vmul.f32 %v11504_v55, %v11724_v11  ;;  %v5439_v62 = vmul.f32 %v11507_v28, %v4864_v30  ;;  %v12972_v49 = vld [vmem:[#allocation94_spill] sm:$0xff]  ;;  %v12974_v20 = vld [vmem:[#allocation91_spill] sm:$0xff]  ;;  %v12975_v11 = vld [vmem:[#allocation108_spill] sm:$0xff] }
 0x2ff   : > { %v4698_v21 = vadd.f32 %v4690_v14, %v4672_v41  ;;  %v4742_v54 = vmul.f32 %v12956_v10, %v4733_v9  ;;  %v5160_v52 = vadd.f32 %v5152_v51, %v5134_v19  ;;  %v5204_v15 = vmul.f32 %v12972_v49, %v4629_v34  ;;  %v4837_v41 = vld [vmem:[#allocation2 + $0x360] sm:$0xff]  ;;  %v12977_v34 = vld [vmem:[#allocation86_spill] sm:$0xff] }
 0x300   : > { %v4907_v44 = vadd.f32 %v4899_v6, %v4881_v56  ;;  %v5369_v22 = vadd.f32 %v5361_v47, %v5343_v2  ;;  %v5465_v0 = vmul.f32 %v12973_v1, %v11731_v46  ;;  %v4768_v40 = vmul.f32 %v12974_v20, %v4759_v18  ;;  %v4863_v6 = vld [vmem:[#allocation2 + $0x3a0] sm:$0xff]  ;;  %v12976_v56 = vld [vmem:[#allocation41_spill] sm:$0xff] }
 0x301   : > { %v4724_v48 = vadd.f32 %v4716_v3, %v4698_v21  ;;  %v4794_v35 = vmul.f32 %v12975_v11, %v4785_v17  ;;  %v5186_v47 = vadd.f32 %v5178_v25, %v5160_v52  ;;  %v5230_v51 = vmul.f32 %v12976_v56, %v4655_v26  ;;  %v12978_v45 = vld [vmem:[#allocation23_spill] sm:$0xff]  ;;  %v12979_v46 = vld [vmem:[#allocation24_spill] sm:$0xff] }
 0x302   : > { %v4917_v30 = vadd.f32 %v12964_v13, %v4907_v44  ;;  %v5395_v14 = vadd.f32 %v5387_v5, %v5369_v22  ;;  %v4820_v19 = vmul.f32 %v12977_v34, %v4811_v60  ;;  %v4519_v16 = vmul.f32 %v12978_v45, %v4510_v57  ;;  %v4606_v44 = vld [vmem:[#allocation2 + $0x138] sm:$0xff] }
 0x303   : > { %v4750_v2 = vadd.f32 %v4742_v54, %v4724_v48  ;;  %v4537_v3 = vmul.f32 %v12979_v46, %v4528_v33  ;;  %v5212_v20 = vadd.f32 %v5204_v15, %v5186_v47  ;;  %v5256_v11 = vmul.f32 %v12951_v42, %v4681_v38 }
 0x304   : > { %v4925_v21 = vmax.f32 %v4917_v30, 0.0  ;;  %v5421_v49 = vadd.f32 %v5413_v32, %v5395_v14  ;;  %v4846_v22 = vmul.f32 %v12968_v61, %v4837_v41  ;;  %v4872_v25 = vmul.f32 %v11423_v39, %v4863_v6  ;;  %v4632_v32 = vld [vmem:[#allocation2 + $0x178] sm:$0xff]  ;;  %v12980_v14 = vld [vmem:[#allocation105_spill] sm:$0xff] }
 0x305   : > { %v4776_v5 = vadd.f32 %v4768_v40, %v4750_v2  ;;  %v4545_v26 = vadd.f32 %v4537_v3, %v4519_v16  ;;  %v4898_v52 = vmul.f32 %v11434_v7, %v4889_v8  ;;  %v5238_v48 = vadd.f32 %v5230_v51, %v5212_v20  ;;  %v12981_v51 = vld [vmem:[#allocation34_spill] sm:$0xff] }
 0x306   : > { %6277 = vmatprep.mubr.msk.f32.mxu0 %vm400_vm0, %v4925_v21  ;;  %v5447_v54 = vadd.f32 %v5439_v62, %v5421_v49  ;;  %v5282_v30 = vmul.f32 %v12942_v37, %v11753_v27  ;;  %v5308_v38 = vmul.f32 %v11476_v63, %v4733_v9  ;;  %v4615_v47 = vmul.f32 %v12899_v43, %v4606_v44  ;;  %v4658_v49 = vld [vmem:[#allocation2 + $0x1b8] sm:$0xff] }
 0x307   : > { %v4802_v15 = vadd.f32 %v4794_v35, %v4776_v5  ;;  %v4571_v40 = vadd.f32 %v12980_v14, %v4545_v26  ;;  %v5264_v39 = vadd.f32 %v5256_v11, %v5238_v48  ;;  %v5334_v16 = vmul.f32 %v11479_v24, %v4759_v18  ;;  %v4684_v5 = vld [vmem:[#allocation2 + $0x1f8] sm:$0xff] }
 0x308   : > { %v5473_v2 = vadd.f32 %v5465_v0, %v5447_v54  ;;  %v5360_v62 = vmul.f32 %v11485_v31, %v4785_v17  ;;  %v5386_v20 = vmul.f32 %v11499_v4, %v4811_v60  ;;  %v4641_v35 = vmul.f32 %v12901_v29, %v4632_v32  ;;  %v4710_v54 = vld [vmem:[#allocation2 + $0x238] sm:$0xff] }
 0x309   : > { %v4828_v3 = vadd.f32 %v4820_v19, %v4802_v15  ;;  %v4597_v27 = vadd.f32 %v12981_v51, %v4571_v40  ;;  %v5290_v21 = vadd.f32 %v5282_v30, %v5264_v39  ;;  %v5085_v26 = vmul.f32 %v12905_v58, %v4510_v57  ;;  %v4736_v14 = vld [vmem:[#allocation2 + $0x278] sm:$0xff] }
 0x30a   : > { %v5483_v9 = vadd.f32 %v11547_v59, %v5473_v2  ;;  %v5103_v0 = vmul.f32 %v12906_v50, %v4528_v33  ;;  %v5412_v18 = vmul.f32 %v11504_v55, %v4837_v41  ;;  %v4667_v19 = vmul.f32 %v11268_v12, %v4658_v49  ;;  %v4762_v40 = vld [vmem:[#allocation2 + $0x2b8] sm:$0xff] }
 0x30b   : > { %v4854_v11 = vadd.f32 %v4846_v22, %v4828_v3  ;;  %v4623_v17 = vadd.f32 %v4615_v47, %v4597_v27  ;;  %v5316_v48 = vadd.f32 %v5308_v38, %v5290_v21  ;;  %v5438_v15 = vmul.f32 %v11507_v28, %v4863_v6  ;;  %v4788_v22 = vld [vmem:[#allocation2 + $0x2f8] sm:$0xff]  ;;  %v12982_v3 = vld [vmem:[#allocation106_spill] sm:$0xff] }
 0x30c   : > { %v5491_v60 = vmax.f32 %v5483_v9, 0.0  ;;  %v5111_v2 = vadd.f32 %v5103_v0, %v5085_v26  ;;  %v5464_v30 = vmul.f32 %v12973_v1, %v4889_v8  ;;  %v4693_v33 = vmul.f32 %v11294_v23, %v4684_v5  ;;  %v4509_v6 = vld [vmem:[#allocation2 + $0x30] sm:$0xff]  ;;  %v12983_v21 = vld [vmem:[#allocation91_spill] sm:$0xff]  ;;  %v12984_v0 = vld [vmem:[#allocation108_spill] sm:$0xff] }
 0x30d   : > { %v4880_v39 = vadd.f32 %v4872_v25, %v4854_v11  ;;  %v4649_v57 = vadd.f32 %v4641_v35, %v4623_v17  ;;  %v5342_v41 = vadd.f32 %v5334_v16, %v5316_v48  ;;  %v4719_v47 = vmul.f32 %v11308_v53, %v4710_v54  ;;  %v4527_v35 = vld [vmem:[#allocation2 + $0x70] sm:$0xff]  ;;  %v11813_v17 = vld [vmem:[#allocation2 + $0x338] sm:$0xff] }
 0x30e   : > { %6326 = vmatprep.mubr.msk.f32.mxu1 %vm400_vm0, %v5491_v60  ;;  %v5137_v51 = vadd.f32 %v12982_v3, %v5111_v2  ;;  %v5181_v38 = vmul.f32 %v12955_v36, %v4606_v44  ;;  %v4745_v25 = vmul.f32 %v12956_v10, %v4736_v14  ;;  %v4771_v8 = vmul.f32 %v12983_v21, %v4762_v40  ;;  %v12985_v16 = vld [vmem:[#allocation83_spill] sm:$0xff]  ;;  %v12986_v48 = vld [vmem:[#allocation94_spill] sm:$0xff] }
 0x30f   : > { %v4906_v27 = vadd.f32 %v4898_v52, %v4880_v39  ;;  %v4675_v9 = vadd.f32 %v4667_v19, %v4649_v57  ;;  %v5368_v26 = vadd.f32 %v5360_v62, %v5342_v41  ;;  %v4797_v11 = vmul.f32 %v12984_v0, %v4788_v22  ;;  %v4579_v39 = vld [vmem:[#allocation2 + $0xf0] sm:$0xff]  ;;  %v11820_v57 = vpop.f32.mrf.mxu0  ;;  %v4840_v62 = vld [vmem:[#allocation2 + $0x378] sm:$0xff] }
 0x310   : > { %v5163_v60 = vadd.f32 %v12985_v16, %v5137_v51  ;;  %v5207_v1 = vmul.f32 %v12986_v48, %v4632_v32  ;;  %v5233_v52 = vmul.f32 %v12976_v56, %v4658_v49  ;;  %v4518_v19 = vmul.f32 %v12978_v45, %v4509_v6  ;;  %12987 = vst [vmem:[#allocation131_spill] sm:$0xff] %v11820_v57  ;;  %v11822_v41 = vld [vmem:[#allocation2 + $0x3b8] sm:$0xff]  ;;  %v6450_v51 = vld [vmem:[#allocation2 + $0xb0] sm:$0xff]  ;;  %v12988_v16 = vld [vmem:[#allocation76_spill] sm:$0xff] }
 0x311   : > { %v4916_v2 = vadd.f32 %v12964_v13, %v4906_v27  ;;  %v4701_v44 = vadd.f32 %v4693_v33, %v4675_v9  ;;  %v5394_v3 = vadd.f32 %v5386_v20, %v5368_v26  ;;  %v4536_v21 = vmul.f32 %v12979_v46, %v4527_v35  ;;  %v4605_v33 = vld [vmem:[#allocation2 + $0x130] sm:$0xff]  ;;  %v3911_v9 = vpop.f32.mrf.mxu0  ;;  %v4892_v20 = vld [vmem:[#allocation2 + $0x3f8] sm:$0xff] }
 0x312   : > { %v5189_v0 = vadd.f32 %v5181_v38, %v5163_v60  ;;  %v4562_v32 = vmul.f32 %v6450_v51, %v12988_v16  ;;  %v4823_v49 = vmul.f32 %v12977_v34, %v11813_v17  ;;  %v5259_v45 = vmul.f32 %v12951_v42, %v4684_v5  ;;  %v12989_v56 = vld [vmem:[#allocation70_spill] sm:$0xff] }
 0x313   : > { %v4924_v48 = vmax.f32 %v4916_v2, 0.0  ;;  %v4727_v27 = vadd.f32 %v4719_v47, %v4701_v44  ;;  %v5420_v57 = vadd.f32 %v5412_v18, %v5394_v3  ;;  %v4544_v13 = vadd.f32 %v4536_v21, %v4518_v19  ;;  %v12990_v2 = vld [vmem:[#allocation111_spill] sm:$0xff]  ;;  %v4631_v16 = vld [vmem:[#allocation2 + $0x170] sm:$0xff] }
 0x314   : > { %v5215_v26 = vadd.f32 %v5207_v1, %v5189_v0  ;;  %v4588_v38 = vmul.f32 %v12989_v56, %v4579_v39  ;;  %v4849_v60 = vmul.f32 %v12968_v61, %v4840_v62  ;;  %v4875_v47 = vmul.f32 %v12990_v2, %v11822_v41  ;;  %v4657_v3 = vld [vmem:[#allocation2 + $0x1b0] sm:$0xff] }
 0x315   : > { %5050 = vmatmul.mubr.f32.gmra.mxu0 %v4924_v48  ;;  %v4753_v46 = vadd.f32 %v4745_v25, %v4727_v27  ;;  %v5285_v44 = vmul.f32 %v12942_v37, %v4710_v54  ;;  %v5446_v34 = vadd.f32 %v5438_v15, %v5420_v57  ;;  %v4570_v42 = vadd.f32 %v4562_v32, %v4544_v13  ;;  %v4683_v54 = vld [vmem:[#allocation2 + $0x1f0] sm:$0xff] }
 0x316   : > { %v5241_v5 = vadd.f32 %v5233_v52, %v5215_v26  ;;  %v4614_v18 = vmul.f32 %v12899_v43, %v4605_v33  ;;  %v4901_v21 = vmul.f32 %v11434_v7, %v4892_v20  ;;  %v5311_v56 = vmul.f32 %v11476_v63, %v4736_v14  ;;  %v4735_v26 = vld [vmem:[#allocation2 + $0x270] sm:$0xff] }
 0x317   : > { %v4779_v1 = vadd.f32 %v4771_v8, %v4753_v46  ;;  %v5337_v25 = vmul.f32 %v11479_v24, %v4762_v40  ;;  %v5472_v0 = vadd.f32 %v5464_v30, %v5446_v34  ;;  %v4596_v19 = vadd.f32 %v4588_v38, %v4570_v42  ;;  %v11842_v8 = vpop.f32.mrf.mxu1  ;;  %v11845_v40 = vld [vmem:[#allocation2 + $0x230] sm:$0xff]  ;;  %v12991_v30 = vld [vmem:[#allocation77_spill] sm:$0xff] }
 0x318   : > { %v5267_v48 = vadd.f32 %v5259_v45, %v5241_v5  ;;  %v4640_v27 = vmul.f32 %v12901_v29, %v4631_v16  ;;  %v5363_v15 = vmul.f32 %v11485_v31, %v4788_v22  ;;  %v4666_v13 = vmul.f32 %v11268_v12, %v4657_v3  ;;  %v12992_v22 = vld [vmem:[#allocation71_spill] sm:$0xff] }
 0x319   : > { %v4805_v9 = vadd.f32 %v4797_v11, %v4779_v1  ;;  %v5084_v43 = vmul.f32 %v12905_v58, %v4509_v6  ;;  %v5482_v52 = vadd.f32 %v11547_v59, %v5472_v0  ;;  %v4622_v57 = vadd.f32 %v4614_v18, %v4596_v19  ;;  %v4477_v12 = vpop.f32.mrf.mxu1 }
 0x31a   : > { %v5293_v14 = vadd.f32 %v5285_v44, %v5267_v48  ;;  %v5102_v42 = vmul.f32 %v12906_v50, %v4527_v35  ;;  %v4692_v29 = vmul.f32 %v11294_v23, %v4683_v54  ;;  %v5128_v11 = vmul.f32 %v6450_v51, %v12991_v30  ;;  %v4761_v51 = vld [vmem:[#allocation2 + $0x2b0] sm:$0xff] }
 0x31b   : > { %v4831_v34 = vadd.f32 %v4823_v49, %v4805_v9  ;;  %v5154_v32 = vmul.f32 %v12992_v22, %v4579_v39  ;;  %v5490_v45 = vmax.f32 %v5482_v52, 0.0  ;;  %v4648_v6 = vadd.f32 %v4640_v27, %v4622_v57  ;;  %v4787_v39 = vld [vmem:[#allocation2 + $0x2f0] sm:$0xff]  ;;  %v12995_v52 = vld [vmem:[#allocation91_spill] sm:$0xff] }
 0x31c   : > { %v5319_v58 = vadd.f32 %v5311_v56, %v5293_v14  ;;  %v5110_v38 = vadd.f32 %v5102_v42, %v5084_v43  ;;  %v5389_v44 = vmul.f32 %v11499_v4, %v11813_v17  ;;  %v5415_v5 = vmul.f32 %v11504_v55, %v4840_v62  ;;  %v12993_v56 = vld [vmem:[#allocation130_spill] sm:$0xff]  ;;  %v1533_v62 = vld [vmem:[#allocation3 + $0x8] sm:$0xff] }
 0x31d   : > { %v4857_v46 = vadd.f32 %v4849_v60, %v4831_v34  ;;  %v4718_v50 = vmul.f32 %v11308_v53, %v11845_v40  ;;  %5616 = vmatmul.mubr.f32.gmra.mxu1 %v5490_v45  ;;  %v4674_v35 = vadd.f32 %v4666_v13, %v4648_v6  ;;  %v5180_v18 = vmul.f32 %v12955_v36, %v4605_v33  ;;  %v12994_v27 = vld [vmem:[#allocation94_spill] sm:$0xff]  ;;  %v1535_v13 = vld [vmem:[#allocation3 + $0x18] sm:$0xff]  ;;  %v12996_v36 = vld [vmem:[#allocation108_spill] sm:$0xff] }
 0x31e   : > { %v5345_v23 = vadd.f32 %v5337_v25, %v5319_v58  ;;  %v5136_v49 = vadd.f32 %v5128_v11, %v5110_v38  ;;  %v5441_v60 = vmul.f32 %v11507_v28, %v11822_v41  ;;  %v5467_v0 = vmul.f32 %v12993_v56, %v4892_v20  ;;  %v1534_v9 = vld [vmem:[#allocation3 + $0x10] sm:$0xff] }
 0x31f   : > { %v4883_v1 = vadd.f32 %v4875_v47, %v4857_v46  ;;  %v4744_v17 = vmul.f32 %v12956_v10, %v4735_v26  ;;  %v4700_v19 = vadd.f32 %v4692_v29, %v4674_v35  ;;  %v5206_v25 = vmul.f32 %v12994_v27, %v4631_v16  ;;  %v12997_v47 = vld [vmem:[#allocation41_spill] sm:$0xff]  ;;  %v4813_v20 = vld [vmem:[#allocation2 + $0x330] sm:$0xff]  ;;  %v12998_v10 = vld [vmem:[#allocation96_spill] sm:$0xff] }
 0x320   : > { %v5371_v48 = vadd.f32 %v5363_v15, %v5345_v23  ;;  %v5162_v53 = vadd.f32 %v5154_v32, %v5136_v49  ;;  %v4770_v14 = vmul.f32 %v12995_v52, %v4761_v51  ;;  %v4796_v33 = vmul.f32 %v12996_v36, %v4787_v39  ;;  %v2664_v15 = vld [vmem:[#allocation3] sm:$0xff]  ;;  %v12999_v29 = vld [vmem:[#allocation49_spill] sm:$0xff]  ;;  %v13000_v22 = vld [vmem:[#allocation142_spill] sm:$0xff] }
 0x321   : > { %v4909_v43 = vadd.f32 %v4901_v21, %v4883_v1  ;;  %v5232_v57 = vmul.f32 %v12997_v47, %v4657_v3  ;;  %v4726_v42 = vadd.f32 %v4718_v50, %v4700_v19  ;;  %v1665_v30 = vadd.f32 %v12998_v10, %v1533_v62  ;;  %v13001_v32 = vld [vmem:[#allocation159_spill] sm:$0xff]  ;;  %v13002_v21 = vld [vmem:[#allocation35_spill] sm:$0xff]  ;;  %v4839_v38 = vld [vmem:[#allocation2 + $0x370] sm:$0xff] }
 0x322   : > { %v5397_v41 = vadd.f32 %v5389_v44, %v5371_v48  ;;  %v5188_v34 = vadd.f32 %v5180_v18, %v5162_v53  ;;  %v1666_v16 = vadd.f32 %v13000_v22, %v1534_v9  ;;  %v1667_v12 = vadd.f32 %v13001_v32, %v1535_v13  ;;  %v13003_v3 = vld [vmem:[#allocation112_spill] sm:$0xff]  ;;  %v13004_v23 = vld [vmem:[#allocation86_spill] sm:$0xff]  ;;  %v13005_v36 = vld [vmem:[#allocation137_spill] sm:$0xff] }
 0x323   : > { %v4919_v11 = vadd.f32 %v12999_v29, %v4909_v43  ;;  %v2796_v45 = vadd.f32 %v13002_v21, %v2664_v15  ;;  %v4752_v6 = vadd.f32 %v4744_v17, %v4726_v42  ;;  %v5258_v44 = vmul.f32 %v13003_v3, %v4683_v54  ;;  %1669 = vst.msk [vmem:[#allocation3 + $0x8] sm:$0xff] %vm1101_vm5, %v1665_v30  ;;  %v4865_v1 = vld [vmem:[#allocation2 + $0x3b0] sm:$0xff] }
 0x324   : > { %v5423_v58 = vadd.f32 %v5415_v5, %v5397_v41  ;;  %v5214_v46 = vadd.f32 %v5206_v25, %v5188_v34  ;;  %v4822_v35 = vmul.f32 %v13004_v23, %v4813_v20  ;;  %1670 = vst.msk [vmem:[#allocation3 + $0x10] sm:$0xff] %vm1101_vm5, %v1666_v16  ;;  %1671 = vst.msk [vmem:[#allocation3 + $0x18] sm:$0xff] %vm1101_vm5, %v1667_v12  ;;  %v4891_v19 = vld [vmem:[#allocation2 + $0x3f0] sm:$0xff]  ;;  %v13007_v41 = vld [vmem:[#allocation160_spill] sm:$0xff] }
 0x325   : > { %v4927_v50 = vmax.f32 %v4919_v11, 0.0  ;;  %2800 = vst.msk [vmem:[#allocation3] sm:$0xff] %vm1101_vm5, %v2796_v45  ;;  %v4778_v18 = vadd.f32 %v4770_v14, %v4752_v6  ;;  %v5284_v17 = vmul.f32 %v12942_v37, %v11845_v40  ;;  %v4848_v54 = vmul.f32 %v12968_v61, %v4839_v38  ;;  %v13008_v34 = vld [vmem:[#allocation78_spill] sm:$0xff]  ;;  %v13009_v45 = vld [vmem:[#allocation115_spill] sm:$0xff] }
 0x326   : > { %v5449_v49 = vadd.f32 %v5441_v60, %v5423_v58  ;;  %v5240_v5 = vadd.f32 %v5232_v57, %v5214_v46  ;;  %v5310_v27 = vmul.f32 %v11476_v63, %v4735_v26  ;;  %v4874_v25 = vmul.f32 %v12990_v2, %v4865_v1  ;;  %v13006_v2 = vld [vmem:[#allocation151_spill] sm:$0xff] }
 0x327   : > { %6278 = vmatprep.mubr.msk.f32.mxu0 %vm400_vm0, %v4927_v50  ;;  %v4804_v48 = vadd.f32 %v4796_v33, %v4778_v18  ;;  %v5336_v43 = vmul.f32 %v11479_v24, %v4761_v51  ;;  %v4900_v37 = vmul.f32 %v11434_v7, %v4891_v19  ;;  %v5362_v40 = vmul.f32 %v11485_v31, %v4787_v39  ;;  %v13012_v23 = vld [vmem:[#allocation131_spill] sm:$0xff] }
 0x328   : > { %v5475_v62 = vadd.f32 %v5467_v0, %v5449_v49  ;;  %v5266_v53 = vadd.f32 %v5258_v44, %v5240_v5  ;;  %v5388_v31 = vmul.f32 %v11499_v4, %v4813_v20  ;;  %v5414_v30 = vmul.f32 %v11504_v55, %v4839_v38  ;;  %v13010_v55 = vld [vmem:[#allocation119_spill] sm:$0xff] }
 0x329   : > { %v4830_v9 = vadd.f32 %v4822_v35, %v4804_v48  ;;  %v5440_v22 = vmul.f32 %v11507_v28, %v4865_v1  ;;  %v5466_v4 = vmul.f32 %v12993_v56, %v4891_v19 }
 0x32a   : > { %v5485_v60 = vadd.f32 %v11547_v59, %v5475_v62  ;;  %v5292_v13 = vadd.f32 %v5284_v17, %v5266_v53  ;;  %v2099_v52 = vld [vmem:[#allocation3 + $0x8] sm:$0xff]  ;;  %v13013_v17 = vld [vmem:[#allocation92_spill] sm:$0xff] }
 0x32b   : > { %v4856_v0 = vadd.f32 %v4848_v54, %v4830_v9  ;;  %v2231_v33 = vadd.f32 %v13005_v36, %v2099_v52  ;;  %v2100_v47 = vld [vmem:[#allocation3 + $0x10] sm:$0xff]  ;;  %v2101_v63 = vld [vmem:[#allocation3 + $0x18] sm:$0xff]  ;;  %v13014_v53 = vld [vmem:[#allocation84_spill] sm:$0xff] }
 0x32c   : > { %v5493_v61 = vmax.f32 %v5485_v60, 0.0  ;;  %v5318_v14 = vadd.f32 %v5310_v27, %v5292_v13  ;;  %v3230_v26 = vld [vmem:[#allocation3] sm:$0xff]  ;;  %v2232_v57 = vadd.f32 %v13006_v2, %v2100_v47  ;;  %v2233_v42 = vadd.f32 %v13007_v41, %v2101_v63 }
 0x32d   : > { %v3362_v10 = vadd.f32 %v13008_v34, %v3230_v26  ;;  %v4882_v7 = vadd.f32 %v4874_v25, %v4856_v0  ;;  %2235 = vst.msk [vmem:[#allocation3 + $0x8] sm:$0xff] %vm1101_vm5, %v2231_v33  ;;  %v13015_v25 = vld [vmem:[#allocation114_spill] sm:$0xff] }
 0x32e   : > { %6327 = vmatprep.mubr.msk.f32.mxu1 %vm400_vm0, %v5493_v61  ;;  %v5344_v24 = vadd.f32 %v5336_v43, %v5318_v14  ;;  %2236 = vst.msk [vmem:[#allocation3 + $0x10] sm:$0xff] %vm1101_vm5, %v2232_v57  ;;  %2237 = vst.msk [vmem:[#allocation3 + $0x18] sm:$0xff] %vm1101_vm5, %v2233_v42  ;;  %v3914_v20 = vpop.f32.mrf.mxu0 }
 0x32f   : > { %3366 = vst.msk [vmem:[#allocation3] sm:$0xff] %vm1101_vm5, %v3362_v10  ;;  %v4908_v51 = vadd.f32 %v4900_v37, %v4882_v7  ;;  %v5660_v10 = vld [vmem:[%s13016_s18 + $0x38] sm:$0xff]  ;;  %v5659_v7 = vld [vmem:[%s13016_s18 + $0x30] sm:$0xff] }
 0x330   : > { %v5370_v39 = vadd.f32 %v5362_v40, %v5344_v24  ;;  %v3916_v44 = vpop.f32.mrf.mxu0  ;;  %6350 = vmatprep.subr.mxu0 %v5660_v10  ;;  %6372 = vmatprep.subr.mxu1 %v5660_v10  ;;  %v5658_v24 = vld [vmem:[%s13016_s18 + $0x28] sm:$0xff] }
 0x331   : > { %v4918_v15 = vadd.f32 %v12999_v29, %v4908_v51  ;;  %v13011_v29 = vld [vmem:[#allocation127_spill] sm:$0xff]  ;;  %6351 = vmatpush3.msra.mxu0 %v5660_v10  ;;  %6380 = vmatpush3.msra.mxu1 %v5660_v10 }
 0x332   : > { %v5396_v11 = vadd.f32 %v5388_v31, %v5370_v39  ;;  %6352 = vmatprep.subr.mxu0 %v5659_v7  ;;  %6373 = vmatprep.subr.mxu1 %v5659_v7  ;;  %v5657_v31 = vld [vmem:[%s13016_s18 + $0x20] sm:$0xff]  ;;  %v5656_v51 = vld [vmem:[%s13016_s18 + $0x18] sm:$0xff]  ;;  %v5655_v39 = vld [vmem:[%s13016_s18 + $0x10] sm:$0xff] }
 0x333   : > { %v4926_v16 = vmax.f32 %v4918_v15, 0.0  ;;  %6353 = vmatpush3.msra.mxu0 %v5659_v7  ;;  %6381 = vmatpush3.msra.mxu1 %v5659_v7  ;;  %v5653_v15 = vld [vmem:[%s13016_s18] sm:$0xff] }
 0x334   : > { %v5422_v32 = vadd.f32 %v5414_v30, %v5396_v11  ;;  %v2665_v12 = vld [vmem:[#allocation3 + $0x8] sm:$0xff]  ;;  %6354 = vmatprep.subr.mxu0 %v5658_v24  ;;  %6374 = vmatprep.subr.mxu1 %v5658_v24 }
 0x335   : > { %5055 = vmatmul.mubr.f32.gmra.mxu0 %v4926_v16  ;;  %v2797_v58 = vadd.f32 %v13009_v45, %v2665_v12  ;;  %v2666_v6 = vld [vmem:[#allocation3 + $0x10] sm:$0xff]  ;;  %v2667_v46 = vld [vmem:[#allocation3 + $0x18] sm:$0xff]  ;;  %v4480_v49 = vpop.f32.mrf.mxu1  ;;  %6382 = vmatpush3.msra.mxu1 %v5658_v24  ;;  %v5654_v30 = vld [vmem:[%s13016_s18 + $0x8] sm:$0xff] }
 0x336   : > { %v5448_v21 = vadd.f32 %v5440_v22, %v5422_v32  ;;  %v3796_v3 = vld [vmem:[#allocation3] sm:$0xff]  ;;  %v2798_v38 = vadd.f32 %v13010_v55, %v2666_v6  ;;  %v2799_v50 = vadd.f32 %v13011_v29, %v2667_v46  ;;  %6355 = vmatpush3.msra.mxu0 %v5658_v24  ;;  %6375 = vmatprep.subr.mxu1 %v5657_v31 }
 0x337   : > { %v3928_v28 = vadd.f32 %v13012_v23, %v3796_v3  ;;  %2801 = vst.msk [vmem:[#allocation3 + $0x8] sm:$0xff] %vm1101_vm5, %v2797_v58  ;;  %v4482_v1 = vpop.f32.mrf.mxu1  ;;  %6356 = vmatprep.subr.mxu0 %v5657_v31  ;;  %6383 = vmatpush3.msra.mxu1 %v5657_v31  ;;  %v6328_v45 = vld [vmem:[%s13017_s6] ss:$0 sm:$0xff] }
 0x338   : > { %v5474_v35 = vadd.f32 %v5466_v4, %v5448_v21  ;;  %2802 = vst.msk [vmem:[#allocation3 + $0x10] sm:$0xff] %vm1101_vm5, %v2798_v38  ;;  %2803 = vst.msk [vmem:[#allocation3 + $0x18] sm:$0xff] %vm1101_vm5, %v2799_v50  ;;  %6357 = vmatpush3.msra.mxu0 %v5657_v31  ;;  %6376 = vmatprep.subr.mxu1 %v5656_v51 }
 0x339   : > { %3932 = vst.msk [vmem:[#allocation3] sm:$0xff] %vm1101_vm5, %v3928_v28  ;;  %6358 = vmatprep.subr.mxu0 %v5656_v51  ;;  %6384 = vmatpush3.msra.mxu1 %v5656_v51 }
 0x33a   : > { %v5484_v56 = vadd.f32 %v11547_v59, %v5474_v35  ;;  %6359 = vmatpush3.msra.mxu0 %v5656_v51  ;;  %6377 = vmatprep.subr.mxu1 %v5655_v39 }
 0x33b   : > { %6360 = vmatprep.subr.mxu0 %v5655_v39  ;;  %6385 = vmatpush3.msra.mxu1 %v5655_v39 }
 0x33c   : > { %v5492_v18 = vmax.f32 %v5484_v56, 0.0  ;;  %6361 = vmatpush3.msra.mxu0 %v5655_v39  ;;  %6378 = vmatprep.subr.mxu1 %v5654_v30 }
 0x33d   : > { %6362 = vmatprep.subr.mxu0 %v5654_v30  ;;  %6386 = vmatpush3.msra.mxu1 %v5654_v30 }
 0x33e   : > { %5621 = vmatmul.mubr.f32.gmra.mxu1 %v5492_v18  ;;  %v3231_v5 = vld [vmem:[#allocation3 + $0x8] sm:$0xff]  ;;  %6363 = vmatpush3.msra.mxu0 %v5654_v30 }
 0x33f   : > { %v3363_v54 = vadd.f32 %v13013_v17, %v3231_v5  ;;  %v3232_v62 = vld [vmem:[#allocation3 + $0x10] sm:$0xff]  ;;  %v3233_v48 = vld [vmem:[#allocation3 + $0x18] sm:$0xff]  ;;  %6364 = vmatprep.subr.mxu0 %v5653_v15  ;;  %6379 = vmatprep.subr.mxu1 %v5653_v15 }
 0x340   : > { %v4362_v19 = vld [vmem:[#allocation3] sm:$0xff]  ;;  %v3364_v27 = vadd.f32 %v13014_v53, %v3232_v62  ;;  %v3365_v60 = vadd.f32 %v13015_v25, %v3233_v48  ;;  %6365 = vmatpush3.msra.mxu0 %v5653_v15  ;;  %6387 = vmatpush3.msra.mxu1 %v5653_v15 }
 0x341   : > { %v4494_v9 = vadd.f32 %v11842_v8, %v4362_v19  ;;  %3367 = vst.msk [vmem:[#allocation3 + $0x8] sm:$0xff] %vm1101_vm5, %v3363_v54 }
 0x342   : > { %3368 = vst.msk [vmem:[#allocation3 + $0x10] sm:$0xff] %vm1101_vm5, %v3364_v27  ;;  %3369 = vst.msk [vmem:[#allocation3 + $0x18] sm:$0xff] %vm1101_vm5, %v3365_v60 }
 0x343   : > { %4498 = vst.msk [vmem:[#allocation3] sm:$0xff] %vm1101_vm5, %v4494_v9 }
 0x348   : > { %v3797_v59 = vld [vmem:[#allocation3 + $0x8] sm:$0xff] }
 0x349   : > { %v3929_v13 = vadd.f32 %v3914_v20, %v3797_v59  ;;  %v3798_v37 = vld [vmem:[#allocation3 + $0x10] sm:$0xff]  ;;  %v3799_v47 = vld [vmem:[#allocation3 + $0x18] sm:$0xff] }
 0x34a   : > { %v4928_v11 = vld [vmem:[#allocation3] sm:$0xff] }
 0x34b   : > { %3933 = vst.msk [vmem:[#allocation3 + $0x8] sm:$0xff] %vm1101_vm5, %v3929_v13 }
 0x352   : > { %v4363_v43 = vld [vmem:[#allocation3 + $0x8] sm:$0xff] }
 0x353   : > { %v3919_v40 = vpop.f32.mrf.mxu0  ;;  %v4495_v52 = vadd.f32 %v4480_v49, %v4363_v43 }
 0x354   : > { %v3930_v61 = vadd.f32 %v3919_v40, %v3798_v37 }
 0x355   : > { %v3921_v0 = vpop.f32.mrf.mxu0  ;;  %4499 = vst.msk [vmem:[#allocation3 + $0x8] sm:$0xff] %vm1101_vm5, %v4495_v52 }
 0x356   : > { %3934 = vst.msk [vmem:[#allocation3 + $0x10] sm:$0xff] %vm1101_vm5, %v3930_v61 }
 0x35a   : > { %v4485_v8 = vpop.f32.mrf.mxu1 }
 0x35c   : > { %v4487_v33 = vpop.f32.mrf.mxu1  ;;  %v4929_v3 = vld [vmem:[#allocation3 + $0x8] sm:$0xff] }
 0x35d   : > { %v4364_v14 = vld [vmem:[#allocation3 + $0x10] sm:$0xff] }
 0x35e   : > { %v4496_v36 = vadd.f32 %v4485_v8, %v4364_v14 }
 0x360   : > { %4500 = vst.msk [vmem:[#allocation3 + $0x10] sm:$0xff] %vm1101_vm5, %v4496_v36  ;;  %v6329_v36 = vld [vmem:[%s13020_s21] ss:$0 sm:$0xff] }
 0x367   : > { %v4930_v18 = vld [vmem:[#allocation3 + $0x10] sm:$0xff] }
 0x372   : > { %v3924_v63 = vpop.f32.mrf.mxu0 }
 0x373   : > { %v3931_v26 = vadd.f32 %v3924_v63, %v3799_v47 }
 0x374   : > { %v3926_v2 = vpop.f32.mrf.mxu0 }
 0x375   : > { %3935 = vst.msk [vmem:[#allocation3 + $0x18] sm:$0xff] %vm1101_vm5, %v3931_v26 }
 0x37b   : > { %v4490_v57 = vpop.f32.mrf.mxu1 }
 0x37c   : > { %v4365_v41 = vld [vmem:[#allocation3 + $0x18] sm:$0xff] }
 0x37d   : > { %v4492_v42 = vpop.f32.mrf.mxu1  ;;  %v4497_v34 = vadd.f32 %v4490_v57, %v4365_v41 }
 0x37f   : > { %4501 = vst.msk [vmem:[#allocation3 + $0x18] sm:$0xff] %vm1101_vm5, %v4497_v34 }
 0x386   : > { %v4931_v60 = vld [vmem:[#allocation3 + $0x18] sm:$0xff] }
 0x395   : > { %v5041_v22 = vpop.f32.mrf.mxu0 }
 0x396   : > { %v5060_v16 = vadd.f32 %v5041_v22, %v4928_v11 }
 0x397   : > { %v5043_v32 = vpop.f32.mrf.mxu0 }
 0x398   : > { %5064 = vst.msk [vmem:[#allocation3] sm:$0xff] %vm1101_vm5, %v5060_v16 }
 0x39b   : > { %v5607_v4 = vpop.f32.mrf.mxu1 }
 0x39d   : > { %v5609_v20 = vpop.f32.mrf.mxu1 }
 0x39f   : > { %v5494_v12 = vld [vmem:[#allocation3] sm:$0xff] }
 0x3a0   : > { %v5626_v21 = vadd.f32 %v5607_v4, %v5494_v12 }
 0x3a2   : > { %5630 = vst.msk [vmem:[#allocation3] sm:$0xff] %vm1101_vm5, %v5626_v21 }
 0x3a9   : > { %v5634_v58 = vld [vmem:[#allocation3] sm:$0xff] }
 0x3aa   : > { %v5645_v6 = vadd.f32 %v6328_v45, %v5634_v58 }
 0x3ac   : > { %v5649_v46 = vmax.f32 %v5645_v6, 0.0 }
 0x3ae   : > { %6366 = vmatprep.mubr.msk.f32.mxu0 %vm1101_vm5, %v5649_v46 }
 0x3b6   : > { %v5046_v44 = vpop.f32.mrf.mxu0 }
 0x3b7   : > { %v5061_v55 = vadd.f32 %v5046_v44, %v4929_v3 }
 0x3b8   : > { %v5048_v38 = vpop.f32.mrf.mxu0 }
 0x3b9   : > { %5065 = vst.msk [vmem:[#allocation3 + $0x8] sm:$0xff] %vm1101_vm5, %v5061_v55 }
 0x3be   : > { %v5612_v29 = vpop.f32.mrf.mxu1 }
 0x3c0   : > { %v5495_v50 = vld [vmem:[#allocation3 + $0x8] sm:$0xff]  ;;  %v5614_v28 = vpop.f32.mrf.mxu1 }
 0x3c1   : > { %v5627_v23 = vadd.f32 %v5612_v29, %v5495_v50 }
 0x3c3   : > { %5631 = vst.msk [vmem:[#allocation3 + $0x8] sm:$0xff] %vm1101_vm5, %v5627_v23 }
 0x3ca   : > { %v5635_v35 = vld [vmem:[#allocation3 + $0x8] sm:$0xff] }
 0x3cb   : > { %v5646_v56 = vadd.f32 %v6328_v45, %v5635_v35 }
 0x3cd   : > { %v5650_v49 = vmax.f32 %v5646_v56, 0.0 }
 0x3cf   : > { %6367 = vmatmul.mubr.msk.f32.vlgmr.msra.gmra.mxu0 %vm1101_vm5, %v5650_v49 }
 0x3d5   : > { %v5051_v1 = vpop.f32.mrf.mxu0 }
 0x3d6   : > { %v5062_v5 = vadd.f32 %v5051_v1, %v4930_v18 }
 0x3d7   : > { %v5053_v17 = vpop.f32.mrf.mxu0 }
 0x3d8   : > { %5066 = vst.msk [vmem:[#allocation3 + $0x10] sm:$0xff] %vm1101_vm5, %v5062_v5 }
 0x3dd   : > { %v5617_v54 = vpop.f32.mrf.mxu1 }
 0x3df   : > { %v5496_v62 = vld [vmem:[#allocation3 + $0x10] sm:$0xff]  ;;  %v5619_v19 = vpop.f32.mrf.mxu1 }
 0x3e0   : > { %v5628_v48 = vadd.f32 %v5617_v54, %v5496_v62 }
 0x3e2   : > { %5632 = vst.msk [vmem:[#allocation3 + $0x10] sm:$0xff] %vm1101_vm5, %v5628_v48 }
 0x3e9   : > { %v5636_v53 = vld [vmem:[#allocation3 + $0x10] sm:$0xff] }
 0x3ea   : > { %v5647_v27 = vadd.f32 %v6328_v45, %v5636_v53 }
 0x3ec   : > { %v5651_v25 = vmax.f32 %v5647_v27, 0.0 }
 0x3ee   : > { %6369 = vmatprep.mubr.msk.f32.mxu1 %vm1101_vm5, %v5651_v25 }
 0x3f5   : > { %v5056_v9 = vpop.f32.mrf.mxu0 }
 0x3f6   : > { %v5063_v59 = vadd.f32 %v5056_v9, %v4931_v60 }
 0x3f7   : > { %v5058_v13 = vpop.f32.mrf.mxu0 }
 0x3f8   : > { %5067 = vst.msk [vmem:[#allocation3 + $0x18] sm:$0xff] %vm1101_vm5, %v5063_v59 }
 0x3fe   : > { %v5622_v43 = vpop.f32.mrf.mxu1 }
 0x3ff   : > { %v5497_v37 = vld [vmem:[#allocation3 + $0x18] sm:$0xff] }
 0x400   : > { %v5624_v40 = vpop.f32.mrf.mxu1  ;;  %v5629_v52 = vadd.f32 %v5622_v43, %v5497_v37 }
 0x402   : > { %5633 = vst.msk [vmem:[#allocation3 + $0x18] sm:$0xff] %vm1101_vm5, %v5629_v52 }
 0x409   : > { %v5637_v61 = vld [vmem:[#allocation3 + $0x18] sm:$0xff] }
 0x40a   : > { %v5648_v0 = vadd.f32 %v6328_v45, %v5637_v61 }
 0x40c   : > { %v5652_v8 = vmax.f32 %v5648_v0, 0.0 }
 0x40e   : > { %6370 = vmatmul.mubr.msk.f32.vlgmr.msra.gmra.mxu1 %vm1101_vm5, %v5652_v8 }
 0x48f   : > { %v6368_v14 = vpop.f32.mrf.mxu0 }
 0x490   : > { %v5752_v63 = vadd.f32 %v6368_v14, %v6329_v36 }
 0x491   : > { %v5746_v33 = vpop.f32.mrf.mxu0 }
 0x492   : > { %v5747_v47 = vadd.f32 %v6329_v36, %v5746_v33  ;;  %5766 = vst [vmem:[%s389_s22 + $0x8] sm:$0xff] %v5752_v63 }
 0x494   : > { %5765 = vst [vmem:[%s389_s22] sm:$0xff] %v5747_v47 }
 0x4ce   : > { %v6371_v26 = vpop.f32.mrf.mxu1 }
 0x4cf   : > { %v5762_v41 = vadd.f32 %v6371_v26, %v6329_v36 }
 0x4d0   : > { %v5756_v2 = vpop.f32.mrf.mxu1 }
 0x4d1   : > { %v5757_v57 = vadd.f32 %v6329_v36, %v5756_v2  ;;  %5768 = vst [vmem:[%s389_s22 + $0x18] sm:$0xff] %v5762_v41 }
 0x4d3   : > { %5767 = vst [vmem:[%s389_s22 + $0x10] sm:$0xff] %v5757_v57 }
 0x4d4 PF: > { %s13022_s26 = sld [smem:[#allocation13_spill]] }
 0x4d5   : > { %s13023_s24 = sld [smem:[#allocation11_spill]] }
 0x4d6   : > { %s13024_s25 = sld [smem:[#allocation14_spill]] }
 0x4da   : > { %p16_p9 = scmp.ge.s32.totalorder %s13022_s26, 4  }
 0x4dc   :  { %18 = sbr.rel (!%p16_p9) target bundleno = 12 (0xc), region = 140 }
 0x4e1   :  { %5791 = vsyncpa [#allocation6], 1 }
 0x4e2   :  { %5793 = vsyncpa [#allocation6 + $0x1], 1 }
 0x4e3   :  { %5794 = vsyncpa [#allocation8], 1 }

</bundles_post_ra>
